<compile_context>
chip_gen: v5e
topology: v5e:2x2
jax: 0.10.0
libtpu: 0.0.40
codegen_flags: <defaults>
</compile_context>

<pallas_src>
import functools

import jax
import jax.numpy as jnp
from jax.experimental import pallas as pl
from jax.experimental.pallas import tpu as pltpu


# ---------------------------------------------------------------------------
# tiling helper
# ---------------------------------------------------------------------------
def _pick_tile(dim, cap, align):
    """Largest multiple of `align` that divides `dim`, capped at `cap`.
    Falls back to the full dimension (always a legal block size)."""
    if dim <= align or dim % align != 0:
        return dim
    t = min(cap, dim)
    t -= t % align
    while t > align and dim % t != 0:
        t -= align
    return t


# ---------------------------------------------------------------------------
# Pallas batched GEMM (full-K blocks, bf16 operands, f32 accumulation,
# optional fused tanh epilogue)
# ---------------------------------------------------------------------------
def _bmm_kernel(a_ref, b_ref, o_ref, *, activation):
    acc = jnp.dot(a_ref[...], b_ref[...], preferred_element_type=jnp.float32)
    if activation == "tanh":
        acc = jnp.tanh(acc)
    o_ref[...] = acc.astype(o_ref.dtype)


def pallas_bmm(a, b, *, activation=None, out_dtype=jnp.bfloat16,
               tm_cap=256, tn_cap=256):
    """a: (P, M, K), b: (P, K, N) -> (P, M, N).

    K is kept fully resident per block (K <= 2048 for every layer of this
    generator), so there is no reduction grid axis, no accumulator scratch,
    and every grid step is one independent (tm x K)x(K x tn) MXU tile.
    """
    P, M, K = a.shape
    P2, K2, N = b.shape
    assert P == P2 and K == K2
    tm = _pick_tile(M, tm_cap, 8)     # sublane axis: x8 (or full dim)
    tn = _pick_tile(N, tn_cap, 128)   # lane axis: x128 (or full dim, e.g. 64/3)
    grid = (P, M // tm, N // tn)

    kernel = functools.partial(_bmm_kernel, activation=activation)
    return pl.pallas_call(
        kernel,
        out_shape=jax.ShapeDtypeStruct((P, M, N), out_dtype),
        grid_spec=pltpu.PrefetchScalarGridSpec(
            num_scalar_prefetch=0,
            grid=grid,
            in_specs=[
                pl.BlockSpec((None, tm, K), lambda p, i, j: (p, i, 0)),
                pl.BlockSpec((None, K, tn), lambda p, i, j: (p, 0, j)),
            ],
            out_specs=pl.BlockSpec((None, tm, tn), lambda p, i, j: (p, i, j)),
        ),
        compiler_params=pltpu.CompilerParams(
            dimension_semantics=("parallel", "parallel", "parallel"),
        ),
    )(a, b)


# ---------------------------------------------------------------------------
# BatchNorm2d (training batch stats, gamma=1, beta=0) + ReLU
#   pass 1: tiled per-channel sum / sum-of-squares reduction (grid accumulator)
#   pass 2: tiled fused normalize + ReLU
# Rows are folded into lanes when C < 128 so all loads/stores are lane-dense.
# ---------------------------------------------------------------------------
def _bn_stats_kernel(x_ref, sum_ref, sq_ref):
    @pl.when(pl.program_id(0) == 0)
    def _():
        sum_ref[...] = jnp.zeros_like(sum_ref)
        sq_ref[...] = jnp.zeros_like(sq_ref)

    x = x_ref[...].astype(jnp.float32)
    sum_ref[...] += jnp.sum(x, axis=0, keepdims=True)
    sq_ref[...] += jnp.sum(x * x, axis=0, keepdims=True)


def _bn_apply_kernel(x_ref, scale_ref, shift_ref, o_ref):
    x = x_ref[...].astype(jnp.float32)
    o_ref[...] = jnp.maximum(x * scale_ref[...] + shift_ref[...],
                             0.0).astype(o_ref.dtype)


def bn_relu(x_nhwc, eps=1e-5, row_cap=512):
    N, H, W, C = x_nhwc.shape
    M = N * H * W

    fold = 1
    if C < 128:                       # fold rows into lanes -> lane-dense tiles
        f = 128 // C
        while f > 1 and M % f:
            f //= 2
        fold = f
    Mf, Cf = M // fold, C * fold
    x2 = x_nhwc.reshape(Mf, Cf)

    rm = _pick_tile(Mf, row_cap, 8)
    grid = (Mf // rm,)

    s, sq = pl.pallas_call(
        _bn_stats_kernel,
        out_shape=(jax.ShapeDtypeStruct((1, Cf), jnp.float32),
                   jax.ShapeDtypeStruct((1, Cf), jnp.float32)),
        grid_spec=pltpu.PrefetchScalarGridSpec(
            num_scalar_prefetch=0,
            grid=grid,
            in_specs=[pl.BlockSpec((rm, Cf), lambda i: (i, 0))],
            out_specs=(pl.BlockSpec((1, Cf), lambda i: (0, 0)),
                       pl.BlockSpec((1, Cf), lambda i: (0, 0))),
        ),
        compiler_params=pltpu.CompilerParams(
            dimension_semantics=("arbitrary",)),
    )(x2)

    # unfold the folded-lane partial sums back to per-channel totals
    s_c = s.reshape(fold, C).sum(axis=0)
    sq_c = sq.reshape(fold, C).sum(axis=0)
    mean = s_c / M
    # NOTE: E[x^2] - mean^2 in f32; fine at DCGAN activation scales.
    var = jnp.maximum(sq_c / M - mean * mean, 0.0)
    scale_c = jax.lax.rsqrt(var + eps)            # gamma = 1
    shift_c = -mean * scale_c                     # beta  = 0
    scale = jnp.tile(scale_c, fold).reshape(1, Cf)
    shift = jnp.tile(shift_c, fold).reshape(1, Cf)

    out = pl.pallas_call(
        _bn_apply_kernel,
        out_shape=jax.ShapeDtypeStruct((Mf, Cf), x_nhwc.dtype),
        grid_spec=pltpu.PrefetchScalarGridSpec(
            num_scalar_prefetch=0,
            grid=grid,
            in_specs=[pl.BlockSpec((rm, Cf), lambda i: (i, 0)),
                      pl.BlockSpec((1, Cf), lambda i: (0, 0)),
                      pl.BlockSpec((1, Cf), lambda i: (0, 0))],
            out_specs=pl.BlockSpec((rm, Cf), lambda i: (i, 0)),
        ),
        compiler_params=pltpu.CompilerParams(
            dimension_semantics=("parallel",)),
    )(x2, scale, shift)
    return out.reshape(N, H, W, C)


# ---------------------------------------------------------------------------
# ConvTranspose2d(k=4, stride=2, pad=1, bias=False) via sub-pixel phases.
#   y[n, 2oy+ry, 2ox+rx, co] =
#       sum_{u,v,ci} x[n, oy+ry-1+u, ox+rx-1+v, ci] * W[ci, co, 3-ry-2u, 3-rx-2v]
# i.e. 4 dense 2x2 convolutions (one per (ry, rx) phase), then pixel shuffle.
# ---------------------------------------------------------------------------
def conv_transpose_s2(x, w_phase, *, activation=None, out_dtype=jnp.bfloat16):
    """x: (N, H, W, Ci) bf16; w_phase: (4, 4*Ci, Co) bf16 -> (N, 2H, 2W, Co)."""
    N, H, W, Ci = x.shape
    Co = w_phase.shape[-1]

    xp = jnp.pad(x, ((0, 0), (1, 1), (1, 1), (0, 0)))        # spatial pad 1
    phases = []
    for ry in range(2):
        for rx in range(2):
            taps = [xp[:, ry + u:ry + u + H, rx + v:rx + v + W, :]
                    for u in range(2) for v in range(2)]
            a = jnp.stack(taps, axis=3)                       # (N,H,W,4,Ci)
            phases.append(a.reshape(N * H * W, 4 * Ci))
    a_all = jnp.stack(phases, axis=0)                          # (4, M, 4Ci)

    y = pallas_bmm(a_all, w_phase, activation=activation, out_dtype=out_dtype)

    # pixel shuffle: (ry, rx, n, oy, ox, co) -> (n, 2oy+ry, 2ox+rx, co)
    y = y.reshape(2, 2, N, H, W, Co)
    y = jnp.transpose(y, (2, 3, 0, 4, 1, 5)).reshape(N, 2 * H, 2 * W, Co)
    return y


# ---------------------------------------------------------------------------
# Weight preparation (PyTorch ConvTranspose2d layout (Ci, Co, kH, kW) -> GEMM)
# ---------------------------------------------------------------------------
def prepare_params(params, dtype=jnp.bfloat16):
    k = 4
    prep = {}
    # proj: 1x1 input, stride 1, pad 0 -> one (Ci, k*k*Co) matrix
    w = params["proj"]                                        # (100, 512, 4, 4)
    prep["proj"] = jnp.transpose(w, (0, 2, 3, 1)).reshape(
        w.shape[0], k * k * w.shape[1]).astype(dtype)
    # stride-2 layers: 4 sub-pixel phase matrices, each (4*Ci, Co)
    for name in ("conv1", "conv2", "conv3", "conv4"):
        w = params[name]                                      # (Ci, Co, 4, 4)
        Ci, Co = w.shape[0], w.shape[1]
        mats = []
        for ry in range(2):
            for rx in range(2):
                taps = [w[:, :, (k - 1 - ry) - 2 * u, (k - 1 - rx) - 2 * v]
                        for u in range(2) for v in range(2)]
                mats.append(jnp.stack(taps, axis=0).reshape(4 * Ci, Co))
        prep[name] = jnp.stack(mats, axis=0).astype(dtype)    # (4, 4Ci, Co)
    return prep


# ---------------------------------------------------------------------------
# Generator forward
# ---------------------------------------------------------------------------
def generator_forward(z_nchw, params):
    prep = prepare_params(params)
    n = z_nchw.shape[0]
    z = z_nchw.reshape(n, -1).astype(jnp.bfloat16)            # (N, 100)

    # proj: ConvTranspose2d(100, 512, 4, 1, 0) on a 1x1 input == a single GEMM
    x = pallas_bmm(z[None], prep["proj"][None], tn_cap=2048)[0]
    x = x.reshape(n, 4, 4, 512)                               # (N, 4, 4, 512)

    x = conv_transpose_s2(bn_relu(x), prep["conv1"])          # (N, 8, 8, 256)
    x = conv_transpose_s2(bn_relu(x), prep["conv2"])          # (N, 16, 16, 128)
    x = conv_transpose_s2(bn_relu(x), prep["conv3"])          # (N, 32, 32, 64)
    x = conv_transpose_s2(bn_relu(x), prep["conv4"],
                          activation="tanh", out_dtype=jnp.float32)
    return jnp.transpose(x, (0, 3, 1, 2))                     # NHWC -> NCHW


def init_params(key):
    # PyTorch ConvTranspose2d weight layout: (in_channels, out_channels, kH, kW)
    shapes = {
        "proj": (100, 512, 4, 4),
        "conv1": (512, 256, 4, 4),
        "conv2": (256, 128, 4, 4),
        "conv3": (128, 64, 4, 4),
        "conv4": (64, 3, 4, 4),
    }
    params = {}
    for name, shp in shapes.items():
        key, sub = jax.random.split(key)
        params[name] = 0.02 * jax.random.normal(sub, shp, jnp.float32)
    return params


if __name__ == "__main__":
    key = jax.random.PRNGKey(0)
    kz, kp = jax.random.split(key)
    z = jax.random.normal(kz, (2, 100, 1, 1), jnp.float32)    # batch=2, latent=100
    params = init_params(kp)

    out = jax.jit(generator_forward)(z, params)
    out = jax.block_until_ready(out)

    assert out.shape == (2, 3, 64, 64), out.shape
    assert bool(jnp.all(jnp.isfinite(out)))
    assert bool(jnp.all(jnp.abs(out) <= 1.0))                 # tanh range
    print("KERNEL_OK")
</pallas_src>

<mosaic_0001>
module attributes {stable_mosaic.version = 11 : i64} {
  func.func @_bmm_kernel(%arg0: i32, %arg1: i32, %arg2: i32, %arg3: memref<1x2x100xbf16, #tpu.memory_space<vmem>>, %arg4: memref<1x100x2048xbf16, #tpu.memory_space<vmem>>, %arg5: memref<1x2x2048xbf16, #tpu.memory_space<vmem>>) attributes {dimension_semantics = [#tpu.dimension_semantics<parallel>, #tpu.dimension_semantics<parallel>, #tpu.dimension_semantics<parallel>], iteration_bounds = array<i64: 1, 1, 4>, scalar_prefetch = 0 : i64, scratch_operands = 0 : i64, tpu.core_type = #tpu.core_type<tc>, window_params = [{transform_indices = @transform_0, window_bounds = array<i64: 1, 2, 100>}, {transform_indices = @transform_1, window_bounds = array<i64: 1, 100, 2048>}, {transform_indices = @transform_2, window_bounds = array<i64: 1, 2, 2048>}]} {
    %c0 = arith.constant 0 : index
    %c0_0 = arith.constant 0 : index
    %c0_1 = arith.constant 0 : index
    %0 = vector.load %arg3[%c0, %c0_0, %c0_1] : memref<1x2x100xbf16, #tpu.memory_space<vmem>>, vector<1x2x100xbf16>
    %1 = vector.shape_cast %0 : vector<1x2x100xbf16> to vector<2x100xbf16>
    %c0_2 = arith.constant 0 : index
    %c0_3 = arith.constant 0 : index
    %c0_4 = arith.constant 0 : index
    %2 = vector.load %arg4[%c0_2, %c0_3, %c0_4] : memref<1x100x2048xbf16, #tpu.memory_space<vmem>>, vector<1x100x2048xbf16>
    %3 = vector.shape_cast %2 : vector<1x100x2048xbf16> to vector<100x2048xbf16>
    %cst = arith.constant dense<0.000000e+00> : vector<2x2048xf32>
    %4 = tpu.matmul %1, %3, %cst {dimension_numbers = #tpu.dot_dimension_numbers<[1], [0], [0], [1], [0, 0, 1, 1], [], []>} : vector<2x100xbf16>, vector<100x2048xbf16>, vector<2x2048xf32> -> vector<2x2048xf32>
    %5 = arith.truncf %4 : vector<2x2048xf32> to vector<2x2048xbf16>
    %c0_5 = arith.constant 0 : index
    %c0_6 = arith.constant 0 : index
    %c0_7 = arith.constant 0 : index
    %6 = vector.load %arg5[%c0_5, %c0_6, %c0_7] : memref<1x2x2048xbf16, #tpu.memory_space<vmem>>, vector<1x2x2048xbf16>
    %7 = vector.shape_cast %6 : vector<1x2x2048xbf16> to vector<2x2048xbf16>
    %8 = vector.shape_cast %5 : vector<2x2048xbf16> to vector<1x2x2048xbf16>
    tpu.vector_store %arg5[%c0_5, %c0_6, %c0_7], %8 {strides = array<i32>} : memref<1x2x2048xbf16, #tpu.memory_space<vmem>>, vector<1x2x2048xbf16>,
    return
  }
  func.func @transform_0(%arg0: i32, %arg1: i32, %arg2: i32) -> (i32, i32, i32) {
    %c0_i32 = arith.constant 0 : i32
    %c0_i32_0 = arith.constant 0 : i32
    return %arg0, %arg1, %c0_i32 : i32, i32, i32
  }
  func.func @transform_1(%arg0: i32, %arg1: i32, %arg2: i32) -> (i32, i32, i32) {
    %c0_i32 = arith.constant 0 : i32
    %c0_i32_0 = arith.constant 0 : i32
    return %arg0, %c0_i32, %arg2 : i32, i32, i32
  }
  func.func @transform_2(%arg0: i32, %arg1: i32, %arg2: i32) -> (i32, i32, i32) {
    %c0_i32 = arith.constant 0 : i32
    return %arg0, %arg1, %arg2 : i32, i32, i32
  }
}

module attributes {stable_mosaic.version = 11 : i64} {
  func.func @_bn_stats_kernel(%arg0: i32, %arg1: memref<32x512xbf16, #tpu.memory_space<vmem>>, %arg2: memref<1x512xf32, #tpu.memory_space<vmem>>, %arg3: memref<1x512xf32, #tpu.memory_space<vmem>>) attributes {dimension_semantics = [#tpu.dimension_semantics<arbitrary>], iteration_bounds = array<i64: 1>, scalar_prefetch = 0 : i64, scratch_operands = 0 : i64, tpu.core_type = #tpu.core_type<tc>, window_params = [{transform_indices = @transform_0, window_bounds = array<i64: 32, 512>}, {pipeline_mode = #tpu.pipeline_mode<synchronous>, transform_indices = @transform_1, window_bounds = array<i64: 1, 512>}, {pipeline_mode = #tpu.pipeline_mode<synchronous>, transform_indices = @transform_2, window_bounds = array<i64: 1, 512>}]} {
    %c0_i32 = arith.constant 0 : i32
    %0 = arith.cmpi eq, %arg0, %c0_i32 : i32
    %1 = arith.extui %0 : i1 to i32
    %c0_i32_0 = arith.constant 0 : i32
    %2 = arith.cmpi ne, %1, %c0_i32_0 : i32
    scf.if %2 {
      %cst_11 = arith.constant 0.000000e+00 : f32
      %16 = vector.broadcast %cst_11 : f32 to vector<1x512xf32>
      %c0_12 = arith.constant 0 : index
      %c0_13 = arith.constant 0 : index
      %17 = vector.load %arg2[%c0_12, %c0_13] : memref<1x512xf32, #tpu.memory_space<vmem>>, vector<1x512xf32>
      tpu.vector_store %arg2[%c0_12, %c0_13], %16 {strides = array<i32>} : memref<1x512xf32, #tpu.memory_space<vmem>>, vector<1x512xf32>,
      %cst_14 = arith.constant 0.000000e+00 : f32
      %18 = vector.broadcast %cst_14 : f32 to vector<1x512xf32>
      %c0_15 = arith.constant 0 : index
      %c0_16 = arith.constant 0 : index
      %19 = vector.load %arg3[%c0_15, %c0_16] : memref<1x512xf32, #tpu.memory_space<vmem>>, vector<1x512xf32>
      tpu.vector_store %arg3[%c0_15, %c0_16], %18 {strides = array<i32>} : memref<1x512xf32, #tpu.memory_space<vmem>>, vector<1x512xf32>,
    } else {
    }
    %c0 = arith.constant 0 : index
    %c0_1 = arith.constant 0 : index
    %3 = vector.load %arg1[%c0, %c0_1] : memref<32x512xbf16, #tpu.memory_space<vmem>>, vector<32x512xbf16>
    %4 = arith.extf %3 : vector<32x512xbf16> to vector<32x512xf32>
    %c0_2 = arith.constant 0 : index
    %c0_3 = arith.constant 0 : index
    %5 = vector.load %arg2[%c0_2, %c0_3] : memref<1x512xf32, #tpu.memory_space<vmem>>, vector<1x512xf32>
    %cst = arith.constant dense<0.000000e+00> : vector<512xf32>
    %6 = vector.multi_reduction <add>, %4, %cst [0] : vector<32x512xf32> to vector<512xf32>
    %7 = vector.shape_cast %6 : vector<512xf32> to vector<1x512xf32>
    %8 = arith.addf %5, %7 : vector<1x512xf32>
    %c0_4 = arith.constant 0 : index
    %c0_5 = arith.constant 0 : index
    %9 = vector.load %arg2[%c0_4, %c0_5] : memref<1x512xf32, #tpu.memory_space<vmem>>, vector<1x512xf32>
    tpu.vector_store %arg2[%c0_4, %c0_5], %8 {strides = array<i32>} : memref<1x512xf32, #tpu.memory_space<vmem>>, vector<1x512xf32>,
    %c0_6 = arith.constant 0 : index
    %c0_7 = arith.constant 0 : index
    %10 = vector.load %arg3[%c0_6, %c0_7] : memref<1x512xf32, #tpu.memory_space<vmem>>, vector<1x512xf32>
    %11 = arith.mulf %4, %4 : vector<32x512xf32>
    %cst_8 = arith.constant dense<0.000000e+00> : vector<512xf32>
    %12 = vector.multi_reduction <add>, %11, %cst_8 [0] : vector<32x512xf32> to vector<512xf32>
    %13 = vector.shape_cast %12 : vector<512xf32> to vector<1x512xf32>
    %14 = arith.addf %10, %13 : vector<1x512xf32>
    %c0_9 = arith.constant 0 : index
    %c0_10 = arith.constant 0 : index
    %15 = vector.load %arg3[%c0_9, %c0_10] : memref<1x512xf32, #tpu.memory_space<vmem>>, vector<1x512xf32>
    tpu.vector_store %arg3[%c0_9, %c0_10], %14 {strides = array<i32>} : memref<1x512xf32, #tpu.memory_space<vmem>>, vector<1x512xf32>,
    return
  }
  func.func @transform_0(%arg0: i32) -> (i32, i32) {
    %c0_i32 = arith.constant 0 : i32
    %c0_i32_0 = arith.constant 0 : i32
    return %arg0, %c0_i32 : i32, i32
  }
  func.func @transform_1(%arg0: i32) -> (i32, i32) {
    %c0_i32 = arith.constant 0 : i32
    %c0_i32_0 = arith.constant 0 : i32
    %c0_i32_1 = arith.constant 0 : i32
    return %c0_i32, %c0_i32_0 : i32, i32
  }
  func.func @transform_2(%arg0: i32) -> (i32, i32) {
    %c0_i32 = arith.constant 0 : i32
    %c0_i32_0 = arith.constant 0 : i32
    %c0_i32_1 = arith.constant 0 : i32
    return %c0_i32, %c0_i32_0 : i32, i32
  }
}

module attributes {stable_mosaic.version = 11 : i64} {
  func.func @_bn_apply_kernel(%arg0: i32, %arg1: memref<32x512xbf16, #tpu.memory_space<vmem>>, %arg2: memref<1x512xf32, #tpu.memory_space<vmem>>, %arg3: memref<1x512xf32, #tpu.memory_space<vmem>>, %arg4: memref<32x512xbf16, #tpu.memory_space<vmem>>) attributes {dimension_semantics = [#tpu.dimension_semantics<parallel>], iteration_bounds = array<i64: 1>, scalar_prefetch = 0 : i64, scratch_operands = 0 : i64, tpu.core_type = #tpu.core_type<tc>, window_params = [{transform_indices = @transform_0, window_bounds = array<i64: 32, 512>}, {pipeline_mode = #tpu.pipeline_mode<synchronous>, transform_indices = @transform_1, window_bounds = array<i64: 1, 512>}, {pipeline_mode = #tpu.pipeline_mode<synchronous>, transform_indices = @transform_2, window_bounds = array<i64: 1, 512>}, {transform_indices = @transform_3, window_bounds = array<i64: 32, 512>}]} {
    %c0 = arith.constant 0 : index
    %c0_0 = arith.constant 0 : index
    %0 = vector.load %arg1[%c0, %c0_0] : memref<32x512xbf16, #tpu.memory_space<vmem>>, vector<32x512xbf16>
    %1 = arith.extf %0 : vector<32x512xbf16> to vector<32x512xf32>
    %c0_1 = arith.constant 0 : index
    %c0_2 = arith.constant 0 : index
    %2 = vector.load %arg2[%c0_1, %c0_2] : memref<1x512xf32, #tpu.memory_space<vmem>>, vector<1x512xf32>
    %3 = vector.broadcast %2 : vector<1x512xf32> to vector<32x512xf32>
    %4 = arith.mulf %1, %3 : vector<32x512xf32>
    %c0_3 = arith.constant 0 : index
    %c0_4 = arith.constant 0 : index
    %5 = vector.load %arg3[%c0_3, %c0_4] : memref<1x512xf32, #tpu.memory_space<vmem>>, vector<1x512xf32>
    %6 = vector.broadcast %5 : vector<1x512xf32> to vector<32x512xf32>
    %7 = arith.addf %4, %6 : vector<32x512xf32>
    %cst = arith.constant 0.000000e+00 : f32
    %8 = vector.broadcast %cst : f32 to vector<32x512xf32>
    %9 = arith.maximumf %7, %8 : vector<32x512xf32>
    %10 = arith.truncf %9 : vector<32x512xf32> to vector<32x512xbf16>
    %c0_5 = arith.constant 0 : index
    %c0_6 = arith.constant 0 : index
    %11 = vector.load %arg4[%c0_5, %c0_6] : memref<32x512xbf16, #tpu.memory_space<vmem>>, vector<32x512xbf16>
    tpu.vector_store %arg4[%c0_5, %c0_6], %10 {strides = array<i32>} : memref<32x512xbf16, #tpu.memory_space<vmem>>, vector<32x512xbf16>,
    return
  }
  func.func @transform_0(%arg0: i32) -> (i32, i32) {
    %c0_i32 = arith.constant 0 : i32
    %c0_i32_0 = arith.constant 0 : i32
    return %arg0, %c0_i32 : i32, i32
  }
  func.func @transform_1(%arg0: i32) -> (i32, i32) {
    %c0_i32 = arith.constant 0 : i32
    %c0_i32_0 = arith.constant 0 : i32
    %c0_i32_1 = arith.constant 0 : i32
    return %c0_i32, %c0_i32_0 : i32, i32
  }
  func.func @transform_2(%arg0: i32) -> (i32, i32) {
    %c0_i32 = arith.constant 0 : i32
    %c0_i32_0 = arith.constant 0 : i32
    %c0_i32_1 = arith.constant 0 : i32
    return %c0_i32, %c0_i32_0 : i32, i32
  }
  func.func @transform_3(%arg0: i32) -> (i32, i32) {
    %c0_i32 = arith.constant 0 : i32
    %c0_i32_0 = arith.constant 0 : i32
    return %arg0, %c0_i32 : i32, i32
  }
}

module attributes {stable_mosaic.version = 11 : i64} {
  func.func @_bmm_kernel(%arg0: i32, %arg1: i32, %arg2: i32, %arg3: memref<1x32x2048xbf16, #tpu.memory_space<vmem>>, %arg4: memref<1x2048x256xbf16, #tpu.memory_space<vmem>>, %arg5: memref<1x32x256xbf16, #tpu.memory_space<vmem>>) attributes {dimension_semantics = [#tpu.dimension_semantics<parallel>, #tpu.dimension_semantics<parallel>, #tpu.dimension_semantics<parallel>], iteration_bounds = array<i64: 4, 1, 1>, scalar_prefetch = 0 : i64, scratch_operands = 0 : i64, tpu.core_type = #tpu.core_type<tc>, window_params = [{transform_indices = @transform_0, window_bounds = array<i64: 1, 32, 2048>}, {transform_indices = @transform_1, window_bounds = array<i64: 1, 2048, 256>}, {transform_indices = @transform_2, window_bounds = array<i64: 1, 32, 256>}]} {
    %c0 = arith.constant 0 : index
    %c0_0 = arith.constant 0 : index
    %c0_1 = arith.constant 0 : index
    %0 = vector.load %arg3[%c0, %c0_0, %c0_1] : memref<1x32x2048xbf16, #tpu.memory_space<vmem>>, vector<1x32x2048xbf16>
    %1 = vector.shape_cast %0 : vector<1x32x2048xbf16> to vector<32x2048xbf16>
    %c0_2 = arith.constant 0 : index
    %c0_3 = arith.constant 0 : index
    %c0_4 = arith.constant 0 : index
    %2 = vector.load %arg4[%c0_2, %c0_3, %c0_4] : memref<1x2048x256xbf16, #tpu.memory_space<vmem>>, vector<1x2048x256xbf16>
    %3 = vector.shape_cast %2 : vector<1x2048x256xbf16> to vector<2048x256xbf16>
    %cst = arith.constant dense<0.000000e+00> : vector<32x256xf32>
    %4 = tpu.matmul %1, %3, %cst {dimension_numbers = #tpu.dot_dimension_numbers<[1], [0], [0], [1], [0, 0, 1, 1], [], []>} : vector<32x2048xbf16>, vector<2048x256xbf16>, vector<32x256xf32> -> vector<32x256xf32>
    %5 = arith.truncf %4 : vector<32x256xf32> to vector<32x256xbf16>
    %c0_5 = arith.constant 0 : index
    %c0_6 = arith.constant 0 : index
    %c0_7 = arith.constant 0 : index
    %6 = vector.load %arg5[%c0_5, %c0_6, %c0_7] : memref<1x32x256xbf16, #tpu.memory_space<vmem>>, vector<1x32x256xbf16>
    %7 = vector.shape_cast %6 : vector<1x32x256xbf16> to vector<32x256xbf16>
    %8 = vector.shape_cast %5 : vector<32x256xbf16> to vector<1x32x256xbf16>
    tpu.vector_store %arg5[%c0_5, %c0_6, %c0_7], %8 {strides = array<i32>} : memref<1x32x256xbf16, #tpu.memory_space<vmem>>, vector<1x32x256xbf16>,
    return
  }
  func.func @transform_0(%arg0: i32, %arg1: i32, %arg2: i32) -> (i32, i32, i32) {
    %c0_i32 = arith.constant 0 : i32
    %c0_i32_0 = arith.constant 0 : i32
    return %arg0, %arg1, %c0_i32 : i32, i32, i32
  }
  func.func @transform_1(%arg0: i32, %arg1: i32, %arg2: i32) -> (i32, i32, i32) {
    %c0_i32 = arith.constant 0 : i32
    %c0_i32_0 = arith.constant 0 : i32
    return %arg0, %c0_i32, %arg2 : i32, i32, i32
  }
  func.func @transform_2(%arg0: i32, %arg1: i32, %arg2: i32) -> (i32, i32, i32) {
    %c0_i32 = arith.constant 0 : i32
    return %arg0, %arg1, %arg2 : i32, i32, i32
  }
}

module attributes {stable_mosaic.version = 11 : i64} {
  func.func @_bn_stats_kernel(%arg0: i32, %arg1: memref<128x256xbf16, #tpu.memory_space<vmem>>, %arg2: memref<1x256xf32, #tpu.memory_space<vmem>>, %arg3: memref<1x256xf32, #tpu.memory_space<vmem>>) attributes {dimension_semantics = [#tpu.dimension_semantics<arbitrary>], iteration_bounds = array<i64: 1>, scalar_prefetch = 0 : i64, scratch_operands = 0 : i64, tpu.core_type = #tpu.core_type<tc>, window_params = [{transform_indices = @transform_0, window_bounds = array<i64: 128, 256>}, {pipeline_mode = #tpu.pipeline_mode<synchronous>, transform_indices = @transform_1, window_bounds = array<i64: 1, 256>}, {pipeline_mode = #tpu.pipeline_mode<synchronous>, transform_indices = @transform_2, window_bounds = array<i64: 1, 256>}]} {
    %c0_i32 = arith.constant 0 : i32
    %0 = arith.cmpi eq, %arg0, %c0_i32 : i32
    %1 = arith.extui %0 : i1 to i32
    %c0_i32_0 = arith.constant 0 : i32
    %2 = arith.cmpi ne, %1, %c0_i32_0 : i32
    scf.if %2 {
      %cst_11 = arith.constant 0.000000e+00 : f32
      %16 = vector.broadcast %cst_11 : f32 to vector<1x256xf32>
      %c0_12 = arith.constant 0 : index
      %c0_13 = arith.constant 0 : index
      %17 = vector.load %arg2[%c0_12, %c0_13] : memref<1x256xf32, #tpu.memory_space<vmem>>, vector<1x256xf32>
      tpu.vector_store %arg2[%c0_12, %c0_13], %16 {strides = array<i32>} : memref<1x256xf32, #tpu.memory_space<vmem>>, vector<1x256xf32>,
      %cst_14 = arith.constant 0.000000e+00 : f32
      %18 = vector.broadcast %cst_14 : f32 to vector<1x256xf32>
      %c0_15 = arith.constant 0 : index
      %c0_16 = arith.constant 0 : index
      %19 = vector.load %arg3[%c0_15, %c0_16] : memref<1x256xf32, #tpu.memory_space<vmem>>, vector<1x256xf32>
      tpu.vector_store %arg3[%c0_15, %c0_16], %18 {strides = array<i32>} : memref<1x256xf32, #tpu.memory_space<vmem>>, vector<1x256xf32>,
    } else {
    }
    %c0 = arith.constant 0 : index
    %c0_1 = arith.constant 0 : index
    %3 = vector.load %arg1[%c0, %c0_1] : memref<128x256xbf16, #tpu.memory_space<vmem>>, vector<128x256xbf16>
    %4 = arith.extf %3 : vector<128x256xbf16> to vector<128x256xf32>
    %c0_2 = arith.constant 0 : index
    %c0_3 = arith.constant 0 : index
    %5 = vector.load %arg2[%c0_2, %c0_3] : memref<1x256xf32, #tpu.memory_space<vmem>>, vector<1x256xf32>
    %cst = arith.constant dense<0.000000e+00> : vector<256xf32>
    %6 = vector.multi_reduction <add>, %4, %cst [0] : vector<128x256xf32> to vector<256xf32>
    %7 = vector.shape_cast %6 : vector<256xf32> to vector<1x256xf32>
    %8 = arith.addf %5, %7 : vector<1x256xf32>
    %c0_4 = arith.constant 0 : index
    %c0_5 = arith.constant 0 : index
    %9 = vector.load %arg2[%c0_4, %c0_5] : memref<1x256xf32, #tpu.memory_space<vmem>>, vector<1x256xf32>
    tpu.vector_store %arg2[%c0_4, %c0_5], %8 {strides = array<i32>} : memref<1x256xf32, #tpu.memory_space<vmem>>, vector<1x256xf32>,
    %c0_6 = arith.constant 0 : index
    %c0_7 = arith.constant 0 : index
    %10 = vector.load %arg3[%c0_6, %c0_7] : memref<1x256xf32, #tpu.memory_space<vmem>>, vector<1x256xf32>
    %11 = arith.mulf %4, %4 : vector<128x256xf32>
    %cst_8 = arith.constant dense<0.000000e+00> : vector<256xf32>
    %12 = vector.multi_reduction <add>, %11, %cst_8 [0] : vector<128x256xf32> to vector<256xf32>
    %13 = vector.shape_cast %12 : vector<256xf32> to vector<1x256xf32>
    %14 = arith.addf %10, %13 : vector<1x256xf32>
    %c0_9 = arith.constant 0 : index
    %c0_10 = arith.constant 0 : index
    %15 = vector.load %arg3[%c0_9, %c0_10] : memref<1x256xf32, #tpu.memory_space<vmem>>, vector<1x256xf32>
    tpu.vector_store %arg3[%c0_9, %c0_10], %14 {strides = array<i32>} : memref<1x256xf32, #tpu.memory_space<vmem>>, vector<1x256xf32>,
    return
  }
  func.func @transform_0(%arg0: i32) -> (i32, i32) {
    %c0_i32 = arith.constant 0 : i32
    %c0_i32_0 = arith.constant 0 : i32
    return %arg0, %c0_i32 : i32, i32
  }
  func.func @transform_1(%arg0: i32) -> (i32, i32) {
    %c0_i32 = arith.constant 0 : i32
    %c0_i32_0 = arith.constant 0 : i32
    %c0_i32_1 = arith.constant 0 : i32
    return %c0_i32, %c0_i32_0 : i32, i32
  }
  func.func @transform_2(%arg0: i32) -> (i32, i32) {
    %c0_i32 = arith.constant 0 : i32
    %c0_i32_0 = arith.constant 0 : i32
    %c0_i32_1 = arith.constant 0 : i32
    return %c0_i32, %c0_i32_0 : i32, i32
  }
}

module attributes {stable_mosaic.version = 11 : i64} {
  func.func @_bn_apply_kernel(%arg0: i32, %arg1: memref<128x256xbf16, #tpu.memory_space<vmem>>, %arg2: memref<1x256xf32, #tpu.memory_space<vmem>>, %arg3: memref<1x256xf32, #tpu.memory_space<vmem>>, %arg4: memref<128x256xbf16, #tpu.memory_space<vmem>>) attributes {dimension_semantics = [#tpu.dimension_semantics<parallel>], iteration_bounds = array<i64: 1>, scalar_prefetch = 0 : i64, scratch_operands = 0 : i64, tpu.core_type = #tpu.core_type<tc>, window_params = [{transform_indices = @transform_0, window_bounds = array<i64: 128, 256>}, {pipeline_mode = #tpu.pipeline_mode<synchronous>, transform_indices = @transform_1, window_bounds = array<i64: 1, 256>}, {pipeline_mode = #tpu.pipeline_mode<synchronous>, transform_indices = @transform_2, window_bounds = array<i64: 1, 256>}, {transform_indices = @transform_3, window_bounds = array<i64: 128, 256>}]} {
    %c0 = arith.constant 0 : index
    %c0_0 = arith.constant 0 : index
    %0 = vector.load %arg1[%c0, %c0_0] : memref<128x256xbf16, #tpu.memory_space<vmem>>, vector<128x256xbf16>
    %1 = arith.extf %0 : vector<128x256xbf16> to vector<128x256xf32>
    %c0_1 = arith.constant 0 : index
    %c0_2 = arith.constant 0 : index
    %2 = vector.load %arg2[%c0_1, %c0_2] : memref<1x256xf32, #tpu.memory_space<vmem>>, vector<1x256xf32>
    %3 = vector.broadcast %2 : vector<1x256xf32> to vector<128x256xf32>
    %4 = arith.mulf %1, %3 : vector<128x256xf32>
    %c0_3 = arith.constant 0 : index
    %c0_4 = arith.constant 0 : index
    %5 = vector.load %arg3[%c0_3, %c0_4] : memref<1x256xf32, #tpu.memory_space<vmem>>, vector<1x256xf32>
    %6 = vector.broadcast %5 : vector<1x256xf32> to vector<128x256xf32>
    %7 = arith.addf %4, %6 : vector<128x256xf32>
    %cst = arith.constant 0.000000e+00 : f32
    %8 = vector.broadcast %cst : f32 to vector<128x256xf32>
    %9 = arith.maximumf %7, %8 : vector<128x256xf32>
    %10 = arith.truncf %9 : vector<128x256xf32> to vector<128x256xbf16>
    %c0_5 = arith.constant 0 : index
    %c0_6 = arith.constant 0 : index
    %11 = vector.load %arg4[%c0_5, %c0_6] : memref<128x256xbf16, #tpu.memory_space<vmem>>, vector<128x256xbf16>
    tpu.vector_store %arg4[%c0_5, %c0_6], %10 {strides = array<i32>} : memref<128x256xbf16, #tpu.memory_space<vmem>>, vector<128x256xbf16>,
    return
  }
  func.func @transform_0(%arg0: i32) -> (i32, i32) {
    %c0_i32 = arith.constant 0 : i32
    %c0_i32_0 = arith.constant 0 : i32
    return %arg0, %c0_i32 : i32, i32
  }
  func.func @transform_1(%arg0: i32) -> (i32, i32) {
    %c0_i32 = arith.constant 0 : i32
    %c0_i32_0 = arith.constant 0 : i32
    %c0_i32_1 = arith.constant 0 : i32
    return %c0_i32, %c0_i32_0 : i32, i32
  }
  func.func @transform_2(%arg0: i32) -> (i32, i32) {
    %c0_i32 = arith.constant 0 : i32
    %c0_i32_0 = arith.constant 0 : i32
    %c0_i32_1 = arith.constant 0 : i32
    return %c0_i32, %c0_i32_0 : i32, i32
  }
  func.func @transform_3(%arg0: i32) -> (i32, i32) {
    %c0_i32 = arith.constant 0 : i32
    %c0_i32_0 = arith.constant 0 : i32
    return %arg0, %c0_i32 : i32, i32
  }
}

module attributes {stable_mosaic.version = 11 : i64} {
  func.func @_bmm_kernel(%arg0: i32, %arg1: i32, %arg2: i32, %arg3: memref<1x128x1024xbf16, #tpu.memory_space<vmem>>, %arg4: memref<1x1024x128xbf16, #tpu.memory_space<vmem>>, %arg5: memref<1x128x128xbf16, #tpu.memory_space<vmem>>) attributes {dimension_semantics = [#tpu.dimension_semantics<parallel>, #tpu.dimension_semantics<parallel>, #tpu.dimension_semantics<parallel>], iteration_bounds = array<i64: 4, 1, 1>, scalar_prefetch = 0 : i64, scratch_operands = 0 : i64, tpu.core_type = #tpu.core_type<tc>, window_params = [{transform_indices = @transform_0, window_bounds = array<i64: 1, 128, 1024>}, {transform_indices = @transform_1, window_bounds = array<i64: 1, 1024, 128>}, {transform_indices = @transform_2, window_bounds = array<i64: 1, 128, 128>}]} {
    %c0 = arith.constant 0 : index
    %c0_0 = arith.constant 0 : index
    %c0_1 = arith.constant 0 : index
    %0 = vector.load %arg3[%c0, %c0_0, %c0_1] : memref<1x128x1024xbf16, #tpu.memory_space<vmem>>, vector<1x128x1024xbf16>
    %1 = vector.shape_cast %0 : vector<1x128x1024xbf16> to vector<128x1024xbf16>
    %c0_2 = arith.constant 0 : index
    %c0_3 = arith.constant 0 : index
    %c0_4 = arith.constant 0 : index
    %2 = vector.load %arg4[%c0_2, %c0_3, %c0_4] : memref<1x1024x128xbf16, #tpu.memory_space<vmem>>, vector<1x1024x128xbf16>
    %3 = vector.shape_cast %2 : vector<1x1024x128xbf16> to vector<1024x128xbf16>
    %cst = arith.constant dense<0.000000e+00> : vector<128x128xf32>
    %4 = tpu.matmul %1, %3, %cst {dimension_numbers = #tpu.dot_dimension_numbers<[1], [0], [0], [1], [0, 0, 1, 1], [], []>} : vector<128x1024xbf16>, vector<1024x128xbf16>, vector<128x128xf32> -> vector<128x128xf32>
    %5 = arith.truncf %4 : vector<128x128xf32> to vector<128x128xbf16>
    %c0_5 = arith.constant 0 : index
    %c0_6 = arith.constant 0 : index
    %c0_7 = arith.constant 0 : index
    %6 = vector.load %arg5[%c0_5, %c0_6, %c0_7] : memref<1x128x128xbf16, #tpu.memory_space<vmem>>, vector<1x128x128xbf16>
    %7 = vector.shape_cast %6 : vector<1x128x128xbf16> to vector<128x128xbf16>
    %8 = vector.shape_cast %5 : vector<128x128xbf16> to vector<1x128x128xbf16>
    tpu.vector_store %arg5[%c0_5, %c0_6, %c0_7], %8 {strides = array<i32>} : memref<1x128x128xbf16, #tpu.memory_space<vmem>>, vector<1x128x128xbf16>,
    return
  }
  func.func @transform_0(%arg0: i32, %arg1: i32, %arg2: i32) -> (i32, i32, i32) {
    %c0_i32 = arith.constant 0 : i32
    %c0_i32_0 = arith.constant 0 : i32
    return %arg0, %arg1, %c0_i32 : i32, i32, i32
  }
  func.func @transform_1(%arg0: i32, %arg1: i32, %arg2: i32) -> (i32, i32, i32) {
    %c0_i32 = arith.constant 0 : i32
    %c0_i32_0 = arith.constant 0 : i32
    return %arg0, %c0_i32, %arg2 : i32, i32, i32
  }
  func.func @transform_2(%arg0: i32, %arg1: i32, %arg2: i32) -> (i32, i32, i32) {
    %c0_i32 = arith.constant 0 : i32
    return %arg0, %arg1, %arg2 : i32, i32, i32
  }
}

module attributes {stable_mosaic.version = 11 : i64} {
  func.func @_bn_stats_kernel(%arg0: i32, %arg1: memref<512x128xbf16, #tpu.memory_space<vmem>>, %arg2: memref<1x128xf32, #tpu.memory_space<vmem>>, %arg3: memref<1x128xf32, #tpu.memory_space<vmem>>) attributes {dimension_semantics = [#tpu.dimension_semantics<arbitrary>], iteration_bounds = array<i64: 1>, scalar_prefetch = 0 : i64, scratch_operands = 0 : i64, tpu.core_type = #tpu.core_type<tc>, window_params = [{transform_indices = @transform_0, window_bounds = array<i64: 512, 128>}, {pipeline_mode = #tpu.pipeline_mode<synchronous>, transform_indices = @transform_1, window_bounds = array<i64: 1, 128>}, {pipeline_mode = #tpu.pipeline_mode<synchronous>, transform_indices = @transform_2, window_bounds = array<i64: 1, 128>}]} {
    %c0_i32 = arith.constant 0 : i32
    %0 = arith.cmpi eq, %arg0, %c0_i32 : i32
    %1 = arith.extui %0 : i1 to i32
    %c0_i32_0 = arith.constant 0 : i32
    %2 = arith.cmpi ne, %1, %c0_i32_0 : i32
    scf.if %2 {
      %cst_11 = arith.constant 0.000000e+00 : f32
      %16 = vector.broadcast %cst_11 : f32 to vector<1x128xf32>
      %c0_12 = arith.constant 0 : index
      %c0_13 = arith.constant 0 : index
      %17 = vector.load %arg2[%c0_12, %c0_13] : memref<1x128xf32, #tpu.memory_space<vmem>>, vector<1x128xf32>
      tpu.vector_store %arg2[%c0_12, %c0_13], %16 {strides = array<i32>} : memref<1x128xf32, #tpu.memory_space<vmem>>, vector<1x128xf32>,
      %cst_14 = arith.constant 0.000000e+00 : f32
      %18 = vector.broadcast %cst_14 : f32 to vector<1x128xf32>
      %c0_15 = arith.constant 0 : index
      %c0_16 = arith.constant 0 : index
      %19 = vector.load %arg3[%c0_15, %c0_16] : memref<1x128xf32, #tpu.memory_space<vmem>>, vector<1x128xf32>
      tpu.vector_store %arg3[%c0_15, %c0_16], %18 {strides = array<i32>} : memref<1x128xf32, #tpu.memory_space<vmem>>, vector<1x128xf32>,
    } else {
    }
    %c0 = arith.constant 0 : index
    %c0_1 = arith.constant 0 : index
    %3 = vector.load %arg1[%c0, %c0_1] : memref<512x128xbf16, #tpu.memory_space<vmem>>, vector<512x128xbf16>
    %4 = arith.extf %3 : vector<512x128xbf16> to vector<512x128xf32>
    %c0_2 = arith.constant 0 : index
    %c0_3 = arith.constant 0 : index
    %5 = vector.load %arg2[%c0_2, %c0_3] : memref<1x128xf32, #tpu.memory_space<vmem>>, vector<1x128xf32>
    %cst = arith.constant dense<0.000000e+00> : vector<128xf32>
    %6 = vector.multi_reduction <add>, %4, %cst [0] : vector<512x128xf32> to vector<128xf32>
    %7 = vector.shape_cast %6 : vector<128xf32> to vector<1x128xf32>
    %8 = arith.addf %5, %7 : vector<1x128xf32>
    %c0_4 = arith.constant 0 : index
    %c0_5 = arith.constant 0 : index
    %9 = vector.load %arg2[%c0_4, %c0_5] : memref<1x128xf32, #tpu.memory_space<vmem>>, vector<1x128xf32>
    tpu.vector_store %arg2[%c0_4, %c0_5], %8 {strides = array<i32>} : memref<1x128xf32, #tpu.memory_space<vmem>>, vector<1x128xf32>,
    %c0_6 = arith.constant 0 : index
    %c0_7 = arith.constant 0 : index
    %10 = vector.load %arg3[%c0_6, %c0_7] : memref<1x128xf32, #tpu.memory_space<vmem>>, vector<1x128xf32>
    %11 = arith.mulf %4, %4 : vector<512x128xf32>
    %cst_8 = arith.constant dense<0.000000e+00> : vector<128xf32>
    %12 = vector.multi_reduction <add>, %11, %cst_8 [0] : vector<512x128xf32> to vector<128xf32>
    %13 = vector.shape_cast %12 : vector<128xf32> to vector<1x128xf32>
    %14 = arith.addf %10, %13 : vector<1x128xf32>
    %c0_9 = arith.constant 0 : index
    %c0_10 = arith.constant 0 : index
    %15 = vector.load %arg3[%c0_9, %c0_10] : memref<1x128xf32, #tpu.memory_space<vmem>>, vector<1x128xf32>
    tpu.vector_store %arg3[%c0_9, %c0_10], %14 {strides = array<i32>} : memref<1x128xf32, #tpu.memory_space<vmem>>, vector<1x128xf32>,
    return
  }
  func.func @transform_0(%arg0: i32) -> (i32, i32) {
    %c0_i32 = arith.constant 0 : i32
    %c0_i32_0 = arith.constant 0 : i32
    return %arg0, %c0_i32 : i32, i32
  }
  func.func @transform_1(%arg0: i32) -> (i32, i32) {
    %c0_i32 = arith.constant 0 : i32
    %c0_i32_0 = arith.constant 0 : i32
    %c0_i32_1 = arith.constant 0 : i32
    return %c0_i32, %c0_i32_0 : i32, i32
  }
  func.func @transform_2(%arg0: i32) -> (i32, i32) {
    %c0_i32 = arith.constant 0 : i32
    %c0_i32_0 = arith.constant 0 : i32
    %c0_i32_1 = arith.constant 0 : i32
    return %c0_i32, %c0_i32_0 : i32, i32
  }
}

module attributes {stable_mosaic.version = 11 : i64} {
  func.func @_bn_apply_kernel(%arg0: i32, %arg1: memref<512x128xbf16, #tpu.memory_space<vmem>>, %arg2: memref<1x128xf32, #tpu.memory_space<vmem>>, %arg3: memref<1x128xf32, #tpu.memory_space<vmem>>, %arg4: memref<512x128xbf16, #tpu.memory_space<vmem>>) attributes {dimension_semantics = [#tpu.dimension_semantics<parallel>], iteration_bounds = array<i64: 1>, scalar_prefetch = 0 : i64, scratch_operands = 0 : i64, tpu.core_type = #tpu.core_type<tc>, window_params = [{transform_indices = @transform_0, window_bounds = array<i64: 512, 128>}, {pipeline_mode = #tpu.pipeline_mode<synchronous>, transform_indices = @transform_1, window_bounds = array<i64: 1, 128>}, {pipeline_mode = #tpu.pipeline_mode<synchronous>, transform_indices = @transform_2, window_bounds = array<i64: 1, 128>}, {transform_indices = @transform_3, window_bounds = array<i64: 512, 128>}]} {
    %c0 = arith.constant 0 : index
    %c0_0 = arith.constant 0 : index
    %0 = vector.load %arg1[%c0, %c0_0] : memref<512x128xbf16, #tpu.memory_space<vmem>>, vector<512x128xbf16>
    %1 = arith.extf %0 : vector<512x128xbf16> to vector<512x128xf32>
    %c0_1 = arith.constant 0 : index
    %c0_2 = arith.constant 0 : index
    %2 = vector.load %arg2[%c0_1, %c0_2] : memref<1x128xf32, #tpu.memory_space<vmem>>, vector<1x128xf32>
    %3 = vector.broadcast %2 : vector<1x128xf32> to vector<512x128xf32>
    %4 = arith.mulf %1, %3 : vector<512x128xf32>
    %c0_3 = arith.constant 0 : index
    %c0_4 = arith.constant 0 : index
    %5 = vector.load %arg3[%c0_3, %c0_4] : memref<1x128xf32, #tpu.memory_space<vmem>>, vector<1x128xf32>
    %6 = vector.broadcast %5 : vector<1x128xf32> to vector<512x128xf32>
    %7 = arith.addf %4, %6 : vector<512x128xf32>
    %cst = arith.constant 0.000000e+00 : f32
    %8 = vector.broadcast %cst : f32 to vector<512x128xf32>
    %9 = arith.maximumf %7, %8 : vector<512x128xf32>
    %10 = arith.truncf %9 : vector<512x128xf32> to vector<512x128xbf16>
    %c0_5 = arith.constant 0 : index
    %c0_6 = arith.constant 0 : index
    %11 = vector.load %arg4[%c0_5, %c0_6] : memref<512x128xbf16, #tpu.memory_space<vmem>>, vector<512x128xbf16>
    tpu.vector_store %arg4[%c0_5, %c0_6], %10 {strides = array<i32>} : memref<512x128xbf16, #tpu.memory_space<vmem>>, vector<512x128xbf16>,
    return
  }
  func.func @transform_0(%arg0: i32) -> (i32, i32) {
    %c0_i32 = arith.constant 0 : i32
    %c0_i32_0 = arith.constant 0 : i32
    return %arg0, %c0_i32 : i32, i32
  }
  func.func @transform_1(%arg0: i32) -> (i32, i32) {
    %c0_i32 = arith.constant 0 : i32
    %c0_i32_0 = arith.constant 0 : i32
    %c0_i32_1 = arith.constant 0 : i32
    return %c0_i32, %c0_i32_0 : i32, i32
  }
  func.func @transform_2(%arg0: i32) -> (i32, i32) {
    %c0_i32 = arith.constant 0 : i32
    %c0_i32_0 = arith.constant 0 : i32
    %c0_i32_1 = arith.constant 0 : i32
    return %c0_i32, %c0_i32_0 : i32, i32
  }
  func.func @transform_3(%arg0: i32) -> (i32, i32) {
    %c0_i32 = arith.constant 0 : i32
    %c0_i32_0 = arith.constant 0 : i32
    return %arg0, %c0_i32 : i32, i32
  }
}

module attributes {stable_mosaic.version = 11 : i64} {
  func.func @_bmm_kernel(%arg0: i32, %arg1: i32, %arg2: i32, %arg3: memref<1x256x512xbf16, #tpu.memory_space<vmem>>, %arg4: memref<1x512x64xbf16, #tpu.memory_space<vmem>>, %arg5: memref<1x256x64xbf16, #tpu.memory_space<vmem>>) attributes {dimension_semantics = [#tpu.dimension_semantics<parallel>, #tpu.dimension_semantics<parallel>, #tpu.dimension_semantics<parallel>], iteration_bounds = array<i64: 4, 2, 1>, scalar_prefetch = 0 : i64, scratch_operands = 0 : i64, tpu.core_type = #tpu.core_type<tc>, window_params = [{transform_indices = @transform_0, window_bounds = array<i64: 1, 256, 512>}, {transform_indices = @transform_1, window_bounds = array<i64: 1, 512, 64>}, {transform_indices = @transform_2, window_bounds = array<i64: 1, 256, 64>}]} {
    %c0 = arith.constant 0 : index
    %c0_0 = arith.constant 0 : index
    %c0_1 = arith.constant 0 : index
    %0 = vector.load %arg3[%c0, %c0_0, %c0_1] : memref<1x256x512xbf16, #tpu.memory_space<vmem>>, vector<1x256x512xbf16>
    %1 = vector.shape_cast %0 : vector<1x256x512xbf16> to vector<256x512xbf16>
    %c0_2 = arith.constant 0 : index
    %c0_3 = arith.constant 0 : index
    %c0_4 = arith.constant 0 : index
    %2 = vector.load %arg4[%c0_2, %c0_3, %c0_4] : memref<1x512x64xbf16, #tpu.memory_space<vmem>>, vector<1x512x64xbf16>
    %3 = vector.shape_cast %2 : vector<1x512x64xbf16> to vector<512x64xbf16>
    %cst = arith.constant dense<0.000000e+00> : vector<256x64xf32>
    %4 = tpu.matmul %1, %3, %cst {dimension_numbers = #tpu.dot_dimension_numbers<[1], [0], [0], [1], [0, 0, 1, 1], [], []>} : vector<256x512xbf16>, vector<512x64xbf16>, vector<256x64xf32> -> vector<256x64xf32>
    %5 = arith.truncf %4 : vector<256x64xf32> to vector<256x64xbf16>
    %c0_5 = arith.constant 0 : index
    %c0_6 = arith.constant 0 : index
    %c0_7 = arith.constant 0 : index
    %6 = vector.load %arg5[%c0_5, %c0_6, %c0_7] : memref<1x256x64xbf16, #tpu.memory_space<vmem>>, vector<1x256x64xbf16>
    %7 = vector.shape_cast %6 : vector<1x256x64xbf16> to vector<256x64xbf16>
    %8 = vector.shape_cast %5 : vector<256x64xbf16> to vector<1x256x64xbf16>
    tpu.vector_store %arg5[%c0_5, %c0_6, %c0_7], %8 {strides = array<i32>} : memref<1x256x64xbf16, #tpu.memory_space<vmem>>, vector<1x256x64xbf16>,
    return
  }
  func.func @transform_0(%arg0: i32, %arg1: i32, %arg2: i32) -> (i32, i32, i32) {
    %c0_i32 = arith.constant 0 : i32
    %c0_i32_0 = arith.constant 0 : i32
    return %arg0, %arg1, %c0_i32 : i32, i32, i32
  }
  func.func @transform_1(%arg0: i32, %arg1: i32, %arg2: i32) -> (i32, i32, i32) {
    %c0_i32 = arith.constant 0 : i32
    %c0_i32_0 = arith.constant 0 : i32
    return %arg0, %c0_i32, %arg2 : i32, i32, i32
  }
  func.func @transform_2(%arg0: i32, %arg1: i32, %arg2: i32) -> (i32, i32, i32) {
    %c0_i32 = arith.constant 0 : i32
    return %arg0, %arg1, %arg2 : i32, i32, i32
  }
}

module attributes {stable_mosaic.version = 11 : i64} {
  func.func @_bn_stats_kernel(%arg0: i32, %arg1: memref<512x128xbf16, #tpu.memory_space<vmem>>, %arg2: memref<1x128xf32, #tpu.memory_space<vmem>>, %arg3: memref<1x128xf32, #tpu.memory_space<vmem>>) attributes {dimension_semantics = [#tpu.dimension_semantics<arbitrary>], iteration_bounds = array<i64: 2>, scalar_prefetch = 0 : i64, scratch_operands = 0 : i64, tpu.core_type = #tpu.core_type<tc>, window_params = [{transform_indices = @transform_0, window_bounds = array<i64: 512, 128>}, {pipeline_mode = #tpu.pipeline_mode<synchronous>, transform_indices = @transform_1, window_bounds = array<i64: 1, 128>}, {pipeline_mode = #tpu.pipeline_mode<synchronous>, transform_indices = @transform_2, window_bounds = array<i64: 1, 128>}]} {
    %c0_i32 = arith.constant 0 : i32
    %0 = arith.cmpi eq, %arg0, %c0_i32 : i32
    %1 = arith.extui %0 : i1 to i32
    %c0_i32_0 = arith.constant 0 : i32
    %2 = arith.cmpi ne, %1, %c0_i32_0 : i32
    scf.if %2 {
      %cst_11 = arith.constant 0.000000e+00 : f32
      %16 = vector.broadcast %cst_11 : f32 to vector<1x128xf32>
      %c0_12 = arith.constant 0 : index
      %c0_13 = arith.constant 0 : index
      %17 = vector.load %arg2[%c0_12, %c0_13] : memref<1x128xf32, #tpu.memory_space<vmem>>, vector<1x128xf32>
      tpu.vector_store %arg2[%c0_12, %c0_13], %16 {strides = array<i32>} : memref<1x128xf32, #tpu.memory_space<vmem>>, vector<1x128xf32>,
      %cst_14 = arith.constant 0.000000e+00 : f32
      %18 = vector.broadcast %cst_14 : f32 to vector<1x128xf32>
      %c0_15 = arith.constant 0 : index
      %c0_16 = arith.constant 0 : index
      %19 = vector.load %arg3[%c0_15, %c0_16] : memref<1x128xf32, #tpu.memory_space<vmem>>, vector<1x128xf32>
      tpu.vector_store %arg3[%c0_15, %c0_16], %18 {strides = array<i32>} : memref<1x128xf32, #tpu.memory_space<vmem>>, vector<1x128xf32>,
    } else {
    }
    %c0 = arith.constant 0 : index
    %c0_1 = arith.constant 0 : index
    %3 = vector.load %arg1[%c0, %c0_1] : memref<512x128xbf16, #tpu.memory_space<vmem>>, vector<512x128xbf16>
    %4 = arith.extf %3 : vector<512x128xbf16> to vector<512x128xf32>
    %c0_2 = arith.constant 0 : index
    %c0_3 = arith.constant 0 : index
    %5 = vector.load %arg2[%c0_2, %c0_3] : memref<1x128xf32, #tpu.memory_space<vmem>>, vector<1x128xf32>
    %cst = arith.constant dense<0.000000e+00> : vector<128xf32>
    %6 = vector.multi_reduction <add>, %4, %cst [0] : vector<512x128xf32> to vector<128xf32>
    %7 = vector.shape_cast %6 : vector<128xf32> to vector<1x128xf32>
    %8 = arith.addf %5, %7 : vector<1x128xf32>
    %c0_4 = arith.constant 0 : index
    %c0_5 = arith.constant 0 : index
    %9 = vector.load %arg2[%c0_4, %c0_5] : memref<1x128xf32, #tpu.memory_space<vmem>>, vector<1x128xf32>
    tpu.vector_store %arg2[%c0_4, %c0_5], %8 {strides = array<i32>} : memref<1x128xf32, #tpu.memory_space<vmem>>, vector<1x128xf32>,
    %c0_6 = arith.constant 0 : index
    %c0_7 = arith.constant 0 : index
    %10 = vector.load %arg3[%c0_6, %c0_7] : memref<1x128xf32, #tpu.memory_space<vmem>>, vector<1x128xf32>
    %11 = arith.mulf %4, %4 : vector<512x128xf32>
    %cst_8 = arith.constant dense<0.000000e+00> : vector<128xf32>
    %12 = vector.multi_reduction <add>, %11, %cst_8 [0] : vector<512x128xf32> to vector<128xf32>
    %13 = vector.shape_cast %12 : vector<128xf32> to vector<1x128xf32>
    %14 = arith.addf %10, %13 : vector<1x128xf32>
    %c0_9 = arith.constant 0 : index
    %c0_10 = arith.constant 0 : index
    %15 = vector.load %arg3[%c0_9, %c0_10] : memref<1x128xf32, #tpu.memory_space<vmem>>, vector<1x128xf32>
    tpu.vector_store %arg3[%c0_9, %c0_10], %14 {strides = array<i32>} : memref<1x128xf32, #tpu.memory_space<vmem>>, vector<1x128xf32>,
    return
  }
  func.func @transform_0(%arg0: i32) -> (i32, i32) {
    %c0_i32 = arith.constant 0 : i32
    %c0_i32_0 = arith.constant 0 : i32
    return %arg0, %c0_i32 : i32, i32
  }
  func.func @transform_1(%arg0: i32) -> (i32, i32) {
    %c0_i32 = arith.constant 0 : i32
    %c0_i32_0 = arith.constant 0 : i32
    %c0_i32_1 = arith.constant 0 : i32
    return %c0_i32, %c0_i32_0 : i32, i32
  }
  func.func @transform_2(%arg0: i32) -> (i32, i32) {
    %c0_i32 = arith.constant 0 : i32
    %c0_i32_0 = arith.constant 0 : i32
    %c0_i32_1 = arith.constant 0 : i32
    return %c0_i32, %c0_i32_0 : i32, i32
  }
}

module attributes {stable_mosaic.version = 11 : i64} {
  func.func @_bn_apply_kernel(%arg0: i32, %arg1: memref<512x128xbf16, #tpu.memory_space<vmem>>, %arg2: memref<1x128xf32, #tpu.memory_space<vmem>>, %arg3: memref<1x128xf32, #tpu.memory_space<vmem>>, %arg4: memref<512x128xbf16, #tpu.memory_space<vmem>>) attributes {dimension_semantics = [#tpu.dimension_semantics<parallel>], iteration_bounds = array<i64: 2>, scalar_prefetch = 0 : i64, scratch_operands = 0 : i64, tpu.core_type = #tpu.core_type<tc>, window_params = [{transform_indices = @transform_0, window_bounds = array<i64: 512, 128>}, {pipeline_mode = #tpu.pipeline_mode<synchronous>, transform_indices = @transform_1, window_bounds = array<i64: 1, 128>}, {pipeline_mode = #tpu.pipeline_mode<synchronous>, transform_indices = @transform_2, window_bounds = array<i64: 1, 128>}, {transform_indices = @transform_3, window_bounds = array<i64: 512, 128>}]} {
    %c0 = arith.constant 0 : index
    %c0_0 = arith.constant 0 : index
    %0 = vector.load %arg1[%c0, %c0_0] : memref<512x128xbf16, #tpu.memory_space<vmem>>, vector<512x128xbf16>
    %1 = arith.extf %0 : vector<512x128xbf16> to vector<512x128xf32>
    %c0_1 = arith.constant 0 : index
    %c0_2 = arith.constant 0 : index
    %2 = vector.load %arg2[%c0_1, %c0_2] : memref<1x128xf32, #tpu.memory_space<vmem>>, vector<1x128xf32>
    %3 = vector.broadcast %2 : vector<1x128xf32> to vector<512x128xf32>
    %4 = arith.mulf %1, %3 : vector<512x128xf32>
    %c0_3 = arith.constant 0 : index
    %c0_4 = arith.constant 0 : index
    %5 = vector.load %arg3[%c0_3, %c0_4] : memref<1x128xf32, #tpu.memory_space<vmem>>, vector<1x128xf32>
    %6 = vector.broadcast %5 : vector<1x128xf32> to vector<512x128xf32>
    %7 = arith.addf %4, %6 : vector<512x128xf32>
    %cst = arith.constant 0.000000e+00 : f32
    %8 = vector.broadcast %cst : f32 to vector<512x128xf32>
    %9 = arith.maximumf %7, %8 : vector<512x128xf32>
    %10 = arith.truncf %9 : vector<512x128xf32> to vector<512x128xbf16>
    %c0_5 = arith.constant 0 : index
    %c0_6 = arith.constant 0 : index
    %11 = vector.load %arg4[%c0_5, %c0_6] : memref<512x128xbf16, #tpu.memory_space<vmem>>, vector<512x128xbf16>
    tpu.vector_store %arg4[%c0_5, %c0_6], %10 {strides = array<i32>} : memref<512x128xbf16, #tpu.memory_space<vmem>>, vector<512x128xbf16>,
    return
  }
  func.func @transform_0(%arg0: i32) -> (i32, i32) {
    %c0_i32 = arith.constant 0 : i32
    %c0_i32_0 = arith.constant 0 : i32
    return %arg0, %c0_i32 : i32, i32
  }
  func.func @transform_1(%arg0: i32) -> (i32, i32) {
    %c0_i32 = arith.constant 0 : i32
    %c0_i32_0 = arith.constant 0 : i32
    %c0_i32_1 = arith.constant 0 : i32
    return %c0_i32, %c0_i32_0 : i32, i32
  }
  func.func @transform_2(%arg0: i32) -> (i32, i32) {
    %c0_i32 = arith.constant 0 : i32
    %c0_i32_0 = arith.constant 0 : i32
    %c0_i32_1 = arith.constant 0 : i32
    return %c0_i32, %c0_i32_0 : i32, i32
  }
  func.func @transform_3(%arg0: i32) -> (i32, i32) {
    %c0_i32 = arith.constant 0 : i32
    %c0_i32_0 = arith.constant 0 : i32
    return %arg0, %c0_i32 : i32, i32
  }
}

module attributes {stable_mosaic.version = 11 : i64} {
  func.func @_bmm_kernel(%arg0: i32, %arg1: i32, %arg2: i32, %arg3: memref<1x256x256xbf16, #tpu.memory_space<vmem>>, %arg4: memref<1x256x3xbf16, #tpu.memory_space<vmem>>, %arg5: memref<1x256x3xf32, #tpu.memory_space<vmem>>) attributes {dimension_semantics = [#tpu.dimension_semantics<parallel>, #tpu.dimension_semantics<parallel>, #tpu.dimension_semantics<parallel>], iteration_bounds = array<i64: 4, 8, 1>, scalar_prefetch = 0 : i64, scratch_operands = 0 : i64, tpu.core_type = #tpu.core_type<tc>, window_params = [{transform_indices = @transform_0, window_bounds = array<i64: 1, 256, 256>}, {transform_indices = @transform_1, window_bounds = array<i64: 1, 256, 3>}, {transform_indices = @transform_2, window_bounds = array<i64: 1, 256, 3>}]} {
    %c0 = arith.constant 0 : index
    %c0_0 = arith.constant 0 : index
    %c0_1 = arith.constant 0 : index
    %0 = vector.load %arg3[%c0, %c0_0, %c0_1] : memref<1x256x256xbf16, #tpu.memory_space<vmem>>, vector<1x256x256xbf16>
    %1 = vector.shape_cast %0 : vector<1x256x256xbf16> to vector<256x256xbf16>
    %c0_2 = arith.constant 0 : index
    %c0_3 = arith.constant 0 : index
    %c0_4 = arith.constant 0 : index
    %2 = vector.load %arg4[%c0_2, %c0_3, %c0_4] : memref<1x256x3xbf16, #tpu.memory_space<vmem>>, vector<1x256x3xbf16>
    %3 = vector.shape_cast %2 : vector<1x256x3xbf16> to vector<256x3xbf16>
    %cst = arith.constant dense<0.000000e+00> : vector<256x3xf32>
    %4 = tpu.matmul %1, %3, %cst {dimension_numbers = #tpu.dot_dimension_numbers<[1], [0], [0], [1], [0, 0, 1, 1], [], []>} : vector<256x256xbf16>, vector<256x3xbf16>, vector<256x3xf32> -> vector<256x3xf32>
    %5 = math.tanh %4 : vector<256x3xf32>
    %c0_5 = arith.constant 0 : index
    %c0_6 = arith.constant 0 : index
    %c0_7 = arith.constant 0 : index
    %6 = vector.load %arg5[%c0_5, %c0_6, %c0_7] : memref<1x256x3xf32, #tpu.memory_space<vmem>>, vector<1x256x3xf32>
    %7 = vector.shape_cast %6 : vector<1x256x3xf32> to vector<256x3xf32>
    %8 = vector.shape_cast %5 : vector<256x3xf32> to vector<1x256x3xf32>
    tpu.vector_store %arg5[%c0_5, %c0_6, %c0_7], %8 {strides = array<i32>} : memref<1x256x3xf32, #tpu.memory_space<vmem>>, vector<1x256x3xf32>,
    return
  }
  func.func @transform_0(%arg0: i32, %arg1: i32, %arg2: i32) -> (i32, i32, i32) {
    %c0_i32 = arith.constant 0 : i32
    %c0_i32_0 = arith.constant 0 : i32
    return %arg0, %arg1, %c0_i32 : i32, i32, i32
  }
  func.func @transform_1(%arg0: i32, %arg1: i32, %arg2: i32) -> (i32, i32, i32) {
    %c0_i32 = arith.constant 0 : i32
    %c0_i32_0 = arith.constant 0 : i32
    return %arg0, %c0_i32, %arg2 : i32, i32, i32
  }
  func.func @transform_2(%arg0: i32, %arg1: i32, %arg2: i32) -> (i32, i32, i32) {
    %c0_i32 = arith.constant 0 : i32
    return %arg0, %arg1, %arg2 : i32, i32, i32
  }
}

</mosaic_0001>

<bundles_post_ra>
// kernel: squeeze.129
= control target key start
LH: loop header
LB: loop body
LE: loop exit
PB: predicated region body
PF: predicated region fallthrough
CT: control target
= control target key end

     0   :  { %s1807_s0 = inlined_call_operand.vmem [shape: bf16[1,2,8192], index: 0, kind: input, shape index: {}]   ;;  %s1808_s1 = inlined_call_operand.vmem [shape: bf16[32,512], index: 1, kind: output, shape index: {}]  }
   0x1   :  { %v1456_v0 = vld [vmem:[%s1807_s0 + $0x3f] sm:$0x1]  ;;  %v1457_v1 = vld [vmem:[%s1807_s0 + $0x3e] sm:$0x1]  ;;  %v1458_v2 = vld [vmem:[%s1807_s0 + $0x3d] sm:$0x1] }
   0x2   :  { %v15_v3 = vunpack.c.l.bf16 %v1456_v0  ;;  %v30_v4 = vunpack.c.l.bf16 %v1457_v1  ;;  %v45_v5 = vunpack.c.l.bf16 %v1458_v2  ;;  %v1459_v6 = vld [vmem:[%s1807_s0 + $0x3c] sm:$0x1]  ;;  %v1460_v7 = vld [vmem:[%s1807_s0 + $0x3b] sm:$0x1]  ;;  %v1461_v8 = vld [vmem:[%s1807_s0 + $0x3a] sm:$0x1] }
   0x3   :  { %v60_v9 = vunpack.c.l.bf16 %v1459_v6  ;;  %v1462_v10 = vld [vmem:[%s1807_s0 + $0x39] sm:$0x1]  ;;  %v75_v11 = vunpack.c.l.bf16 %v1460_v7  ;;  %v1463_v12 = vld [vmem:[%s1807_s0 + $0x38] sm:$0x1]  ;;  %v90_v13 = vunpack.c.l.bf16 %v1461_v8  ;;  %v1464_v14 = vld [vmem:[%s1807_s0 + $0x37] sm:$0x1] }
   0x4   :  { %18 = vst [vmem:[#allocation1 + $0x148] sm:$0x3] %v15_v3  ;;  %v105_v15 = vunpack.c.l.bf16 %v1462_v10  ;;  %v1465_v16 = vld [vmem:[%s1807_s0 + $0x36] sm:$0x1]  ;;  %v120_v17 = vunpack.c.l.bf16 %v1463_v12  ;;  %v1466_v18 = vld [vmem:[%s1807_s0 + $0x35] sm:$0x1]  ;;  %v135_v19 = vunpack.c.l.bf16 %v1464_v14 }
   0x5   :  { %33 = vst [vmem:[#allocation1 + $0x48] sm:$0x3] %v30_v4  ;;  %v1467_v20 = vld [vmem:[%s1807_s0 + $0x34] sm:$0x1]  ;;  %v150_v21 = vunpack.c.l.bf16 %v1465_v16  ;;  %v1468_v22 = vld [vmem:[%s1807_s0 + $0x33] sm:$0x1]  ;;  %v165_v23 = vunpack.c.l.bf16 %v1466_v18 }
   0x6   :  { %48 = vst [vmem:[#allocation1 + $0x120] sm:$0x3] %v45_v5  ;;  %v1469_v24 = vld [vmem:[%s1807_s0 + $0x32] sm:$0x1]  ;;  %v180_v25 = vunpack.c.l.bf16 %v1467_v20  ;;  %v1470_v26 = vld [vmem:[%s1807_s0 + $0x31] sm:$0x1]  ;;  %v195_v27 = vunpack.c.l.bf16 %v1468_v22 }
   0x7   :  { %63 = vst [vmem:[#allocation1 + $0x1e0] sm:$0x3] %v60_v9  ;;  %v1471_v28 = vld [vmem:[%s1807_s0 + $0x30] sm:$0x1]  ;;  %v210_v29 = vunpack.c.l.bf16 %v1469_v24  ;;  %v1472_v30 = vld [vmem:[%s1807_s0 + $0x2f] sm:$0x1]  ;;  %v225_v31 = vunpack.c.l.bf16 %v1470_v26 }
   0x8   :  { %78 = vst [vmem:[#allocation1 + $0x1a8] sm:$0x3] %v75_v11  ;;  %v1473_v32 = vld [vmem:[%s1807_s0 + $0x2e] sm:$0x1]  ;;  %v240_v33 = vunpack.c.l.bf16 %v1471_v28  ;;  %v1474_v34 = vld [vmem:[%s1807_s0 + $0x2d] sm:$0x1]  ;;  %v255_v35 = vunpack.c.l.bf16 %v1472_v30 }
   0x9   :  { %93 = vst [vmem:[#allocation1 + $0x90] sm:$0x3] %v90_v13  ;;  %v1475_v36 = vld [vmem:[%s1807_s0 + $0x2c] sm:$0x1]  ;;  %v270_v37 = vunpack.c.l.bf16 %v1473_v32  ;;  %v1476_v38 = vld [vmem:[%s1807_s0 + $0x2b] sm:$0x1]  ;;  %v285_v39 = vunpack.c.l.bf16 %v1474_v34 }
   0xa   :  { %108 = vst [vmem:[#allocation1 + $0xc8] sm:$0x3] %v105_v15  ;;  %v1477_v40 = vld [vmem:[%s1807_s0 + $0x2a] sm:$0x1]  ;;  %v300_v41 = vunpack.c.l.bf16 %v1475_v36  ;;  %v1478_v42 = vld [vmem:[%s1807_s0 + $0x29] sm:$0x1]  ;;  %v315_v43 = vunpack.c.l.bf16 %v1476_v38 }
   0xb   :  { %123 = vst [vmem:[#allocation1 + $0x1b0] sm:$0x3] %v120_v17  ;;  %v1479_v44 = vld [vmem:[%s1807_s0 + $0x28] sm:$0x1]  ;;  %v330_v45 = vunpack.c.l.bf16 %v1477_v40  ;;  %v1480_v46 = vld [vmem:[%s1807_s0 + $0x27] sm:$0x1]  ;;  %v345_v47 = vunpack.c.l.bf16 %v1478_v42 }
   0xc   :  { %138 = vst [vmem:[#allocation1 + $0x78] sm:$0x3] %v135_v19  ;;  %v1481_v48 = vld [vmem:[%s1807_s0 + $0x26] sm:$0x1]  ;;  %v360_v49 = vunpack.c.l.bf16 %v1479_v44  ;;  %v1482_v50 = vld [vmem:[%s1807_s0 + $0x25] sm:$0x1]  ;;  %v375_v51 = vunpack.c.l.bf16 %v1480_v46 }
   0xd   :  { %153 = vst [vmem:[#allocation1 + $0xe8] sm:$0x3] %v150_v21  ;;  %v1483_v52 = vld [vmem:[%s1807_s0 + $0x24] sm:$0x1]  ;;  %v390_v53 = vunpack.c.l.bf16 %v1481_v48  ;;  %v1484_v54 = vld [vmem:[%s1807_s0 + $0x23] sm:$0x1]  ;;  %v405_v55 = vunpack.c.l.bf16 %v1482_v50 }
   0xe   :  { %168 = vst [vmem:[#allocation1 + $0xe0] sm:$0x3] %v165_v23  ;;  %v1485_v56 = vld [vmem:[%s1807_s0 + $0x22] sm:$0x1]  ;;  %v420_v57 = vunpack.c.l.bf16 %v1483_v52  ;;  %v1486_v58 = vld [vmem:[%s1807_s0 + $0x21] sm:$0x1]  ;;  %v435_v59 = vunpack.c.l.bf16 %v1484_v54 }
   0xf   :  { %183 = vst [vmem:[#allocation1 + $0x160] sm:$0x3] %v180_v25  ;;  %v1487_v60 = vld [vmem:[%s1807_s0 + $0x20] sm:$0x1]  ;;  %v450_v61 = vunpack.c.l.bf16 %v1485_v56  ;;  %v1488_v62 = vld [vmem:[%s1807_s0 + $0x1f] sm:$0x1]  ;;  %v465_v63 = vunpack.c.l.bf16 %v1486_v58 }
  0x10   :  { %198 = vst [vmem:[#allocation1 + $0xd8] sm:$0x3] %v195_v27  ;;  %v1489_v0 = vld [vmem:[%s1807_s0 + $0x1e] sm:$0x1]  ;;  %v480_v1 = vunpack.c.l.bf16 %v1487_v60  ;;  %v1490_v2 = vld [vmem:[%s1807_s0 + $0x1d] sm:$0x1]  ;;  %v495_v3 = vunpack.c.l.bf16 %v1488_v62 }
  0x11   :  { %213 = vst [vmem:[#allocation1 + $0xa8] sm:$0x3] %v210_v29  ;;  %v1491_v4 = vld [vmem:[%s1807_s0 + $0x1c] sm:$0x1]  ;;  %v510_v5 = vunpack.c.l.bf16 %v1489_v0  ;;  %v1492_v6 = vld [vmem:[%s1807_s0 + $0x1b] sm:$0x1]  ;;  %v525_v7 = vunpack.c.l.bf16 %v1490_v2 }
  0x12   :  { %228 = vst [vmem:[#allocation1 + $0xf0] sm:$0x3] %v225_v31  ;;  %v1493_v8 = vld [vmem:[%s1807_s0 + $0x1a] sm:$0x1]  ;;  %v540_v9 = vunpack.c.l.bf16 %v1491_v4  ;;  %v1494_v10 = vld [vmem:[%s1807_s0 + $0x19] sm:$0x1]  ;;  %v555_v11 = vunpack.c.l.bf16 %v1492_v6 }
  0x13   :  { %243 = vst [vmem:[#allocation1 + $0x198] sm:$0x3] %v240_v33  ;;  %v1495_v12 = vld [vmem:[%s1807_s0 + $0x18] sm:$0x1]  ;;  %v570_v13 = vunpack.c.l.bf16 %v1493_v8  ;;  %v1496_v14 = vld [vmem:[%s1807_s0 + $0x17] sm:$0x1]  ;;  %v585_v15 = vunpack.c.l.bf16 %v1494_v10 }
  0x14   :  { %258 = vst [vmem:[#allocation1 + $0x118] sm:$0x3] %v255_v35  ;;  %v1497_v16 = vld [vmem:[%s1807_s0 + $0x16] sm:$0x1]  ;;  %v600_v17 = vunpack.c.l.bf16 %v1495_v12  ;;  %v1498_v18 = vld [vmem:[%s1807_s0 + $0x15] sm:$0x1]  ;;  %v615_v19 = vunpack.c.l.bf16 %v1496_v14 }
  0x15   :  { %273 = vst [vmem:[#allocation1 + $0x70] sm:$0x3] %v270_v37  ;;  %v1499_v20 = vld [vmem:[%s1807_s0 + $0x14] sm:$0x1]  ;;  %v630_v21 = vunpack.c.l.bf16 %v1497_v16  ;;  %v1500_v22 = vld [vmem:[%s1807_s0 + $0x13] sm:$0x1]  ;;  %v645_v23 = vunpack.c.l.bf16 %v1498_v18 }
  0x16   :  { %288 = vst [vmem:[#allocation1 + $0xc0] sm:$0x3] %v285_v39  ;;  %v1501_v24 = vld [vmem:[%s1807_s0 + $0x12] sm:$0x1]  ;;  %v660_v25 = vunpack.c.l.bf16 %v1499_v20  ;;  %v1502_v26 = vld [vmem:[%s1807_s0 + $0x11] sm:$0x1]  ;;  %v675_v27 = vunpack.c.l.bf16 %v1500_v22 }
  0x17   :  { %303 = vst [vmem:[#allocation1 + $0xb8] sm:$0x3] %v300_v41  ;;  %v1503_v28 = vld [vmem:[%s1807_s0 + $0x10] sm:$0x1]  ;;  %v690_v29 = vunpack.c.l.bf16 %v1501_v24  ;;  %v1504_v30 = vld [vmem:[%s1807_s0 + $0xf] sm:$0x1]  ;;  %v705_v31 = vunpack.c.l.bf16 %v1502_v26 }
  0x18   :  { %318 = vst [vmem:[#allocation1 + $0x178] sm:$0x3] %v315_v43  ;;  %v1505_v32 = vld [vmem:[%s1807_s0 + $0xe] sm:$0x1]  ;;  %v720_v33 = vunpack.c.l.bf16 %v1503_v28  ;;  %v1506_v34 = vld [vmem:[%s1807_s0 + $0xd] sm:$0x1]  ;;  %v735_v35 = vunpack.c.l.bf16 %v1504_v30 }
  0x19   :  { %333 = vst [vmem:[#allocation1 + $0x50] sm:$0x3] %v330_v45  ;;  %v1507_v36 = vld [vmem:[%s1807_s0 + $0xc] sm:$0x1]  ;;  %v750_v37 = vunpack.c.l.bf16 %v1505_v32  ;;  %v1508_v38 = vld [vmem:[%s1807_s0 + $0xb] sm:$0x1]  ;;  %v765_v39 = vunpack.c.l.bf16 %v1506_v34 }
  0x1a   :  { %348 = vst [vmem:[#allocation1 + $0x40] sm:$0x3] %v345_v47  ;;  %v1509_v40 = vld [vmem:[%s1807_s0 + $0xa] sm:$0x1]  ;;  %v780_v41 = vunpack.c.l.bf16 %v1507_v36  ;;  %v1510_v42 = vld [vmem:[%s1807_s0 + $0x9] sm:$0x1]  ;;  %v795_v43 = vunpack.c.l.bf16 %v1508_v38 }
  0x1b   :  { %363 = vst [vmem:[#allocation1 + $0x1d0] sm:$0x3] %v360_v49  ;;  %v1511_v44 = vld [vmem:[%s1807_s0 + $0x8] sm:$0x1]  ;;  %v810_v45 = vunpack.c.l.bf16 %v1509_v40  ;;  %v1512_v46 = vld [vmem:[%s1807_s0 + $0x7] sm:$0x1]  ;;  %v825_v47 = vunpack.c.l.bf16 %v1510_v42 }
  0x1c   :  { %378 = vst [vmem:[#allocation1 + $0x10] sm:$0x3] %v375_v51  ;;  %v1513_v48 = vld [vmem:[%s1807_s0 + $0x6] sm:$0x1]  ;;  %v840_v49 = vunpack.c.l.bf16 %v1511_v44  ;;  %v1514_v50 = vld [vmem:[%s1807_s0 + $0x5] sm:$0x1]  ;;  %v855_v51 = vunpack.c.l.bf16 %v1512_v46 }
  0x1d   :  { %393 = vst [vmem:[#allocation1 + $0x100] sm:$0x3] %v390_v53  ;;  %v1515_v52 = vld [vmem:[%s1807_s0 + $0x4] sm:$0x1]  ;;  %v870_v53 = vunpack.c.l.bf16 %v1513_v48  ;;  %v1516_v54 = vld [vmem:[%s1807_s0 + $0x3] sm:$0x1] }
  0x1e   :  { %408 = vst [vmem:[#allocation1 + $0x98] sm:$0x3] %v405_v55  ;;  %v885_v55 = vunpack.c.l.bf16 %v1514_v50  ;;  %v1517_v56 = vld [vmem:[%s1807_s0 + $0x2] sm:$0x1]  ;;  %v1518_v58 = vld [vmem:[%s1807_s0 + $0x1] sm:$0x1] }
  0x1f   :  { %423 = vst [vmem:[#allocation1 + $0x1c8] sm:$0x3] %v420_v57  ;;  %v900_v57 = vunpack.c.l.bf16 %v1515_v52  ;;  %v958_v60 = vld [vmem:[%s1807_s0] sm:$0x1]  ;;  %v945_v62 = vunpack.c.l.bf16 %v1518_v58  ;;  %v1225_v44 = vld [vmem:[#allocation1 + $0xb8] sm:$0x3]  }
  0x20   :  { %438 = vst [vmem:[#allocation1 + $0x18] sm:$0x3] %v435_v59  ;;  %v915_v59 = vunpack.c.l.bf16 %v1516_v54  ;;  %v1213_v42 = vld [vmem:[#allocation1 + $0x50] sm:$0x3]   ;;  %v1249_v48 = vld [vmem:[#allocation1 + $0x198] sm:$0x3]  }
  0x21   :  { %453 = vst [vmem:[#allocation1 + $0x1f8] sm:$0x3] %v450_v61  ;;  %v930_v61 = vunpack.c.l.bf16 %v1517_v56  ;;  %v1237_v46 = vld [vmem:[#allocation1 + $0x70] sm:$0x3]   ;;  %v1261_v50 = vld [vmem:[#allocation1 + $0xa8] sm:$0x3]  }
  0x22   :  { %468 = vst [vmem:[#allocation1 + $0x108] sm:$0x3] %v465_v63  ;;  %v959_v63 = vunpack.c.l.bf16 %v958_v60  ;;  %v1201_v40 = vld [vmem:[#allocation1 + $0x1d0] sm:$0x3]   ;;  %v1273_v52 = vld [vmem:[#allocation1 + $0x160] sm:$0x3]  }
  0x23   :  { %483 = vst [vmem:[#allocation1 + $0x1f0] sm:$0x3] %v480_v1  ;;  %v1285_v54 = vld [vmem:[#allocation1 + $0xe8] sm:$0x3]   ;;  %v1297_v56 = vld [vmem:[#allocation1 + $0x1b0] sm:$0x3]  }
  0x24   :  { %498 = vst [vmem:[#allocation1 + $0xb0] sm:$0x3] %v495_v3  ;;  %v1189_v38 = vld [vmem:[#allocation1 + $0x100] sm:$0x3]   ;;  %v1309_v58 = vld [vmem:[#allocation1 + $0x90] sm:$0x3]  }
  0x25   :  { %513 = vst [vmem:[#allocation1 + $0x28] sm:$0x3] %v510_v5  ;;  %v1321_v60 = vld [vmem:[#allocation1 + $0x1e0] sm:$0x3]  }
  0x26   :  { %528 = vst [vmem:[#allocation1 + $0xf8] sm:$0x3] %v525_v7  ;;  %v1177_v36 = vld [vmem:[#allocation1 + $0x1c8] sm:$0x3]  }
  0x27   :  { %543 = vst [vmem:[#allocation1 + $0x130] sm:$0x3] %v540_v9 }
  0x28   :  { %558 = vst [vmem:[#allocation1 + $0x1b8] sm:$0x3] %v555_v11  ;;  %v1165_v34 = vld [vmem:[#allocation1 + $0x1f8] sm:$0x3]  }
  0x29   :  { %573 = vst [vmem:[#allocation1] sm:$0x3] %v570_v13 }
  0x2a   :  { %588 = vst [vmem:[#allocation1 + $0x1d8] sm:$0x3] %v585_v15  ;;  %v1153_v32 = vld [vmem:[#allocation1 + $0x1f0] sm:$0x3]  }
  0x2b   :  { %603 = vst [vmem:[#allocation1 + $0xd0] sm:$0x3] %v600_v17 }
  0x2c   :  { %618 = vst [vmem:[#allocation1 + $0x58] sm:$0x3] %v615_v19  ;;  %v1141_v30 = vld [vmem:[#allocation1 + $0x28] sm:$0x3]  }
  0x2d   :  { %633 = vst [vmem:[#allocation1 + $0x8] sm:$0x3] %v630_v21 }
  0x2e   :  { %648 = vst [vmem:[#allocation1 + $0x110] sm:$0x3] %v645_v23  ;;  %v1129_v28 = vld [vmem:[#allocation1 + $0x130] sm:$0x3]  }
  0x2f   :  { %663 = vst [vmem:[#allocation1 + $0x180] sm:$0x3] %v660_v25 }
  0x30   :  { %678 = vst [vmem:[#allocation1 + $0x188] sm:$0x3] %v675_v27  ;;  %v1117_v26 = vld [vmem:[#allocation1] sm:$0x3]   ;;  %v1123_v27 = vld [vmem:[#allocation1 + $0x1b8] sm:$0x3]  }
  0x31   :  { %693 = vst [vmem:[#allocation1 + $0x168] sm:$0x3] %v690_v29  ;;  %v1111_v25 = vld [vmem:[#allocation1 + $0x1d8] sm:$0x3]  }
  0x32   :  { %708 = vst [vmem:[#allocation1 + $0x20] sm:$0x3] %v705_v31  ;;  %v1105_v24 = vld [vmem:[#allocation1 + $0xd0] sm:$0x3]   ;;  %v1135_v29 = vld [vmem:[#allocation1 + $0xf8] sm:$0x3]  }
  0x33   :  { %723 = vst [vmem:[#allocation1 + $0x128] sm:$0x3] %v720_v33  ;;  %v1099_v23 = vld [vmem:[#allocation1 + $0x58] sm:$0x3]   ;;  %v1147_v31 = vld [vmem:[#allocation1 + $0xb0] sm:$0x3]  }
  0x34   :  { %738 = vst [vmem:[#allocation1 + $0x140] sm:$0x3] %v735_v35  ;;  %v1093_v22 = vld [vmem:[#allocation1 + $0x8] sm:$0x3]   ;;  %v1171_v35 = vld [vmem:[#allocation1 + $0x18] sm:$0x3]  }
  0x35   :  { %753 = vst [vmem:[#allocation1 + $0x170] sm:$0x3] %v750_v37  ;;  %v1087_v21 = vld [vmem:[#allocation1 + $0x110] sm:$0x3]   ;;  %v1159_v33 = vld [vmem:[#allocation1 + $0x108] sm:$0x3]  }
  0x36   :  { %768 = vst [vmem:[#allocation1 + $0x150] sm:$0x3] %v765_v39  ;;  %v1081_v20 = vld [vmem:[#allocation1 + $0x180] sm:$0x3]   ;;  %v1183_v37 = vld [vmem:[#allocation1 + $0x98] sm:$0x3]  }
  0x37   :  { %783 = vst [vmem:[#allocation1 + $0x30] sm:$0x3] %v780_v41  ;;  %v1075_v19 = vld [vmem:[#allocation1 + $0x188] sm:$0x3]   ;;  %v1195_v39 = vld [vmem:[#allocation1 + $0x10] sm:$0x3]  }
  0x38   :  { %798 = vst [vmem:[#allocation1 + $0x88] sm:$0x3] %v795_v43  ;;  %v1069_v18 = vld [vmem:[#allocation1 + $0x168] sm:$0x3]   ;;  %v1207_v41 = vld [vmem:[#allocation1 + $0x40] sm:$0x3]  }
  0x39   :  { %813 = vst [vmem:[#allocation1 + $0x80] sm:$0x3] %v810_v45  ;;  %v1063_v17 = vld [vmem:[#allocation1 + $0x20] sm:$0x3]   ;;  %v1219_v43 = vld [vmem:[#allocation1 + $0x178] sm:$0x3]  }
  0x3a   :  { %828 = vst [vmem:[#allocation1 + $0x190] sm:$0x3] %v825_v47  ;;  %v1057_v16 = vld [vmem:[#allocation1 + $0x128] sm:$0x3]   ;;  %v1231_v45 = vld [vmem:[#allocation1 + $0xc0] sm:$0x3]  }
  0x3b   :  { %843 = vst [vmem:[#allocation1 + $0x68] sm:$0x3] %v840_v49  ;;  %v1051_v15 = vld [vmem:[#allocation1 + $0x140] sm:$0x3]   ;;  %v1243_v47 = vld [vmem:[#allocation1 + $0x118] sm:$0x3]  }
  0x3c   :  { %858 = vst [vmem:[#allocation1 + $0x60] sm:$0x3] %v855_v51  ;;  %v1045_v14 = vld [vmem:[#allocation1 + $0x170] sm:$0x3]   ;;  %v1267_v51 = vld [vmem:[#allocation1 + $0xd8] sm:$0x3]  }
  0x3d   :  { %873 = vst [vmem:[#allocation1 + $0x1c0] sm:$0x3] %v870_v53  ;;  %v1039_v13 = vld [vmem:[#allocation1 + $0x150] sm:$0x3]   ;;  %v1279_v53 = vld [vmem:[#allocation1 + $0xe0] sm:$0x3]  }
  0x3e   :  { %888 = vst [vmem:[#allocation1 + $0x138] sm:$0x3] %v885_v55  ;;  %v1033_v12 = vld [vmem:[#allocation1 + $0x30] sm:$0x3]   ;;  %v1291_v55 = vld [vmem:[#allocation1 + $0x78] sm:$0x3]  }
  0x3f   :  { %903 = vst [vmem:[#allocation1 + $0x38] sm:$0x3] %v900_v57  ;;  %v1027_v11 = vld [vmem:[#allocation1 + $0x88] sm:$0x3]   ;;  %v1255_v49 = vld [vmem:[#allocation1 + $0xf0] sm:$0x3]  }
  0x40   :  { %918 = vst [vmem:[#allocation1 + $0xa0] sm:$0x3] %v915_v59  ;;  %v1021_v10 = vld [vmem:[#allocation1 + $0x80] sm:$0x3]   ;;  %v1303_v57 = vld [vmem:[#allocation1 + $0xc8] sm:$0x3]  }
  0x41   :  { %933 = vst [vmem:[#allocation1 + $0x1e8] sm:$0x3] %v930_v61  ;;  %v1015_v9 = vld [vmem:[#allocation1 + $0x190] sm:$0x3]   ;;  %v1315_v59 = vld [vmem:[#allocation1 + $0x1a8] sm:$0x3]  }
  0x42   :  { %948 = vst [vmem:[#allocation1 + $0x1a0] sm:$0x3] %v945_v62  ;;  %v1009_v8 = vld [vmem:[#allocation1 + $0x68] sm:$0x3]   ;;  %v1327_v61 = vld [vmem:[#allocation1 + $0x120] sm:$0x3]  }
  0x43   :  { %961 = vst [vmem:[#allocation1 + $0x158] sm:$0x3] %v959_v63  ;;  %v1003_v0 = vld [vmem:[#allocation1 + $0x60] sm:$0x3]   ;;  %v1333_v62 = vld [vmem:[#allocation1 + $0x48] sm:$0x3]  }
  0x44   :  { %v997_v1 = vld [vmem:[#allocation1 + $0x1c0] sm:$0x3]   ;;  %1005 = vst [vmem:[#allocation0 + $0x19] sm:$0x1] %v1003_v0  }
  0x45   :  { %v991_v2 = vld [vmem:[#allocation1 + $0x138] sm:$0x3]   ;;  %999 = vst [vmem:[#allocation0 + $0x11] sm:$0x1] %v997_v1  }
  0x46   :  { %v985_v3 = vld [vmem:[#allocation1 + $0x38] sm:$0x3]   ;;  %993 = vst [vmem:[#allocation0 + $0x9] sm:$0x1] %v991_v2  }
  0x47   :  { %v979_v4 = vld [vmem:[#allocation1 + $0xa0] sm:$0x3]   ;;  %987 = vst [vmem:[#allocation0 + $0x1] sm:$0x1] %v985_v3  }
  0x48   :  { %v973_v5 = vld [vmem:[#allocation1 + $0x1e8] sm:$0x3]   ;;  %981 = vst [vmem:[#allocation0 + $0x18] sm:$0x1] %v979_v4  }
  0x49   :  { %v967_v6 = vld [vmem:[#allocation1 + $0x1a0] sm:$0x3]   ;;  %975 = vst [vmem:[#allocation0 + $0x10] sm:$0x1] %v973_v5  }
  0x4a   :  { %v962_v7 = vld [vmem:[#allocation1 + $0x158] sm:$0x3]   ;;  %969 = vst [vmem:[#allocation0 + $0x8] sm:$0x1] %v967_v6  }
  0x4b   :  { %963 = vst [vmem:[#allocation0] sm:$0x1] %v962_v7  }
  0x4c   :  { %965 = vst [vmem:[#allocation0 + $0x3f] sm:$0x2] %v962_v7  }
  0x4d   :  { %971 = vst [vmem:[#allocation0 + $0x47] sm:$0x2] %v967_v6  }
  0x4e   :  { %977 = vst [vmem:[#allocation0 + $0x4f] sm:$0x2] %v973_v5  }
  0x4f   :  { %983 = vst [vmem:[#allocation0 + $0x57] sm:$0x2] %v979_v4  }
  0x50   :  { %989 = vst [vmem:[#allocation0 + $0x40] sm:$0x2] %v985_v3   ;;  %v1339_v3 = vld [vmem:[#allocation1 + $0x148] sm:$0x3]  }
  0x51   :  { %995 = vst [vmem:[#allocation0 + $0x48] sm:$0x2] %v991_v2  }
  0x52   :  { %1001 = vst [vmem:[#allocation0 + $0x50] sm:$0x2] %v997_v1  }
  0x53   :  { %1007 = vst [vmem:[#allocation0 + $0x58] sm:$0x2] %v1003_v0  }
  0x54   :  { %1011 = vst [vmem:[#allocation0 + $0x2] sm:$0x1] %v1009_v8  }
  0x55   :  { %1013 = vst [vmem:[#allocation0 + $0x41] sm:$0x2] %v1009_v8  }
  0x56   :  { %1017 = vst [vmem:[#allocation0 + $0xa] sm:$0x1] %v1015_v9  }
  0x57   :  { %1019 = vst [vmem:[#allocation0 + $0x49] sm:$0x2] %v1015_v9  }
  0x58   :  { %1023 = vst [vmem:[#allocation0 + $0x12] sm:$0x1] %v1021_v10  }
  0x59   :  { %1025 = vst [vmem:[#allocation0 + $0x51] sm:$0x2] %v1021_v10  }
  0x5a   :  { %1029 = vst [vmem:[#allocation0 + $0x1a] sm:$0x1] %v1027_v11  }
  0x5b   :  { %1031 = vst [vmem:[#allocation0 + $0x59] sm:$0x2] %v1027_v11  }
  0x5c   :  { %1035 = vst [vmem:[#allocation0 + $0x3] sm:$0x1] %v1033_v12  }
  0x5d   :  { %1037 = vst [vmem:[#allocation0 + $0x42] sm:$0x2] %v1033_v12  }
  0x5e   :  { %1041 = vst [vmem:[#allocation0 + $0xb] sm:$0x1] %v1039_v13  }
  0x5f   :  { %1043 = vst [vmem:[#allocation0 + $0x4a] sm:$0x2] %v1039_v13  }
  0x60   :  { %1047 = vst [vmem:[#allocation0 + $0x13] sm:$0x1] %v1045_v14  }
  0x61   :  { %1049 = vst [vmem:[#allocation0 + $0x52] sm:$0x2] %v1045_v14  }
  0x62   :  { %1053 = vst [vmem:[#allocation0 + $0x1b] sm:$0x1] %v1051_v15  }
  0x63   :  { %1055 = vst [vmem:[#allocation0 + $0x5a] sm:$0x2] %v1051_v15  }
  0x64   :  { %1059 = vst [vmem:[#allocation0 + $0x4] sm:$0x1] %v1057_v16  }
  0x65   :  { %1061 = vst [vmem:[#allocation0 + $0x43] sm:$0x2] %v1057_v16  }
  0x66   :  { %1065 = vst [vmem:[#allocation0 + $0xc] sm:$0x1] %v1063_v17  }
  0x67   :  { %1067 = vst [vmem:[#allocation0 + $0x4b] sm:$0x2] %v1063_v17  }
  0x68   :  { %1071 = vst [vmem:[#allocation0 + $0x14] sm:$0x1] %v1069_v18  }
  0x69   :  { %1073 = vst [vmem:[#allocation0 + $0x53] sm:$0x2] %v1069_v18  }
  0x6a   :  { %1077 = vst [vmem:[#allocation0 + $0x1c] sm:$0x1] %v1075_v19  }
  0x6b   :  { %1079 = vst [vmem:[#allocation0 + $0x5b] sm:$0x2] %v1075_v19  }
  0x6c   :  { %1083 = vst [vmem:[#allocation0 + $0x5] sm:$0x1] %v1081_v20  }
  0x6d   :  { %1085 = vst [vmem:[#allocation0 + $0x44] sm:$0x2] %v1081_v20  }
  0x6e   :  { %1089 = vst [vmem:[#allocation0 + $0xd] sm:$0x1] %v1087_v21  }
  0x6f   :  { %1091 = vst [vmem:[#allocation0 + $0x4c] sm:$0x2] %v1087_v21  }
  0x70   :  { %1095 = vst [vmem:[#allocation0 + $0x15] sm:$0x1] %v1093_v22  }
  0x71   :  { %1097 = vst [vmem:[#allocation0 + $0x54] sm:$0x2] %v1093_v22  }
  0x72   :  { %1101 = vst [vmem:[#allocation0 + $0x1d] sm:$0x1] %v1099_v23  }
  0x73   :  { %1103 = vst [vmem:[#allocation0 + $0x5c] sm:$0x2] %v1099_v23  }
  0x74   :  { %1107 = vst [vmem:[#allocation0 + $0x6] sm:$0x1] %v1105_v24  }
  0x75   :  { %1109 = vst [vmem:[#allocation0 + $0x45] sm:$0x2] %v1105_v24  }
  0x76   :  { %1113 = vst [vmem:[#allocation0 + $0xe] sm:$0x1] %v1111_v25  }
  0x77   :  { %1115 = vst [vmem:[#allocation0 + $0x4d] sm:$0x2] %v1111_v25  }
  0x78   :  { %1119 = vst [vmem:[#allocation0 + $0x16] sm:$0x1] %v1117_v26  }
  0x79   :  { %1121 = vst [vmem:[#allocation0 + $0x55] sm:$0x2] %v1117_v26  }
  0x7a   :  { %1125 = vst [vmem:[#allocation0 + $0x1e] sm:$0x1] %v1123_v27  }
  0x7b   :  { %1127 = vst [vmem:[#allocation0 + $0x5d] sm:$0x2] %v1123_v27  }
  0x7c   :  { %1131 = vst [vmem:[#allocation0 + $0x7] sm:$0x1] %v1129_v28  }
  0x7d   :  { %1133 = vst [vmem:[#allocation0 + $0x46] sm:$0x2] %v1129_v28  }
  0x7e   :  { %1137 = vst [vmem:[#allocation0 + $0xf] sm:$0x1] %v1135_v29  }
  0x7f   :  { %1139 = vst [vmem:[#allocation0 + $0x4e] sm:$0x2] %v1135_v29  }
  0x80   :  { %1143 = vst [vmem:[#allocation0 + $0x17] sm:$0x1] %v1141_v30  }
  0x81   :  { %1145 = vst [vmem:[#allocation0 + $0x56] sm:$0x2] %v1141_v30  }
  0x82   :  { %1149 = vst [vmem:[#allocation0 + $0x1f] sm:$0x1] %v1147_v31  }
  0x83   :  { %1151 = vst [vmem:[#allocation0 + $0x5e] sm:$0x2] %v1147_v31   ;;  %v1346_v63 = vld [vmem:[#allocation0] sm:$0xff] }
  0x84   :  { %1155 = vst [vmem:[#allocation0 + $0x20] sm:$0x1] %v1153_v32   ;;  %v1401_v4 = vld [vmem:[#allocation0 + $0x40] sm:$0xff] }
  0x85   :  { %1157 = vst [vmem:[#allocation0 + $0x5f] sm:$0x2] %v1153_v32   ;;  %v1352_v0 = vld [vmem:[#allocation0 + $0x8] sm:$0xff] }
  0x86   :  { %1161 = vst [vmem:[#allocation0 + $0x28] sm:$0x1] %v1159_v33   ;;  %v1408_v5 = vld [vmem:[#allocation0 + $0x48] sm:$0xff]  ;;  %v1537_v6 = vpack.c.bf16 %v1352_v0, %v1346_v63 }
  0x87   :  { %1163 = vst [vmem:[#allocation0 + $0x67] sm:$0x2] %v1159_v33   ;;  %v1359_v1 = vld [vmem:[#allocation0 + $0x10] sm:$0xff]  ;;  %v1557_v10 = vpack.c.bf16 %v1408_v5, %v1401_v4 }
  0x88   :  { %1167 = vst [vmem:[#allocation0 + $0x30] sm:$0x1] %v1165_v34   ;;  %v1415_v7 = vld [vmem:[#allocation0 + $0x50] sm:$0xff] }
  0x89   :  { %1169 = vst [vmem:[#allocation0 + $0x6f] sm:$0x2] %v1165_v34   ;;  %v1366_v2 = vld [vmem:[#allocation0 + $0x18] sm:$0xff] }
  0x8a   :  { %1173 = vst [vmem:[#allocation0 + $0x38] sm:$0x1] %v1171_v35   ;;  %v1422_v8 = vld [vmem:[#allocation0 + $0x58] sm:$0xff]  ;;  %v1542_v9 = vpack.c.bf16 %v1366_v2, %v1359_v1 }
  0x8b   :  { %1175 = vst [vmem:[#allocation0 + $0x77] sm:$0x2] %v1171_v35   ;;  %v1562_v12 = vpack.c.bf16 %v1422_v8, %v1415_v7 }
  0x8c   :  { %1179 = vst [vmem:[#allocation0 + $0x21] sm:$0x1] %v1177_v36  }
  0x8d   :  { %1181 = vst [vmem:[#allocation0 + $0x60] sm:$0x2] %v1177_v36  }
  0x8e   :  { %1185 = vst [vmem:[#allocation0 + $0x29] sm:$0x1] %v1183_v37  }
  0x8f   :  { %1187 = vst [vmem:[#allocation0 + $0x68] sm:$0x2] %v1183_v37  }
  0x90   :  { %1191 = vst [vmem:[#allocation0 + $0x31] sm:$0x1] %v1189_v38  }
  0x91   :  { %1193 = vst [vmem:[#allocation0 + $0x70] sm:$0x2] %v1189_v38  }
  0x92   :  { %1197 = vst [vmem:[#allocation0 + $0x39] sm:$0x1] %v1195_v39  }
  0x93   :  { %1199 = vst [vmem:[#allocation0 + $0x78] sm:$0x2] %v1195_v39  }
  0x94   :  { %1203 = vst [vmem:[#allocation0 + $0x22] sm:$0x1] %v1201_v40  }
  0x95   :  { %1205 = vst [vmem:[#allocation0 + $0x61] sm:$0x2] %v1201_v40  }
  0x96   :  { %1209 = vst [vmem:[#allocation0 + $0x2a] sm:$0x1] %v1207_v41  }
  0x97   :  { %1211 = vst [vmem:[#allocation0 + $0x69] sm:$0x2] %v1207_v41  }
  0x98   :  { %1215 = vst [vmem:[#allocation0 + $0x32] sm:$0x1] %v1213_v42  }
  0x99   :  { %1217 = vst [vmem:[#allocation0 + $0x71] sm:$0x2] %v1213_v42  }
  0x9a   :  { %1221 = vst [vmem:[#allocation0 + $0x3a] sm:$0x1] %v1219_v43  }
  0x9b   :  { %1223 = vst [vmem:[#allocation0 + $0x79] sm:$0x2] %v1219_v43  }
  0x9c   :  { %1227 = vst [vmem:[#allocation0 + $0x23] sm:$0x1] %v1225_v44  }
  0x9d   :  { %1229 = vst [vmem:[#allocation0 + $0x62] sm:$0x2] %v1225_v44  }
  0x9e   :  { %1233 = vst [vmem:[#allocation0 + $0x2b] sm:$0x1] %v1231_v45  }
  0x9f   :  { %1235 = vst [vmem:[#allocation0 + $0x6a] sm:$0x2] %v1231_v45  }
  0xa0   :  { %1239 = vst [vmem:[#allocation0 + $0x33] sm:$0x1] %v1237_v46  }
  0xa1   :  { %1241 = vst [vmem:[#allocation0 + $0x72] sm:$0x2] %v1237_v46  }
  0xa2   :  { %1245 = vst [vmem:[#allocation0 + $0x3b] sm:$0x1] %v1243_v47  }
  0xa3   :  { %1247 = vst [vmem:[#allocation0 + $0x7a] sm:$0x2] %v1243_v47  }
  0xa4   :  { %1251 = vst [vmem:[#allocation0 + $0x24] sm:$0x1] %v1249_v48  }
  0xa5   :  { %1253 = vst [vmem:[#allocation0 + $0x63] sm:$0x2] %v1249_v48  }
  0xa6   :  { %1257 = vst [vmem:[#allocation0 + $0x2c] sm:$0x1] %v1255_v49  }
  0xa7   :  { %1259 = vst [vmem:[#allocation0 + $0x6b] sm:$0x2] %v1255_v49  }
  0xa8   :  { %1263 = vst [vmem:[#allocation0 + $0x34] sm:$0x1] %v1261_v50  }
  0xa9   :  { %1265 = vst [vmem:[#allocation0 + $0x73] sm:$0x2] %v1261_v50  }
  0xaa   :  { %1269 = vst [vmem:[#allocation0 + $0x3c] sm:$0x1] %v1267_v51  }
  0xab   :  { %1271 = vst [vmem:[#allocation0 + $0x7b] sm:$0x2] %v1267_v51  }
  0xac   :  { %1275 = vst [vmem:[#allocation0 + $0x25] sm:$0x1] %v1273_v52  }
  0xad   :  { %1277 = vst [vmem:[#allocation0 + $0x64] sm:$0x2] %v1273_v52  }
  0xae   :  { %1281 = vst [vmem:[#allocation0 + $0x2d] sm:$0x1] %v1279_v53  }
  0xaf   :  { %1283 = vst [vmem:[#allocation0 + $0x6c] sm:$0x2] %v1279_v53  }
  0xb0   :  { %1287 = vst [vmem:[#allocation0 + $0x35] sm:$0x1] %v1285_v54  }
  0xb1   :  { %1289 = vst [vmem:[#allocation0 + $0x74] sm:$0x2] %v1285_v54  }
  0xb2   :  { %1293 = vst [vmem:[#allocation0 + $0x3d] sm:$0x1] %v1291_v55  }
  0xb3   :  { %1295 = vst [vmem:[#allocation0 + $0x7c] sm:$0x2] %v1291_v55  }
  0xb4   :  { %1299 = vst [vmem:[#allocation0 + $0x26] sm:$0x1] %v1297_v56  }
  0xb5   :  { %1301 = vst [vmem:[#allocation0 + $0x65] sm:$0x2] %v1297_v56  }
  0xb6   :  { %1305 = vst [vmem:[#allocation0 + $0x2e] sm:$0x1] %v1303_v57  }
  0xb7   :  { %1307 = vst [vmem:[#allocation0 + $0x6d] sm:$0x2] %v1303_v57  }
  0xb8   :  { %1311 = vst [vmem:[#allocation0 + $0x36] sm:$0x1] %v1309_v58  }
  0xb9   :  { %1313 = vst [vmem:[#allocation0 + $0x75] sm:$0x2] %v1309_v58  }
  0xba   :  { %1317 = vst [vmem:[#allocation0 + $0x3e] sm:$0x1] %v1315_v59  }
  0xbb   :  { %1319 = vst [vmem:[#allocation0 + $0x7d] sm:$0x2] %v1315_v59  }
  0xbc   :  { %1323 = vst [vmem:[#allocation0 + $0x27] sm:$0x1] %v1321_v60  }
  0xbd   :  { %1325 = vst [vmem:[#allocation0 + $0x66] sm:$0x2] %v1321_v60  }
  0xbe   :  { %1329 = vst [vmem:[#allocation0 + $0x2f] sm:$0x1] %v1327_v61  }
  0xbf   :  { %1331 = vst [vmem:[#allocation0 + $0x6e] sm:$0x2] %v1327_v61  }
  0xc0   :  { %1335 = vst [vmem:[#allocation0 + $0x37] sm:$0x1] %v1333_v62  }
  0xc1   :  { %1337 = vst [vmem:[#allocation0 + $0x76] sm:$0x2] %v1333_v62  }
  0xc2   :  { %1341 = vst [vmem:[#allocation0 + $0x3f] sm:$0x1] %v1339_v3  }
  0xc3   :  { %1343 = vst [vmem:[#allocation0 + $0x7e] sm:$0x2] %v1339_v3   ;;  %v1373_v11 = vld [vmem:[#allocation0 + $0x20] sm:$0xff] }
  0xc4   :  { %1538 = vst [vmem:[%s1808_s1] sm:$0xff] %v1537_v6   ;;  %v1429_v13 = vld [vmem:[#allocation0 + $0x60] sm:$0xff] }
  0xc5   :  { %1574 = vst [vmem:[%s1808_s1 + $0x8] sm:$0xff] %v1542_v9   ;;  %v1380_v14 = vld [vmem:[#allocation0 + $0x28] sm:$0xff] }
  0xc6   :  { %v1547_v15 = vpack.c.bf16 %v1380_v14, %v1373_v11  ;;  %1577 = vst [vmem:[%s1808_s1 + $0x20] sm:$0xff] %v1557_v10   ;;  %v1436_v16 = vld [vmem:[#allocation0 + $0x68] sm:$0xff] }
  0xc7   :  { %v1387_v17 = vld [vmem:[#allocation0 + $0x30] sm:$0xff]  ;;  %1578 = vst [vmem:[%s1808_s1 + $0x28] sm:$0xff] %v1562_v12   ;;  %v1567_v18 = vpack.c.bf16 %v1436_v16, %v1429_v13 }
  0xc8   :  { %1575 = vst [vmem:[%s1808_s1 + $0x10] sm:$0xff] %v1547_v15   ;;  %v1443_v19 = vld [vmem:[#allocation0 + $0x70] sm:$0xff] }
  0xc9   :  { %v1394_v20 = vld [vmem:[#allocation0 + $0x38] sm:$0xff]  ;;  %1579 = vst [vmem:[%s1808_s1 + $0x30] sm:$0xff] %v1567_v18  }
  0xca   :  { %v1552_v21 = vpack.c.bf16 %v1394_v20, %v1387_v17  ;;  %v1450_v22 = vld [vmem:[#allocation0 + $0x78] sm:$0xff] }
  0xcb   :  { %v1572_v23 = vpack.c.bf16 %v1450_v22, %v1443_v19 }
  0xcc   :  { %1576 = vst [vmem:[%s1808_s1 + $0x18] sm:$0xff] %v1552_v21  }
  0xcd   :  { %1580 = vst [vmem:[%s1808_s1 + $0x38] sm:$0xff] %v1572_v23  }

// kernel: generator_forward.13
= control target key start
LH: loop header
LB: loop body
LE: loop exit
PB: predicated region body
PF: predicated region fallthrough
CT: control target
= control target key end

     0   :  { %s2118_s9 = smov 0   ;;  %s2120_s10 = smov 0   ;;  %s2668_s0 = inlined_call_operand.vmem [shape: bf16[1,2,100], index: 0, kind: input, shape index: {}]   ;;  %s2669_s1 = inlined_call_operand.vmem [shape: bf16[1,100,8192], index: 1, kind: input, shape index: {}]   ;;  %s2670_s2 = inlined_call_operand.vmem [shape: bf16[1,2,8192], index: 2, kind: output, shape index: {}]  }
   0x1   :  { %s2122_s11 = smov 0   ;;  %s2124_s12 = smov 0  }
   0x2   :  { %s2126_s13 = smov 0  }
   0x3 LB: > { %s24_s14 = sadd.s32 1, %s2097_s12  ;;  %p75_p1 = scmp.ne.s32.totalorder %s2089_s10, %s2085_s9  ;;  %s2101_s13 = sphi %s2126_s13, %s12_s13   ;;  %s2097_s12 = sphi %s2124_s12, %s2674_s12   ;;  %s2093_s11 = sphi %s2122_s11, %s2673_s11   ;;  %s2089_s10 = sphi %s2120_s10, %s2672_s10   ;;  %s2085_s9 = sphi %s2118_s9, %s2671_s9  }
   0x4   : > { %p25_p0 = scmp.ge.s32.totalorder %s24_s14, 4  ;;  %p76_p2 = scmp.eq.s32.totalorder %s2101_s13, 0 }
   0x5   : > { %s68_s16 = sadd.s32 1, %s2089_s10  ;;  %p1517_p5 = scmp.ge.s32.totalorder %s2101_s13, 4 }
   0x6   : > { %s2676_s14 = smov (%p25_p0, %s24_s14), 0  ;;  %p77_p3 = por %p76_p2, %p75_p1 }
   0x7   : > { %s64_s15 = ssub.s32 %s2097_s12, %s2676_s14  ;;  %140 = sbr.rel (%p1517_p5) target bundleno = 120 (0x78), region = 20 }
   0x8   : > { %p66_p4 = scmp.eq.s32.totalorder %s64_s15, 0 }
   0xa   : > { %s2153_s17 = scalar_select %p66_p4, %s2089_s10, %s68_s16  }
   0xc   : > { %143 = sbr.rel (!%p77_p3) target bundleno = 120 (0x78), region = 24  ;;  %s145_s18 = sand.u32 (%p77_p3), 1, %s2089_s10  }
   0xd   : > { %s1924_s19 = sshll.u32 (%p77_p3), %s2097_s12, 6  ;;  %s2021_s20 = smul.u32 (%p77_p3), 832, %s145_s18 }
   0xe   : > { %s2161_s23 = scalar_lea.vmem (%p77_p3), %s2669_s1, %s1924_s19 }
   0xf   : > { %v165_v0 = vld [vmem:[%s2161_s23] sm:$0xff] (%p77_p3)  ;;  %v167_v1 = vld [vmem:[%s2161_s23 + $0x8] sm:$0xff] (%p77_p3)  ;;  %v169_v2 = vld [vmem:[%s2161_s23 + $0x10] sm:$0xff] (%p77_p3)  ;;  %s2166_s24 = scalar_lea.vmem (%p77_p3), [#allocation2], %s2021_s20 }
  0x10   : > { %166 = vst [vmem:[%s2166_s24] sm:$0xff] (%p77_p3), %v165_v0  ;;  %v171_v3 = vld [vmem:[%s2161_s23 + $0x18] sm:$0xff] (%p77_p3)  ;;  %v173_v4 = vld [vmem:[%s2161_s23 + $0x20] sm:$0xff] (%p77_p3)  ;;  %v175_v5 = vld [vmem:[%s2161_s23 + $0x28] sm:$0xff] (%p77_p3) }
  0x11   : > { %168 = vst [vmem:[%s2166_s24 + $0x8] sm:$0xff] %v167_v1  ;;  %v177_v6 = vld [vmem:[%s2161_s23 + $0x30] sm:$0xff]  ;;  %v179_v7 = vld [vmem:[%s2161_s23 + $0x38] sm:$0xff]  ;;  %v181_v8 = vld [vmem:[%s2161_s23 + $0x100] sm:$0xff] }
  0x12   : > { %170 = vst [vmem:[%s2166_s24 + $0x10] sm:$0xff] %v169_v2  ;;  %v183_v9 = vld [vmem:[%s2161_s23 + $0x108] sm:$0xff]  ;;  %v185_v10 = vld [vmem:[%s2161_s23 + $0x110] sm:$0xff]  ;;  %v187_v11 = vld [vmem:[%s2161_s23 + $0x118] sm:$0xff] }
  0x13   : > { %172 = vst [vmem:[%s2166_s24 + $0x18] sm:$0xff] %v171_v3  ;;  %v189_v12 = vld [vmem:[%s2161_s23 + $0x120] sm:$0xff]  ;;  %v191_v13 = vld [vmem:[%s2161_s23 + $0x128] sm:$0xff]  ;;  %v193_v14 = vld [vmem:[%s2161_s23 + $0x130] sm:$0xff] }
  0x14   : > { %174 = vst [vmem:[%s2166_s24 + $0x20] sm:$0xff] %v173_v4  ;;  %v195_v15 = vld [vmem:[%s2161_s23 + $0x138] sm:$0xff]  ;;  %v197_v16 = vld [vmem:[%s2161_s23 + $0x200] sm:$0xff]  ;;  %v199_v17 = vld [vmem:[%s2161_s23 + $0x208] sm:$0xff] }
  0x15   : > { %176 = vst [vmem:[%s2166_s24 + $0x28] sm:$0xff] %v175_v5  ;;  %v201_v18 = vld [vmem:[%s2161_s23 + $0x210] sm:$0xff]  ;;  %v203_v19 = vld [vmem:[%s2161_s23 + $0x218] sm:$0xff]  ;;  %v205_v20 = vld [vmem:[%s2161_s23 + $0x220] sm:$0xff] }
  0x16   : > { %178 = vst [vmem:[%s2166_s24 + $0x30] sm:$0xff] %v177_v6  ;;  %v207_v21 = vld [vmem:[%s2161_s23 + $0x228] sm:$0xff]  ;;  %v209_v22 = vld [vmem:[%s2161_s23 + $0x230] sm:$0xff]  ;;  %v211_v23 = vld [vmem:[%s2161_s23 + $0x238] sm:$0xff] }
  0x17   : > { %180 = vst [vmem:[%s2166_s24 + $0x38] sm:$0xff] %v179_v7  ;;  %v213_v24 = vld [vmem:[%s2161_s23 + $0x300] sm:$0xff]  ;;  %v215_v25 = vld [vmem:[%s2161_s23 + $0x308] sm:$0xff]  ;;  %v217_v26 = vld [vmem:[%s2161_s23 + $0x310] sm:$0xff] }
  0x18   : > { %182 = vst [vmem:[%s2166_s24 + $0x40] sm:$0xff] %v181_v8  ;;  %v219_v27 = vld [vmem:[%s2161_s23 + $0x318] sm:$0xff]  ;;  %v221_v28 = vld [vmem:[%s2161_s23 + $0x320] sm:$0xff]  ;;  %v223_v29 = vld [vmem:[%s2161_s23 + $0x328] sm:$0xff] }
  0x19   : > { %184 = vst [vmem:[%s2166_s24 + $0x48] sm:$0xff] %v183_v9  ;;  %v225_v30 = vld [vmem:[%s2161_s23 + $0x330] sm:$0xff]  ;;  %v227_v31 = vld [vmem:[%s2161_s23 + $0x338] sm:$0xff]  ;;  %v229_v32 = vld [vmem:[%s2161_s23 + $0x400] sm:$0xff] }
  0x1a   : > { %186 = vst [vmem:[%s2166_s24 + $0x50] sm:$0xff] %v185_v10  ;;  %v231_v33 = vld [vmem:[%s2161_s23 + $0x408] sm:$0xff]  ;;  %v233_v34 = vld [vmem:[%s2161_s23 + $0x410] sm:$0xff]  ;;  %v235_v35 = vld [vmem:[%s2161_s23 + $0x418] sm:$0xff] }
  0x1b   : > { %188 = vst [vmem:[%s2166_s24 + $0x58] sm:$0xff] %v187_v11  ;;  %v237_v36 = vld [vmem:[%s2161_s23 + $0x420] sm:$0xff]  ;;  %v239_v37 = vld [vmem:[%s2161_s23 + $0x428] sm:$0xff]  ;;  %v241_v38 = vld [vmem:[%s2161_s23 + $0x430] sm:$0xff] }
  0x1c   : > { %190 = vst [vmem:[%s2166_s24 + $0x60] sm:$0xff] %v189_v12  ;;  %v243_v39 = vld [vmem:[%s2161_s23 + $0x438] sm:$0xff]  ;;  %v245_v40 = vld [vmem:[%s2161_s23 + $0x500] sm:$0xff]  ;;  %v247_v41 = vld [vmem:[%s2161_s23 + $0x508] sm:$0xff] }
  0x1d   : > { %192 = vst [vmem:[%s2166_s24 + $0x68] sm:$0xff] %v191_v13  ;;  %v249_v42 = vld [vmem:[%s2161_s23 + $0x510] sm:$0xff]  ;;  %v251_v43 = vld [vmem:[%s2161_s23 + $0x518] sm:$0xff]  ;;  %v253_v44 = vld [vmem:[%s2161_s23 + $0x520] sm:$0xff] }
  0x1e   : > { %194 = vst [vmem:[%s2166_s24 + $0x70] sm:$0xff] %v193_v14  ;;  %v255_v45 = vld [vmem:[%s2161_s23 + $0x528] sm:$0xff]  ;;  %v257_v46 = vld [vmem:[%s2161_s23 + $0x530] sm:$0xff]  ;;  %v259_v47 = vld [vmem:[%s2161_s23 + $0x538] sm:$0xff] }
  0x1f   : > { %196 = vst [vmem:[%s2166_s24 + $0x78] sm:$0xff] %v195_v15  ;;  %v261_v48 = vld [vmem:[%s2161_s23 + $0x600] sm:$0xff]  ;;  %v263_v49 = vld [vmem:[%s2161_s23 + $0x608] sm:$0xff]  ;;  %v265_v50 = vld [vmem:[%s2161_s23 + $0x610] sm:$0xff] }
  0x20   : > { %198 = vst [vmem:[%s2166_s24 + $0x80] sm:$0xff] %v197_v16  ;;  %v267_v51 = vld [vmem:[%s2161_s23 + $0x618] sm:$0xff]  ;;  %v269_v52 = vld [vmem:[%s2161_s23 + $0x620] sm:$0xff]  ;;  %v271_v53 = vld [vmem:[%s2161_s23 + $0x628] sm:$0xff] }
  0x21   : > { %200 = vst [vmem:[%s2166_s24 + $0x88] sm:$0xff] %v199_v17  ;;  %v273_v54 = vld [vmem:[%s2161_s23 + $0x630] sm:$0xff]  ;;  %v275_v55 = vld [vmem:[%s2161_s23 + $0x638] sm:$0xff]  ;;  %v277_v56 = vld [vmem:[%s2161_s23 + $0x700] sm:$0xff] }
  0x22   : > { %202 = vst [vmem:[%s2166_s24 + $0x90] sm:$0xff] %v201_v18  ;;  %v279_v57 = vld [vmem:[%s2161_s23 + $0x708] sm:$0xff]  ;;  %v281_v58 = vld [vmem:[%s2161_s23 + $0x710] sm:$0xff]  ;;  %v283_v59 = vld [vmem:[%s2161_s23 + $0x718] sm:$0xff] }
  0x23   : > { %204 = vst [vmem:[%s2166_s24 + $0x98] sm:$0xff] %v203_v19  ;;  %v285_v60 = vld [vmem:[%s2161_s23 + $0x720] sm:$0xff]  ;;  %v287_v61 = vld [vmem:[%s2161_s23 + $0x728] sm:$0xff]  ;;  %v289_v62 = vld [vmem:[%s2161_s23 + $0x730] sm:$0xff] }
  0x24   : > { %206 = vst [vmem:[%s2166_s24 + $0xa0] sm:$0xff] %v205_v20  ;;  %v291_v63 = vld [vmem:[%s2161_s23 + $0x738] sm:$0xff]  ;;  %v293_v0 = vld [vmem:[%s2161_s23 + $0x800] sm:$0xff]  ;;  %v295_v1 = vld [vmem:[%s2161_s23 + $0x808] sm:$0xff] }
  0x25   : > { %208 = vst [vmem:[%s2166_s24 + $0xa8] sm:$0xff] %v207_v21  ;;  %v297_v2 = vld [vmem:[%s2161_s23 + $0x810] sm:$0xff]  ;;  %v299_v3 = vld [vmem:[%s2161_s23 + $0x818] sm:$0xff]  ;;  %v301_v4 = vld [vmem:[%s2161_s23 + $0x820] sm:$0xff] }
  0x26   : > { %210 = vst [vmem:[%s2166_s24 + $0xb0] sm:$0xff] %v209_v22  ;;  %v303_v5 = vld [vmem:[%s2161_s23 + $0x828] sm:$0xff]  ;;  %v305_v6 = vld [vmem:[%s2161_s23 + $0x830] sm:$0xff]  ;;  %v307_v7 = vld [vmem:[%s2161_s23 + $0x838] sm:$0xff] }
  0x27   : > { %212 = vst [vmem:[%s2166_s24 + $0xb8] sm:$0xff] %v211_v23  ;;  %v309_v8 = vld [vmem:[%s2161_s23 + $0x900] sm:$0xff]  ;;  %v311_v9 = vld [vmem:[%s2161_s23 + $0x908] sm:$0xff]  ;;  %v313_v10 = vld [vmem:[%s2161_s23 + $0x910] sm:$0xff] }
  0x28   : > { %214 = vst [vmem:[%s2166_s24 + $0xc0] sm:$0xff] %v213_v24  ;;  %v315_v11 = vld [vmem:[%s2161_s23 + $0x918] sm:$0xff]  ;;  %v317_v12 = vld [vmem:[%s2161_s23 + $0x920] sm:$0xff]  ;;  %v319_v13 = vld [vmem:[%s2161_s23 + $0x928] sm:$0xff] }
  0x29   : > { %216 = vst [vmem:[%s2166_s24 + $0xc8] sm:$0xff] %v215_v25  ;;  %v321_v14 = vld [vmem:[%s2161_s23 + $0x930] sm:$0xff]  ;;  %v323_v15 = vld [vmem:[%s2161_s23 + $0x938] sm:$0xff]  ;;  %v325_v16 = vld [vmem:[%s2161_s23 + $0xa00] sm:$0xff] }
  0x2a   : > { %218 = vst [vmem:[%s2166_s24 + $0xd0] sm:$0xff] %v217_v26  ;;  %v327_v17 = vld [vmem:[%s2161_s23 + $0xa08] sm:$0xff]  ;;  %v329_v18 = vld [vmem:[%s2161_s23 + $0xa10] sm:$0xff]  ;;  %v331_v19 = vld [vmem:[%s2161_s23 + $0xa18] sm:$0xff] }
  0x2b   : > { %220 = vst [vmem:[%s2166_s24 + $0xd8] sm:$0xff] %v219_v27  ;;  %v333_v20 = vld [vmem:[%s2161_s23 + $0xa20] sm:$0xff]  ;;  %v335_v21 = vld [vmem:[%s2161_s23 + $0xa28] sm:$0xff]  ;;  %v337_v22 = vld [vmem:[%s2161_s23 + $0xa30] sm:$0xff] }
  0x2c   : > { %222 = vst [vmem:[%s2166_s24 + $0xe0] sm:$0xff] %v221_v28  ;;  %v339_v23 = vld [vmem:[%s2161_s23 + $0xa38] sm:$0xff]  ;;  %v341_v24 = vld [vmem:[%s2161_s23 + $0xb00] sm:$0xff]  ;;  %v343_v25 = vld [vmem:[%s2161_s23 + $0xb08] sm:$0xff] }
  0x2d   : > { %224 = vst [vmem:[%s2166_s24 + $0xe8] sm:$0xff] %v223_v29  ;;  %v345_v26 = vld [vmem:[%s2161_s23 + $0xb10] sm:$0xff]  ;;  %v347_v27 = vld [vmem:[%s2161_s23 + $0xb18] sm:$0xff]  ;;  %v349_v28 = vld [vmem:[%s2161_s23 + $0xb20] sm:$0xff] }
  0x2e   : > { %226 = vst [vmem:[%s2166_s24 + $0xf0] sm:$0xff] %v225_v30  ;;  %v351_v29 = vld [vmem:[%s2161_s23 + $0xb28] sm:$0xff]  ;;  %v353_v30 = vld [vmem:[%s2161_s23 + $0xb30] sm:$0xff] }
  0x2f   : > { %228 = vst [vmem:[%s2166_s24 + $0xf8] sm:$0xff] %v227_v31  ;;  %v355_v31 = vld [vmem:[%s2161_s23 + $0xb38] sm:$0xff] }
  0x30   : > { %230 = vst [vmem:[%s2166_s24 + $0x100] sm:$0xff] %v229_v32  ;;  %v357_v32 = vld [vmem:[%s2161_s23 + $0xc00] sm:$0xff] }
  0x31   : > { %232 = vst [vmem:[%s2166_s24 + $0x108] sm:$0xff] %v231_v33  ;;  %v359_v33 = vld [vmem:[%s2161_s23 + $0xc08] sm:$0xff] }
  0x32   : > { %234 = vst [vmem:[%s2166_s24 + $0x110] sm:$0xff] %v233_v34  ;;  %v361_v34 = vld [vmem:[%s2161_s23 + $0xc10] sm:$0xff] }
  0x33   : > { %236 = vst [vmem:[%s2166_s24 + $0x118] sm:$0xff] %v235_v35  ;;  %v363_v35 = vld [vmem:[%s2161_s23 + $0xc18] sm:$0xff] }
  0x34   : > { %238 = vst [vmem:[%s2166_s24 + $0x120] sm:$0xff] %v237_v36  ;;  %v365_v36 = vld [vmem:[%s2161_s23 + $0xc20] sm:$0xff] }
  0x35   : > { %240 = vst [vmem:[%s2166_s24 + $0x128] sm:$0xff] %v239_v37  ;;  %v367_v37 = vld [vmem:[%s2161_s23 + $0xc28] sm:$0xff] }
  0x36   : > { %242 = vst [vmem:[%s2166_s24 + $0x130] sm:$0xff] %v241_v38  ;;  %v369_v38 = vld [vmem:[%s2161_s23 + $0xc30] sm:$0xff] }
  0x37   : > { %244 = vst [vmem:[%s2166_s24 + $0x138] sm:$0xff] %v243_v39  ;;  %v371_v39 = vld [vmem:[%s2161_s23 + $0xc38] sm:$0xff] }
  0x38   : > { %246 = vst [vmem:[%s2166_s24 + $0x140] sm:$0xff] %v245_v40 }
  0x39   : > { %248 = vst [vmem:[%s2166_s24 + $0x148] sm:$0xff] %v247_v41 }
  0x3a   : > { %250 = vst [vmem:[%s2166_s24 + $0x150] sm:$0xff] %v249_v42 }
  0x3b   : > { %252 = vst [vmem:[%s2166_s24 + $0x158] sm:$0xff] %v251_v43 }
  0x3c   : > { %254 = vst [vmem:[%s2166_s24 + $0x160] sm:$0xff] %v253_v44 }
  0x3d   : > { %256 = vst [vmem:[%s2166_s24 + $0x168] sm:$0xff] %v255_v45 }
  0x3e   : > { %258 = vst [vmem:[%s2166_s24 + $0x170] sm:$0xff] %v257_v46 }
  0x3f   : > { %260 = vst [vmem:[%s2166_s24 + $0x178] sm:$0xff] %v259_v47 }
  0x40   : > { %262 = vst [vmem:[%s2166_s24 + $0x180] sm:$0xff] %v261_v48 }
  0x41   : > { %264 = vst [vmem:[%s2166_s24 + $0x188] sm:$0xff] %v263_v49 }
  0x42   : > { %266 = vst [vmem:[%s2166_s24 + $0x190] sm:$0xff] %v265_v50 }
  0x43   : > { %268 = vst [vmem:[%s2166_s24 + $0x198] sm:$0xff] %v267_v51 }
  0x44   : > { %270 = vst [vmem:[%s2166_s24 + $0x1a0] sm:$0xff] %v269_v52 }
  0x45   : > { %272 = vst [vmem:[%s2166_s24 + $0x1a8] sm:$0xff] %v271_v53 }
  0x46   : > { %274 = vst [vmem:[%s2166_s24 + $0x1b0] sm:$0xff] %v273_v54 }
  0x47   : > { %276 = vst [vmem:[%s2166_s24 + $0x1b8] sm:$0xff] %v275_v55 }
  0x48   : > { %278 = vst [vmem:[%s2166_s24 + $0x1c0] sm:$0xff] %v277_v56 }
  0x49   : > { %280 = vst [vmem:[%s2166_s24 + $0x1c8] sm:$0xff] %v279_v57 }
  0x4a   : > { %282 = vst [vmem:[%s2166_s24 + $0x1d0] sm:$0xff] %v281_v58 }
  0x4b   : > { %284 = vst [vmem:[%s2166_s24 + $0x1d8] sm:$0xff] %v283_v59 }
  0x4c   : > { %286 = vst [vmem:[%s2166_s24 + $0x1e0] sm:$0xff] %v285_v60 }
  0x4d   : > { %288 = vst [vmem:[%s2166_s24 + $0x1e8] sm:$0xff] %v287_v61 }
  0x4e   : > { %290 = vst [vmem:[%s2166_s24 + $0x1f0] sm:$0xff] %v289_v62 }
  0x4f   : > { %292 = vst [vmem:[%s2166_s24 + $0x1f8] sm:$0xff] %v291_v63 }
  0x50   : > { %294 = vst [vmem:[%s2166_s24 + $0x200] sm:$0xff] %v293_v0 }
  0x51   : > { %296 = vst [vmem:[%s2166_s24 + $0x208] sm:$0xff] %v295_v1 }
  0x52   : > { %298 = vst [vmem:[%s2166_s24 + $0x210] sm:$0xff] %v297_v2 }
  0x53   : > { %300 = vst [vmem:[%s2166_s24 + $0x218] sm:$0xff] %v299_v3 }
  0x54   : > { %302 = vst [vmem:[%s2166_s24 + $0x220] sm:$0xff] %v301_v4 }
  0x55   : > { %304 = vst [vmem:[%s2166_s24 + $0x228] sm:$0xff] %v303_v5 }
  0x56   : > { %306 = vst [vmem:[%s2166_s24 + $0x230] sm:$0xff] %v305_v6 }
  0x57   : > { %308 = vst [vmem:[%s2166_s24 + $0x238] sm:$0xff] %v307_v7 }
  0x58   : > { %310 = vst [vmem:[%s2166_s24 + $0x240] sm:$0xff] %v309_v8 }
  0x59   : > { %312 = vst [vmem:[%s2166_s24 + $0x248] sm:$0xff] %v311_v9 }
  0x5a   : > { %314 = vst [vmem:[%s2166_s24 + $0x250] sm:$0xff] %v313_v10 }
  0x5b   : > { %316 = vst [vmem:[%s2166_s24 + $0x258] sm:$0xff] %v315_v11 }
  0x5c   : > { %318 = vst [vmem:[%s2166_s24 + $0x260] sm:$0xff] %v317_v12 }
  0x5d   : > { %320 = vst [vmem:[%s2166_s24 + $0x268] sm:$0xff] %v319_v13 }
  0x5e   : > { %322 = vst [vmem:[%s2166_s24 + $0x270] sm:$0xff] %v321_v14 }
  0x5f   : > { %324 = vst [vmem:[%s2166_s24 + $0x278] sm:$0xff] %v323_v15 }
  0x60   : > { %326 = vst [vmem:[%s2166_s24 + $0x280] sm:$0xff] %v325_v16 }
  0x61   : > { %328 = vst [vmem:[%s2166_s24 + $0x288] sm:$0xff] %v327_v17 }
  0x62   : > { %330 = vst [vmem:[%s2166_s24 + $0x290] sm:$0xff] %v329_v18 }
  0x63   : > { %332 = vst [vmem:[%s2166_s24 + $0x298] sm:$0xff] %v331_v19 }
  0x64   : > { %334 = vst [vmem:[%s2166_s24 + $0x2a0] sm:$0xff] %v333_v20 }
  0x65   : > { %336 = vst [vmem:[%s2166_s24 + $0x2a8] sm:$0xff] %v335_v21 }
  0x66   : > { %338 = vst [vmem:[%s2166_s24 + $0x2b0] sm:$0xff] %v337_v22 }
  0x67   : > { %340 = vst [vmem:[%s2166_s24 + $0x2b8] sm:$0xff] %v339_v23 }
  0x68   : > { %342 = vst [vmem:[%s2166_s24 + $0x2c0] sm:$0xff] %v341_v24 }
  0x69   : > { %344 = vst [vmem:[%s2166_s24 + $0x2c8] sm:$0xff] %v343_v25 }
  0x6a   : > { %346 = vst [vmem:[%s2166_s24 + $0x2d0] sm:$0xff] %v345_v26 }
  0x6b   : > { %348 = vst [vmem:[%s2166_s24 + $0x2d8] sm:$0xff] %v347_v27 }
  0x6c   : > { %350 = vst [vmem:[%s2166_s24 + $0x2e0] sm:$0xff] %v349_v28 }
  0x6d   : > { %352 = vst [vmem:[%s2166_s24 + $0x2e8] sm:$0xff] %v351_v29 }
  0x6e   : > { %354 = vst [vmem:[%s2166_s24 + $0x2f0] sm:$0xff] %v353_v30 }
  0x6f   : > { %356 = vst [vmem:[%s2166_s24 + $0x2f8] sm:$0xff] %v355_v31 }
  0x70   : > { %358 = vst [vmem:[%s2166_s24 + $0x300] sm:$0xff] %v357_v32 }
  0x71   : > { %360 = vst [vmem:[%s2166_s24 + $0x308] sm:$0xff] %v359_v33 }
  0x72   : > { %362 = vst [vmem:[%s2166_s24 + $0x310] sm:$0xff] %v361_v34 }
  0x73   : > { %364 = vst [vmem:[%s2166_s24 + $0x318] sm:$0xff] %v363_v35 }
  0x74   : > { %366 = vst [vmem:[%s2166_s24 + $0x320] sm:$0xff] %v365_v36 }
  0x75   : > { %368 = vst [vmem:[%s2166_s24 + $0x328] sm:$0xff] %v367_v37 }
  0x76   : > { %370 = vst [vmem:[%s2166_s24 + $0x330] sm:$0xff] %v369_v38 }
  0x77   : > { %372 = vst [vmem:[%s2166_s24 + $0x338] sm:$0xff] %v371_v39 }
  0x78 PF: > { %p1520_p6 = scmp.ge.s32.totalorder %s2101_s13, 1  ;;  %p377_p7 = scmp.lt.s32.totalorder %s2101_s13, 5 }
  0x7a   : > { %p378_p8 = pnand %p1520_p6, %p377_p7 }
  0x7b   : > { %s384_s25 = sand.u32 (!%p378_p8), 1, %s2085_s9   ;;  %s1521_s30 = sshll.u32 (!%p378_p8), %s2093_s11, 4 }
  0x7c   : > { %381 = sbr.rel (%p378_p8) target bundleno = 387 (0x183), region = 47  ;;  %p430_p9 = scmp.lt.s32.totalorder (!%p378_p8), %s1521_s30, 63 }
  0x7d   : > { %s2022_s26 = smul.u32 (!%p378_p8), 832, %s384_s25 }
  0x7f   : > { %s2376_s27 = scalar_lea.vmem (!%p378_p8), [#allocation2], %s2022_s26 }
  0x81   : > { %v536_v40 = vld [vmem:[%s2376_s27 + $0x300] sm:$0x33]  ;;  %v537_v41 = vld [vmem:[%s2376_s27 + $0x308] sm:$0x33]  ;;  %vm1068_vm0 = vcmask 1041408   ;;  %vm1064_vm1 = vcmask 818176  }
  0x82   : > { %v840_v42 = vunpack.c.l.b16 %v536_v40  ;;  %v841_v43 = vunpack.c.h.b16 %v536_v40  ;;  %v842_v44 = vunpack.c.l.b16 %v537_v41  ;;  %v843_v45 = vunpack.c.h.b16 %v537_v41  ;;  %v1844_v46 = vld [vmem:[%s2376_s27 + $0x280] sm:$0xf]  ;;  %v2005_v52 = vld [vmem:[%s2376_s27 + $0x284] sm:$0xf]  ;;  %v1852_v54 = vld [vmem:[%s2376_s27 + $0x288] sm:$0xf] }
  0x83   : > { %v2013_v47 = vld [vmem:[%s2376_s27 + $0x2bc] sm:$0xf0]  ;;  %v1846_v53 = vld [vmem:[%s2376_s27 + $0x2c0] sm:$0xf0]  ;;  %v2014_v55 = vld [vmem:[%s2376_s27 + $0x2c4] sm:$0xf0] }
  0x84   : > { %v952_v48 = vpack.c.b16 %v840_v42, %v840_v42  ;;  %v953_v49 = vpack.c.b16 %v841_v43, %v841_v43  ;;  %v954_v50 = vpack.c.b16 %v842_v44, %v842_v44  ;;  %v955_v51 = vpack.c.b16 %v843_v45, %v843_v45  ;;  %v2006_v56 = vld [vmem:[%s2376_s27 + $0x28c] sm:$0xf]  ;;  %v1780_v0 = vld [vmem:[%s2376_s27 + $0x200] sm:$0xf]  ;;  %v1989_v4 = vld [vmem:[%s2376_s27 + $0x204] sm:$0xf] }
  0x85   : > { %v1854_v57 = vld [vmem:[%s2376_s27 + $0x2c8] sm:$0xf0]  ;;  %v1845_v62 = vor.u32 %v2013_v47, %v1844_v46  ;;  %v1849_v63 = vor.u32 %v2005_v52, %v1846_v53  ;;  %v1997_v1 = vld [vmem:[%s2376_s27 + $0x23c] sm:$0xf0]  ;;  %v1853_v2 = vor.u32 %v2014_v55, %v1852_v54  ;;  %v1782_v5 = vld [vmem:[%s2376_s27 + $0x240] sm:$0xf0] }
  0x86   : > { %v1070_v58 = vsel %vm1068_vm0, %v952_v48, 0  ;;  %v1073_v59 = vsel %vm1068_vm0, %v953_v49, 0  ;;  %v1076_v60 = vsel %vm1068_vm0, %v954_v50, 0  ;;  %v1079_v61 = vsel %vm1068_vm0, %v955_v51, 0  ;;  %v1788_v6 = vld [vmem:[%s2376_s27 + $0x208] sm:$0xf] }
  0x87   : > { %1118 = vmatpush.bf16.msra.mxu0 %v1070_v58  ;;  %1131 = vmatpush.bf16.msra.mxu1 %v1073_v59  ;;  %v1857_v3 = vor.u32 %v2006_v56, %v1854_v57  ;;  %v1998_v7 = vld [vmem:[%s2376_s27 + $0x244] sm:$0xf0]  ;;  %v1990_v8 = vld [vmem:[%s2376_s27 + $0x20c] sm:$0xf]  ;;  %v1781_v10 = vor.u32 %v1997_v1, %v1780_v0  ;;  %v1785_v11 = vor.u32 %v1989_v4, %v1782_v5  ;;  %v1716_v12 = vld [vmem:[%s2376_s27 + $0x180] sm:$0xf] }
  0x88   : > { %1144 = vmatpush.bf16.msra.mxu2 %v1076_v60  ;;  %1157 = vmatpush.bf16.msra.mxu3 %v1079_v61  ;;  %v1790_v9 = vld [vmem:[%s2376_s27 + $0x248] sm:$0xf0]  ;;  %v1981_v13 = vld [vmem:[%s2376_s27 + $0x1bc] sm:$0xf0]  ;;  %v1789_v14 = vor.u32 %v1998_v7, %v1788_v6  ;;  %v1973_v16 = vld [vmem:[%s2376_s27 + $0x184] sm:$0xf] }
  0x89   : > { %v1793_v15 = vor.u32 %v1990_v8, %v1790_v9  ;;  %v1718_v17 = vld [vmem:[%s2376_s27 + $0x1c0] sm:$0xf0]  ;;  %v1724_v18 = vld [vmem:[%s2376_s27 + $0x188] sm:$0xf]  ;;  %v1974_v20 = vld [vmem:[%s2376_s27 + $0x18c] sm:$0xf]  ;;  %v1717_v22 = vor.u32 %v1981_v13, %v1716_v12 }
  0x8a   : > { %v1982_v19 = vld [vmem:[%s2376_s27 + $0x1c4] sm:$0xf0]  ;;  %v1726_v21 = vld [vmem:[%s2376_s27 + $0x1c8] sm:$0xf0]  ;;  %v1721_v23 = vor.u32 %v1973_v16, %v1718_v17  ;;  %v1652_v24 = vld [vmem:[%s2376_s27 + $0x100] sm:$0xf] }
  0x8b   : > { %1119 = vmatpush.bf16.msra.mxu0 %v1845_v62  ;;  %1132 = vmatpush.bf16.msra.mxu1 %v1849_v63  ;;  %v1965_v25 = vld [vmem:[%s2376_s27 + $0x13c] sm:$0xf0]  ;;  %v1725_v26 = vor.u32 %v1982_v19, %v1724_v18  ;;  %v1729_v27 = vor.u32 %v1974_v20, %v1726_v21  ;;  %v1957_v28 = vld [vmem:[%s2376_s27 + $0x104] sm:$0xf]  ;;  %v1660_v30 = vld [vmem:[%s2376_s27 + $0x108] sm:$0xf] }
  0x8c   : > { %1145 = vmatpush.bf16.msra.mxu2 %v1853_v2  ;;  %1158 = vmatpush.bf16.msra.mxu3 %v1857_v3  ;;  %v1654_v29 = vld [vmem:[%s2376_s27 + $0x140] sm:$0xf0]  ;;  %v1966_v31 = vld [vmem:[%s2376_s27 + $0x144] sm:$0xf0]  ;;  %v1958_v32 = vld [vmem:[%s2376_s27 + $0x10c] sm:$0xf]  ;;  %v1653_v35 = vor.u32 %v1965_v25, %v1652_v24 }
  0x8d   : > { %v1662_v33 = vld [vmem:[%s2376_s27 + $0x148] sm:$0xf0]  ;;  %v1588_v34 = vld [vmem:[%s2376_s27 + $0x80] sm:$0xf]  ;;  %v1657_v36 = vor.u32 %v1957_v28, %v1654_v29  ;;  %v1941_v38 = vld [vmem:[%s2376_s27 + $0x84] sm:$0xf]  ;;  %v1661_v40 = vor.u32 %v1966_v31, %v1660_v30 }
  0x8e   : > { %v1949_v37 = vld [vmem:[%s2376_s27 + $0xbc] sm:$0xf0]  ;;  %v538_v39 = vld [vmem:[%s2376_s27 + $0x310] sm:$0x33]  ;;  %v1665_v41 = vor.u32 %v1958_v32, %v1662_v33  ;;  %v1590_v42 = vld [vmem:[%s2376_s27 + $0xc0] sm:$0xf0] }
  0x8f   : > { %1120 = vmatpush.bf16.msra.mxu0 %v1781_v10  ;;  %1133 = vmatpush.bf16.msra.mxu1 %v1785_v11  ;;  %v1596_v43 = vld [vmem:[%s2376_s27 + $0x88] sm:$0xf]  ;;  %v539_v44 = vld [vmem:[%s2376_s27 + $0x318] sm:$0x33]  ;;  %v1942_v46 = vld [vmem:[%s2376_s27 + $0x8c] sm:$0xf]  ;;  %v844_v48 = vunpack.c.l.b16 %v538_v39  ;;  %v845_v49 = vunpack.c.h.b16 %v538_v39  ;;  %v1589_v50 = vor.u32 %v1949_v37, %v1588_v34  ;;  %v1593_v51 = vor.u32 %v1941_v38, %v1590_v42 }
  0x90   : > { %1146 = vmatpush.bf16.msra.mxu2 %v1789_v14  ;;  %1159 = vmatpush.bf16.msra.mxu3 %v1793_v15  ;;  %v1950_v45 = vld [vmem:[%s2376_s27 + $0xc4] sm:$0xf0]  ;;  %v1598_v47 = vld [vmem:[%s2376_s27 + $0xc8] sm:$0xf0]  ;;  %v1524_v52 = vld [vmem:[%s2376_s27] sm:$0xf]  ;;  %v846_v54 = vunpack.c.l.b16 %v539_v44  ;;  %v847_v55 = vunpack.c.h.b16 %v539_v44 }
  0x91   : > { %v1933_v53 = vld [vmem:[%s2376_s27 + $0x3c] sm:$0xf0]  ;;  %v1597_v56 = vor.u32 %v1950_v45, %v1596_v43  ;;  %v1601_v57 = vor.u32 %v1942_v46, %v1598_v47  ;;  %v1925_v58 = vld [vmem:[%s2376_s27 + $0x4] sm:$0xf]  ;;  %v1532_v60 = vld [vmem:[%s2376_s27 + $0x8] sm:$0xf]  ;;  %v956_v1 = vpack.c.b16 %v844_v48, %v844_v48  ;;  %v957_v2 = vpack.c.b16 %v845_v49, %v845_v49 }
  0x92   : > { %v1526_v59 = vld [vmem:[%s2376_s27 + $0x40] sm:$0xf0]  ;;  %v1934_v61 = vld [vmem:[%s2376_s27 + $0x44] sm:$0xf0]  ;;  %v1926_v62 = vld [vmem:[%s2376_s27 + $0xc] sm:$0xf]  ;;  %v1525_v0 = vor.u32 %v1933_v53, %v1524_v52  ;;  %v958_v4 = vpack.c.b16 %v846_v54, %v846_v54  ;;  %v959_v5 = vpack.c.b16 %v847_v55, %v847_v55 }
  0x93   : > { %1121 = vmatpush.bf16.msra.mxu0 %v1717_v22  ;;  %1134 = vmatpush.bf16.msra.mxu1 %v1721_v23  ;;  %v1534_v63 = vld [vmem:[%s2376_s27 + $0x48] sm:$0xf0]  ;;  %v1529_v3 = vor.u32 %v1925_v58, %v1526_v59  ;;  %v1533_v6 = vor.u32 %v1934_v61, %v1532_v60  ;;  %v1860_v8 = vld [vmem:[%s2376_s27 + $0x290] sm:$0xf]  ;;  %v2007_v10 = vld [vmem:[%s2376_s27 + $0x294] sm:$0xf] }
  0x94   : > { %1147 = vmatpush.bf16.msra.mxu2 %v1725_v26  ;;  %1160 = vmatpush.bf16.msra.mxu3 %v1729_v27  ;;  %v1537_v7 = vor.u32 %v1926_v62, %v1534_v63  ;;  %v2015_v9 = vld [vmem:[%s2376_s27 + $0x2cc] sm:$0xf0]  ;;  %v1862_v11 = vld [vmem:[%s2376_s27 + $0x2d0] sm:$0xf0]  ;;  %v1082_v12 = vsel %vm1068_vm0, %v956_v1, 0  ;;  %v1085_v13 = vsel %vm1068_vm0, %v957_v2, 0 }
  0x95   : > { %v1868_v14 = vld [vmem:[%s2376_s27 + $0x298] sm:$0xf]  ;;  %v1088_v16 = vsel %vm1068_vm0, %v958_v4, 0  ;;  %v1091_v17 = vsel %vm1068_vm0, %v959_v5, 0  ;;  %v2008_v18 = vld [vmem:[%s2376_s27 + $0x29c] sm:$0xf]  ;;  %v1861_v21 = vor.u32 %v2015_v9, %v1860_v8  ;;  %v1865_v22 = vor.u32 %v2007_v10, %v1862_v11 }
  0x96   : > { %v2016_v15 = vld [vmem:[%s2376_s27 + $0x2d4] sm:$0xf0]  ;;  %v1870_v19 = vld [vmem:[%s2376_s27 + $0x2d8] sm:$0xf0]  ;;  %v2449_v20 = vld [vmem:[%s2668_s0] sm:$0x1] }
  0x97   : > { %1122 = vmatpush.bf16.msra.mxu0 %v1653_v35  ;;  %1135 = vmatpush.bf16.msra.mxu1 %v1657_v36  ;;  %v1796_v23 = vld [vmem:[%s2376_s27 + $0x210] sm:$0xf]  ;;  %v1869_v25 = vor.u32 %v2016_v15, %v1868_v14  ;;  %v1873_v26 = vor.u32 %v2008_v18, %v1870_v19  ;;  %v1991_v27 = vld [vmem:[%s2376_s27 + $0x214] sm:$0xf]  ;;  %v1804_v29 = vld [vmem:[%s2376_s27 + $0x218] sm:$0xf] }
  0x98   : > { %1148 = vmatpush.bf16.msra.mxu2 %v1661_v40  ;;  %1161 = vmatpush.bf16.msra.mxu3 %v1665_v41  ;;  %v1999_v24 = vld [vmem:[%s2376_s27 + $0x24c] sm:$0xf0]  ;;  %v1798_v28 = vld [vmem:[%s2376_s27 + $0x250] sm:$0xf0]  ;;  %v2000_v30 = vld [vmem:[%s2376_s27 + $0x254] sm:$0xf0] }
  0x99   : > { %v1992_v31 = vld [vmem:[%s2376_s27 + $0x21c] sm:$0xf]  ;;  %v1797_v33 = vor.u32 %v1999_v24, %v1796_v23  ;;  %v1801_v34 = vor.u32 %v1991_v27, %v1798_v28  ;;  %v1732_v35 = vld [vmem:[%s2376_s27 + $0x190] sm:$0xf]  ;;  %v1805_v37 = vor.u32 %v2000_v30, %v1804_v29  ;;  %v1975_v39 = vld [vmem:[%s2376_s27 + $0x194] sm:$0xf] }
  0x9a   : > { %v1806_v32 = vld [vmem:[%s2376_s27 + $0x258] sm:$0xf0]  ;;  %v1983_v36 = vld [vmem:[%s2376_s27 + $0x1cc] sm:$0xf0]  ;;  %v1734_v40 = vld [vmem:[%s2376_s27 + $0x1d0] sm:$0xf0] }
  0x9b   : > { %1123 = vmatpush.bf16.msra.mxu0 %v1589_v50  ;;  %1136 = vmatpush.bf16.msra.mxu1 %v1593_v51  ;;  %v1809_v38 = vor.u32 %v1992_v31, %v1806_v32  ;;  %v1740_v41 = vld [vmem:[%s2376_s27 + $0x198] sm:$0xf]  ;;  %v1976_v43 = vld [vmem:[%s2376_s27 + $0x19c] sm:$0xf]  ;;  %v1733_v45 = vor.u32 %v1983_v36, %v1732_v35  ;;  %v1737_v46 = vor.u32 %v1975_v39, %v1734_v40  ;;  %v1668_v47 = vld [vmem:[%s2376_s27 + $0x110] sm:$0xf] }
  0x9c   : > { %1149 = vmatpush.bf16.msra.mxu2 %v1597_v56  ;;  %1162 = vmatpush.bf16.msra.mxu3 %v1601_v57  ;;  %v1984_v42 = vld [vmem:[%s2376_s27 + $0x1d4] sm:$0xf0]  ;;  %v1742_v44 = vld [vmem:[%s2376_s27 + $0x1d8] sm:$0xf0]  ;;  %v1967_v48 = vld [vmem:[%s2376_s27 + $0x14c] sm:$0xf0] }
  0x9d   : > { %v1741_v49 = vor.u32 %v1984_v42, %v1740_v41  ;;  %v1745_v50 = vor.u32 %v1976_v43, %v1742_v44  ;;  %v1959_v51 = vld [vmem:[%s2376_s27 + $0x114] sm:$0xf]  ;;  %v1676_v53 = vld [vmem:[%s2376_s27 + $0x118] sm:$0xf]  ;;  %v1960_v55 = vld [vmem:[%s2376_s27 + $0x11c] sm:$0xf]  ;;  %v1669_v58 = vor.u32 %v1967_v48, %v1668_v47 }
  0x9e   : > { %v1670_v52 = vld [vmem:[%s2376_s27 + $0x150] sm:$0xf0]  ;;  %v1968_v54 = vld [vmem:[%s2376_s27 + $0x154] sm:$0xf0]  ;;  %v1678_v56 = vld [vmem:[%s2376_s27 + $0x158] sm:$0xf0] }
  0x9f   : > { %1124 = vmatpush.bf16.msra.mxu0 %v1525_v0  ;;  %1137 = vmatpush.bf16.msra.mxu1 %v1529_v3  ;;  %v1604_v57 = vld [vmem:[%s2376_s27 + $0x90] sm:$0xf]  ;;  %v1673_v59 = vor.u32 %v1959_v51, %v1670_v52  ;;  %v1943_v61 = vld [vmem:[%s2376_s27 + $0x94] sm:$0xf]  ;;  %v540_v62 = vld [vmem:[%s2376_s27 + $0x320] sm:$0x33]  ;;  %v1677_v63 = vor.u32 %v1968_v54, %v1676_v53  ;;  %v1681_v0 = vor.u32 %v1960_v55, %v1678_v56 }
  0xa0   : > { %1150 = vmatpush.bf16.msra.mxu2 %v1533_v6  ;;  %1163 = vmatpush.bf16.msra.mxu3 %v1537_v7  ;;  %v1951_v60 = vld [vmem:[%s2376_s27 + $0xcc] sm:$0xf0]  ;;  %v1606_v1 = vld [vmem:[%s2376_s27 + $0xd0] sm:$0xf0]  ;;  %v1612_v2 = vld [vmem:[%s2376_s27 + $0x98] sm:$0xf]  ;;  %v848_v7 = vunpack.c.l.b16 %v540_v62  ;;  %v849_v8 = vunpack.c.h.b16 %v540_v62 }
  0xa1   : > { %v541_v3 = vld [vmem:[%s2376_s27 + $0x328] sm:$0x33]  ;;  %v1952_v4 = vld [vmem:[%s2376_s27 + $0xd4] sm:$0xf0]  ;;  %v1944_v5 = vld [vmem:[%s2376_s27 + $0x9c] sm:$0xf]  ;;  %v1605_v9 = vor.u32 %v1951_v60, %v1604_v57  ;;  %v1609_v10 = vor.u32 %v1943_v61, %v1606_v1 }
  0xa2   : > { %1906 = vmatmul.msk.bf16.vlgmr.msra.gmra.mxu0 %vm1064_vm1, %v2449_v20  ;;  %1907 = vmatmul.msk.bf16.vlgmr.msra.gmra.mxu1 %vm1064_vm1, %v2449_v20  ;;  %v1614_v6 = vld [vmem:[%s2376_s27 + $0xd8] sm:$0xf0]  ;;  %v1540_v11 = vld [vmem:[%s2376_s27 + $0x10] sm:$0xf]  ;;  %v851_v14 = vunpack.c.h.b16 %v541_v3  ;;  %v1613_v15 = vor.u32 %v1952_v4, %v1612_v2  ;;  %v1542_v18 = vld [vmem:[%s2376_s27 + $0x50] sm:$0xf0] }
  0xa3   : > { %1170 = vmatpush.bf16.msrb.mxu0 %v1082_v12  ;;  %1183 = vmatpush.bf16.msrb.mxu1 %v1085_v13  ;;  %v1935_v12 = vld [vmem:[%s2376_s27 + $0x4c] sm:$0xf0]  ;;  %v850_v13 = vunpack.c.l.b16 %v541_v3  ;;  %v1548_v19 = vld [vmem:[%s2376_s27 + $0x18] sm:$0xf]  ;;  %v1550_v23 = vld [vmem:[%s2376_s27 + $0x58] sm:$0xf0] }
  0xa4   : > { %1196 = vmatpush.bf16.msrb.mxu2 %v1088_v16  ;;  %1209 = vmatpush.bf16.msrb.mxu3 %v1091_v17  ;;  %v1617_v16 = vor.u32 %v1944_v5, %v1614_v6  ;;  %v1927_v17 = vld [vmem:[%s2376_s27 + $0x14] sm:$0xf]  ;;  %v1541_v24 = vor.u32 %v1935_v12, %v1540_v11  ;;  %v963_v29 = vpack.c.b16 %v851_v14, %v851_v14  ;;  %v1876_v32 = vld [vmem:[%s2376_s27 + $0x2a0] sm:$0xf]  ;;  %v1878_v35 = vld [vmem:[%s2376_s27 + $0x2e0] sm:$0xf0] }
  0xa5   : > { %1908 = vmatmul.msk.bf16.vlgmr.msra.gmra.mxu2 %vm1064_vm1, %v2449_v20  ;;  %1909 = vmatmul.msk.bf16.vlgmr.msra.gmra.mxu3 %vm1064_vm1, %v2449_v20  ;;  %v1545_v27 = vor.u32 %v1927_v17, %v1542_v18  ;;  %v962_v28 = vpack.c.b16 %v850_v13, %v850_v13  ;;  %v2018_v39 = vld [vmem:[%s2376_s27 + $0x2e4] sm:$0xf0]  ;;  %v2010_v42 = vld [vmem:[%s2376_s27 + $0x2ac] sm:$0xf]  ;;  %v2001_v47 = vld [vmem:[%s2376_s27 + $0x25c] sm:$0xf0] }
  0xa6   : > { %v1103_v41 = vsel %vm1068_vm0, %v963_v29, 0  ;;  %v1886_v43 = vld [vmem:[%s2376_s27 + $0x2e8] sm:$0xf0]  ;;  %v1814_v51 = vld [vmem:[%s2376_s27 + $0x260] sm:$0xf0]  ;;  %vm1355_vm2 = vcmask 1040384  }
  0xa7   : > { %1171 = vmatpush.bf16.msrb.mxu0 %v1861_v21  ;;  %1184 = vmatpush.bf16.msrb.mxu1 %v1865_v22  ;;  %v1936_v21 = vld [vmem:[%s2376_s27 + $0x54] sm:$0xf0]  ;;  %v1928_v22 = vld [vmem:[%s2376_s27 + $0x1c] sm:$0xf]  ;;  %v1100_v40 = vsel %vm1068_vm0, %v962_v28, 0  ;;  %vm1359_vm3 = vcmask 1042434  }
  0xa8   : > { %1197 = vmatpush.bf16.msrb.mxu2 %v1869_v25  ;;  %1210 = vmatpush.bf16.msrb.mxu3 %v1873_v26  ;;  %v960_v25 = vpack.c.b16 %v848_v7, %v848_v7  ;;  %v961_v26 = vpack.c.b16 %v849_v8, %v849_v8  ;;  %v1549_v30 = vor.u32 %v1936_v21, %v1548_v19  ;;  %v1820_v52 = vld [vmem:[%s2376_s27 + $0x228] sm:$0xf]  ;;  %v1994_v54 = vld [vmem:[%s2376_s27 + $0x22c] sm:$0xf]  ;;  %v1977_v62 = vld [vmem:[%s2376_s27 + $0x1a4] sm:$0xf] }
  0xa9   : > { %v1553_v31 = vor.u32 %v1928_v22, %v1550_v23  ;;  %v2002_v53 = vld [vmem:[%s2376_s27 + $0x264] sm:$0xf0]  ;;  %v1822_v55 = vld [vmem:[%s2376_s27 + $0x268] sm:$0xf0]  ;;  %v1684_v6 = vld [vmem:[%s2376_s27 + $0x120] sm:$0xf] }
  0xaa   : > { %v1094_v36 = vsel %vm1068_vm0, %v960_v25, 0  ;;  %v1821_v60 = vor.u32 %v2002_v53, %v1820_v52  ;;  %v1825_v61 = vor.u32 %v1994_v54, %v1822_v55  ;;  %v1986_v1 = vld [vmem:[%s2376_s27 + $0x1e4] sm:$0xf0]  ;;  %v1978_v2 = vld [vmem:[%s2376_s27 + $0x1ac] sm:$0xf]  ;;  %vm1364_vm4 = vcmask 1044484  }
  0xab   : > { %1172 = vmatpush.bf16.msrb.mxu0 %v1797_v33  ;;  %1185 = vmatpush.bf16.msrb.mxu1 %v1801_v34  ;;  %v2017_v33 = vld [vmem:[%s2376_s27 + $0x2dc] sm:$0xf0]  ;;  %v2009_v34 = vld [vmem:[%s2376_s27 + $0x2a4] sm:$0xf]  ;;  %v1758_v3 = vld [vmem:[%s2376_s27 + $0x1e8] sm:$0xf0] }
  0xac   : > { %1198 = vmatpush.bf16.msrb.mxu2 %v1805_v37  ;;  %1211 = vmatpush.bf16.msrb.mxu3 %v1809_v38  ;;  %v1097_v37 = vsel %vm1068_vm0, %v961_v26, 0  ;;  %v1884_v38 = vld [vmem:[%s2376_s27 + $0x2a8] sm:$0xf]  ;;  %v1877_v44 = vor.u32 %v2017_v33, %v1876_v32  ;;  %v1969_v7 = vld [vmem:[%s2376_s27 + $0x15c] sm:$0xf0]  ;;  %s2678_s30 = smov (!%p430_p9, %s1521_s30), 63 }
  0xad   : > { %v1885_v48 = vor.u32 %v2018_v39, %v1884_v38  ;;  %v1686_v11 = vld [vmem:[%s2376_s27 + $0x160] sm:$0xf0]  ;;  %v1692_v12 = vld [vmem:[%s2376_s27 + $0x128] sm:$0xf]  ;;  %v1962_v14 = vld [vmem:[%s2376_s27 + $0x12c] sm:$0xf]  ;;  %v1685_v17 = vor.u32 %v1969_v7, %v1684_v6  ;;  %s2638_s5 = scalar_lea.vmem %s2670_s2, %s2678_s30 }
  0xae   : > { %v1970_v13 = vld [vmem:[%s2376_s27 + $0x164] sm:$0xf0]  ;;  %v1953_v19 = vld [vmem:[%s2376_s27 + $0xdc] sm:$0xf0]  ;;  %v1945_v21 = vld [vmem:[%s2376_s27 + $0xa4] sm:$0xf] }
  0xaf   : > { %1173 = vmatpush.bf16.msrb.mxu0 %v1733_v45  ;;  %1186 = vmatpush.bf16.msrb.mxu1 %v1737_v46  ;;  %v1881_v45 = vor.u32 %v2009_v34, %v1878_v35  ;;  %v1812_v46 = vld [vmem:[%s2376_s27 + $0x220] sm:$0xf]  ;;  %v542_v22 = vld [vmem:[%s2376_s27 + $0x330] sm:$0x33]  ;;  %v1693_v23 = vor.u32 %v1970_v13, %v1692_v12  ;;  %v1622_v25 = vld [vmem:[%s2376_s27 + $0xe0] sm:$0xf0] }
  0xb0   : > { %1199 = vmatpush.bf16.msrb.mxu2 %v1741_v49  ;;  %1212 = vmatpush.bf16.msrb.mxu3 %v1745_v50  ;;  %v1889_v49 = vor.u32 %v2010_v42, %v1886_v43  ;;  %v1993_v50 = vld [vmem:[%s2376_s27 + $0x224] sm:$0xf]  ;;  %v1813_v56 = vor.u32 %v2001_v47, %v1812_v46  ;;  %v1628_v26 = vld [vmem:[%s2376_s27 + $0xa8] sm:$0xf]  ;;  %v1946_v29 = vld [vmem:[%s2376_s27 + $0xac] sm:$0xf]  ;;  %v853_v32 = vunpack.c.h.b16 %v542_v22  ;;  %v1625_v34 = vor.u32 %v1945_v21, %v1622_v25 }
  0xb1   : > { %v1817_v57 = vor.u32 %v1993_v50, %v1814_v51  ;;  %v1954_v28 = vld [vmem:[%s2376_s27 + $0xe4] sm:$0xf0]  ;;  %v1556_v35 = vld [vmem:[%s2376_s27 + $0x20] sm:$0xf]  ;;  %v1558_v42 = vld [vmem:[%s2376_s27 + $0x60] sm:$0xf0] }
  0xb2   : > { %v1629_v39 = vor.u32 %v1954_v28, %v1628_v26  ;;  %v1564_v43 = vld [vmem:[%s2376_s27 + $0x28] sm:$0xf]  ;;  %v1566_v46 = vld [vmem:[%s2376_s27 + $0x68] sm:$0xf0]  ;;  %v1892_v55 = vld [vmem:[%s2376_s27 + $0x2b0] sm:$0xf] }
  0xb3   : > { %1174 = vmatpush.bf16.msrb.mxu0 %v1669_v58  ;;  %1187 = vmatpush.bf16.msrb.mxu1 %v1673_v59  ;;  %v1748_v58 = vld [vmem:[%s2376_s27 + $0x1a0] sm:$0xf]  ;;  %v2003_v6 = vld [vmem:[%s2376_s27 + $0x26c] sm:$0xf0]  ;;  %v2004_v12 = vld [vmem:[%s2376_s27 + $0x274] sm:$0xf0] }
  0xb4   : > { %1200 = vmatpush.bf16.msrb.mxu2 %v1677_v63  ;;  %1213 = vmatpush.bf16.msrb.mxu3 %v1681_v0  ;;  %v1985_v59 = vld [vmem:[%s2376_s27 + $0x1dc] sm:$0xf0]  ;;  %v1750_v63 = vld [vmem:[%s2376_s27 + $0x1e0] sm:$0xf0]  ;;  %v1756_v0 = vld [vmem:[%s2376_s27 + $0x1a8] sm:$0xf] }
  0xb5   : > { %v1749_v4 = vor.u32 %v1985_v59, %v1748_v58  ;;  %v1753_v5 = vor.u32 %v1977_v62, %v1750_v63  ;;  %v1757_v8 = vor.u32 %v1986_v1, %v1756_v0  ;;  %v1894_v58 = vld [vmem:[%s2376_s27 + $0x2f0] sm:$0xf0]  ;;  %v2020_v62 = vld [vmem:[%s2376_s27 + $0x2f4] sm:$0xf0]  ;;  %v2012_v1 = vld [vmem:[%s2376_s27 + $0x2bc] sm:$0xf] }
  0xb6   : > { %v1996_v13 = vld [vmem:[%s2376_s27 + $0x23c] sm:$0xf]  ;;  %v1988_v25 = vld [vmem:[%s2376_s27 + $0x1f4] sm:$0xf0]  ;;  %vm1368_vm5 = vcmask 1046534   ;;  %vm1372_vm6 = vcmask 1045508  }
  0xb7   : > { %1175 = vmatpush.bf16.msrb.mxu0 %v1605_v9  ;;  %1188 = vmatpush.bf16.msrb.mxu1 %v1609_v10  ;;  %v1761_v9 = vor.u32 %v1978_v2, %v1758_v3  ;;  %v1961_v10 = vld [vmem:[%s2376_s27 + $0x124] sm:$0xf]  ;;  %v1902_v2 = vld [vmem:[%s2376_s27 + $0x2f8] sm:$0xf0]  ;;  %vm1374_vm7 = vcmask 1043456  }
  0xb8   : > { %1201 = vmatpush.bf16.msrb.mxu2 %v1613_v15  ;;  %1214 = vmatpush.bf16.msrb.mxu3 %v1617_v16  ;;  %v1694_v15 = vld [vmem:[%s2376_s27 + $0x168] sm:$0xf0]  ;;  %v1620_v16 = vld [vmem:[%s2376_s27 + $0xa0] sm:$0xf]  ;;  %v1689_v18 = vor.u32 %v1961_v10, %v1686_v11  ;;  %v1830_v10 = vld [vmem:[%s2376_s27 + $0x270] sm:$0xf0] }
  0xb9   : > { %v1621_v33 = vor.u32 %v1953_v19, %v1620_v16  ;;  %v1836_v11 = vld [vmem:[%s2376_s27 + $0x238] sm:$0xf]  ;;  %v1980_v26 = vld [vmem:[%s2376_s27 + $0x1bc] sm:$0xf] }
  0xba   : > { %v1837_v19 = vor.u32 %v2004_v12, %v1836_v11 }
  0xbb   : > { %1176 = vmatpush.bf16.msrb.mxu0 %v1541_v24  ;;  %1189 = vmatpush.bf16.msrb.mxu1 %v1545_v27  ;;  %v1697_v24 = vor.u32 %v1962_v14, %v1694_v15  ;;  %v543_v27 = vld [vmem:[%s2376_s27 + $0x338] sm:$0x33] }
  0xbc   : > { %1202 = vmatpush.bf16.msrb.mxu2 %v1549_v30  ;;  %1215 = vmatpush.bf16.msrb.mxu3 %v1553_v31  ;;  %v1630_v30 = vld [vmem:[%s2376_s27 + $0xe8] sm:$0xf0]  ;;  %v852_v31 = vunpack.c.l.b16 %v542_v22  ;;  %v855_v38 = vunpack.c.h.b16 %v543_v27  ;;  %v1838_v14 = vld [vmem:[%s2376_s27 + $0x278] sm:$0xf0]  ;;  %v1979_v22 = vld [vmem:[%s2376_s27 + $0x1b4] sm:$0xf] }
  0xbd   : > { %v1841_v21 = vor.u32 %v1996_v13, %v1838_v14 }
  0xbe   : > { %1910 = vmatmul.msk.bf16.vlgmr.msrb.gmra.mxu0 %vm1064_vm1, %v2449_v20  ;;  %1911 = vmatmul.msk.bf16.vlgmr.msrb.gmra.mxu1 %vm1064_vm1, %v2449_v20  ;;  %v967_v52 = vpack.c.b16 %v855_v38, %v855_v38  ;;  %v1964_v38 = vld [vmem:[%s2376_s27 + $0x13c] sm:$0xf] }
  0xbf   : > { %1222 = vmatpush.bf16.msra.mxu0 %v1094_v36  ;;  %1235 = vmatpush.bf16.msra.mxu1 %v1097_v37  ;;  %v1937_v36 = vld [vmem:[%s2376_s27 + $0x5c] sm:$0xf0]  ;;  %v854_v37 = vunpack.c.l.b16 %v543_v27  ;;  %v1774_v27 = vld [vmem:[%s2376_s27 + $0x1f8] sm:$0xf0] }
  0xc0   : > { %1248 = vmatpush.bf16.msra.mxu2 %v1100_v40  ;;  %1261 = vmatpush.bf16.msra.mxu3 %v1103_v41  ;;  %v1633_v40 = vor.u32 %v1946_v29, %v1630_v30  ;;  %v1929_v41 = vld [vmem:[%s2376_s27 + $0x24] sm:$0xf]  ;;  %v1557_v47 = vor.u32 %v1937_v36, %v1556_v35  ;;  %v1115_v0 = vsel %vm1068_vm0, %v967_v52, 0  ;;  %v1700_v30 = vld [vmem:[%s2376_s27 + $0x130] sm:$0xf] }
  0xc1   : > { %1912 = vmatmul.msk.bf16.vlgmr.msrb.gmra.mxu2 %vm1064_vm1, %v2449_v20  ;;  %1913 = vmatmul.msk.bf16.vlgmr.msrb.gmra.mxu3 %vm1064_vm1, %v2449_v20  ;;  %v1561_v50 = vor.u32 %v1929_v41, %v1558_v42  ;;  %v966_v51 = vpack.c.b16 %v854_v37, %v854_v37  ;;  %v1702_v35 = vld [vmem:[%s2376_s27 + $0x170] sm:$0xf0]  ;;  %v1708_v36 = vld [vmem:[%s2376_s27 + $0x138] sm:$0xf]  ;;  %v1636_v42 = vld [vmem:[%s2376_s27 + $0xb0] sm:$0xf] }
  0xc2   : > { %v1972_v37 = vld [vmem:[%s2376_s27 + $0x174] sm:$0xf0] }
  0xc3   : > { %1223 = vmatpush.bf16.msra.mxu0 %v1877_v44  ;;  %1236 = vmatpush.bf16.msra.mxu1 %v1881_v45  ;;  %v1938_v44 = vld [vmem:[%s2376_s27 + $0x64] sm:$0xf0]  ;;  %v1930_v45 = vld [vmem:[%s2376_s27 + $0x2c] sm:$0xf]  ;;  %v1112_v63 = vsel %vm1068_vm0, %v966_v51, 0 }
  0xc4   : > { %1249 = vmatpush.bf16.msra.mxu2 %v1885_v48  ;;  %1262 = vmatpush.bf16.msra.mxu3 %v1889_v49  ;;  %v964_v48 = vpack.c.b16 %v852_v31, %v852_v31  ;;  %v965_v49 = vpack.c.b16 %v853_v32, %v853_v32  ;;  %v1565_v53 = vor.u32 %v1938_v44, %v1564_v43  ;;  %v1971_v31 = vld [vmem:[%s2376_s27 + $0x16c] sm:$0xf0]  ;;  %v1646_v51 = vld [vmem:[%s2376_s27 + $0xf8] sm:$0xf0] }
  0xc5   : > { %v1569_v54 = vor.u32 %v1930_v45, %v1566_v46  ;;  %v1955_v43 = vld [vmem:[%s2376_s27 + $0xec] sm:$0xf0]  ;;  %v1709_v44 = vor.u32 %v1972_v37, %v1708_v36  ;;  %v1947_v46 = vld [vmem:[%s2376_s27 + $0xb4] sm:$0xf] }
  0xc6   : > { %v1106_v59 = vsel %vm1068_vm0, %v964_v48, 0  ;;  %v1644_v48 = vld [vmem:[%s2376_s27 + $0xb8] sm:$0xf]  ;;  %v1637_v52 = vor.u32 %v1955_v43, %v1636_v42 }
  0xc7   : > { %1224 = vmatpush.bf16.msra.mxu0 %v1813_v56  ;;  %1237 = vmatpush.bf16.msra.mxu1 %v1817_v57  ;;  %v2019_v56 = vld [vmem:[%s2376_s27 + $0x2ec] sm:$0xf0]  ;;  %v2011_v57 = vld [vmem:[%s2376_s27 + $0x2b4] sm:$0xf] }
  0xc8   : > { %1250 = vmatpush.bf16.msra.mxu2 %v1821_v60  ;;  %1263 = vmatpush.bf16.msra.mxu3 %v1825_v61  ;;  %v1109_v60 = vsel %vm1068_vm0, %v965_v49, 0  ;;  %v1900_v61 = vld [vmem:[%s2376_s27 + $0x2b8] sm:$0xf]  ;;  %v1893_v3 = vor.u32 %v2019_v56, %v1892_v55  ;;  %v1939_v55 = vld [vmem:[%s2376_s27 + $0x6c] sm:$0xf0] }
  0xc9   : > { %v1901_v7 = vor.u32 %v2020_v62, %v1900_v61  ;;  %v1956_v49 = vld [vmem:[%s2376_s27 + $0xf4] sm:$0xf0]  ;;  %v1932_v62 = vld [vmem:[%s2376_s27 + $0x3c] sm:$0xf] }
  0xca   : > { %v1645_v56 = vor.u32 %v1956_v49, %v1644_v48  ;;  %v1940_v61 = vld [vmem:[%s2376_s27 + $0x74] sm:$0xf0] }
  0xcb   : > { %1225 = vmatpush.bf16.msra.mxu0 %v1749_v4  ;;  %1238 = vmatpush.bf16.msra.mxu1 %v1753_v5  ;;  %v1897_v4 = vor.u32 %v2011_v57, %v1894_v58  ;;  %v1828_v5 = vld [vmem:[%s2376_s27 + $0x230] sm:$0xf]  ;;  %v1931_v58 = vld [vmem:[%s2376_s27 + $0x34] sm:$0xf] }
  0xcc   : > { %1251 = vmatpush.bf16.msra.mxu2 %v1757_v8  ;;  %1264 = vmatpush.bf16.msra.mxu3 %v1761_v9  ;;  %v1905_v8 = vor.u32 %v2012_v1, %v1902_v2  ;;  %v1995_v9 = vld [vmem:[%s2376_s27 + $0x234] sm:$0xf]  ;;  %v1829_v15 = vor.u32 %v2003_v6, %v1828_v5 }
  0xcd   : > { %v1833_v16 = vor.u32 %v1995_v9, %v1830_v10 }
  0xcf   : > { %1226 = vmatpush.bf16.msra.mxu0 %v1685_v17  ;;  %1239 = vmatpush.bf16.msra.mxu1 %v1689_v18  ;;  %v1764_v17 = vld [vmem:[%s2376_s27 + $0x1b0] sm:$0xf] }
  0xd0   : > { %1252 = vmatpush.bf16.msra.mxu2 %v1693_v23  ;;  %1265 = vmatpush.bf16.msra.mxu3 %v1697_v24  ;;  %v1987_v18 = vld [vmem:[%s2376_s27 + $0x1ec] sm:$0xf0]  ;;  %v1766_v23 = vld [vmem:[%s2376_s27 + $0x1f0] sm:$0xf0]  ;;  %v1772_v24 = vld [vmem:[%s2376_s27 + $0x1b8] sm:$0xf] }
  0xd1   : > { %v1765_v28 = vor.u32 %v1987_v18, %v1764_v17  ;;  %v1769_v29 = vor.u32 %v1979_v22, %v1766_v23  ;;  %v1773_v32 = vor.u32 %v1988_v25, %v1772_v24 }
  0xd3   : > { %1227 = vmatpush.bf16.msra.mxu0 %v1621_v33  ;;  %1240 = vmatpush.bf16.msra.mxu1 %v1625_v34  ;;  %v1777_v33 = vor.u32 %v1980_v26, %v1774_v27  ;;  %v1963_v34 = vld [vmem:[%s2376_s27 + $0x134] sm:$0xf] }
  0xd4   : > { %1253 = vmatpush.bf16.msra.mxu2 %v1629_v39  ;;  %1266 = vmatpush.bf16.msra.mxu3 %v1633_v40  ;;  %v1710_v39 = vld [vmem:[%s2376_s27 + $0x178] sm:$0xf0]  ;;  %v1701_v40 = vor.u32 %v1971_v31, %v1700_v30  ;;  %v1705_v41 = vor.u32 %v1963_v34, %v1702_v35 }
  0xd5   : > { %v1713_v45 = vor.u32 %v1964_v38, %v1710_v39 }
  0xd7   : > { %1228 = vmatpush.bf16.msra.mxu0 %v1557_v47  ;;  %1241 = vmatpush.bf16.msra.mxu1 %v1561_v50  ;;  %v1638_v47 = vld [vmem:[%s2376_s27 + $0xf0] sm:$0xf0]  ;;  %v1948_v50 = vld [vmem:[%s2376_s27 + $0xbc] sm:$0xf] }
  0xd8   : > { %1254 = vmatpush.bf16.msra.mxu2 %v1565_v53  ;;  %1267 = vmatpush.bf16.msra.mxu3 %v1569_v54  ;;  %v1641_v53 = vor.u32 %v1947_v46, %v1638_v47  ;;  %v1572_v54 = vld [vmem:[%s2376_s27 + $0x30] sm:$0xf]  ;;  %v1649_v57 = vor.u32 %v1948_v50, %v1646_v51 }
  0xda   : > { %1914 = vmatmul.msk.bf16.vlgmr.msra.gmra.mxu0 %vm1064_vm1, %v2449_v20  ;;  %1915 = vmatmul.msk.bf16.vlgmr.msra.gmra.mxu1 %vm1064_vm1, %v2449_v20 }
  0xdb   : > { %1274 = vmatpush.bf16.msrb.mxu0 %v1106_v59  ;;  %1287 = vmatpush.bf16.msrb.mxu1 %v1109_v60  ;;  %v1574_v59 = vld [vmem:[%s2376_s27 + $0x70] sm:$0xf0]  ;;  %v1580_v60 = vld [vmem:[%s2376_s27 + $0x38] sm:$0xf] }
  0xdc   : > { %1300 = vmatpush.bf16.msrb.mxu2 %v1112_v63  ;;  %1313 = vmatpush.bf16.msrb.mxu3 %v1115_v0  ;;  %v1582_v63 = vld [vmem:[%s2376_s27 + $0x78] sm:$0xf0]  ;;  %v1573_v0 = vor.u32 %v1939_v55, %v1572_v54  ;;  %v1577_v1 = vor.u32 %v1931_v58, %v1574_v59  ;;  %v1581_v2 = vor.u32 %v1940_v61, %v1580_v60 }
  0xdd   : > { %1916 = vmatmul.msk.bf16.vlgmr.msra.gmra.mxu2 %vm1064_vm1, %v2449_v20  ;;  %1917 = vmatmul.msk.bf16.vlgmr.msra.gmra.mxu3 %vm1064_vm1, %v2449_v20 }
  0xdf   : > { %1275 = vmatpush.bf16.msrb.mxu0 %v1893_v3  ;;  %1288 = vmatpush.bf16.msrb.mxu1 %v1897_v4  ;;  %v1585_v3 = vor.u32 %v1932_v62, %v1582_v63 }
  0xe0   : > { %1301 = vmatpush.bf16.msrb.mxu2 %v1901_v7  ;;  %1314 = vmatpush.bf16.msrb.mxu3 %v1905_v8 }
  0xe3   : > { %1276 = vmatpush.bf16.msrb.mxu0 %v1829_v15  ;;  %1289 = vmatpush.bf16.msrb.mxu1 %v1833_v16 }
  0xe4   : > { %1302 = vmatpush.bf16.msrb.mxu2 %v1837_v19  ;;  %1315 = vmatpush.bf16.msrb.mxu3 %v1841_v21 }
  0xe7   : > { %1277 = vmatpush.bf16.msrb.mxu0 %v1765_v28  ;;  %1290 = vmatpush.bf16.msrb.mxu1 %v1769_v29 }
  0xe8   : > { %1303 = vmatpush.bf16.msrb.mxu2 %v1773_v32  ;;  %1316 = vmatpush.bf16.msrb.mxu3 %v1777_v33 }
  0xeb   : > { %1278 = vmatpush.bf16.msrb.mxu0 %v1701_v40  ;;  %1291 = vmatpush.bf16.msrb.mxu1 %v1705_v41 }
  0xec   : > { %1304 = vmatpush.bf16.msrb.mxu2 %v1709_v44  ;;  %1317 = vmatpush.bf16.msrb.mxu3 %v1713_v45 }
  0xef   : > { %1279 = vmatpush.bf16.msrb.mxu0 %v1637_v52  ;;  %1292 = vmatpush.bf16.msrb.mxu1 %v1641_v53 }
  0xf0   : > { %1305 = vmatpush.bf16.msrb.mxu2 %v1645_v56  ;;  %1318 = vmatpush.bf16.msrb.mxu3 %v1649_v57 }
  0xf3   : > { %1280 = vmatpush.bf16.msrb.mxu0 %v1573_v0  ;;  %1293 = vmatpush.bf16.msrb.mxu1 %v1577_v1 }
  0xf4   : > { %1306 = vmatpush.bf16.msrb.mxu2 %v1581_v2  ;;  %1319 = vmatpush.bf16.msrb.mxu3 %v1585_v3 }
  0xf6   : > { %1918 = vmatmul.msk.bf16.vlgmr.msrb.gmra.mxu0 %vm1064_vm1, %v2449_v20  ;;  %1919 = vmatmul.msk.bf16.vlgmr.msrb.gmra.mxu1 %vm1064_vm1, %v2449_v20 }
  0xf7   : > { %1920 = vmatmul.msk.bf16.vlgmr.msrb.gmra.mxu2 %vm1064_vm1, %v2449_v20  ;;  %1921 = vmatmul.msk.bf16.vlgmr.msrb.gmra.mxu3 %vm1064_vm1, %v2449_v20 }
 0x11f   : > { %v1126_v4 = vpop.f32.mrf.mxu0  ;;  %v1139_v5 = vpop.f32.mrf.mxu1 }
 0x120   : > { %v1325_v12 = vpack.c.bf16 %v1139_v5, %v1126_v4 }
 0x122   : > { %v1341_v17 = vrot.slane %v1325_v12, 3 }
 0x124   : > { %v1358_v25 = vsel %vm1355_vm2, %v1325_v12, %v1341_v17 }
 0x127   : > { %v1128_v8 = vpop.f32.mrf.mxu0  ;;  %v1141_v9 = vpop.f32.mrf.mxu1 }
 0x128   : > { %v1152_v6 = vpop.f32.mrf.mxu2  ;;  %v1165_v7 = vpop.f32.mrf.mxu3 }
 0x129   : > { %v1326_v13 = vpack.c.bf16 %v1165_v7, %v1152_v6 }
 0x12b   : > { %v1342_v18 = vrot.slane %v1326_v13, 6  ;;  %v1343_v19 = vrot.slane %v1326_v13, 1 }
 0x12d   : > { %v1362_v26 = vsel %vm1359_vm3, %v1342_v18, %v1343_v19 }
 0x12e   : > { %v1363_v33 = vsel %vm1068_vm0, %v1358_v25, %v1362_v26 }
 0x130   : > { %v1154_v10 = vpop.f32.mrf.mxu2  ;;  %v1167_v11 = vpop.f32.mrf.mxu3 }
 0x13b   : > { %v1178_v14 = vpop.f32.mrf.mxu0  ;;  %v1191_v15 = vpop.f32.mrf.mxu1 }
 0x13c   : > { %v1327_v16 = vpack.c.bf16 %v1191_v15, %v1178_v14 }
 0x13e   : > { %v1344_v20 = vrot.slane %v1327_v16, 4  ;;  %v1345_v21 = vrot.slane %v1327_v16, 7 }
 0x140   : > { %v1367_v27 = vsel %vm1364_vm4, %v1344_v20, %v1345_v21 }
 0x143   : > { %v1180_v30 = vpop.f32.mrf.mxu0  ;;  %v1193_v31 = vpop.f32.mrf.mxu1 }
 0x144   : > { %v1204_v22 = vpop.f32.mrf.mxu2  ;;  %v1217_v23 = vpop.f32.mrf.mxu3 }
 0x145   : > { %v1328_v24 = vpack.c.bf16 %v1217_v23, %v1204_v22 }
 0x147   : > { %v1346_v28 = vrot.slane %v1328_v24, 2  ;;  %v1347_v29 = vrot.slane %v1328_v24, 5 }
 0x149   : > { %v1371_v32 = vsel %vm1368_vm5, %v1346_v28, %v1347_v29 }
 0x14a   : > { %v1373_v34 = vsel %vm1372_vm6, %v1367_v27, %v1371_v32 }
 0x14b   : > { %v1375_v35 = vsel %vm1374_vm7, %v1363_v33, %v1373_v34 }
 0x14c   : > { %1393 = vst [vmem:[%s2638_s5] sm:$0xff] %v1375_v35  ;;  %v1206_v36 = vpop.f32.mrf.mxu2  ;;  %v1219_v37 = vpop.f32.mrf.mxu3 }
 0x157   : > { %v1230_v38 = vpop.f32.mrf.mxu0  ;;  %v1243_v39 = vpop.f32.mrf.mxu1 }
 0x158   : > { %v1329_v48 = vpack.c.bf16 %v1243_v39, %v1230_v38 }
 0x15a   : > { %v1348_v51 = vrot.slane %v1329_v48, 3 }
 0x15c   : > { %v1378_v61 = vsel %vm1355_vm2, %v1329_v48, %v1348_v51 }
 0x15f   : > { %v1232_v42 = vpop.f32.mrf.mxu0  ;;  %v1245_v43 = vpop.f32.mrf.mxu1 }
 0x160   : > { %v1256_v40 = vpop.f32.mrf.mxu2  ;;  %v1269_v41 = vpop.f32.mrf.mxu3 }
 0x161   : > { %v1330_v49 = vpack.c.bf16 %v1269_v41, %v1256_v40 }
 0x163   : > { %v1349_v52 = vrot.slane %v1330_v49, 6  ;;  %v1350_v53 = vrot.slane %v1330_v49, 1 }
 0x165   : > { %v1381_v62 = vsel %vm1359_vm3, %v1349_v52, %v1350_v53 }
 0x166   : > { %v1382_v3 = vsel %vm1068_vm0, %v1378_v61, %v1381_v62 }
 0x168   : > { %v1258_v44 = vpop.f32.mrf.mxu2  ;;  %v1271_v45 = vpop.f32.mrf.mxu3 }
 0x173   : > { %v1282_v46 = vpop.f32.mrf.mxu0  ;;  %v1295_v47 = vpop.f32.mrf.mxu1 }
 0x174   : > { %v1331_v50 = vpack.c.bf16 %v1295_v47, %v1282_v46 }
 0x176   : > { %v1351_v54 = vrot.slane %v1331_v50, 4  ;;  %v1352_v55 = vrot.slane %v1331_v50, 7 }
 0x178   : > { %v1385_v63 = vsel %vm1364_vm4, %v1351_v54, %v1352_v55 }
 0x17a   : > { %v1308_v56 = vpop.f32.mrf.mxu2  ;;  %v1321_v57 = vpop.f32.mrf.mxu3 }
 0x17b   : > { %v1332_v58 = vpack.c.bf16 %v1321_v57, %v1308_v56  ;;  %v1284_v59 = vpop.f32.mrf.mxu0  ;;  %v1297_v60 = vpop.f32.mrf.mxu1 }
 0x17d   : > { %v1353_v0 = vrot.slane %v1332_v58, 2  ;;  %v1354_v1 = vrot.slane %v1332_v58, 5 }
 0x17f   : > { %v1388_v2 = vsel %vm1368_vm5, %v1353_v0, %v1354_v1 }
 0x180   : > { %v1389_v4 = vsel %vm1372_vm6, %v1385_v63, %v1388_v2 }
 0x181   : > { %v1390_v5 = vsel %vm1374_vm7, %v1382_v3, %v1389_v4 }
 0x182   : > { %1394 = vst [vmem:[%s2638_s5 + $0x8] sm:$0xff] %v1390_v5  ;;  %v1310_v6 = vpop.f32.mrf.mxu2  ;;  %v1323_v7 = vpop.f32.mrf.mxu3 }
 0x183 PF: > { %s12_s13 = sadd.s32 1, %s2101_s13   ;;  %s2671_s9 = smov %s2089_s10 }
 0x184   : > { %p9_p10 = scmp.ge.s32.totalorder %s12_s13, 6   ;;  %s2672_s10 = smov %s2153_s17 }
 0x185   : > { %s2673_s11 = smov %s2097_s12  ;;  %s2674_s12 = smov %s2676_s14 }
 0x186   :  { %11 = sbr.rel (!%p9_p10) target bundleno = 3 (0x3), region = 89 }

// kernel: generator_forward.14
= control target key start
LH: loop header
LB: loop body
LE: loop exit
PB: predicated region body
PF: predicated region fallthrough
CT: control target
= control target key end

     0   :  { %v14_v0 = vlaneseq  ;;  %v176_v11 = vmov 0.0   ;;  %vm88_vm1 = vcmask 1040384   ;;  %vm90_vm2 = vcmask 1042434   ;;  %s252_s0 = inlined_call_operand.vmem [shape: bf16[32,512], index: 0, kind: input, shape index: {}]   ;;  %s253_s1 = inlined_call_operand.vmem [shape: f32[1,512], index: 1, kind: output, shape index: {0}]   ;;  %s254_s2 = inlined_call_operand.vmem [shape: f32[1,512], index: 2, kind: output, shape index: {1}]  }
   0x1   :  { %v20_v1 = vld [vmem:[%s252_s0] sm:$0xff]  ;;  %v21_v2 = vld [vmem:[%s252_s0 + $0x8] sm:$0xff]  ;;  %v22_v3 = vld [vmem:[%s252_s0 + $0x10] sm:$0xff]  ;;  %vm92_vm3 = vcmask 1041408  }
   0x2   :  { %vm201_vm0 = vcmp.lt.s32.totalorder %v14_v0, 512  ;;  %v23_v5 = vld [vmem:[%s252_s0 + $0x18] sm:$0xff]  ;;  %v24_v6 = vld [vmem:[%s252_s0 + $0x20] sm:$0xff]  ;;  %v25_v7 = vld [vmem:[%s252_s0 + $0x28] sm:$0xff]  ;;  %v28_v8 = vunpack.c.l.bf16 %v20_v1  ;;  %v29_v9 = vunpack.c.h.bf16 %v20_v1  ;;  %v30_v10 = vunpack.c.l.bf16 %v21_v2 }
   0x3   :  { %18 = vst.msk [vmem:[%s253_s1] sm:$0xf] %vm201_vm0, %v176_v11  ;;  %v26_v12 = vld [vmem:[%s252_s0 + $0x30] sm:$0xff]  ;;  %v27_v13 = vld [vmem:[%s252_s0 + $0x38] sm:$0xff]  ;;  %v31_v14 = vunpack.c.h.bf16 %v21_v2  ;;  %v32_v15 = vunpack.c.l.bf16 %v22_v3  ;;  %v33_v16 = vunpack.c.h.bf16 %v22_v3  ;;  %v34_v17 = vunpack.c.l.bf16 %v23_v5 }
   0x4   :  { %v35_v18 = vunpack.c.h.bf16 %v23_v5  ;;  %v36_v19 = vunpack.c.l.bf16 %v24_v6  ;;  %v37_v20 = vunpack.c.h.bf16 %v24_v6  ;;  %v38_v21 = vunpack.c.l.bf16 %v25_v7  ;;  %19 = vst.msk [vmem:[%s254_s2] sm:$0xf] %vm201_vm0, %v176_v11 }
   0x5   :  { %v39_v22 = vunpack.c.h.bf16 %v25_v7  ;;  %v40_v23 = vunpack.c.l.bf16 %v26_v12  ;;  %v41_v24 = vunpack.c.h.bf16 %v26_v12  ;;  %v42_v25 = vunpack.c.l.bf16 %v27_v13 }
   0x6   :  { %v43_v26 = vunpack.c.h.bf16 %v27_v13  ;;  %v45_v27 = vadd.f32 %v32_v15, %v28_v8  ;;  %v54_v28 = vadd.f32 %v33_v16, %v29_v9  ;;  %v63_v29 = vadd.f32 %v34_v17, %v30_v10 }
   0x7   :  { %v72_v30 = vadd.f32 %v35_v18, %v31_v14  ;;  %v102_v31 = vmul.f32 %v28_v8, %v28_v8  ;;  %v103_v32 = vmul.f32 %v29_v9, %v29_v9  ;;  %v104_v33 = vmul.f32 %v30_v10, %v30_v10 }
   0x8   :  { %v46_v34 = vadd.f32 %v45_v27, %v36_v19  ;;  %v55_v35 = vadd.f32 %v54_v28, %v37_v20  ;;  %v64_v36 = vadd.f32 %v63_v29, %v38_v21  ;;  %v105_v37 = vmul.f32 %v31_v14, %v31_v14 }
   0x9   :  { %v73_v38 = vadd.f32 %v72_v30, %v39_v22  ;;  %v106_v39 = vmul.f32 %v32_v15, %v32_v15  ;;  %v107_v40 = vmul.f32 %v33_v16, %v33_v16  ;;  %v108_v41 = vmul.f32 %v34_v17, %v34_v17 }
   0xa   :  { %v47_v42 = vadd.f32 %v46_v34, %v40_v23  ;;  %v56_v43 = vadd.f32 %v55_v35, %v41_v24  ;;  %v65_v44 = vadd.f32 %v64_v36, %v42_v25  ;;  %v109_v45 = vmul.f32 %v35_v18, %v35_v18 }
   0xb   :  { %v74_v46 = vadd.f32 %v73_v38, %v43_v26  ;;  %v110_v47 = vmul.f32 %v36_v19, %v36_v19  ;;  %v111_v48 = vmul.f32 %v37_v20, %v37_v20  ;;  %v112_v49 = vmul.f32 %v38_v21, %v38_v21 }
   0xc   :  { %v48_v50 = vrot.slane %v47_v42, 4  ;;  %v57_v51 = vrot.slane %v56_v43, 4  ;;  %v66_v52 = vrot.slane %v65_v44, 4  ;;  %v113_v53 = vmul.f32 %v39_v22, %v39_v22 }
   0xd   :  { %v75_v54 = vrot.slane %v74_v46, 4  ;;  %v114_v55 = vmul.f32 %v40_v23, %v40_v23  ;;  %v115_v56 = vmul.f32 %v41_v24, %v41_v24  ;;  %v116_v57 = vmul.f32 %v42_v25, %v42_v25 }
   0xe   :  { %v49_v58 = vadd.f32 %v48_v50, %v47_v42  ;;  %v58_v59 = vadd.f32 %v57_v51, %v56_v43  ;;  %v67_v60 = vadd.f32 %v66_v52, %v65_v44  ;;  %v117_v61 = vmul.f32 %v43_v26, %v43_v26  ;;  %v44_v42 = vld [vmem:[%s253_s1] sm:$0xf] }
   0xf   :  { %v76_v62 = vadd.f32 %v75_v54, %v74_v46  ;;  %v118_v63 = vadd.f32 %v106_v39, %v102_v31  ;;  %v127_v0 = vadd.f32 %v107_v40, %v103_v32  ;;  %v136_v1 = vadd.f32 %v108_v41, %v104_v33 }
  0x10   :  { %v50_v2 = vrot.slane %v49_v58, 2  ;;  %v59_v3 = vrot.slane %v58_v59, 2  ;;  %v68_v5 = vrot.slane %v67_v60, 2  ;;  %v145_v6 = vadd.f32 %v109_v45, %v105_v37 }
  0x11   :  { %v77_v7 = vrot.slane %v76_v62, 2  ;;  %v119_v8 = vadd.f32 %v118_v63, %v110_v47  ;;  %v128_v9 = vadd.f32 %v127_v0, %v111_v48  ;;  %v137_v10 = vadd.f32 %v136_v1, %v112_v49  ;;  %v101_v63 = vld [vmem:[%s254_s2] sm:$0xf] }
  0x12   :  { %v51_v11 = vadd.f32 %v50_v2, %v49_v58  ;;  %v60_v12 = vadd.f32 %v59_v3, %v58_v59  ;;  %v69_v13 = vadd.f32 %v68_v5, %v67_v60  ;;  %v146_v14 = vadd.f32 %v145_v6, %v113_v53 }
  0x13   :  { %v78_v15 = vadd.f32 %v77_v7, %v76_v62  ;;  %v120_v16 = vadd.f32 %v119_v8, %v114_v55  ;;  %v129_v17 = vadd.f32 %v128_v9, %v115_v56  ;;  %v138_v18 = vadd.f32 %v137_v10, %v116_v57 }
  0x14   :  { %v52_v19 = vrot.slane %v51_v11, 1  ;;  %v61_v20 = vrot.slane %v60_v12, 1  ;;  %v70_v21 = vrot.slane %v69_v13, 1  ;;  %v147_v22 = vadd.f32 %v146_v14, %v117_v61 }
  0x15   :  { %v79_v23 = vrot.slane %v78_v15, 1  ;;  %v121_v24 = vrot.slane %v120_v16, 4  ;;  %v130_v25 = vrot.slane %v129_v17, 4  ;;  %v139_v26 = vrot.slane %v138_v18, 4 }
  0x16   :  { %v53_v27 = vadd.f32 %v52_v19, %v51_v11  ;;  %v62_v28 = vadd.f32 %v61_v20, %v60_v12  ;;  %v71_v29 = vadd.f32 %v70_v21, %v69_v13  ;;  %v148_v30 = vrot.slane %v147_v22, 4 }
  0x17   :  { %v80_v31 = vadd.f32 %v79_v23, %v78_v15  ;;  %v122_v32 = vadd.f32 %v121_v24, %v120_v16  ;;  %v131_v33 = vadd.f32 %v130_v25, %v129_v17  ;;  %v140_v34 = vadd.f32 %v139_v26, %v138_v18 }
  0x18   :  { %v85_v35 = vrot.slane %v62_v28, 7  ;;  %v86_v36 = vrot.slane %v71_v29, 6  ;;  %v149_v37 = vadd.f32 %v148_v30, %v147_v22 }
  0x19   :  { %v87_v38 = vrot.slane %v80_v31, 5  ;;  %v123_v39 = vrot.slane %v122_v32, 2  ;;  %v132_v40 = vrot.slane %v131_v33, 2  ;;  %v141_v41 = vrot.slane %v140_v34, 2 }
  0x1a   :  { %v89_v43 = vsel %vm88_vm1, %v53_v27, %v85_v35  ;;  %v150_v44 = vrot.slane %v149_v37, 2 }
  0x1b   :  { %v91_v45 = vsel %vm90_vm2, %v86_v36, %v87_v38  ;;  %v124_v46 = vadd.f32 %v123_v39, %v122_v32  ;;  %v133_v47 = vadd.f32 %v132_v40, %v131_v33  ;;  %v142_v48 = vadd.f32 %v141_v41, %v140_v34 }
  0x1c   :  { %v93_v49 = vsel %vm92_vm3, %v89_v43, %v91_v45  ;;  %v151_v50 = vadd.f32 %v150_v44, %v149_v37 }
  0x1d   :  { %v95_v51 = vadd.f32 %v93_v49, %v44_v42  ;;  %v125_v52 = vrot.slane %v124_v46, 1  ;;  %v134_v53 = vrot.slane %v133_v47, 1  ;;  %v143_v54 = vrot.slane %v142_v48, 1 }
  0x1e   :  { %v152_v55 = vrot.slane %v151_v50, 1 }
  0x1f   :  { %100 = vst.msk [vmem:[%s253_s1] sm:$0xf] %vm201_vm0, %v95_v51  ;;  %v126_v56 = vadd.f32 %v125_v52, %v124_v46  ;;  %v135_v57 = vadd.f32 %v134_v53, %v133_v47  ;;  %v144_v58 = vadd.f32 %v143_v54, %v142_v48 }
  0x20   :  { %v153_v59 = vadd.f32 %v152_v55, %v151_v50 }
  0x21   :  { %v158_v60 = vrot.slane %v135_v57, 7  ;;  %v159_v61 = vrot.slane %v144_v58, 6 }
  0x22   :  { %v160_v62 = vrot.slane %v153_v59, 5 }
  0x23   :  { %v161_v0 = vsel %vm88_vm1, %v126_v56, %v158_v60 }
  0x24   :  { %v162_v1 = vsel %vm90_vm2, %v159_v61, %v160_v62 }
  0x25   :  { %v163_v2 = vsel %vm92_vm3, %v161_v0, %v162_v1 }
  0x26   :  { %v165_v3 = vadd.f32 %v163_v2, %v101_v63 }
  0x28   :  { %166 = vst.msk [vmem:[%s254_s2] sm:$0xf] %vm201_vm0, %v165_v3 }

// kernel: generator_forward.15
= control target key start
LH: loop header
LB: loop body
LE: loop exit
PB: predicated region body
PF: predicated region fallthrough
CT: control target
= control target key end

     0   :  { %s248_s0 = inlined_call_operand.vmem [shape: bf16[32,512], index: 0, kind: input, shape index: {}]   ;;  %s249_s1 = inlined_call_operand.vmem [shape: f32[1,512], index: 1, kind: input, shape index: {}]   ;;  %s250_s2 = inlined_call_operand.vmem [shape: f32[1,512], index: 2, kind: input, shape index: {}]   ;;  %s251_s3 = inlined_call_operand.vmem [shape: bf16[32,512], index: 3, kind: output, shape index: {}]  }
   0x1   :  { %v14_v0 = vld [vmem:[%s248_s0] sm:$0xff]  ;;  %v15_v7 = vld [vmem:[%s248_s0 + $0x8] sm:$0xff]  ;;  %v16_v8 = vld [vmem:[%s248_s0 + $0x10] sm:$0xff] }
   0x2   :  { %v38_v1 = vld [vmem:[%s249_s1] sm:$0xf]  ;;  %v22_v3 = vunpack.c.l.bf16 %v14_v0  ;;  %v23_v4 = vunpack.c.h.bf16 %v14_v0  ;;  %v24_v11 = vunpack.c.l.bf16 %v15_v7  ;;  %v25_v12 = vunpack.c.h.bf16 %v15_v7  ;;  %v17_v17 = vld [vmem:[%s248_s0 + $0x18] sm:$0xff]  ;;  %v19_v39 = vld [vmem:[%s248_s0 + $0x28] sm:$0xff] }
   0x3   :  { %v64_v2 = vld [vmem:[%s250_s2] sm:$0xf]  ;;  %v155_v5 = vperm.slane %v38_v1, 0  ;;  %v157_v6 = vperm.slane %v38_v1, 1  ;;  %v171_v15 = vperm.slane %v38_v1, 2  ;;  %v173_v16 = vperm.slane %v38_v1, 3 }
   0x4   :  { %v165_v9 = vperm.slane %v64_v2, 0  ;;  %v167_v10 = vperm.slane %v64_v2, 1  ;;  %v178_v18 = vperm.slane %v64_v2, 2  ;;  %v180_v19 = vperm.slane %v64_v2, 3  ;;  %v18_v30 = vld [vmem:[%s248_s0 + $0x20] sm:$0xff]  ;;  %v20_v48 = vld [vmem:[%s248_s0 + $0x30] sm:$0xff] }
   0x5   :  { %v48_v13 = vmul.f32 %v155_v5, %v22_v3  ;;  %v49_v14 = vmul.f32 %v157_v6, %v23_v4  ;;  %v26_v20 = vunpack.c.l.bf16 %v16_v8  ;;  %v27_v21 = vunpack.c.h.bf16 %v16_v8  ;;  %v21_v53 = vld [vmem:[%s248_s0 + $0x38] sm:$0xff] }
   0x6   :  { %v50_v24 = vmul.f32 %v171_v15, %v24_v11  ;;  %v51_v25 = vmul.f32 %v173_v16, %v25_v12  ;;  %v28_v28 = vunpack.c.l.bf16 %v17_v17  ;;  %v29_v29 = vunpack.c.h.bf16 %v17_v17 }
   0x7   :  { %v74_v22 = vadd.f32 %v165_v9, %v48_v13  ;;  %v75_v23 = vadd.f32 %v167_v10, %v49_v14  ;;  %v52_v26 = vmul.f32 %v155_v5, %v26_v20  ;;  %v53_v27 = vmul.f32 %v157_v6, %v27_v21 }
   0x8   :  { %v76_v33 = vadd.f32 %v178_v18, %v50_v24  ;;  %v77_v34 = vadd.f32 %v180_v19, %v51_v25  ;;  %v54_v37 = vmul.f32 %v171_v15, %v28_v28  ;;  %v55_v38 = vmul.f32 %v173_v16, %v29_v29 }
   0x9   :  { %v90_v31 = vmax.f32 %v74_v22, 0.0  ;;  %v91_v32 = vmax.f32 %v75_v23, 0.0  ;;  %v78_v35 = vadd.f32 %v165_v9, %v52_v26  ;;  %v79_v36 = vadd.f32 %v167_v10, %v53_v27 }
   0xa   :  { %v92_v41 = vmax.f32 %v76_v33, 0.0  ;;  %v93_v42 = vmax.f32 %v77_v34, 0.0  ;;  %v30_v43 = vunpack.c.l.bf16 %v18_v30  ;;  %v80_v46 = vadd.f32 %v178_v18, %v54_v37 }
   0xb   :  { %v106_v40 = vpack.c.bf16 %v91_v32, %v90_v31  ;;  %v94_v44 = vmax.f32 %v78_v35, 0.0  ;;  %v95_v45 = vmax.f32 %v79_v36, 0.0  ;;  %v81_v47 = vadd.f32 %v180_v19, %v55_v38 }
   0xc   :  { %v107_v49 = vpack.c.bf16 %v93_v42, %v92_v41  ;;  %v31_v50 = vunpack.c.h.bf16 %v18_v30  ;;  %v56_v51 = vmul.f32 %v155_v5, %v30_v43  ;;  %v32_v52 = vunpack.c.l.bf16 %v19_v39 }
   0xd   :  { %114 = vst [vmem:[%s251_s3] sm:$0xff] %v106_v40  ;;  %v108_v54 = vpack.c.bf16 %v95_v45, %v94_v44  ;;  %v96_v55 = vmax.f32 %v80_v46, 0.0  ;;  %v97_v56 = vmax.f32 %v81_v47, 0.0  ;;  %v33_v57 = vunpack.c.h.bf16 %v19_v39 }
   0xe   :  { %115 = vst [vmem:[%s251_s3 + $0x8] sm:$0xff] %v107_v49  ;;  %v57_v58 = vmul.f32 %v157_v6, %v31_v50  ;;  %v82_v59 = vadd.f32 %v165_v9, %v56_v51  ;;  %v58_v60 = vmul.f32 %v171_v15, %v32_v52  ;;  %v34_v61 = vunpack.c.l.bf16 %v20_v48 }
   0xf   :  { %116 = vst [vmem:[%s251_s3 + $0x10] sm:$0xff] %v108_v54  ;;  %v109_v62 = vpack.c.bf16 %v97_v56, %v96_v55  ;;  %v59_v63 = vmul.f32 %v173_v16, %v33_v57  ;;  %v35_v0 = vunpack.c.h.bf16 %v20_v48  ;;  %v36_v1 = vunpack.c.l.bf16 %v21_v53 }
  0x10   :  { %v83_v2 = vadd.f32 %v167_v10, %v57_v58  ;;  %v98_v3 = vmax.f32 %v82_v59, 0.0  ;;  %v84_v4 = vadd.f32 %v178_v18, %v58_v60  ;;  %v60_v7 = vmul.f32 %v155_v5, %v34_v61 }
  0x11   :  { %117 = vst [vmem:[%s251_s3 + $0x18] sm:$0xff] %v109_v62  ;;  %v85_v8 = vadd.f32 %v180_v19, %v59_v63  ;;  %v61_v11 = vmul.f32 %v157_v6, %v35_v0  ;;  %v37_v12 = vunpack.c.h.bf16 %v21_v53  ;;  %v62_v13 = vmul.f32 %v171_v15, %v36_v1 }
  0x12   :  { %v99_v14 = vmax.f32 %v83_v2, 0.0  ;;  %v100_v17 = vmax.f32 %v84_v4, 0.0  ;;  %v86_v20 = vadd.f32 %v165_v9, %v60_v7 }
  0x13   :  { %v101_v21 = vmax.f32 %v85_v8, 0.0  ;;  %v87_v22 = vadd.f32 %v167_v10, %v61_v11  ;;  %v63_v5 = vmul.f32 %v173_v16, %v37_v12  ;;  %v88_v23 = vadd.f32 %v178_v18, %v62_v13 }
  0x14   :  { %v110_v24 = vpack.c.bf16 %v99_v14, %v98_v3  ;;  %v102_v25 = vmax.f32 %v86_v20, 0.0 }
  0x15   :  { %v111_v26 = vpack.c.bf16 %v101_v21, %v100_v17  ;;  %v103_v27 = vmax.f32 %v87_v22, 0.0  ;;  %v89_v6 = vadd.f32 %v180_v19, %v63_v5  ;;  %v104_v28 = vmax.f32 %v88_v23, 0.0 }
  0x16   :  { %118 = vst [vmem:[%s251_s3 + $0x20] sm:$0xff] %v110_v24 }
  0x17   :  { %119 = vst [vmem:[%s251_s3 + $0x28] sm:$0xff] %v111_v26  ;;  %v112_v9 = vpack.c.bf16 %v103_v27, %v102_v25  ;;  %v105_v10 = vmax.f32 %v89_v6, 0.0 }
  0x19   :  { %120 = vst [vmem:[%s251_s3 + $0x30] sm:$0xff] %v112_v9  ;;  %v113_v15 = vpack.c.bf16 %v105_v10, %v104_v28 }
  0x1b   :  { %121 = vst [vmem:[%s251_s3 + $0x38] sm:$0xff] %v113_v15 }

// kernel: generator_forward.16
= control target key start
LH: loop header
LB: loop body
LE: loop exit
PB: predicated region body
PF: predicated region fallthrough
CT: control target
= control target key end

     0   :  { %s4235_s9 = smov 0   ;;  %s4237_s10 = smov 0   ;;  %s5029_s0 = inlined_call_operand.vmem [shape: bf16[4,32,2048], index: 0, kind: input, shape index: {}]   ;;  %s5030_s1 = inlined_call_operand.vmem [shape: bf16[4,2048,256], index: 1, kind: input, shape index: {}]   ;;  %s5031_s2 = inlined_call_operand.vmem [shape: bf16[4,32,256], index: 2, kind: output, shape index: {}]  }
   0x1   :  { %s4239_s11 = smov 0  }
   0x2 LB: > { %s31_s12 = sadd.s32 1, %s4214_s10  ;;  %p2720_p0 = scmp.ge.s32.totalorder %s4218_s11, 1  ;;  %s4218_s11 = sphi %s4239_s11, %s12_s11   ;;  %s4214_s10 = sphi %s4237_s10, %s5033_s10   ;;  %s4210_s9 = sphi %s4235_s9, %s5032_s9  }
   0x3   : > { %p33_p1 = scmp.ge.s32.totalorder %s31_s12, 4  ;;  %p160_p2 = scmp.lt.s32.totalorder %s4218_s11, 5 }
   0x5   : > { %s5035_s12 = smov (%p33_p1, %s31_s12), 0  ;;  %p161_p3 = pnand %p2720_p0, %p160_p2 }
   0x6   : > { %p206_p4 = scmp.lt.s32.totalorder (!%p161_p3), %s4210_s9, 3 }
   0x7   : > { %164 = sbr.rel (%p161_p3) target bundleno = 440 (0x1b8), region = 28 }
   0xc   : > { %s5037_s9 = smov (!%p206_p4, %s4210_s9), 3 }
   0xd   : > { %s3882_s13 = sshll.u32 %s5037_s9, 11  ;;  %s3881_s17 = sshll.u32 %s5037_s9, 8 }
   0xe   : > { %s4259_s16 = scalar_lea.vmem %s5030_s1, %s3882_s13  ;;  %s4322_s20 = scalar_lea.vmem %s5029_s0, %s3881_s17 }
   0xf   : > { %v2913_v0 = vld [vmem:[%s4259_s16 + $0x70] sm:$0xf]  ;;  %v3931_v1 = vld [vmem:[%s4259_s16 + $0x74] sm:$0xf0]  ;;  %v2905_v11 = vld [vmem:[%s4259_s16 + $0x60] sm:$0xf] }
  0x10   : > { %v2977_v2 = vld [vmem:[%s4259_s16 + $0xf0] sm:$0xf]  ;;  %v2914_v3 = vor.u32 %v3931_v1, %v2913_v0  ;;  %v3947_v4 = vld [vmem:[%s4259_s16 + $0xf4] sm:$0xf0]  ;;  %v3929_v13 = vld [vmem:[%s4259_s16 + $0x64] sm:$0xf0] }
  0x11   : > { %v3041_v5 = vld [vmem:[%s4259_s16 + $0x170] sm:$0xf]  ;;  %v3963_v6 = vld [vmem:[%s4259_s16 + $0x174] sm:$0xf0]  ;;  %v2978_v7 = vor.u32 %v3947_v4, %v2977_v2  ;;  %v2969_v14 = vld [vmem:[%s4259_s16 + $0xe0] sm:$0xf]  ;;  %v2906_v16 = vor.u32 %v3929_v13, %v2905_v11 }
  0x12   : > { %v3042_v8 = vor.u32 %v3963_v6, %v3041_v5  ;;  %v3105_v9 = vld [vmem:[%s4259_s16 + $0x1f0] sm:$0xf]  ;;  %v3979_v10 = vld [vmem:[%s4259_s16 + $0x1f4] sm:$0xf0]  ;;  %1970 = vmatpush.bf16.msra.mxu0 %v2914_v3  ;;  %v3945_v15 = vld [vmem:[%s4259_s16 + $0xe4] sm:$0xf0] }
  0x13   : > { %v3106_v12 = vor.u32 %v3979_v10, %v3105_v9  ;;  %1989 = vmatpush.bf16.msra.mxu1 %v2978_v7  ;;  %v2970_v17 = vor.u32 %v3945_v15, %v2969_v14  ;;  %v3033_v18 = vld [vmem:[%s4259_s16 + $0x160] sm:$0xf]  ;;  %v3961_v19 = vld [vmem:[%s4259_s16 + $0x164] sm:$0xf0]  ;;  %v2897_v23 = vld [vmem:[%s4259_s16 + $0x50] sm:$0xf] }
  0x14   : > { %2008 = vmatpush.bf16.msra.mxu2 %v3042_v8  ;;  %v3097_v20 = vld [vmem:[%s4259_s16 + $0x1e0] sm:$0xf]  ;;  %v3034_v21 = vor.u32 %v3961_v19, %v3033_v18  ;;  %v3977_v22 = vld [vmem:[%s4259_s16 + $0x1e4] sm:$0xf0]  ;;  %v3927_v24 = vld [vmem:[%s4259_s16 + $0x54] sm:$0xf0] }
  0x15   : > { %2027 = vmatpush.bf16.msra.mxu3 %v3106_v12  ;;  %v3098_v25 = vor.u32 %v3977_v22, %v3097_v20  ;;  %v2961_v26 = vld [vmem:[%s4259_s16 + $0xd0] sm:$0xf]  ;;  %v3943_v27 = vld [vmem:[%s4259_s16 + $0xd4] sm:$0xf0]  ;;  %v2898_v29 = vor.u32 %v3927_v24, %v2897_v23  ;;  %v2889_v35 = vld [vmem:[%s4259_s16 + $0x40] sm:$0xf] }
  0x16   : > { %v3025_v28 = vld [vmem:[%s4259_s16 + $0x150] sm:$0xf]  ;;  %1971 = vmatpush.bf16.msra.mxu0 %v2906_v16  ;;  %v3959_v30 = vld [vmem:[%s4259_s16 + $0x154] sm:$0xf0]  ;;  %v2962_v33 = vor.u32 %v3943_v27, %v2961_v26  ;;  %v3925_v36 = vld [vmem:[%s4259_s16 + $0x44] sm:$0xf0] }
  0x17   : > { %v3089_v31 = vld [vmem:[%s4259_s16 + $0x1d0] sm:$0xf]  ;;  %v3975_v32 = vld [vmem:[%s4259_s16 + $0x1d4] sm:$0xf0]  ;;  %1990 = vmatpush.bf16.msra.mxu1 %v2970_v17  ;;  %v3026_v34 = vor.u32 %v3959_v30, %v3025_v28  ;;  %v2953_v37 = vld [vmem:[%s4259_s16 + $0xc0] sm:$0xf]  ;;  %v2890_v44 = vor.u32 %v3925_v36, %v2889_v35 }
  0x18   : > { %2009 = vmatpush.bf16.msra.mxu2 %v3034_v21  ;;  %v3090_v38 = vor.u32 %v3975_v32, %v3089_v31  ;;  %v3941_v39 = vld [vmem:[%s4259_s16 + $0xc4] sm:$0xf0]  ;;  %v3017_v40 = vld [vmem:[%s4259_s16 + $0x140] sm:$0xf]  ;;  %v2881_v47 = vld [vmem:[%s4259_s16 + $0x30] sm:$0xf] }
  0x19   : > { %2028 = vmatpush.bf16.msra.mxu3 %v3098_v25  ;;  %v3957_v41 = vld [vmem:[%s4259_s16 + $0x144] sm:$0xf0]  ;;  %v3081_v42 = vld [vmem:[%s4259_s16 + $0x1c0] sm:$0xf]  ;;  %v2954_v45 = vor.u32 %v3941_v39, %v2953_v37  ;;  %v3923_v48 = vld [vmem:[%s4259_s16 + $0x34] sm:$0xf0] }
  0x1a   : > { %v3973_v43 = vld [vmem:[%s4259_s16 + $0x1c4] sm:$0xf0]  ;;  %1972 = vmatpush.bf16.msra.mxu0 %v2898_v29  ;;  %v3018_v46 = vor.u32 %v3957_v41, %v3017_v40  ;;  %v2945_v49 = vld [vmem:[%s4259_s16 + $0xb0] sm:$0xf]  ;;  %v3939_v51 = vld [vmem:[%s4259_s16 + $0xb4] sm:$0xf0]  ;;  %v2882_v56 = vor.u32 %v3923_v48, %v2881_v47 }
  0x1b   : > { %1991 = vmatpush.bf16.msra.mxu1 %v2962_v33  ;;  %v3082_v50 = vor.u32 %v3973_v43, %v3081_v42  ;;  %v3009_v52 = vld [vmem:[%s4259_s16 + $0x130] sm:$0xf]  ;;  %v3955_v53 = vld [vmem:[%s4259_s16 + $0x134] sm:$0xf0]  ;;  %v2946_v57 = vor.u32 %v3939_v51, %v2945_v49  ;;  %v2873_v59 = vld [vmem:[%s4259_s16 + $0x20] sm:$0xf] }
  0x1c   : > { %2010 = vmatpush.bf16.msra.mxu2 %v3026_v34  ;;  %v3073_v54 = vld [vmem:[%s4259_s16 + $0x1b0] sm:$0xf]  ;;  %v3971_v55 = vld [vmem:[%s4259_s16 + $0x1b4] sm:$0xf0]  ;;  %v3010_v58 = vor.u32 %v3955_v53, %v3009_v52  ;;  %v3921_v60 = vld [vmem:[%s4259_s16 + $0x24] sm:$0xf0] }
  0x1d   : > { %2029 = vmatpush.bf16.msra.mxu3 %v3090_v38  ;;  %v2937_v61 = vld [vmem:[%s4259_s16 + $0xa0] sm:$0xf]  ;;  %v3074_v62 = vor.u32 %v3971_v55, %v3073_v54  ;;  %v3937_v63 = vld [vmem:[%s4259_s16 + $0xa4] sm:$0xf0]  ;;  %v2874_v4 = vor.u32 %v3921_v60, %v2873_v59  ;;  %v2865_v7 = vld [vmem:[%s4259_s16 + $0x10] sm:$0xf] }
  0x1e   : > { %1973 = vmatpush.bf16.msra.mxu0 %v2890_v44  ;;  %v3001_v0 = vld [vmem:[%s4259_s16 + $0x120] sm:$0xf]  ;;  %v3953_v1 = vld [vmem:[%s4259_s16 + $0x124] sm:$0xf0]  ;;  %v2938_v5 = vor.u32 %v3937_v63, %v2937_v61  ;;  %v3919_v8 = vld [vmem:[%s4259_s16 + $0x14] sm:$0xf0] }
  0x1f   : > { %1992 = vmatpush.bf16.msra.mxu1 %v2954_v45  ;;  %v3065_v2 = vld [vmem:[%s4259_s16 + $0x1a0] sm:$0xf]  ;;  %v3969_v3 = vld [vmem:[%s4259_s16 + $0x1a4] sm:$0xf0]  ;;  %v3002_v6 = vor.u32 %v3953_v1, %v3001_v0  ;;  %v2929_v9 = vld [vmem:[%s4259_s16 + $0x90] sm:$0xf]  ;;  %v2866_v17 = vor.u32 %v3919_v8, %v2865_v7 }
  0x20   : > { %2011 = vmatpush.bf16.msra.mxu2 %v3018_v46  ;;  %v3066_v10 = vor.u32 %v3969_v3, %v3065_v2  ;;  %v3935_v11 = vld [vmem:[%s4259_s16 + $0x94] sm:$0xf0]  ;;  %v2993_v12 = vld [vmem:[%s4259_s16 + $0x110] sm:$0xf]  ;;  %v2857_v16 = vld [vmem:[%s4259_s16] sm:$0xf] }
  0x21   : > { %2030 = vmatpush.bf16.msra.mxu3 %v3082_v50  ;;  %v3951_v13 = vld [vmem:[%s4259_s16 + $0x114] sm:$0xf0]  ;;  %v3057_v14 = vld [vmem:[%s4259_s16 + $0x190] sm:$0xf]  ;;  %v3917_v18 = vld [vmem:[%s4259_s16 + $0x4] sm:$0xf0]  ;;  %v2930_v21 = vor.u32 %v3935_v11, %v2929_v9 }
  0x22   : > { %1974 = vmatpush.bf16.msra.mxu0 %v2882_v56  ;;  %v3967_v15 = vld [vmem:[%s4259_s16 + $0x194] sm:$0xf0]  ;;  %v2921_v19 = vld [vmem:[%s4259_s16 + $0x80] sm:$0xf]  ;;  %v3933_v20 = vld [vmem:[%s4259_s16 + $0x84] sm:$0xf0]  ;;  %v2994_v22 = vor.u32 %v3951_v13, %v2993_v12  ;;  %v2858_v34 = vor.u32 %v3917_v18, %v2857_v16 }
  0x23   : > { %1993 = vmatpush.bf16.msra.mxu1 %v2946_v57  ;;  %v2985_v23 = vld [vmem:[%s4259_s16 + $0x100] sm:$0xf]  ;;  %v3949_v24 = vld [vmem:[%s4259_s16 + $0x104] sm:$0xf0]  ;;  %v3058_v26 = vor.u32 %v3967_v15, %v3057_v14  ;;  %v3884_v30 = vld [vmem:[%s4322_s20 + $0x4] sm:$0xf]  ;;  %v2922_v38 = vor.u32 %v3933_v20, %v2921_v19 }
  0x24   : > { %2012 = vmatpush.bf16.msra.mxu2 %v3010_v58  ;;  %v3049_v25 = vld [vmem:[%s4259_s16 + $0x180] sm:$0xf]  ;;  %v3965_v27 = vld [vmem:[%s4259_s16 + $0x184] sm:$0xf0]  ;;  %v2731_v31 = vld [vmem:[%s4322_s20 + $0x40] sm:$0xf0]  ;;  %v2986_v39 = vor.u32 %v3949_v24, %v2985_v23 }
  0x25   : > { %2031 = vmatpush.bf16.msra.mxu3 %v3074_v62  ;;  %v2729_v28 = vld [vmem:[%s4322_s20] sm:$0xf]  ;;  %v3297_v32 = vld [vmem:[%s4259_s16 + $0x370] sm:$0xf]  ;;  %v4027_v33 = vld [vmem:[%s4259_s16 + $0x374] sm:$0xf0]  ;;  %v3050_v43 = vor.u32 %v3965_v27, %v3049_v25  ;;  %v4351_v53 = vor.u32 %v3884_v30, %v2731_v31 }
  0x26   : > { %1975 = vmatpush.bf16.msra.mxu0 %v2874_v4  ;;  %v3892_v29 = vld [vmem:[%s4322_s20 + $0x3c] sm:$0xf0]  ;;  %v2737_v35 = vld [vmem:[%s4322_s20 + $0x8] sm:$0xf]  ;;  %v3233_v36 = vld [vmem:[%s4259_s16 + $0x2f0] sm:$0xf]  ;;  %v3298_v44 = vor.u32 %v4027_v33, %v3297_v32 }
  0x27   : > { %1994 = vmatpush.bf16.msra.mxu1 %v2938_v5  ;;  %v4011_v37 = vld [vmem:[%s4259_s16 + $0x2f4] sm:$0xf0]  ;;  %v3893_v40 = vld [vmem:[%s4322_s20 + $0x44] sm:$0xf0]  ;;  %v3885_v41 = vld [vmem:[%s4322_s20 + $0xc] sm:$0xf]  ;;  %v4346_v48 = vor.u32 %v3892_v29, %v2729_v28 }
  0x28   : > { %2013 = vmatpush.bf16.msra.mxu2 %v3002_v6  ;;  %v2739_v42 = vld [vmem:[%s4322_s20 + $0x48] sm:$0xf0]  ;;  %v3169_v45 = vld [vmem:[%s4259_s16 + $0x270] sm:$0xf]  ;;  %v3995_v46 = vld [vmem:[%s4259_s16 + $0x274] sm:$0xf0]  ;;  %v3234_v49 = vor.u32 %v4011_v37, %v3233_v36  ;;  %v4353_v54 = vor.u32 %v3893_v40, %v2737_v35 }
  0x29   : > { %2032 = vmatpush.bf16.msra.mxu3 %v3066_v10  ;;  %v3361_v47 = vld [vmem:[%s4259_s16 + $0x3f0] sm:$0xf]  ;;  %v4043_v50 = vld [vmem:[%s4259_s16 + $0x3f4] sm:$0xf0]  ;;  %v3289_v51 = vld [vmem:[%s4259_s16 + $0x360] sm:$0xf]  ;;  %v4357_v57 = vor.u32 %v3885_v41, %v2739_v42  ;;  %v3170_v58 = vor.u32 %v3995_v46, %v3169_v45 }
  0x2a   : > { %1976 = vmatpush.bf16.msra.mxu0 %v2866_v17  ;;  %v4025_v52 = vld [vmem:[%s4259_s16 + $0x364] sm:$0xf0]  ;;  %v3225_v55 = vld [vmem:[%s4259_s16 + $0x2e0] sm:$0xf]  ;;  %v3362_v59 = vor.u32 %v4043_v50, %v3361_v47  ;;  %v3281_v2 = vld [vmem:[%s4259_s16 + $0x350] sm:$0xf] }
  0x2b   : > { %1995 = vmatpush.bf16.msra.mxu1 %v2930_v21  ;;  %v4009_v56 = vld [vmem:[%s4259_s16 + $0x2e4] sm:$0xf0]  ;;  %v3290_v60 = vor.u32 %v4025_v52, %v3289_v51  ;;  %v3161_v61 = vld [vmem:[%s4259_s16 + $0x260] sm:$0xf]  ;;  %v4023_v3 = vld [vmem:[%s4259_s16 + $0x354] sm:$0xf0] }
  0x2c   : > { %2014 = vmatpush.bf16.msra.mxu2 %v2994_v22  ;;  %v3993_v62 = vld [vmem:[%s4259_s16 + $0x264] sm:$0xf0]  ;;  %v3353_v63 = vld [vmem:[%s4259_s16 + $0x3e0] sm:$0xf]  ;;  %v3226_v0 = vor.u32 %v4009_v56, %v3225_v55  ;;  %v3217_v4 = vld [vmem:[%s4259_s16 + $0x2d0] sm:$0xf]  ;;  %v3282_v8 = vor.u32 %v4023_v3, %v3281_v2 }
  0x2d   : > { %2033 = vmatpush.bf16.msra.mxu3 %v3058_v26  ;;  %v4041_v1 = vld [vmem:[%s4259_s16 + $0x3e4] sm:$0xf0]  ;;  %v4007_v5 = vld [vmem:[%s4259_s16 + $0x2d4] sm:$0xf0]  ;;  %v3162_v6 = vor.u32 %v3993_v62, %v3161_v61  ;;  %v3153_v9 = vld [vmem:[%s4259_s16 + $0x250] sm:$0xf] }
  0x2e   : > { %1977 = vmatpush.bf16.msra.mxu0 %v2858_v34  ;;  %v3354_v7 = vor.u32 %v4041_v1, %v3353_v63  ;;  %v3991_v10 = vld [vmem:[%s4259_s16 + $0x254] sm:$0xf0]  ;;  %v3345_v11 = vld [vmem:[%s4259_s16 + $0x3d0] sm:$0xf]  ;;  %v3218_v12 = vor.u32 %v4007_v5, %v3217_v4  ;;  %v3273_v14 = vld [vmem:[%s4259_s16 + $0x340] sm:$0xf] }
  0x2f   : > { %1996 = vmatpush.bf16.msra.mxu1 %v2922_v38  ;;  %v4039_v13 = vld [vmem:[%s4259_s16 + $0x3d4] sm:$0xf0]  ;;  %v4021_v15 = vld [vmem:[%s4259_s16 + $0x344] sm:$0xf0]  ;;  %v3209_v16 = vld [vmem:[%s4259_s16 + $0x2c0] sm:$0xf]  ;;  %v3154_v18 = vor.u32 %v3991_v10, %v3153_v9 }
  0x30   : > { %2015 = vmatpush.bf16.msra.mxu2 %v2986_v39  ;;  %v4005_v17 = vld [vmem:[%s4259_s16 + $0x2c4] sm:$0xf0]  ;;  %v3145_v19 = vld [vmem:[%s4259_s16 + $0x240] sm:$0xf]  ;;  %v3346_v22 = vor.u32 %v4039_v13, %v3345_v11  ;;  %v3274_v23 = vor.u32 %v4021_v15, %v3273_v14  ;;  %v3900_v28 = vld [vmem:[%s4322_s20 + $0x84] sm:$0xf] }
  0x31   : > { %2034 = vmatpush.bf16.msra.mxu3 %v3050_v43  ;;  %1978 = vmatmul.bf16.vlgmr.msra.gmra.mxu0 %v4346_v48  ;;  %v3989_v20 = vld [vmem:[%s4259_s16 + $0x244] sm:$0xf0]  ;;  %v3337_v21 = vld [vmem:[%s4259_s16 + $0x3c0] sm:$0xf]  ;;  %v3210_v27 = vor.u32 %v4005_v17, %v3209_v16  ;;  %v2795_v29 = vld [vmem:[%s4322_s20 + $0xc0] sm:$0xf0] }
  0x32   : > { %1997 = vmatmul.bf16.vlgmr.msra.gmra.mxu1 %v4351_v53  ;;  %2046 = vmatpush.bf16.msrb.mxu0 %v3170_v58  ;;  %v4037_v24 = vld [vmem:[%s4259_s16 + $0x3c4] sm:$0xf0]  ;;  %v2793_v25 = vld [vmem:[%s4322_s20 + $0x80] sm:$0xf]  ;;  %v3265_v30 = vld [vmem:[%s4259_s16 + $0x330] sm:$0xf]  ;;  %v3146_v35 = vor.u32 %v3989_v20, %v3145_v19  ;;  %v4403_v50 = vor.u32 %v3900_v28, %v2795_v29 }
  0x33   : > { %2065 = vmatpush.bf16.msrb.mxu1 %v3234_v49  ;;  %2016 = vmatmul.bf16.vlgmr.msra.gmra.mxu2 %v4353_v54  ;;  %v3908_v26 = vld [vmem:[%s4322_s20 + $0xbc] sm:$0xf0]  ;;  %v4019_v31 = vld [vmem:[%s4259_s16 + $0x334] sm:$0xf0]  ;;  %v2801_v32 = vld [vmem:[%s4322_s20 + $0x88] sm:$0xf]  ;;  %v3338_v39 = vor.u32 %v4037_v24, %v3337_v21 }
  0x34   : > { %2084 = vmatpush.bf16.msrb.mxu2 %v3298_v44  ;;  %2035 = vmatmul.bf16.vlgmr.msra.gmra.mxu3 %v4357_v57  ;;  %v3201_v33 = vld [vmem:[%s4259_s16 + $0x2b0] sm:$0xf]  ;;  %v4003_v34 = vld [vmem:[%s4259_s16 + $0x2b4] sm:$0xf0]  ;;  %v3909_v36 = vld [vmem:[%s4322_s20 + $0xc4] sm:$0xf0]  ;;  %v3266_v40 = vor.u32 %v4019_v31, %v3265_v30  ;;  %v4398_v44 = vor.u32 %v3908_v26, %v2793_v25 }
  0x35   : > { %2103 = vmatpush.bf16.msrb.mxu3 %v3362_v59  ;;  %v3901_v37 = vld [vmem:[%s4322_s20 + $0x8c] sm:$0xf]  ;;  %v3137_v41 = vld [vmem:[%s4259_s16 + $0x230] sm:$0xf]  ;;  %v3987_v42 = vld [vmem:[%s4259_s16 + $0x234] sm:$0xf0]  ;;  %v3202_v45 = vor.u32 %v4003_v34, %v3201_v33  ;;  %v4405_v51 = vor.u32 %v3909_v36, %v2801_v32 }
  0x36   : > { %2047 = vmatpush.bf16.msrb.mxu0 %v3162_v6  ;;  %v2803_v38 = vld [vmem:[%s4322_s20 + $0xc8] sm:$0xf0]  ;;  %v3329_v43 = vld [vmem:[%s4259_s16 + $0x3b0] sm:$0xf]  ;;  %v4035_v46 = vld [vmem:[%s4259_s16 + $0x3b4] sm:$0xf0]  ;;  %v3138_v58 = vor.u32 %v3987_v42, %v3137_v41 }
  0x37   : > { %2066 = vmatpush.bf16.msrb.mxu1 %v3226_v0  ;;  %v3257_v47 = vld [vmem:[%s4259_s16 + $0x320] sm:$0xf]  ;;  %v4017_v49 = vld [vmem:[%s4259_s16 + $0x324] sm:$0xf0]  ;;  %v4409_v56 = vor.u32 %v3901_v37, %v2803_v38  ;;  %v3330_v59 = vor.u32 %v4035_v46, %v3329_v43  ;;  %v3249_v2 = vld [vmem:[%s4259_s16 + $0x310] sm:$0xf] }
  0x38   : > { %2085 = vmatpush.bf16.msrb.mxu2 %v3290_v60  ;;  %v3193_v52 = vld [vmem:[%s4259_s16 + $0x2a0] sm:$0xf]  ;;  %v4001_v55 = vld [vmem:[%s4259_s16 + $0x2a4] sm:$0xf0]  ;;  %v3258_v60 = vor.u32 %v4017_v49, %v3257_v47  ;;  %v4015_v3 = vld [vmem:[%s4259_s16 + $0x314] sm:$0xf0] }
  0x39   : > { %2104 = vmatpush.bf16.msrb.mxu3 %v3354_v7  ;;  %v3129_v61 = vld [vmem:[%s4259_s16 + $0x220] sm:$0xf]  ;;  %v3985_v62 = vld [vmem:[%s4259_s16 + $0x224] sm:$0xf0]  ;;  %v3194_v0 = vor.u32 %v4001_v55, %v3193_v52  ;;  %v3185_v4 = vld [vmem:[%s4259_s16 + $0x290] sm:$0xf]  ;;  %v3250_v9 = vor.u32 %v4015_v3, %v3249_v2 }
  0x3a   : > { %2048 = vmatpush.bf16.msrb.mxu0 %v3154_v18  ;;  %v3321_v63 = vld [vmem:[%s4259_s16 + $0x3a0] sm:$0xf]  ;;  %v4033_v1 = vld [vmem:[%s4259_s16 + $0x3a4] sm:$0xf0]  ;;  %v3999_v5 = vld [vmem:[%s4259_s16 + $0x294] sm:$0xf0]  ;;  %v3130_v6 = vor.u32 %v3985_v62, %v3129_v61 }
  0x3b   : > { %2067 = vmatpush.bf16.msrb.mxu1 %v3218_v12  ;;  %v3121_v7 = vld [vmem:[%s4259_s16 + $0x210] sm:$0xf]  ;;  %v3983_v10 = vld [vmem:[%s4259_s16 + $0x214] sm:$0xf0]  ;;  %v3186_v13 = vor.u32 %v3999_v5, %v3185_v4  ;;  %v3241_v14 = vld [vmem:[%s4259_s16 + $0x300] sm:$0xf] }
  0x3c   : > { %2086 = vmatpush.bf16.msrb.mxu2 %v3282_v8  ;;  %v3322_v8 = vor.u32 %v4033_v1, %v3321_v63  ;;  %v3313_v11 = vld [vmem:[%s4259_s16 + $0x390] sm:$0xf]  ;;  %v4031_v12 = vld [vmem:[%s4259_s16 + $0x394] sm:$0xf0]  ;;  %v4013_v15 = vld [vmem:[%s4259_s16 + $0x304] sm:$0xf0]  ;;  %v3122_v20 = vor.u32 %v3983_v10, %v3121_v7 }
  0x3d   : > { %2105 = vmatpush.bf16.msrb.mxu3 %v3346_v22  ;;  %v3177_v16 = vld [vmem:[%s4259_s16 + $0x280] sm:$0xf]  ;;  %v3997_v17 = vld [vmem:[%s4259_s16 + $0x284] sm:$0xf0]  ;;  %v3553_v18 = vld [vmem:[%s4259_s16 + $0x570] sm:$0xf]  ;;  %v3314_v24 = vor.u32 %v4031_v12, %v3313_v11  ;;  %v3242_v25 = vor.u32 %v4013_v15, %v3241_v14 }
  0x3e   : > { %2049 = vmatpush.bf16.msrb.mxu0 %v3146_v35  ;;  %v4091_v19 = vld [vmem:[%s4259_s16 + $0x574] sm:$0xf0]  ;;  %v3113_v21 = vld [vmem:[%s4259_s16 + $0x200] sm:$0xf]  ;;  %v3489_v22 = vld [vmem:[%s4259_s16 + $0x4f0] sm:$0xf]  ;;  %v3178_v29 = vor.u32 %v3997_v17, %v3177_v16 }
  0x3f   : > { %2068 = vmatpush.bf16.msrb.mxu1 %v3210_v27  ;;  %v3981_v26 = vld [vmem:[%s4259_s16 + $0x204] sm:$0xf0]  ;;  %v3305_v27 = vld [vmem:[%s4259_s16 + $0x380] sm:$0xf]  ;;  %v2745_v30 = vld [vmem:[%s4322_s20 + $0x10] sm:$0xf]  ;;  %v3554_v34 = vor.u32 %v4091_v19, %v3553_v18 }
  0x40   : > { %2087 = vmatpush.bf16.msrb.mxu2 %v3274_v23  ;;  %v4075_v23 = vld [vmem:[%s4259_s16 + $0x4f4] sm:$0xf0]  ;;  %v4029_v28 = vld [vmem:[%s4259_s16 + $0x384] sm:$0xf0]  ;;  %v3894_v31 = vld [vmem:[%s4322_s20 + $0x4c] sm:$0xf0]  ;;  %v3114_v42 = vor.u32 %v3981_v26, %v3113_v21 }
  0x41   : > { %2106 = vmatpush.bf16.msrb.mxu3 %v3338_v39  ;;  %1983 = vmatmul.bf16.gmra.mxu0 %v4398_v44  ;;  %v3886_v32 = vld [vmem:[%s4322_s20 + $0x14] sm:$0xf]  ;;  %v3425_v35 = vld [vmem:[%s4259_s16 + $0x470] sm:$0xf]  ;;  %v4059_v36 = vld [vmem:[%s4259_s16 + $0x474] sm:$0xf0]  ;;  %v3490_v38 = vor.u32 %v4075_v23, %v3489_v22  ;;  %v3306_v47 = vor.u32 %v4029_v28, %v3305_v27 }
  0x42   : > { %2002 = vmatmul.bf16.gmra.mxu1 %v4403_v50  ;;  %2050 = vmatpush.bf16.msrb.mxu0 %v3138_v58  ;;  %v2747_v33 = vld [vmem:[%s4322_s20 + $0x50] sm:$0xf0]  ;;  %v3617_v37 = vld [vmem:[%s4259_s16 + $0x5f0] sm:$0xf]  ;;  %v4107_v39 = vld [vmem:[%s4259_s16 + $0x5f4] sm:$0xf0]  ;;  %v3426_v52 = vor.u32 %v4059_v36, %v3425_v35 }
  0x43   : > { %2069 = vmatpush.bf16.msrb.mxu1 %v3202_v45  ;;  %2021 = vmatmul.bf16.gmra.mxu2 %v4405_v51  ;;  %v4089_v41 = vld [vmem:[%s4259_s16 + $0x564] sm:$0xf0]  ;;  %v2753_v43 = vld [vmem:[%s4322_s20 + $0x18] sm:$0xf]  ;;  %v3887_v46 = vld [vmem:[%s4322_s20 + $0x1c] sm:$0xf]  ;;  %v4460_v1 = vor.u32 %v3886_v32, %v2747_v33 }
  0x44   : > { %2088 = vmatpush.bf16.msrb.mxu2 %v3266_v40  ;;  %2040 = vmatmul.bf16.gmra.mxu3 %v4409_v56  ;;  %v3545_v40 = vld [vmem:[%s4259_s16 + $0x560] sm:$0xf]  ;;  %v3895_v45 = vld [vmem:[%s4322_s20 + $0x54] sm:$0xf0]  ;;  %v2755_v49 = vld [vmem:[%s4322_s20 + $0x58] sm:$0xf0] }
  0x45   : > { %2107 = vmatpush.bf16.msrb.mxu3 %v3330_v59  ;;  %v3417_v55 = vld [vmem:[%s4259_s16 + $0x460] sm:$0xf]  ;;  %v4057_v58 = vld [vmem:[%s4259_s16 + $0x464] sm:$0xf0]  ;;  %v3618_v59 = vor.u32 %v4107_v39, %v3617_v37  ;;  %v3537_v3 = vld [vmem:[%s4259_s16 + $0x550] sm:$0xf]  ;;  %v4465_v5 = vor.u32 %v3895_v45, %v2753_v43 }
  0x46   : > { %2051 = vmatpush.bf16.msrb.mxu0 %v3130_v6  ;;  %v3481_v61 = vld [vmem:[%s4259_s16 + $0x4e0] sm:$0xf]  ;;  %v4073_v62 = vld [vmem:[%s4259_s16 + $0x4e4] sm:$0xf0]  ;;  %v4087_v4 = vld [vmem:[%s4259_s16 + $0x554] sm:$0xf0]  ;;  %v4467_v6 = vor.u32 %v3887_v46, %v2755_v49  ;;  %v3418_v7 = vor.u32 %v4057_v58, %v3417_v55 }
  0x47   : > { %2070 = vmatpush.bf16.msrb.mxu1 %v3194_v0  ;;  %v3609_v63 = vld [vmem:[%s4259_s16 + $0x5e0] sm:$0xf]  ;;  %v4458_v0 = vor.u32 %v3894_v31, %v2745_v30  ;;  %v4105_v2 = vld [vmem:[%s4259_s16 + $0x5e4] sm:$0xf0]  ;;  %v4055_v10 = vld [vmem:[%s4259_s16 + $0x454] sm:$0xf0]  ;;  %v3538_v12 = vor.u32 %v4087_v4, %v3537_v3 }
  0x48   : > { %2089 = vmatpush.bf16.msrb.mxu2 %v3258_v60  ;;  %v3546_v60 = vor.u32 %v4089_v41, %v3545_v40  ;;  %v3610_v11 = vor.u32 %v4105_v2, %v3609_v63  ;;  %v4071_v14 = vld [vmem:[%s4259_s16 + $0x4d4] sm:$0xf0]  ;;  %v3601_v15 = vld [vmem:[%s4259_s16 + $0x5d0] sm:$0xf]  ;;  %v3529_v17 = vld [vmem:[%s4259_s16 + $0x540] sm:$0xf] }
  0x49   : > { %2108 = vmatpush.bf16.msrb.mxu3 %v3322_v8  ;;  %v3482_v8 = vor.u32 %v4073_v62, %v3481_v61  ;;  %v4103_v16 = vld [vmem:[%s4259_s16 + $0x5d4] sm:$0xf0]  ;;  %v4085_v18 = vld [vmem:[%s4259_s16 + $0x544] sm:$0xf0]  ;;  %v3401_v21 = vld [vmem:[%s4259_s16 + $0x440] sm:$0xf] }
  0x4a   : > { %2052 = vmatpush.bf16.msrb.mxu0 %v3122_v20  ;;  %v4053_v22 = vld [vmem:[%s4259_s16 + $0x444] sm:$0xf0]  ;;  %v3602_v23 = vor.u32 %v4103_v16, %v3601_v15  ;;  %v3593_v27 = vld [vmem:[%s4259_s16 + $0x5c0] sm:$0xf]  ;;  %v4083_v30 = vld [vmem:[%s4259_s16 + $0x534] sm:$0xf0] }
  0x4b   : > { %2071 = vmatpush.bf16.msrb.mxu1 %v3186_v13  ;;  %v3473_v13 = vld [vmem:[%s4259_s16 + $0x4d0] sm:$0xf]  ;;  %v4069_v26 = vld [vmem:[%s4259_s16 + $0x4c4] sm:$0xf0]  ;;  %v3402_v31 = vor.u32 %v4053_v22, %v3401_v21  ;;  %v2811_v39 = vld [vmem:[%s4322_s20 + $0xd0] sm:$0xf0] }
  0x4c   : > { %2090 = vmatpush.bf16.msrb.mxu2 %v3250_v9  ;;  %v3409_v9 = vld [vmem:[%s4259_s16 + $0x450] sm:$0xf]  ;;  %v3474_v20 = vor.u32 %v4071_v14, %v3473_v13  ;;  %v4101_v28 = vld [vmem:[%s4259_s16 + $0x5c4] sm:$0xf0]  ;;  %v4099_v45 = vld [vmem:[%s4259_s16 + $0x5b4] sm:$0xf0] }
  0x4d   : > { %2109 = vmatpush.bf16.msrb.mxu3 %v3314_v24  ;;  %v3410_v19 = vor.u32 %v4055_v10, %v3409_v9  ;;  %v3530_v24 = vor.u32 %v4085_v18, %v3529_v17  ;;  %v3393_v33 = vld [vmem:[%s4259_s16 + $0x430] sm:$0xf]  ;;  %v3594_v35 = vor.u32 %v4101_v28, %v3593_v27  ;;  %v3513_v46 = vld [vmem:[%s4259_s16 + $0x520] sm:$0xf]  ;;  %v2817_v49 = vld [vmem:[%s4322_s20 + $0x98] sm:$0xf] }
  0x4e   : > { %2053 = vmatpush.bf16.msrb.mxu0 %v3114_v42  ;;  %v2809_v36 = vld [vmem:[%s4322_s20 + $0x90] sm:$0xf]  ;;  %v4067_v42 = vld [vmem:[%s4259_s16 + $0x4b4] sm:$0xf0]  ;;  %v3903_v55 = vld [vmem:[%s4322_s20 + $0x9c] sm:$0xf] }
  0x4f   : > { %2072 = vmatpush.bf16.msrb.mxu1 %v3178_v29  ;;  %v3521_v29 = vld [vmem:[%s4259_s16 + $0x530] sm:$0xf]  ;;  %v2819_v58 = vld [vmem:[%s4322_s20 + $0xd8] sm:$0xf0]  ;;  %v3385_v61 = vld [vmem:[%s4259_s16 + $0x420] sm:$0xf] }
  0x50   : > { %2091 = vmatpush.bf16.msrb.mxu2 %v3242_v25  ;;  %v3465_v25 = vld [vmem:[%s4259_s16 + $0x4c0] sm:$0xf]  ;;  %v3910_v37 = vld [vmem:[%s4322_s20 + $0xcc] sm:$0xf0]  ;;  %v3522_v40 = vor.u32 %v4083_v30, %v3521_v29  ;;  %v4049_v62 = vld [vmem:[%s4259_s16 + $0x424] sm:$0xf0]  ;;  %v4519_v14 = vor.u32 %v3903_v55, %v2819_v58 }
  0x51   : > { %2110 = vmatpush.bf16.msrb.mxu3 %v3306_v47  ;;  %2054 = vmatmul.bf16.vlgmr.msrb.gmra.mxu0 %v4458_v0  ;;  %v3466_v32 = vor.u32 %v4069_v26, %v3465_v25  ;;  %v3457_v41 = vld [vmem:[%s4259_s16 + $0x4b0] sm:$0xf]  ;;  %v4081_v47 = vld [vmem:[%s4259_s16 + $0x524] sm:$0xf0]  ;;  %v3449_v3 = vld [vmem:[%s4259_s16 + $0x4a0] sm:$0xf]  ;;  %v3386_v15 = vor.u32 %v4049_v62, %v3385_v61 }
  0x52   : > { %2122 = vmatpush.bf16.msra.mxu0 %v3426_v52  ;;  %2073 = vmatmul.bf16.vlgmr.msrb.gmra.mxu1 %v4460_v1  ;;  %v3585_v43 = vld [vmem:[%s4259_s16 + $0x5b0] sm:$0xf]  ;;  %v3911_v52 = vld [vmem:[%s4322_s20 + $0xd4] sm:$0xf0]  ;;  %v3514_v2 = vor.u32 %v4081_v47, %v3513_v46  ;;  %v4065_v4 = vld [vmem:[%s4259_s16 + $0x4a4] sm:$0xf0] }
  0x53   : > { %2141 = vmatpush.bf16.msra.mxu1 %v3490_v38  ;;  %2092 = vmatmul.bf16.vlgmr.msrb.gmra.mxu2 %v4465_v5  ;;  %v3902_v38 = vld [vmem:[%s4322_s20 + $0x94] sm:$0xf]  ;;  %v3586_v63 = vor.u32 %v4099_v45, %v3585_v43  ;;  %v4097_v10 = vld [vmem:[%s4259_s16 + $0x5a4] sm:$0xf0]  ;;  %v4517_v13 = vor.u32 %v3911_v52, %v2817_v49  ;;  %v3450_v16 = vor.u32 %v4065_v4, %v3449_v3  ;;  %v3377_v17 = vld [vmem:[%s4259_s16 + $0x410] sm:$0xf] }
  0x54   : > { %2160 = vmatpush.bf16.msra.mxu2 %v3554_v34  ;;  %2111 = vmatmul.bf16.vlgmr.msrb.gmra.mxu3 %v4467_v6  ;;  %v4051_v34 = vld [vmem:[%s4259_s16 + $0x434] sm:$0xf0]  ;;  %v4512_v9 = vor.u32 %v3902_v38, %v2811_v39  ;;  %v3441_v21 = vld [vmem:[%s4259_s16 + $0x490] sm:$0xf]  ;;  %v3497_v25 = vld [vmem:[%s4259_s16 + $0x500] sm:$0xf] }
  0x55   : > { %2179 = vmatpush.bf16.msra.mxu3 %v3618_v59  ;;  %v3394_v59 = vor.u32 %v4051_v34, %v3393_v33  ;;  %v4047_v18 = vld [vmem:[%s4259_s16 + $0x414] sm:$0xf0]  ;;  %v4077_v26 = vld [vmem:[%s4259_s16 + $0x504] sm:$0xf0]  ;;  %v3809_v27 = vld [vmem:[%s4259_s16 + $0x770] sm:$0xf] }
  0x56   : > { %2123 = vmatpush.bf16.msra.mxu0 %v3418_v7  ;;  %v3577_v7 = vld [vmem:[%s4259_s16 + $0x5a0] sm:$0xf]  ;;  %v4063_v22 = vld [vmem:[%s4259_s16 + $0x494] sm:$0xf0]  ;;  %v3378_v29 = vor.u32 %v4047_v18, %v3377_v17  ;;  %v4093_v38 = vld [vmem:[%s4259_s16 + $0x584] sm:$0xf0] }
  0x57   : > { %2142 = vmatpush.bf16.msra.mxu1 %v3482_v8  ;;  %v4510_v8 = vor.u32 %v3910_v37, %v2809_v36  ;;  %v4155_v28 = vld [vmem:[%s4259_s16 + $0x774] sm:$0xf0]  ;;  %v3442_v30 = vor.u32 %v4063_v22, %v3441_v21  ;;  %v3433_v33 = vld [vmem:[%s4259_s16 + $0x480] sm:$0xf]  ;;  %v4061_v36 = vld [vmem:[%s4259_s16 + $0x484] sm:$0xf0] }
  0x58   : > { %2161 = vmatpush.bf16.msra.mxu2 %v3546_v60  ;;  %v3458_v60 = vor.u32 %v4067_v42, %v3457_v41  ;;  %v3561_v37 = vld [vmem:[%s4259_s16 + $0x580] sm:$0xf]  ;;  %v3810_v39 = vor.u32 %v4155_v28, %v3809_v27  ;;  %v4123_v41 = vld [vmem:[%s4259_s16 + $0x674] sm:$0xf0]  ;;  %v3745_v42 = vld [vmem:[%s4259_s16 + $0x6f0] sm:$0xf]  ;;  %v3434_v49 = vor.u32 %v4061_v36, %v3433_v33 }
  0x59   : > { %2180 = vmatpush.bf16.msra.mxu3 %v3610_v11  ;;  %v3505_v11 = vld [vmem:[%s4259_s16 + $0x510] sm:$0xf]  ;;  %v4139_v43 = vld [vmem:[%s4259_s16 + $0x6f4] sm:$0xf0]  ;;  %v3801_v52 = vld [vmem:[%s4259_s16 + $0x760] sm:$0xf]  ;;  %v3562_v58 = vor.u32 %v4093_v38, %v3561_v37 }
  0x5a   : > { %2124 = vmatpush.bf16.msra.mxu0 %v3410_v19  ;;  %v3578_v19 = vor.u32 %v4097_v10, %v3577_v7  ;;  %v3873_v45 = vld [vmem:[%s4259_s16 + $0x7f0] sm:$0xf]  ;;  %v4171_v46 = vld [vmem:[%s4259_s16 + $0x7f4] sm:$0xf0]  ;;  %v4153_v55 = vld [vmem:[%s4259_s16 + $0x764] sm:$0xf0] }
  0x5b   : > { %2143 = vmatpush.bf16.msra.mxu1 %v3474_v20  ;;  %v3888_v61 = vld [vmem:[%s4322_s20 + $0x24] sm:$0xf]  ;;  %v3874_v3 = vor.u32 %v4171_v46, %v3873_v45  ;;  %v3673_v4 = vld [vmem:[%s4259_s16 + $0x660] sm:$0xf]  ;;  %v4121_v7 = vld [vmem:[%s4259_s16 + $0x664] sm:$0xf0] }
  0x5c   : > { %2162 = vmatpush.bf16.msra.mxu2 %v3538_v12  ;;  %v4079_v12 = vld [vmem:[%s4259_s16 + $0x514] sm:$0xf0]  ;;  %v2769_v10 = vld [vmem:[%s4322_s20 + $0x28] sm:$0xf]  ;;  %v3737_v17 = vld [vmem:[%s4259_s16 + $0x6e0] sm:$0xf] }
  0x5d   : > { %2181 = vmatpush.bf16.msra.mxu3 %v3602_v23  ;;  %v3506_v20 = vor.u32 %v4079_v12, %v3505_v11  ;;  %v3569_v23 = vld [vmem:[%s4259_s16 + $0x590] sm:$0xf]  ;;  %v3897_v11 = vld [vmem:[%s4322_s20 + $0x64] sm:$0xf0]  ;;  %v3889_v12 = vld [vmem:[%s4322_s20 + $0x2c] sm:$0xf] }
  0x5e   : > { %2125 = vmatpush.bf16.msra.mxu0 %v3402_v31  ;;  %v3369_v31 = vld [vmem:[%s4259_s16 + $0x400] sm:$0xf]  ;;  %v4137_v18 = vld [vmem:[%s4259_s16 + $0x6e4] sm:$0xf0]  ;;  %v3793_v22 = vld [vmem:[%s4259_s16 + $0x750] sm:$0xf]  ;;  %v4571_v28 = vor.u32 %v3897_v11, %v2769_v10 }
  0x5f   : > { %2144 = vmatpush.bf16.msra.mxu1 %v3466_v32  ;;  %v4045_v32 = vld [vmem:[%s4259_s16 + $0x404] sm:$0xf0]  ;;  %v4119_v27 = vld [vmem:[%s4259_s16 + $0x654] sm:$0xf0]  ;;  %v3857_v36 = vld [vmem:[%s4259_s16 + $0x7d0] sm:$0xf] }
  0x60   : > { %2163 = vmatpush.bf16.msra.mxu2 %v3530_v24  ;;  %v4095_v24 = vld [vmem:[%s4259_s16 + $0x594] sm:$0xf0]  ;;  %v3370_v47 = vor.u32 %v4045_v32, %v3369_v31  ;;  %v4169_v21 = vld [vmem:[%s4259_s16 + $0x7e4] sm:$0xf0]  ;;  %v3729_v32 = vld [vmem:[%s4259_s16 + $0x6d0] sm:$0xf] }
  0x61   : > { %2182 = vmatpush.bf16.msra.mxu3 %v3594_v35  ;;  %2059 = vmatmul.bf16.gmra.mxu0 %v4510_v8  ;;  %v3570_v34 = vor.u32 %v4095_v24, %v3569_v23  ;;  %v3498_v35 = vor.u32 %v4077_v26, %v3497_v25  ;;  %v4151_v25 = vld [vmem:[%s4259_s16 + $0x754] sm:$0xf0]  ;;  %v3665_v26 = vld [vmem:[%s4259_s16 + $0x650] sm:$0xf]  ;;  %v3785_v38 = vld [vmem:[%s4259_s16 + $0x740] sm:$0xf] }
  0x62   : > { %2126 = vmatpush.bf16.msra.mxu0 %v3394_v59  ;;  %2078 = vmatmul.bf16.gmra.mxu1 %v4512_v9  ;;  %v2761_v59 = vld [vmem:[%s4322_s20 + $0x20] sm:$0xf]  ;;  %v4135_v33 = vld [vmem:[%s4259_s16 + $0x6d4] sm:$0xf0]  ;;  %v4133_v46 = vld [vmem:[%s4259_s16 + $0x6c4] sm:$0xf0] }
  0x63   : > { %2145 = vmatpush.bf16.msra.mxu1 %v3458_v60  ;;  %2097 = vmatmul.bf16.gmra.mxu2 %v4517_v13  ;;  %v3896_v60 = vld [vmem:[%s4322_s20 + $0x5c] sm:$0xf0]  ;;  %v4167_v37 = vld [vmem:[%s4259_s16 + $0x7d4] sm:$0xf0]  ;;  %v3904_v10 = vld [vmem:[%s4322_s20 + $0xa4] sm:$0xf] }
  0x64   : > { %2164 = vmatpush.bf16.msra.mxu2 %v3522_v40  ;;  %2116 = vmatmul.bf16.gmra.mxu3 %v4519_v14  ;;  %v3681_v40 = vld [vmem:[%s4259_s16 + $0x670] sm:$0xf]  ;;  %v4564_v23 = vor.u32 %v3896_v60, %v2761_v59  ;;  %v3721_v45 = vld [vmem:[%s4259_s16 + $0x6c0] sm:$0xf]  ;;  %v4147_v59 = vld [vmem:[%s4259_s16 + $0x734] sm:$0xf0] }
  0x65   : > { %2183 = vmatpush.bf16.msra.mxu3 %v3586_v63  ;;  %v3682_v62 = vor.u32 %v4123_v41, %v3681_v40  ;;  %v2763_v63 = vld [vmem:[%s4322_s20 + $0x60] sm:$0xf0]  ;;  %v3657_v40 = vld [vmem:[%s4259_s16 + $0x640] sm:$0xf]  ;;  %v4117_v41 = vld [vmem:[%s4259_s16 + $0x644] sm:$0xf0] }
  0x66   : > { %2127 = vmatpush.bf16.msra.mxu0 %v3386_v15  ;;  %v3802_v15 = vor.u32 %v4153_v55, %v3801_v52  ;;  %v4566_v24 = vor.u32 %v3888_v61, %v2763_v63  ;;  %v3849_v52 = vld [vmem:[%s4259_s16 + $0x7c0] sm:$0xf]  ;;  %v4165_v55 = vld [vmem:[%s4259_s16 + $0x7c4] sm:$0xf0]  ;;  %v3649_v60 = vld [vmem:[%s4259_s16 + $0x630] sm:$0xf] }
  0x67   : > { %2146 = vmatpush.bf16.msra.mxu1 %v3450_v16  ;;  %v2771_v16 = vld [vmem:[%s4322_s20 + $0x68] sm:$0xf0]  ;;  %v4115_v61 = vld [vmem:[%s4259_s16 + $0x634] sm:$0xf0]  ;;  %v3850_v63 = vor.u32 %v4165_v55, %v3849_v52  ;;  %v2827_v11 = vld [vmem:[%s4322_s20 + $0xe0] sm:$0xf0] }
  0x68   : > { %2165 = vmatpush.bf16.msra.mxu2 %v3514_v2  ;;  %v3746_v2 = vor.u32 %v4139_v43, %v3745_v42  ;;  %v3730_v42 = vor.u32 %v4135_v33, %v3729_v32  ;;  %v3858_v43 = vor.u32 %v4167_v37, %v3857_v36  ;;  %v3705_v32 = vld [vmem:[%s4259_s16 + $0x6a0] sm:$0xf]  ;;  %v4129_v33 = vld [vmem:[%s4259_s16 + $0x6a4] sm:$0xf0]  ;;  %v3697_v52 = vld [vmem:[%s4259_s16 + $0x690] sm:$0xf] }
  0x69   : > { %2184 = vmatpush.bf16.msra.mxu3 %v3578_v19  ;;  %v3674_v19 = vor.u32 %v4121_v7, %v3673_v4  ;;  %v2825_v4 = vld [vmem:[%s4322_s20 + $0xa0] sm:$0xf]  ;;  %v4161_v37 = vld [vmem:[%s4259_s16 + $0x7a4] sm:$0xf0]  ;;  %v4127_v55 = vld [vmem:[%s4259_s16 + $0x694] sm:$0xf0] }
  0x6a   : > { %2128 = vmatpush.bf16.msra.mxu0 %v3378_v29  ;;  %v4573_v29 = vor.u32 %v3889_v12, %v2771_v16  ;;  %v3912_v7 = vld [vmem:[%s4322_s20 + $0xdc] sm:$0xf0]  ;;  %v3841_v16 = vld [vmem:[%s4259_s16 + $0x7b0] sm:$0xf]  ;;  %s3883_s21 = sshll.u32 %s5037_s9, 5 }
  0x6b   : > { %2147 = vmatpush.bf16.msra.mxu1 %v3442_v30  ;;  %v3738_v30 = vor.u32 %v4137_v18, %v3737_v17  ;;  %v4163_v17 = vld [vmem:[%s4259_s16 + $0x7b4] sm:$0xf0]  ;;  %v3769_v18 = vld [vmem:[%s4259_s16 + $0x720] sm:$0xf]  ;;  %s5010_s24 = scalar_lea.vmem %s5031_s2, %s3883_s21 }
  0x6c   : > { %2166 = vmatpush.bf16.msra.mxu2 %v3506_v20  ;;  %v3865_v20 = vld [vmem:[%s4259_s16 + $0x7e0] sm:$0xf] }
  0x6d   : > { %2185 = vmatpush.bf16.msra.mxu3 %v3570_v34  ;;  %v3866_v31 = vor.u32 %v4169_v21, %v3865_v20  ;;  %v3794_v34 = vor.u32 %v4151_v25, %v3793_v22  ;;  %v3641_v20 = vld [vmem:[%s4259_s16 + $0x620] sm:$0xf]  ;;  %v4113_v21 = vld [vmem:[%s4259_s16 + $0x624] sm:$0xf0] }
  0x6e   : > { %2129 = vmatpush.bf16.msra.mxu0 %v3370_v47  ;;  %v2833_v22 = vld [vmem:[%s4322_s20 + $0xa8] sm:$0xf]  ;;  %v3833_v36 = vld [vmem:[%s4259_s16 + $0x7a0] sm:$0xf] }
  0x6f   : > { %2148 = vmatpush.bf16.msra.mxu1 %v3434_v49  ;;  %v3658_v49 = vor.u32 %v4117_v41, %v3657_v40  ;;  %v3913_v25 = vld [vmem:[%s4322_s20 + $0xe4] sm:$0xf0]  ;;  %v4618_v40 = vor.u32 %v3904_v10, %v2827_v11  ;;  %v4143_v41 = vld [vmem:[%s4259_s16 + $0x714] sm:$0xf0]  ;;  %v3930_v10 = vld [vmem:[%s4259_s16 + $0x74] sm:$0xf] }
  0x70   : > { %2167 = vmatpush.bf16.msra.mxu2 %v3498_v35  ;;  %v3666_v35 = vor.u32 %v4119_v27, %v3665_v26  ;;  %v3905_v26 = vld [vmem:[%s4322_s20 + $0xac] sm:$0xf]  ;;  %v2915_v11 = vld [vmem:[%s4259_s16 + $0x78] sm:$0xf0] }
  0x71   : > { %2186 = vmatpush.bf16.msra.mxu3 %v3562_v58  ;;  %2130 = vmatmul.bf16.vlgmr.msra.gmra.mxu0 %v4564_v23  ;;  %v3777_v58 = vld [vmem:[%s4259_s16 + $0x730] sm:$0xf]  ;;  %v2835_v27 = vld [vmem:[%s4322_s20 + $0xe8] sm:$0xf0] }
  0x72   : > { %2198 = vmatpush.bf16.msrb.mxu0 %v3682_v62  ;;  %2149 = vmatmul.bf16.vlgmr.msra.gmra.mxu1 %v4566_v24  ;;  %v3722_v62 = vor.u32 %v4133_v46, %v3721_v45  ;;  %v3778_v12 = vor.u32 %v4147_v59, %v3777_v58  ;;  %v4623_v45 = vor.u32 %v3913_v25, %v2833_v22  ;;  %v3825_v58 = vld [vmem:[%s4259_s16 + $0x790] sm:$0xf]  ;;  %v3946_v22 = vld [vmem:[%s4259_s16 + $0xf4] sm:$0xf]  ;;  %v2979_v25 = vld [vmem:[%s4259_s16 + $0xf8] sm:$0xf0] }
  0x73   : > { %2217 = vmatpush.bf16.msrb.mxu1 %v3746_v2  ;;  %2168 = vmatmul.bf16.vlgmr.msra.gmra.mxu2 %v4571_v28  ;;  %v3713_v2 = vld [vmem:[%s4259_s16 + $0x6b0] sm:$0xf]  ;;  %v4625_v46 = vor.u32 %v3905_v26, %v2835_v27  ;;  %v2918_v27 = vor.u32 %v3930_v10, %v2915_v11 }
  0x74   : > { %2236 = vmatpush.bf16.msrb.mxu2 %v3810_v39  ;;  %v4149_v39 = vld [vmem:[%s4259_s16 + $0x744] sm:$0xf0]  ;;  %2187 = vmatmul.bf16.vlgmr.msra.gmra.mxu3 %v4573_v29 }
  0x75   : > { %2255 = vmatpush.bf16.msrb.mxu3 %v3874_v3  ;;  %v3786_v47 = vor.u32 %v4149_v39, %v3785_v38  ;;  %v4131_v3 = vld [vmem:[%s4259_s16 + $0x6b4] sm:$0xf0]  ;;  %v3761_v38 = vld [vmem:[%s4259_s16 + $0x710] sm:$0xf]  ;;  %v4616_v39 = vor.u32 %v3912_v7, %v2825_v4  ;;  %v3962_v4 = vld [vmem:[%s4259_s16 + $0x174] sm:$0xf] }
  0x76   : > { %2199 = vmatpush.bf16.msrb.mxu0 %v3674_v19  ;;  %v4145_v19 = vld [vmem:[%s4259_s16 + $0x724] sm:$0xf0]  ;;  %v3762_v59 = vor.u32 %v4143_v41, %v3761_v38  ;;  %v3043_v7 = vld [vmem:[%s4259_s16 + $0x178] sm:$0xf0]  ;;  %v2777_v38 = vld [vmem:[%s4322_s20 + $0x30] sm:$0xf] }
  0x77   : > { %2218 = vmatpush.bf16.msrb.mxu1 %v3738_v30  ;;  %v3714_v30 = vor.u32 %v4131_v3, %v3713_v2  ;;  %v3625_v2 = vld [vmem:[%s4259_s16 + $0x600] sm:$0xf]  ;;  %v4109_v3 = vld [vmem:[%s4259_s16 + $0x604] sm:$0xf0]  ;;  %v3046_v26 = vor.u32 %v3962_v4, %v3043_v7  ;;  %v3898_v41 = vld [vmem:[%s4322_s20 + $0x6c] sm:$0xf0] }
  0x78   : > { %2237 = vmatpush.bf16.msrb.mxu2 %v3802_v15  ;;  %v3650_v15 = vor.u32 %v4115_v61, %v3649_v60  ;;  %v4159_v61 = vld [vmem:[%s4259_s16 + $0x794] sm:$0xf0]  ;;  %v3958_v4 = vld [vmem:[%s4259_s16 + $0x154] sm:$0xf]  ;;  %v3027_v7 = vld [vmem:[%s4259_s16 + $0x158] sm:$0xf0] }
  0x79   : > { %2256 = vmatpush.bf16.msrb.mxu3 %v3866_v31  ;;  %v3842_v31 = vor.u32 %v4163_v17, %v3841_v16  ;;  %v3689_v16 = vld [vmem:[%s4259_s16 + $0x680] sm:$0xf]  ;;  %v4125_v17 = vld [vmem:[%s4259_s16 + $0x684] sm:$0xf0] }
  0x7a   : > { %2200 = vmatpush.bf16.msrb.mxu0 %v3666_v35  ;;  %v3642_v35 = vor.u32 %v4113_v21, %v3641_v20  ;;  %v3626_v20 = vor.u32 %v4109_v3, %v3625_v2  ;;  %v4157_v21 = vld [vmem:[%s4259_s16 + $0x784] sm:$0xf0]  ;;  %v3891_v2 = vld [vmem:[%s4322_s20 + $0x3c] sm:$0xf] }
  0x7b   : > { %2219 = vmatpush.bf16.msrb.mxu1 %v3730_v42  ;;  %v3633_v42 = vld [vmem:[%s4259_s16 + $0x610] sm:$0xf]  ;;  %v2787_v3 = vld [vmem:[%s4322_s20 + $0x78] sm:$0xf0] }
  0x7c   : > { %2238 = vmatpush.bf16.msrb.mxu2 %v3794_v34  ;;  %v3770_v34 = vor.u32 %v4145_v19, %v3769_v18  ;;  %v3817_v18 = vld [vmem:[%s4259_s16 + $0x780] sm:$0xf] }
  0x7d   : > { %2257 = vmatpush.bf16.msrb.mxu3 %v3858_v43  ;;  %v4111_v43 = vld [vmem:[%s4259_s16 + $0x614] sm:$0xf0] }
  0x7e   : > { %2201 = vmatpush.bf16.msrb.mxu0 %v3658_v49  ;;  %v3834_v49 = vor.u32 %v4161_v37, %v3833_v36  ;;  %v3634_v60 = vor.u32 %v4111_v43, %v3633_v42  ;;  %v3690_v36 = vor.u32 %v4125_v17, %v3689_v16  ;;  %v3818_v37 = vor.u32 %v4157_v21, %v3817_v18  ;;  %v3890_v42 = vld [vmem:[%s4322_s20 + $0x34] sm:$0xf]  ;;  %v3091_v21 = vld [vmem:[%s4259_s16 + $0x1d8] sm:$0xf0] }
  0x7f   : > { %2220 = vmatpush.bf16.msrb.mxu1 %v3722_v62  ;;  %v3753_v62 = vld [vmem:[%s4259_s16 + $0x700] sm:$0xf]  ;;  %v2779_v43 = vld [vmem:[%s4322_s20 + $0x70] sm:$0xf0]  ;;  %v4672_v17 = vor.u32 %v3898_v41, %v2777_v38  ;;  %v3972_v38 = vld [vmem:[%s4259_s16 + $0x1c4] sm:$0xf] }
  0x80   : > { %2239 = vmatpush.bf16.msrb.mxu2 %v3786_v47  ;;  %v3706_v47 = vor.u32 %v4129_v33, %v3705_v32  ;;  %v3960_v32 = vld [vmem:[%s4259_s16 + $0x164] sm:$0xf]  ;;  %v3035_v33 = vld [vmem:[%s4259_s16 + $0x168] sm:$0xf0]  ;;  %v3942_v16 = vld [vmem:[%s4259_s16 + $0xd4] sm:$0xf]  ;;  %v4674_v18 = vor.u32 %v3890_v42, %v2779_v43 }
  0x81   : > { %2258 = vmatpush.bf16.msrb.mxu3 %v3850_v63  ;;  %v4141_v63 = vld [vmem:[%s4259_s16 + $0x704] sm:$0xf0]  ;;  %2135 = vmatmul.bf16.gmra.mxu0 %v4616_v39  ;;  %v3083_v41 = vld [vmem:[%s4259_s16 + $0x1c8] sm:$0xf0] }
  0x82   : > { %2202 = vmatpush.bf16.msrb.mxu0 %v3650_v15  ;;  %2154 = vmatmul.bf16.gmra.mxu1 %v4618_v40  ;;  %v3826_v15 = vor.u32 %v4159_v61, %v3825_v58  ;;  %v3754_v19 = vor.u32 %v4141_v63, %v3753_v62  ;;  %v3099_v61 = vld [vmem:[%s4259_s16 + $0x1e8] sm:$0xf0]  ;;  %v2785_v62 = vld [vmem:[%s4322_s20 + $0x38] sm:$0xf] }
  0x83   : > { %2221 = vmatpush.bf16.msrb.mxu1 %v3714_v30  ;;  %2173 = vmatmul.bf16.gmra.mxu2 %v4623_v45  ;;  %v3978_v30 = vld [vmem:[%s4259_s16 + $0x1f4] sm:$0xf]  ;;  %v3899_v63 = vld [vmem:[%s4322_s20 + $0x74] sm:$0xf0] }
  0x84   : > { %2240 = vmatpush.bf16.msrb.mxu2 %v3778_v12  ;;  %2192 = vmatmul.bf16.gmra.mxu3 %v4625_v46  ;;  %v3698_v12 = vor.u32 %v4127_v55, %v3697_v52  ;;  %v3944_v52 = vld [vmem:[%s4259_s16 + $0xe4] sm:$0xf]  ;;  %v3038_v55 = vor.u32 %v3960_v32, %v3035_v33 }
  0x85   : > { %2259 = vmatpush.bf16.msrb.mxu3 %v3842_v31  ;;  %v3107_v31 = vld [vmem:[%s4259_s16 + $0x1f8] sm:$0xf0] }
  0x86   : > { %2203 = vmatpush.bf16.msrb.mxu0 %v3642_v35  ;;  %v2907_v35 = vld [vmem:[%s4259_s16 + $0x68] sm:$0xf0] }
  0x87   : > { %2222 = vmatpush.bf16.msrb.mxu1 %v3706_v47  ;;  %v2982_v47 = vor.u32 %v3946_v22, %v2979_v25  ;;  %v4679_v22 = vor.u32 %v3899_v63, %v2785_v62  ;;  %v4681_v25 = vor.u32 %v3891_v2, %v2787_v3  ;;  %v3970_v62 = vld [vmem:[%s4259_s16 + $0x1b4] sm:$0xf]  ;;  %v3075_v63 = vld [vmem:[%s4259_s16 + $0x1b8] sm:$0xf0] }
  0x88   : > { %2241 = vmatpush.bf16.msrb.mxu2 %v3770_v34  ;;  %v3928_v34 = vld [vmem:[%s4259_s16 + $0x64] sm:$0xf] }
  0x89   : > { %2260 = vmatpush.bf16.msrb.mxu3 %v3834_v49  ;;  %v3110_v49 = vor.u32 %v3978_v30, %v3107_v31  ;;  %v2910_v58 = vor.u32 %v3928_v34, %v2907_v35  ;;  %v3956_v30 = vld [vmem:[%s4259_s16 + $0x144] sm:$0xf]  ;;  %v3019_v31 = vld [vmem:[%s4259_s16 + $0x148] sm:$0xf0] }
  0x8a   : > { %2204 = vmatpush.bf16.msrb.mxu0 %v3634_v60  ;;  %v3976_v60 = vld [vmem:[%s4259_s16 + $0x1e4] sm:$0xf]  ;;  %v2891_v35 = vld [vmem:[%s4259_s16 + $0x48] sm:$0xf0]  ;;  %v3022_v42 = vor.u32 %v3956_v30, %v3019_v31 }
  0x8b   : > { %2223 = vmatpush.bf16.msrb.mxu1 %v3698_v12  ;;  %v3102_v11 = vor.u32 %v3976_v60, %v3099_v61  ;;  %v3926_v12 = vld [vmem:[%s4259_s16 + $0x54] sm:$0xf]  ;;  %v3924_v34 = vld [vmem:[%s4259_s16 + $0x44] sm:$0xf]  ;;  %v2947_v61 = vld [vmem:[%s4259_s16 + $0xb8] sm:$0xf0] }
  0x8c   : > { %2242 = vmatpush.bf16.msrb.mxu2 %v3762_v59  ;;  %v2971_v59 = vld [vmem:[%s4259_s16 + $0xe8] sm:$0xf0]  ;;  %v2894_v43 = vor.u32 %v3924_v34, %v2891_v35  ;;  %v3938_v60 = vld [vmem:[%s4259_s16 + $0xb4] sm:$0xf]  ;;  %v3968_v30 = vld [vmem:[%s4259_s16 + $0x1a4] sm:$0xf] }
  0x8d   : > { %2261 = vmatpush.bf16.msrb.mxu3 %v3826_v15  ;;  %v2974_v10 = vor.u32 %v3944_v52, %v2971_v59  ;;  %v2899_v15 = vld [vmem:[%s4259_s16 + $0x58] sm:$0xf0]  ;;  %v3067_v31 = vld [vmem:[%s4259_s16 + $0x1a8] sm:$0xf0] }
  0x8e   : > { %2205 = vmatpush.bf16.msrb.mxu0 %v3626_v20  ;;  %v3974_v20 = vld [vmem:[%s4259_s16 + $0x1d4] sm:$0xf]  ;;  %v2883_v59 = vld [vmem:[%s4259_s16 + $0x38] sm:$0xf0] }
  0x8f   : > { %2224 = vmatpush.bf16.msrb.mxu1 %v3690_v36  ;;  %v3094_v33 = vor.u32 %v3974_v20, %v3091_v21  ;;  %v3940_v36 = vld [vmem:[%s4259_s16 + $0xc4] sm:$0xf]  ;;  %v2875_v21 = vld [vmem:[%s4259_s16 + $0x28] sm:$0xf0]  ;;  %v3907_v34 = vld [vmem:[%s4322_s20 + $0xbc] sm:$0xf] }
  0x90   : > { %2243 = vmatpush.bf16.msrb.mxu2 %v3754_v19  ;;  %v2963_v19 = vld [vmem:[%s4259_s16 + $0xd8] sm:$0xf0]  ;;  %v3920_v20 = vld [vmem:[%s4259_s16 + $0x24] sm:$0xf] }
  0x91   : > { %2262 = vmatpush.bf16.msrb.mxu3 %v3818_v37  ;;  %v2966_v32 = vor.u32 %v3942_v16, %v2963_v19  ;;  %2206 = vmatmul.bf16.vlgmr.msrb.gmra.mxu0 %v4672_v17  ;;  %v2955_v37 = vld [vmem:[%s4259_s16 + $0xc8] sm:$0xf0]  ;;  %v2950_v16 = vor.u32 %v3938_v60, %v2947_v61  ;;  %v3078_v19 = vor.u32 %v3970_v62, %v3075_v63  ;;  %v2851_v35 = vld [vmem:[%s4322_s20 + $0xf8] sm:$0xf0]  ;;  %v3966_v60 = vld [vmem:[%s4259_s16 + $0x194] sm:$0xf] }
  0x92   : > { %2274 = vmatpush.bf16.msra.mxu0 %v2918_v27  ;;  %v2902_v27 = vor.u32 %v3926_v12, %v2899_v15  ;;  %2225 = vmatmul.bf16.vlgmr.msrb.gmra.mxu1 %v4674_v18  ;;  %v2958_v52 = vor.u32 %v3940_v36, %v2955_v37  ;;  %v3906_v12 = vld [vmem:[%s4322_s20 + $0xb4] sm:$0xf]  ;;  %v2878_v37 = vor.u32 %v3920_v20, %v2875_v21  ;;  %v3059_v61 = vld [vmem:[%s4259_s16 + $0x198] sm:$0xf0]  ;;  %v3964_v20 = vld [vmem:[%s4259_s16 + $0x184] sm:$0xf] }
  0x93   : > { %2293 = vmatpush.bf16.msra.mxu1 %v2982_v47  ;;  %2244 = vmatmul.bf16.vlgmr.msrb.gmra.mxu2 %v4679_v22  ;;  %v3954_v47 = vld [vmem:[%s4259_s16 + $0x134] sm:$0xf]  ;;  %v4733_v63 = vor.u32 %v3907_v34, %v2851_v35  ;;  %v3051_v21 = vld [vmem:[%s4259_s16 + $0x188] sm:$0xf0]  ;;  %v3235_v35 = vld [vmem:[%s4259_s16 + $0x2f8] sm:$0xf0] }
  0x94   : > { %2312 = vmatpush.bf16.msra.mxu2 %v3046_v26  ;;  %v3030_v26 = vor.u32 %v3958_v4, %v3027_v7  ;;  %2263 = vmatmul.bf16.vlgmr.msrb.gmra.mxu3 %v4681_v25  ;;  %v3952_v4 = vld [vmem:[%s4259_s16 + $0x124] sm:$0xf]  ;;  %v3003_v7 = vld [vmem:[%s4259_s16 + $0x128] sm:$0xf0]  ;;  %v2843_v15 = vld [vmem:[%s4322_s20 + $0xf0] sm:$0xf0] }
  0x95   : > { %2331 = vmatpush.bf16.msra.mxu3 %v3110_v49  ;;  %v3011_v49 = vld [vmem:[%s4259_s16 + $0x138] sm:$0xf0]  ;;  %v3006_v36 = vor.u32 %v3952_v4, %v3003_v7  ;;  %v2987_v7 = vld [vmem:[%s4259_s16 + $0x108] sm:$0xf0] }
  0x96   : > { %2275 = vmatpush.bf16.msra.mxu0 %v2910_v58  ;;  %v3922_v58 = vld [vmem:[%s4259_s16 + $0x34] sm:$0xf]  ;;  %v3014_v2 = vor.u32 %v3954_v47, %v3011_v49  ;;  %v2867_v49 = vld [vmem:[%s4259_s16 + $0x18] sm:$0xf0] }
  0x97   : > { %2294 = vmatpush.bf16.msra.mxu1 %v2974_v10  ;;  %v2886_v3 = vor.u32 %v3922_v58, %v2883_v59  ;;  %v2841_v10 = vld [vmem:[%s4322_s20 + $0xb0] sm:$0xf]  ;;  %v3918_v47 = vld [vmem:[%s4259_s16 + $0x14] sm:$0xf]  ;;  %v4726_v58 = vor.u32 %v3906_v12, %v2843_v15  ;;  %v2931_v59 = vld [vmem:[%s4259_s16 + $0x98] sm:$0xf0]  ;;  %v3062_v15 = vor.u32 %v3966_v60, %v3059_v61 }
  0x98   : > { %2313 = vmatpush.bf16.msra.mxu2 %v3038_v55  ;;  %v3086_v55 = vor.u32 %v3972_v38, %v3083_v41  ;;  %v3950_v38 = vld [vmem:[%s4259_s16 + $0x114] sm:$0xf]  ;;  %v2995_v41 = vld [vmem:[%s4259_s16 + $0x118] sm:$0xf0]  ;;  %v2870_v4 = vor.u32 %v3918_v47, %v2867_v49  ;;  %v4024_v47 = vld [vmem:[%s4259_s16 + $0x364] sm:$0xf] }
  0x99   : > { %2332 = vmatpush.bf16.msra.mxu3 %v3102_v11  ;;  %v3914_v11 = vld [vmem:[%s4322_s20 + $0xec] sm:$0xf0]  ;;  %v3291_v49 = vld [vmem:[%s4259_s16 + $0x368] sm:$0xf0]  ;;  %v3992_v60 = vld [vmem:[%s4259_s16 + $0x264] sm:$0xf] }
  0x9a   : > { %2276 = vmatpush.bf16.msra.mxu0 %v2902_v27  ;;  %v2939_v27 = vld [vmem:[%s4259_s16 + $0xa8] sm:$0xf0] }
  0x9b   : > { %2295 = vmatpush.bf16.msra.mxu1 %v2966_v32  ;;  %v2849_v32 = vld [vmem:[%s4322_s20 + $0xb8] sm:$0xf]  ;;  %v3163_v61 = vld [vmem:[%s4259_s16 + $0x268] sm:$0xf0] }
  0x9c   : > { %2314 = vmatpush.bf16.msra.mxu2 %v3030_v26  ;;  %v3936_v26 = vld [vmem:[%s4259_s16 + $0xa4] sm:$0xf] }
  0x9d   : > { %2333 = vmatpush.bf16.msra.mxu3 %v3094_v33  ;;  %v3915_v33 = vld [vmem:[%s4322_s20 + $0xf4] sm:$0xf0] }
  0x9e   : > { %2277 = vmatpush.bf16.msra.mxu0 %v2894_v43  ;;  %v3070_v43 = vor.u32 %v3968_v30, %v3067_v31  ;;  %v4731_v62 = vor.u32 %v3915_v33, %v2849_v32  ;;  %v3994_v30 = vld [vmem:[%s4259_s16 + $0x274] sm:$0xf]  ;;  %v3171_v31 = vld [vmem:[%s4259_s16 + $0x278] sm:$0xf0] }
  0x9f   : > { %2296 = vmatpush.bf16.msra.mxu1 %v2958_v52  ;;  %v3934_v52 = vld [vmem:[%s4259_s16 + $0x94] sm:$0xf] }
  0xa0   : > { %2315 = vmatpush.bf16.msra.mxu2 %v3022_v42  ;;  %v2942_v42 = vor.u32 %v3936_v26, %v2939_v27  ;;  %v2934_v12 = vor.u32 %v3934_v52, %v2931_v59  ;;  %v4026_v26 = vld [vmem:[%s4259_s16 + $0x374] sm:$0xf]  ;;  %v3299_v27 = vld [vmem:[%s4259_s16 + $0x378] sm:$0xf0] }
  0xa1   : > { %2334 = vmatpush.bf16.msra.mxu3 %v3086_v55  ;;  %v4724_v55 = vor.u32 %v3914_v11, %v2841_v10  ;;  %v3916_v10 = vld [vmem:[%s4259_s16 + $0x4] sm:$0xf]  ;;  %v2859_v11 = vld [vmem:[%s4259_s16 + $0x8] sm:$0xf0]  ;;  %v4010_v32 = vld [vmem:[%s4259_s16 + $0x2f4] sm:$0xf] }
  0xa2   : > { %2278 = vmatpush.bf16.msra.mxu0 %v2886_v3  ;;  %v2998_v3 = vor.u32 %v3950_v38, %v2995_v41  ;;  %2230 = vmatmul.bf16.gmra.mxu1 %v4726_v58  ;;  %v2862_v34 = vor.u32 %v3916_v10, %v2859_v11  ;;  %v3054_v41 = vor.u32 %v3964_v20, %v3051_v21  ;;  %v3990_v20 = vld [vmem:[%s4259_s16 + $0x254] sm:$0xf]  ;;  %v3155_v21 = vld [vmem:[%s4259_s16 + $0x258] sm:$0xf0] }
  0xa3   : > { %2297 = vmatpush.bf16.msra.mxu1 %v2950_v16  ;;  %v3932_v16 = vld [vmem:[%s4259_s16 + $0x84] sm:$0xf]  ;;  %2211 = vmatmul.bf16.gmra.mxu0 %v4724_v55  ;;  %v3238_v52 = vor.u32 %v4010_v32, %v3235_v35  ;;  %v3294_v10 = vor.u32 %v4024_v47, %v3291_v49  ;;  %v3166_v11 = vor.u32 %v3992_v60, %v3163_v61  ;;  %v3347_v32 = vld [vmem:[%s4259_s16 + $0x3d8] sm:$0xf0]  ;;  %v3147_v47 = vld [vmem:[%s4259_s16 + $0x248] sm:$0xf0] }
  0xa4   : > { %2316 = vmatpush.bf16.msra.mxu2 %v3014_v2  ;;  %v3948_v2 = vld [vmem:[%s4259_s16 + $0x104] sm:$0xf]  ;;  %2268 = vmatmul.bf16.gmra.mxu3 %v4733_v63  ;;  %v3339_v60 = vld [vmem:[%s4259_s16 + $0x3c8] sm:$0xf0] }
  0xa5   : > { %2335 = vmatpush.bf16.msra.mxu3 %v3078_v19  ;;  %v2923_v19 = vld [vmem:[%s4259_s16 + $0x88] sm:$0xf0]  ;;  %2249 = vmatmul.bf16.gmra.mxu2 %v4731_v62  ;;  %v2990_v33 = vor.u32 %v3948_v2, %v2987_v7  ;;  %v4008_v2 = vld [vmem:[%s4259_s16 + $0x2e4] sm:$0xf] }
  0xa6   : > { %2279 = vmatpush.bf16.msra.mxu0 %v2878_v37  ;;  %v3363_v37 = vld [vmem:[%s4259_s16 + $0x3f8] sm:$0xf0]  ;;  %v2926_v38 = vor.u32 %v3932_v16, %v2923_v19  ;;  %v3355_v7 = vld [vmem:[%s4259_s16 + $0x3e8] sm:$0xf0]  ;;  %v4022_v16 = vld [vmem:[%s4259_s16 + $0x354] sm:$0xf] }
  0xa7   : > { %2298 = vmatpush.bf16.msra.mxu1 %v2942_v42  ;;  %v3302_v42 = vor.u32 %v4026_v26, %v3299_v27  ;;  %v3283_v19 = vld [vmem:[%s4259_s16 + $0x358] sm:$0xf0]  ;;  %v4006_v26 = vld [vmem:[%s4259_s16 + $0x2d4] sm:$0xf]  ;;  %v4004_v49 = vld [vmem:[%s4259_s16 + $0x2c4] sm:$0xf] }
  0xa8   : > { %2317 = vmatpush.bf16.msra.mxu2 %v3006_v36  ;;  %v4042_v36 = vld [vmem:[%s4259_s16 + $0x3f4] sm:$0xf]  ;;  %v3286_v35 = vor.u32 %v4022_v16, %v3283_v19  ;;  %v3203_v16 = vld [vmem:[%s4259_s16 + $0x2b8] sm:$0xf0] }
  0xa9   : > { %2336 = vmatpush.bf16.msra.mxu3 %v3070_v43  ;;  %v3174_v43 = vor.u32 %v3994_v30, %v3171_v31  ;;  %v3366_v59 = vor.u32 %v4042_v36, %v3363_v37  ;;  %v3219_v30 = vld [vmem:[%s4259_s16 + $0x2d8] sm:$0xf0]  ;;  %v4038_v31 = vld [vmem:[%s4259_s16 + $0x3d4] sm:$0xf]  ;;  %v3158_v36 = vor.u32 %v3990_v20, %v3155_v21  ;;  %v4020_v37 = vld [vmem:[%s4259_s16 + $0x344] sm:$0xf] }
  0xaa   : > { %2280 = vmatpush.bf16.msra.mxu0 %v2870_v4  ;;  %v4040_v4 = vld [vmem:[%s4259_s16 + $0x3e4] sm:$0xf]  ;;  %v4034_v19 = vld [vmem:[%s4259_s16 + $0x3b4] sm:$0xf]  ;;  %v3331_v20 = vld [vmem:[%s4259_s16 + $0x3b8] sm:$0xf0] }
  0xab   : > { %2299 = vmatpush.bf16.msra.mxu1 %v2934_v12 }
  0xac   : > { %2318 = vmatpush.bf16.msra.mxu2 %v2998_v3  ;;  %v3227_v3 = vld [vmem:[%s4259_s16 + $0x2e8] sm:$0xf0] }
  0xad   : > { %2337 = vmatpush.bf16.msra.mxu3 %v3062_v15  ;;  %v3230_v12 = vor.u32 %v4008_v2, %v3227_v3  ;;  %v3358_v15 = vor.u32 %v4040_v4, %v3355_v7  ;;  %v3267_v3 = vld [vmem:[%s4259_s16 + $0x338] sm:$0xf0] }
  0xae   : > { %2281 = vmatpush.bf16.msra.mxu0 %v2862_v34  ;;  %v1979_v27 = vpop.f32.mrf.mxu0 }
  0xaf   : > { %2300 = vmatpush.bf16.msra.mxu1 %v2926_v38  ;;  %v3275_v38 = vld [vmem:[%s4259_s16 + $0x348] sm:$0xf0] }
  0xb0   : > { %2319 = vmatpush.bf16.msra.mxu2 %v2990_v33  ;;  %v1998_v33 = vpop.f32.mrf.mxu1  ;;  %v3278_v61 = vor.u32 %v4020_v37, %v3275_v38  ;;  %v3131_v37 = vld [vmem:[%s4259_s16 + $0x228] sm:$0xf0]  ;;  %v4000_v38 = vld [vmem:[%s4259_s16 + $0x2a4] sm:$0xf] }
  0xb1   : > { %2338 = vmatpush.bf16.msra.mxu3 %v3054_v41  ;;  %v1999_v34 = vadd.f32 %v1998_v33, %v1979_v27  ;;  %v3222_v41 = vor.u32 %v4006_v26, %v3219_v30  ;;  %v3259_v33 = vld [vmem:[%s4259_s16 + $0x328] sm:$0xf0] }
  0xb2   : > { %2350 = vmatpush.bf16.msrb.mxu0 %v3174_v43  ;;  %v3988_v43 = vld [vmem:[%s4259_s16 + $0x244] sm:$0xf]  ;;  %2301 = vmatmul.bf16.vlgmr.msra.gmra.mxu1 %v4351_v53 }
  0xb3   : > { %2369 = vmatpush.bf16.msrb.mxu1 %v3238_v52  ;;  %2282 = vmatmul.bf16.vlgmr.msra.gmra.mxu0 %v4346_v48  ;;  %v3211_v52 = vld [vmem:[%s4259_s16 + $0x2c8] sm:$0xf0]  ;;  %v3150_v2 = vor.u32 %v3988_v43, %v3147_v47  ;;  %v4018_v48 = vld [vmem:[%s4259_s16 + $0x334] sm:$0xf] }
  0xb4   : > { %2388 = vmatpush.bf16.msrb.mxu2 %v3302_v42  ;;  %v3350_v42 = vor.u32 %v4038_v31, %v3347_v32  ;;  %2339 = vmatmul.bf16.vlgmr.msra.gmra.mxu3 %v4357_v57  ;;  %v3214_v4 = vor.u32 %v4004_v49, %v3211_v52  ;;  %v3270_v26 = vor.u32 %v4018_v48, %v3267_v3  ;;  %v4016_v32 = vld [vmem:[%s4259_s16 + $0x324] sm:$0xf]  ;;  %v3323_v43 = vld [vmem:[%s4259_s16 + $0x3a8] sm:$0xf0]  ;;  %v4014_v52 = vld [vmem:[%s4259_s16 + $0x314] sm:$0xf] }
  0xb5   : > { %2407 = vmatpush.bf16.msrb.mxu3 %v3366_v59  ;;  %v4036_v59 = vld [vmem:[%s4259_s16 + $0x3c4] sm:$0xf]  ;;  %2320 = vmatmul.bf16.vlgmr.msra.gmra.mxu2 %v4353_v54  ;;  %v4002_v54 = vld [vmem:[%s4259_s16 + $0x2b4] sm:$0xf]  ;;  %v3262_v47 = vor.u32 %v4016_v32, %v3259_v33  ;;  %v3123_v3 = vld [vmem:[%s4259_s16 + $0x218] sm:$0xf0] }
  0xb6   : > { %2351 = vmatpush.bf16.msrb.mxu0 %v3166_v11  ;;  %v2017_v53 = vpop.f32.mrf.mxu2  ;;  %v3342_v7 = vor.u32 %v4036_v59, %v3339_v60  ;;  %v3139_v11 = vld [vmem:[%s4259_s16 + $0x238] sm:$0xf0]  ;;  %v3982_v48 = vld [vmem:[%s4259_s16 + $0x214] sm:$0xf] }
  0xb7   : > { %2370 = vmatpush.bf16.msrb.mxu1 %v3230_v12  ;;  %v2018_v57 = vadd.f32 %v2017_v53, %v1999_v34  ;;  %v2036_v12 = vpop.f32.mrf.mxu3  ;;  %v3206_v34 = vor.u32 %v4002_v54, %v3203_v16  ;;  %v3251_v59 = vld [vmem:[%s4259_s16 + $0x318] sm:$0xf0]  ;;  %v3998_v53 = vld [vmem:[%s4259_s16 + $0x294] sm:$0xf]  ;;  %v4012_v16 = vld [vmem:[%s4259_s16 + $0x304] sm:$0xf] }
  0xb8   : > { %2389 = vmatpush.bf16.msrb.mxu2 %v3294_v10  ;;  %v3986_v10 = vld [vmem:[%s4259_s16 + $0x234] sm:$0xf]  ;;  %v2000_v21 = vpop.f32.mrf.mxu1 }
  0xb9   : > { %2408 = vmatpush.bf16.msrb.mxu3 %v3358_v15  ;;  %v1981_v15 = vpop.f32.mrf.mxu0  ;;  %v4791_v27 = vadd.f32 %v2036_v12, %v2018_v57  ;;  %v3142_v31 = vor.u32 %v3986_v10, %v3139_v11  ;;  %v3187_v11 = vld [vmem:[%s4259_s16 + $0x298] sm:$0xf0]  ;;  %v4030_v54 = vld [vmem:[%s4259_s16 + $0x394] sm:$0xf] }
  0xba   : > { %2352 = vmatpush.bf16.msrb.mxu0 %v3158_v36  ;;  %v2001_v30 = vadd.f32 %v2000_v21, %v1981_v15  ;;  %v3984_v36 = vld [vmem:[%s4259_s16 + $0x224] sm:$0xf]  ;;  %v3315_v57 = vld [vmem:[%s4259_s16 + $0x398] sm:$0xf0]  ;;  %v3254_v15 = vor.u32 %v4014_v52, %v3251_v59  ;;  %v3126_v21 = vor.u32 %v3982_v48, %v3123_v3  ;;  %v3190_v32 = vor.u32 %v3998_v53, %v3187_v11  ;;  %v4106_v59 = vld [vmem:[%s4259_s16 + $0x5f4] sm:$0xf] }
  0xbb   : > { %2371 = vmatpush.bf16.msrb.mxu1 %v3222_v41  ;;  %v3195_v41 = vld [vmem:[%s4259_s16 + $0x2a8] sm:$0xf0]  ;;  %v3134_v49 = vor.u32 %v3984_v36, %v3131_v37  ;;  %v3318_v33 = vor.u32 %v4030_v54, %v3315_v57  ;;  %v4028_v36 = vld [vmem:[%s4259_s16 + $0x384] sm:$0xf] }
  0xbc   : > { %2390 = vmatpush.bf16.msrb.mxu2 %v3286_v35  ;;  %v3334_v35 = vor.u32 %v4034_v19, %v3331_v20  ;;  %v3307_v37 = vld [vmem:[%s4259_s16 + $0x388] sm:$0xf0]  ;;  %v4056_v57 = vld [vmem:[%s4259_s16 + $0x464] sm:$0xf] }
  0xbd   : > { %2409 = vmatpush.bf16.msrb.mxu3 %v3350_v42  ;;  %v4032_v42 = vld [vmem:[%s4259_s16 + $0x3a4] sm:$0xf] }
  0xbe   : > { %2353 = vmatpush.bf16.msrb.mxu0 %v3150_v2  ;;  %v2019_v60 = vpop.f32.mrf.mxu2  ;;  %v3326_v2 = vor.u32 %v4032_v42, %v3323_v43  ;;  %v4058_v42 = vld [vmem:[%s4259_s16 + $0x474] sm:$0xf]  ;;  %v3427_v43 = vld [vmem:[%s4259_s16 + $0x478] sm:$0xf0] }
  0xbf   : > { %2372 = vmatpush.bf16.msrb.mxu1 %v3214_v4  ;;  %v2020_v4 = vadd.f32 %v2019_v60, %v2001_v30  ;;  %v3980_v30 = vld [vmem:[%s4259_s16 + $0x204] sm:$0xf]  ;;  %v3619_v60 = vld [vmem:[%s4259_s16 + $0x5f8] sm:$0xf0]  ;;  %v3430_v53 = vor.u32 %v4058_v42, %v3427_v43  ;;  %v4070_v42 = vld [vmem:[%s4259_s16 + $0x4d4] sm:$0xf] }
  0xc0   : > { %2391 = vmatpush.bf16.msrb.mxu2 %v3278_v61  ;;  %v3198_v61 = vor.u32 %v4000_v38, %v3195_v41  ;;  %v2003_v12 = vpop.f32.mrf.mxu1  ;;  %v4090_v38 = vld [vmem:[%s4259_s16 + $0x574] sm:$0xf]  ;;  %v3555_v41 = vld [vmem:[%s4259_s16 + $0x578] sm:$0xf0]  ;;  %v3622_v54 = vor.u32 %v4106_v59, %v3619_v60 }
  0xc1   : > { %2410 = vmatpush.bf16.msrb.mxu3 %v3342_v7  ;;  %v2038_v7 = vpop.f32.mrf.mxu3  ;;  %v1984_v10 = vpop.f32.mrf.mxu0  ;;  %v3558_v3 = vor.u32 %v4090_v38, %v3555_v41  ;;  %v4054_v38 = vld [vmem:[%s4259_s16 + $0x454] sm:$0xf]  ;;  %v3411_v41 = vld [vmem:[%s4259_s16 + $0x458] sm:$0xf0] }
  0xc2   : > { %2354 = vmatpush.bf16.msrb.mxu0 %v3142_v31  ;;  %v4810_v19 = vadd.f32 %v2038_v7, %v2020_v4  ;;  %v2004_v20 = vadd.f32 %v2003_v12, %v1984_v10  ;;  %v3115_v31 = vld [vmem:[%s4259_s16 + $0x208] sm:$0xf0]  ;;  %2306 = vmatmul.bf16.gmra.mxu1 %v4403_v50  ;;  %v4088_v4 = vld [vmem:[%s4259_s16 + $0x564] sm:$0xf] }
  0xc3   : > { %2373 = vmatpush.bf16.msrb.mxu1 %v3206_v34  ;;  %v3996_v34 = vld [vmem:[%s4259_s16 + $0x284] sm:$0xf]  ;;  %2287 = vmatmul.bf16.gmra.mxu0 %v4398_v44  ;;  %v3118_v52 = vor.u32 %v3980_v30, %v3115_v31  ;;  %v3491_v44 = vld [vmem:[%s4259_s16 + $0x4f8] sm:$0xf0]  ;;  %v3547_v7 = vld [vmem:[%s4259_s16 + $0x568] sm:$0xf0] }
  0xc4   : > { %2392 = vmatpush.bf16.msrb.mxu2 %v3270_v26  ;;  %v3243_v26 = vld [vmem:[%s4259_s16 + $0x308] sm:$0xf0]  ;;  %2344 = vmatmul.bf16.gmra.mxu3 %v4409_v56  ;;  %v3310_v56 = vor.u32 %v4028_v36, %v3307_v37  ;;  %v3550_v31 = vor.u32 %v4088_v4, %v3547_v7  ;;  %v3539_v36 = vld [vmem:[%s4259_s16 + $0x558] sm:$0xf0]  ;;  %v4052_v4 = vld [vmem:[%s4259_s16 + $0x444] sm:$0xf] }
  0xc5   : > { %2411 = vmatpush.bf16.msrb.mxu3 %v3334_v35  ;;  %v3179_v35 = vld [vmem:[%s4259_s16 + $0x288] sm:$0xf0]  ;;  %2325 = vmatmul.bf16.gmra.mxu2 %v4405_v51 }
  0xc6   : > { %2355 = vmatpush.bf16.msrb.mxu0 %v3134_v49  ;;  %v3246_v49 = vor.u32 %v4012_v16, %v3243_v26  ;;  %v2022_v50 = vpop.f32.mrf.mxu2  ;;  %v3182_v51 = vor.u32 %v3996_v34, %v3179_v35  ;;  %v3419_v12 = vld [vmem:[%s4259_s16 + $0x468] sm:$0xf0]  ;;  %v4104_v26 = vld [vmem:[%s4259_s16 + $0x5e4] sm:$0xf]  ;;  %v4086_v35 = vld [vmem:[%s4259_s16 + $0x554] sm:$0xf] }
  0xc7   : > { %2374 = vmatpush.bf16.msrb.mxu1 %v3198_v61  ;;  %v2023_v61 = vadd.f32 %v2022_v50, %v2004_v20  ;;  %v3483_v20 = vld [vmem:[%s4259_s16 + $0x4e8] sm:$0xf0] }
  0xc8   : > { %2393 = vmatpush.bf16.msrb.mxu2 %v3262_v47  ;;  %v4074_v47 = vld [vmem:[%s4259_s16 + $0x4f4] sm:$0xf]  ;;  %v2005_v10 = vpop.f32.mrf.mxu1  ;;  %v3611_v30 = vld [vmem:[%s4259_s16 + $0x5e8] sm:$0xf0] }
  0xc9   : > { %2412 = vmatpush.bf16.msrb.mxu3 %v3326_v2  ;;  %v2041_v2 = vpop.f32.mrf.mxu3  ;;  %v1986_v48 = vpop.f32.mrf.mxu0  ;;  %v3494_v11 = vor.u32 %v4074_v47, %v3491_v44  ;;  %v3614_v34 = vor.u32 %v4104_v26, %v3611_v30  ;;  %v3603_v44 = vld [vmem:[%s4259_s16 + $0x5d8] sm:$0xf0]  ;;  %v3403_v7 = vld [vmem:[%s4259_s16 + $0x448] sm:$0xf0]  ;;  %v4050_v26 = vld [vmem:[%s4259_s16 + $0x434] sm:$0xf] }
  0xca   : > { %2356 = vmatpush.bf16.msrb.mxu0 %v3126_v21  ;;  %v4836_v16 = vadd.f32 %v2041_v2, %v2023_v61  ;;  %v2006_v21 = vadd.f32 %v2005_v10, %v1986_v48  ;;  %v3414_v61 = vor.u32 %v4054_v38, %v3411_v41  ;;  %v4084_v2 = vld [vmem:[%s4259_s16 + $0x544] sm:$0xf]  ;;  %v3531_v48 = vld [vmem:[%s4259_s16 + $0x548] sm:$0xf0]  ;;  %v3395_v30 = vld [vmem:[%s4259_s16 + $0x438] sm:$0xf0] }
  0xcb   : > { %2375 = vmatpush.bf16.msrb.mxu1 %v3190_v32  ;;  %v3422_v32 = vor.u32 %v4056_v57, %v3419_v12  ;;  %v4068_v10 = vld [vmem:[%s4259_s16 + $0x4c4] sm:$0xf]  ;;  %v3595_v57 = vld [vmem:[%s4259_s16 + $0x5c8] sm:$0xf0]  ;;  %v3534_v12 = vor.u32 %v4084_v2, %v3531_v48 }
  0xcc   : > { %2394 = vmatpush.bf16.msrb.mxu2 %v3254_v15  ;;  %v4072_v15 = vld [vmem:[%s4259_s16 + $0x4e4] sm:$0xf]  ;;  %v3579_v2 = vld [vmem:[%s4259_s16 + $0x5a8] sm:$0xf0] }
  0xcd   : > { %2413 = vmatpush.bf16.msrb.mxu3 %v3318_v33  ;;  %v3486_v33 = vor.u32 %v4072_v15, %v3483_v20  ;;  %v3406_v15 = vor.u32 %v4052_v4, %v3403_v7  ;;  %v3507_v4 = vld [vmem:[%s4259_s16 + $0x518] sm:$0xf0] }
  0xce   : > { %2357 = vmatpush.bf16.msrb.mxu0 %v3118_v52  ;;  %v2024_v37 = vpop.f32.mrf.mxu2  ;;  %v4102_v52 = vld [vmem:[%s4259_s16 + $0x5d4] sm:$0xf] }
  0xcf   : > { %2376 = vmatpush.bf16.msrb.mxu1 %v3182_v51  ;;  %v2025_v43 = vadd.f32 %v2024_v37, %v2006_v21  ;;  %v3523_v21 = vld [vmem:[%s4259_s16 + $0x538] sm:$0xf0] }
  0xd0   : > { %2395 = vmatpush.bf16.msrb.mxu2 %v3246_v49  ;;  %v3475_v49 = vld [vmem:[%s4259_s16 + $0x4d8] sm:$0xf0]  ;;  %v2074_v60 = vpop.f32.mrf.mxu1 }
  0xd1   : > { %2414 = vmatpush.bf16.msrb.mxu3 %v3310_v56  ;;  %v2043_v47 = vpop.f32.mrf.mxu3  ;;  %v2055_v59 = vpop.f32.mrf.mxu0  ;;  %v3542_v56 = vor.u32 %v4086_v35, %v3539_v36 }
  0xd2   : > { %2426 = vmatpush.bf16.msra.mxu0 %v3430_v53  ;;  %v4849_v50 = vadd.f32 %v2043_v47, %v2025_v43  ;;  %v2056_v51 = vadd.f32 %v2055_v59, %v4791_v27  ;;  %v3606_v53 = vor.u32 %v4102_v52, %v3603_v44  ;;  %2377 = vmatmul.bf16.vlgmr.msrb.gmra.mxu1 %v4460_v1  ;;  %v4100_v27 = vld [vmem:[%s4259_s16 + $0x5c4] sm:$0xf]  ;;  %v3515_v47 = vld [vmem:[%s4259_s16 + $0x528] sm:$0xf0] }
  0xd3   : > { %2445 = vmatpush.bf16.msra.mxu1 %v3494_v11  ;;  %2358 = vmatmul.bf16.vlgmr.msrb.gmra.mxu0 %v4458_v0  ;;  %v4082_v0 = vld [vmem:[%s4259_s16 + $0x534] sm:$0xf]  ;;  %v3598_v20 = vor.u32 %v4100_v27, %v3595_v57  ;;  %v4080_v43 = vld [vmem:[%s4259_s16 + $0x524] sm:$0xf] }
  0xd4   : > { %2464 = vmatpush.bf16.msra.mxu2 %v3558_v3  ;;  %v3478_v3 = vor.u32 %v4070_v42, %v3475_v49  ;;  %v2075_v11 = vadd.f32 %v2074_v60, %v2056_v51  ;;  %2415 = vmatmul.bf16.vlgmr.msrb.gmra.mxu3 %v4467_v6  ;;  %v3526_v41 = vor.u32 %v4082_v0, %v3523_v21  ;;  %v4048_v59 = vld [vmem:[%s4259_s16 + $0x424] sm:$0xf]  ;;  %v3387_v60 = vld [vmem:[%s4259_s16 + $0x428] sm:$0xf0]  ;;  %v4062_v27 = vld [vmem:[%s4259_s16 + $0x494] sm:$0xf] }
  0xd5   : > { %2483 = vmatpush.bf16.msra.mxu3 %v3622_v54  ;;  %v3467_v54 = vld [vmem:[%s4259_s16 + $0x4c8] sm:$0xf0]  ;;  %2396 = vmatmul.bf16.vlgmr.msrb.gmra.mxu2 %v4465_v5  ;;  %v4066_v5 = vld [vmem:[%s4259_s16 + $0x4b4] sm:$0xf]  ;;  %v3398_v42 = vor.u32 %v4050_v26, %v3395_v30  ;;  %v3518_v48 = vor.u32 %v4080_v43, %v3515_v47  ;;  %v3571_v21 = vld [vmem:[%s4259_s16 + $0x598] sm:$0xf0] }
  0xd6   : > { %2427 = vmatpush.bf16.msra.mxu0 %v3422_v32  ;;  %v3470_v1 = vor.u32 %v4068_v10, %v3467_v54  ;;  %v3459_v32 = vld [vmem:[%s4259_s16 + $0x4b8] sm:$0xf0]  ;;  %v4094_v0 = vld [vmem:[%s4259_s16 + $0x594] sm:$0xf]  ;;  %v4076_v30 = vld [vmem:[%s4259_s16 + $0x504] sm:$0xf] }
  0xd7   : > { %2446 = vmatpush.bf16.msra.mxu1 %v3486_v33  ;;  %v4098_v33 = vld [vmem:[%s4259_s16 + $0x5b4] sm:$0xf]  ;;  %v3462_v52 = vor.u32 %v4066_v5, %v3459_v32  ;;  %v3379_v54 = vld [vmem:[%s4259_s16 + $0x418] sm:$0xf0]  ;;  %v3499_v32 = vld [vmem:[%s4259_s16 + $0x508] sm:$0xf0] }
  0xd8   : > { %2465 = vmatpush.bf16.msra.mxu2 %v3550_v31  ;;  %v2093_v31 = vpop.f32.mrf.mxu2  ;;  %v2076_v37 = vpop.f32.mrf.mxu1  ;;  %v3563_v43 = vld [vmem:[%s4259_s16 + $0x588] sm:$0xf0]  ;;  %v4154_v47 = vld [vmem:[%s4259_s16 + $0x774] sm:$0xf] }
  0xd9   : > { %2484 = vmatpush.bf16.msra.mxu3 %v3614_v34  ;;  %v2112_v6 = vpop.f32.mrf.mxu3  ;;  %v3587_v34 = vld [vmem:[%s4259_s16 + $0x5b8] sm:$0xf0]  ;;  %v2094_v35 = vadd.f32 %v2093_v31, %v2075_v11  ;;  %v2057_v36 = vpop.f32.mrf.mxu0  ;;  %v4046_v11 = vld [vmem:[%s4259_s16 + $0x414] sm:$0xf] }
  0xda   : > { %2428 = vmatpush.bf16.msra.mxu0 %v3414_v61  ;;  %v2058_v38 = vadd.f32 %v2057_v36, %v4810_v19  ;;  %v3590_v44 = vor.u32 %v4098_v33, %v3587_v34  ;;  %v4064_v19 = vld [vmem:[%s4259_s16 + $0x4a4] sm:$0xf]  ;;  %v3371_v34 = vld [vmem:[%s4259_s16 + $0x408] sm:$0xf0] }
  0xdb   : > { %2447 = vmatpush.bf16.msra.mxu1 %v3478_v3  ;;  %v4875_v49 = vadd.f32 %v2112_v6, %v2094_v35  ;;  %v4096_v61 = vld [vmem:[%s4259_s16 + $0x5a4] sm:$0xf]  ;;  %v3390_v3 = vor.u32 %v4048_v59, %v3387_v60  ;;  %v3382_v6 = vor.u32 %v4046_v11, %v3379_v54  ;;  %v3683_v59 = vld [vmem:[%s4259_s16 + $0x678] sm:$0xf0]  ;;  %v4138_v60 = vld [vmem:[%s4259_s16 + $0x6f4] sm:$0xf] }
  0xdc   : > { %2466 = vmatpush.bf16.msra.mxu2 %v3542_v56  ;;  %v2077_v51 = vadd.f32 %v2076_v37, %v2058_v38  ;;  %v3451_v56 = vld [vmem:[%s4259_s16 + $0x4a8] sm:$0xf0]  ;;  %v3582_v10 = vor.u32 %v4096_v61, %v3579_v2  ;;  %v4044_v33 = vld [vmem:[%s4259_s16 + $0x404] sm:$0xf]  ;;  %v3574_v37 = vor.u32 %v4094_v0, %v3571_v21  ;;  %v3875_v61 = vld [vmem:[%s4259_s16 + $0x7f8] sm:$0xf0] }
  0xdd   : > { %2485 = vmatpush.bf16.msra.mxu3 %v3606_v53  ;;  %v4078_v53 = vld [vmem:[%s4259_s16 + $0x514] sm:$0xf]  ;;  %v3454_v7 = vor.u32 %v4064_v19, %v3451_v56  ;;  %v3435_v38 = vld [vmem:[%s4259_s16 + $0x488] sm:$0xf0]  ;;  %v3502_v19 = vor.u32 %v4076_v30, %v3499_v32 }
  0xde   : > { %2429 = vmatpush.bf16.msra.mxu0 %v3406_v15  ;;  %v3443_v15 = vld [vmem:[%s4259_s16 + $0x498] sm:$0xf0]  ;;  %v3510_v31 = vor.u32 %v4078_v53, %v3507_v4  ;;  %v4170_v56 = vld [vmem:[%s4259_s16 + $0x7f4] sm:$0xf]  ;;  %v4152_v53 = vld [vmem:[%s4259_s16 + $0x764] sm:$0xf] }
  0xdf   : > { %2448 = vmatpush.bf16.msra.mxu1 %v3470_v1  ;;  %v3446_v36 = vor.u32 %v4062_v27, %v3443_v15  ;;  %v3803_v4 = vld [vmem:[%s4259_s16 + $0x768] sm:$0xf0]  ;;  %v3878_v27 = vor.u32 %v4170_v56, %v3875_v61  ;;  %v4136_v15 = vld [vmem:[%s4259_s16 + $0x6e4] sm:$0xf]  ;;  %v4150_v32 = vld [vmem:[%s4259_s16 + $0x754] sm:$0xf] }
  0xe0   : > { %2467 = vmatpush.bf16.msra.mxu2 %v3534_v12  ;;  %v2095_v57 = vpop.f32.mrf.mxu2  ;;  %v2079_v26 = vpop.f32.mrf.mxu1  ;;  %v3739_v21 = vld [vmem:[%s4259_s16 + $0x6e8] sm:$0xf0] }
  0xe1   : > { %2486 = vmatpush.bf16.msra.mxu3 %v3598_v20  ;;  %v2114_v12 = vpop.f32.mrf.mxu3  ;;  %v2096_v1 = vadd.f32 %v2095_v57, %v2077_v51  ;;  %v2060_v20 = vpop.f32.mrf.mxu0  ;;  %v3374_v51 = vor.u32 %v4044_v33, %v3371_v34  ;;  %v4120_v57 = vld [vmem:[%s4259_s16 + $0x664] sm:$0xf]  ;;  %v3795_v33 = vld [vmem:[%s4259_s16 + $0x758] sm:$0xf0]  ;;  %v4118_v34 = vld [vmem:[%s4259_s16 + $0x654] sm:$0xf] }
  0xe2   : > { %2430 = vmatpush.bf16.msra.mxu0 %v3398_v42  ;;  %v2061_v5 = vadd.f32 %v2060_v20, %v4836_v16  ;;  %v4060_v16 = vld [vmem:[%s4259_s16 + $0x484] sm:$0xf]  ;;  %2382 = vmatmul.bf16.gmra.mxu1 %v4512_v9  ;;  %v3867_v20 = vld [vmem:[%s4259_s16 + $0x7e8] sm:$0xf0] }
  0xe3   : > { %2449 = vmatpush.bf16.msra.mxu1 %v3462_v52  ;;  %v4896_v35 = vadd.f32 %v2114_v12, %v2096_v1  ;;  %2363 = vmatmul.bf16.gmra.mxu0 %v4510_v8  ;;  %v3811_v52 = vld [vmem:[%s4259_s16 + $0x778] sm:$0xf0]  ;;  %v3438_v9 = vor.u32 %v4060_v16, %v3435_v38  ;;  %v3675_v12 = vld [vmem:[%s4259_s16 + $0x668] sm:$0xf0]  ;;  %v4168_v1 = vld [vmem:[%s4259_s16 + $0x7e4] sm:$0xf] }
  0xe4   : > { %2468 = vmatpush.bf16.msra.mxu2 %v3526_v41  ;;  %v4092_v41 = vld [vmem:[%s4259_s16 + $0x584] sm:$0xf]  ;;  %v2080_v42 = vadd.f32 %v2079_v26, %v2061_v5  ;;  %2420 = vmatmul.bf16.gmra.mxu3 %v4519_v14  ;;  %v3747_v8 = vld [vmem:[%s4259_s16 + $0x6f8] sm:$0xf0]  ;;  %v3806_v5 = vor.u32 %v4152_v53, %v3803_v4  ;;  %v3851_v53 = vld [vmem:[%s4259_s16 + $0x7c8] sm:$0xf0] }
  0xe5   : > { %2487 = vmatpush.bf16.msra.mxu3 %v3590_v44  ;;  %2401 = vmatmul.bf16.gmra.mxu2 %v4517_v13  ;;  %v4122_v44 = vld [vmem:[%s4259_s16 + $0x674] sm:$0xf]  ;;  %v3566_v13 = vor.u32 %v4092_v41, %v3563_v43  ;;  %v3750_v54 = vor.u32 %v4138_v60, %v3747_v8  ;;  %v3731_v41 = vld [vmem:[%s4259_s16 + $0x6d8] sm:$0xf0]  ;;  %v3798_v60 = vor.u32 %v4150_v32, %v3795_v33  ;;  %v3787_v8 = vld [vmem:[%s4259_s16 + $0x748] sm:$0xf0] }
  0xe6   : > { %2431 = vmatpush.bf16.msra.mxu0 %v3390_v3  ;;  %v3686_v3 = vor.u32 %v4122_v44, %v3683_v59  ;;  %v3859_v43 = vld [vmem:[%s4259_s16 + $0x7d8] sm:$0xf0] }
  0xe7   : > { %2450 = vmatpush.bf16.msra.mxu1 %v3454_v7 }
  0xe8   : > { %2469 = vmatpush.bf16.msra.mxu2 %v3518_v48  ;;  %v2098_v14 = vpop.f32.mrf.mxu2  ;;  %v3814_v48 = vor.u32 %v4154_v47, %v3811_v52  ;;  %v2081_v11 = vpop.f32.mrf.mxu1 }
  0xe9   : > { %2488 = vmatpush.bf16.msra.mxu3 %v3582_v10  ;;  %v2117_v2 = vpop.f32.mrf.mxu3  ;;  %v2099_v7 = vadd.f32 %v2098_v14, %v2080_v42  ;;  %v2062_v10 = vpop.f32.mrf.mxu0  ;;  %v4166_v42 = vld [vmem:[%s4259_s16 + $0x7d4] sm:$0xf]  ;;  %v3659_v14 = vld [vmem:[%s4259_s16 + $0x648] sm:$0xf0] }
  0xea   : > { %2432 = vmatpush.bf16.msra.mxu0 %v3382_v6  ;;  %v2063_v0 = vadd.f32 %v2062_v10, %v4849_v50  ;;  %v3678_v50 = vor.u32 %v4120_v57, %v3675_v12  ;;  %v3870_v6 = vor.u32 %v4168_v1, %v3867_v20  ;;  %v3779_v10 = vld [vmem:[%s4259_s16 + $0x738] sm:$0xf0] }
  0xeb   : > { %2451 = vmatpush.bf16.msra.mxu1 %v3446_v36  ;;  %v4923_v26 = vadd.f32 %v2117_v2, %v2099_v7  ;;  %v3667_v36 = vld [vmem:[%s4259_s16 + $0x658] sm:$0xf0]  ;;  %v4132_v2 = vld [vmem:[%s4259_s16 + $0x6c4] sm:$0xf] }
  0xec   : > { %2470 = vmatpush.bf16.msra.mxu2 %v3510_v31  ;;  %v2082_v30 = vadd.f32 %v2081_v11, %v2063_v0  ;;  %v3742_v31 = vor.u32 %v4136_v15, %v3739_v21  ;;  %v3715_v12 = vld [vmem:[%s4259_s16 + $0x6b8] sm:$0xf0]  ;;  %v4162_v15 = vld [vmem:[%s4259_s16 + $0x7b4] sm:$0xf] }
  0xed   : > { %2489 = vmatpush.bf16.msra.mxu3 %v3574_v37  ;;  %v4134_v37 = vld [vmem:[%s4259_s16 + $0x6d4] sm:$0xf]  ;;  %v3843_v0 = vld [vmem:[%s4259_s16 + $0x7b8] sm:$0xf0] }
  0xee   : > { %2433 = vmatpush.bf16.msra.mxu0 %v3374_v51  ;;  %v4148_v51 = vld [vmem:[%s4259_s16 + $0x744] sm:$0xf]  ;;  %v3734_v61 = vor.u32 %v4134_v37, %v3731_v41  ;;  %v3643_v37 = vld [vmem:[%s4259_s16 + $0x628] sm:$0xf0] }
  0xef   : > { %2452 = vmatpush.bf16.msra.mxu1 %v3438_v9  ;;  %v3862_v9 = vor.u32 %v4166_v42, %v3859_v43  ;;  %v3790_v4 = vor.u32 %v4148_v51, %v3787_v8  ;;  %v4160_v41 = vld [vmem:[%s4259_s16 + $0x7a4] sm:$0xf]  ;;  %v3835_v42 = vld [vmem:[%s4259_s16 + $0x7a8] sm:$0xf0]  ;;  %v3635_v51 = vld [vmem:[%s4259_s16 + $0x618] sm:$0xf0] }
  0xf0   : > { %2471 = vmatpush.bf16.msra.mxu2 %v3502_v19  ;;  %v2100_v16 = vpop.f32.mrf.mxu2  ;;  %v2150_v44 = vpop.f32.mrf.mxu1  ;;  %v3670_v19 = vor.u32 %v4118_v34, %v3667_v36  ;;  %v3846_v34 = vor.u32 %v4162_v15, %v3843_v0  ;;  %v4112_v36 = vld [vmem:[%s4259_s16 + $0x624] sm:$0xf]  ;;  %v4126_v8 = vld [vmem:[%s4259_s16 + $0x694] sm:$0xf]  ;;  %v3819_v15 = vld [vmem:[%s4259_s16 + $0x788] sm:$0xf0] }
  0xf1   : > { %2490 = vmatpush.bf16.msra.mxu3 %v3566_v13  ;;  %v2119_v38 = vpop.f32.mrf.mxu3  ;;  %v2101_v47 = vadd.f32 %v2100_v16, %v2082_v30  ;;  %v2131_v52 = vpop.f32.mrf.mxu0  ;;  %v4116_v13 = vld [vmem:[%s4259_s16 + $0x644] sm:$0xf] }
  0xf2   : > { %2502 = vmatpush.bf16.msrb.mxu0 %v3686_v3  ;;  %v2132_v59 = vadd.f32 %v2131_v52, %v4875_v49  ;;  %2453 = vmatmul.bf16.vlgmr.msra.gmra.mxu1 %v4566_v24  ;;  %v3723_v49 = vld [vmem:[%s4259_s16 + $0x6c8] sm:$0xf0]  ;;  %v4164_v3 = vld [vmem:[%s4259_s16 + $0x7c4] sm:$0xf]  ;;  %v3662_v7 = vor.u32 %v4116_v13, %v3659_v14  ;;  %v4142_v52 = vld [vmem:[%s4259_s16 + $0x714] sm:$0xf] }
  0xf3   : > { %2521 = vmatpush.bf16.msrb.mxu1 %v3750_v54  ;;  %v4936_v56 = vadd.f32 %v2119_v38, %v2101_v47  ;;  %2434 = vmatmul.bf16.vlgmr.msra.gmra.mxu0 %v4564_v23  ;;  %v4146_v23 = vld [vmem:[%s4259_s16 + $0x734] sm:$0xf]  ;;  %v3726_v24 = vor.u32 %v4132_v2, %v3723_v49  ;;  %v3854_v11 = vor.u32 %v4164_v3, %v3851_v53  ;;  %v3707_v38 = vld [vmem:[%s4259_s16 + $0x6a8] sm:$0xf0]  ;;  %v3699_v13 = vld [vmem:[%s4259_s16 + $0x698] sm:$0xf0] }
  0xf4   : > { %2540 = vmatpush.bf16.msrb.mxu2 %v3814_v48  ;;  %v2151_v48 = vadd.f32 %v2150_v44, %v2132_v59  ;;  %2491 = vmatmul.bf16.vlgmr.msra.gmra.mxu3 %v4573_v29  ;;  %v4114_v54 = vld [vmem:[%s4259_s16 + $0x634] sm:$0xf]  ;;  %v3646_v47 = vor.u32 %v4112_v36, %v3643_v37  ;;  %v3763_v44 = vld [vmem:[%s4259_s16 + $0x718] sm:$0xf0] }
  0xf5   : > { %2559 = vmatpush.bf16.msrb.mxu3 %v3878_v27  ;;  %2472 = vmatmul.bf16.vlgmr.msra.gmra.mxu2 %v4571_v28  ;;  %v3651_v27 = vld [vmem:[%s4259_s16 + $0x638] sm:$0xf0]  ;;  %v4130_v28 = vld [vmem:[%s4259_s16 + $0x6b4] sm:$0xf] }
  0xf6   : > { %2503 = vmatpush.bf16.msrb.mxu0 %v3678_v50  ;;  %v3654_v50 = vor.u32 %v4114_v54, %v3651_v27  ;;  %v3718_v33 = vor.u32 %v4130_v28, %v3715_v12  ;;  %v4158_v14 = vld [vmem:[%s4259_s16 + $0x794] sm:$0xf]  ;;  %v3827_v2 = vld [vmem:[%s4259_s16 + $0x798] sm:$0xf0]  ;;  %v4108_v27 = vld [vmem:[%s4259_s16 + $0x604] sm:$0xf] }
  0xf7   : > { %2522 = vmatpush.bf16.msrb.mxu1 %v3742_v31  ;;  %v4144_v31 = vld [vmem:[%s4259_s16 + $0x724] sm:$0xf]  ;;  %v3830_v54 = vor.u32 %v4158_v14, %v3827_v2  ;;  %v3627_v28 = vld [vmem:[%s4259_s16 + $0x608] sm:$0xf0] }
  0xf8   : > { %2541 = vmatpush.bf16.msrb.mxu2 %v3806_v5  ;;  %v2169_v57 = vpop.f32.mrf.mxu2  ;;  %v2152_v20 = vpop.f32.mrf.mxu1  ;;  %v3782_v5 = vor.u32 %v4146_v23, %v3779_v10  ;;  %v4140_v23 = vld [vmem:[%s4259_s16 + $0x704] sm:$0xf]  ;;  %v3755_v10 = vld [vmem:[%s4259_s16 + $0x708] sm:$0xf0] }
  0xf9   : > { %2560 = vmatpush.bf16.msrb.mxu3 %v3870_v6  ;;  %v2188_v29 = vpop.f32.mrf.mxu3  ;;  %v2170_v21 = vadd.f32 %v2169_v57, %v2151_v48  ;;  %v2133_v1 = vpop.f32.mrf.mxu0  ;;  %v3771_v6 = vld [vmem:[%s4259_s16 + $0x728] sm:$0xf0]  ;;  %v4124_v57 = vld [vmem:[%s4259_s16 + $0x684] sm:$0xf]  ;;  %v3758_v0 = vor.u32 %v4140_v23, %v3755_v10 }
  0xfa   : > { %2504 = vmatpush.bf16.msrb.mxu0 %v3670_v19  ;;  %v2134_v30 = vadd.f32 %v2133_v1, %v4896_v35  ;;  %v4128_v35 = vld [vmem:[%s4259_s16 + $0x6a4] sm:$0xf]  ;;  %v3774_v43 = vor.u32 %v4144_v31, %v3771_v6  ;;  %v4110_v19 = vld [vmem:[%s4259_s16 + $0x614] sm:$0xf] }
  0xfb   : > { %2523 = vmatpush.bf16.msrb.mxu1 %v3734_v61  ;;  %v4959_v32 = vadd.f32 %v2188_v29, %v2170_v21  ;;  %v3710_v59 = vor.u32 %v4128_v35, %v3707_v38  ;;  %v4156_v12 = vld [vmem:[%s4259_s16 + $0x784] sm:$0xf]  ;;  %v3630_v21 = vor.u32 %v4108_v27, %v3627_v28 }
  0xfc   : > { %2542 = vmatpush.bf16.msrb.mxu2 %v3798_v60  ;;  %v2153_v16 = vadd.f32 %v2152_v20, %v2134_v30  ;;  %v3838_v60 = vor.u32 %v4160_v41, %v3835_v42  ;;  %v3822_v20 = vor.u32 %v4156_v12, %v3819_v15 }
  0xfd   : > { %2561 = vmatpush.bf16.msrb.mxu3 %v3862_v9 }
  0xfe   : > { %2505 = vmatpush.bf16.msrb.mxu0 %v3662_v7  ;;  %v3638_v7 = vor.u32 %v4110_v19, %v3635_v51 }
  0xff   : > { %2524 = vmatpush.bf16.msrb.mxu1 %v3726_v24 }
 0x100   : > { %2543 = vmatpush.bf16.msrb.mxu2 %v3790_v4  ;;  %v2171_v61 = vpop.f32.mrf.mxu2  ;;  %v2155_v3 = vpop.f32.mrf.mxu1  ;;  %v3766_v4 = vor.u32 %v4142_v52, %v3763_v44 }
 0x101   : > { %2562 = vmatpush.bf16.msrb.mxu3 %v3854_v11  ;;  %v2190_v9 = vpop.f32.mrf.mxu3  ;;  %v2172_v48 = vadd.f32 %v2171_v61, %v2153_v16  ;;  %v2136_v49 = vpop.f32.mrf.mxu0  ;;  %v3702_v11 = vor.u32 %v4126_v8, %v3699_v13 }
 0x102   : > { %2506 = vmatpush.bf16.msrb.mxu0 %v3654_v50  ;;  %v2137_v53 = vadd.f32 %v2136_v49, %v4923_v26  ;;  %2458 = vmatmul.bf16.gmra.mxu1 %v4618_v40  ;;  %v3691_v26 = vld [vmem:[%s4259_s16 + $0x688] sm:$0xf0] }
 0x103   : > { %2525 = vmatpush.bf16.msrb.mxu1 %v3718_v33  ;;  %v2191_v24 = vadd.f32 %v2190_v9, %v2172_v48  ;;  %2439 = vmatmul.bf16.gmra.mxu0 %v4616_v39  ;;  %v3694_v1 = vor.u32 %v4124_v57, %v3691_v26 }
 0x104   : > { %2544 = vmatpush.bf16.msrb.mxu2 %v3782_v5  ;;  %v2156_v29 = vadd.f32 %v2155_v3, %v2137_v53  ;;  %2496 = vmatmul.bf16.gmra.mxu3 %v4625_v46 }
 0x105   : > { %2563 = vmatpush.bf16.msrb.mxu3 %v3846_v34  ;;  %2477 = vmatmul.bf16.gmra.mxu2 %v4623_v45 }
 0x106   : > { %2507 = vmatpush.bf16.msrb.mxu0 %v3646_v47 }
 0x107   : > { %2526 = vmatpush.bf16.msrb.mxu1 %v3710_v59 }
 0x108   : > { %2545 = vmatpush.bf16.msrb.mxu2 %v3774_v43  ;;  %v2174_v30 = vpop.f32.mrf.mxu2  ;;  %v2157_v40 = vpop.f32.mrf.mxu1 }
 0x109   : > { %2564 = vmatpush.bf16.msrb.mxu3 %v3838_v60  ;;  %v2193_v5 = vpop.f32.mrf.mxu3  ;;  %v2175_v39 = vadd.f32 %v2174_v30, %v2156_v29  ;;  %v2138_v50 = vpop.f32.mrf.mxu0 }
 0x10a   : > { %2508 = vmatpush.bf16.msrb.mxu0 %v3638_v7  ;;  %v2139_v31 = vadd.f32 %v2138_v50, %v4936_v56 }
 0x10b   : > { %2527 = vmatpush.bf16.msrb.mxu1 %v3702_v11  ;;  %v2194_v45 = vadd.f32 %v2193_v5, %v2175_v39 }
 0x10c   : > { %2546 = vmatpush.bf16.msrb.mxu2 %v3766_v4  ;;  %v2158_v46 = vadd.f32 %v2157_v40, %v2139_v31 }
 0x10d   : > { %2565 = vmatpush.bf16.msrb.mxu3 %v3830_v54 }
 0x10e   : > { %2509 = vmatpush.bf16.msrb.mxu0 %v3630_v21 }
 0x10f   : > { %2528 = vmatpush.bf16.msrb.mxu1 %v3694_v1 }
 0x110   : > { %2547 = vmatpush.bf16.msrb.mxu2 %v3758_v0  ;;  %v2176_v6 = vpop.f32.mrf.mxu2  ;;  %v2226_v37 = vpop.f32.mrf.mxu1 }
 0x111   : > { %2566 = vmatpush.bf16.msrb.mxu3 %v3822_v20  ;;  %v2195_v33 = vpop.f32.mrf.mxu3  ;;  %v2177_v34 = vadd.f32 %v2176_v6, %v2158_v46  ;;  %v2207_v36 = vpop.f32.mrf.mxu0 }
 0x112   : > { %v2208_v35 = vadd.f32 %v2207_v36, %v4959_v32  ;;  %2529 = vmatmul.bf16.vlgmr.msrb.gmra.mxu1 %v4674_v18 }
 0x113   : > { %v2196_v16 = vadd.f32 %v2195_v33, %v2177_v34  ;;  %2510 = vmatmul.bf16.vlgmr.msrb.gmra.mxu0 %v4672_v17 }
 0x114   : > { %v2227_v38 = vadd.f32 %v2226_v37, %v2208_v35  ;;  %2567 = vmatmul.bf16.vlgmr.msrb.gmra.mxu3 %v4681_v25 }
 0x115   : > { %2548 = vmatmul.bf16.vlgmr.msrb.gmra.mxu2 %v4679_v22 }
 0x118   : > { %v2245_v56 = vpop.f32.mrf.mxu2  ;;  %v2228_v47 = vpop.f32.mrf.mxu1 }
 0x119   : > { %v2264_v41 = vpop.f32.mrf.mxu3  ;;  %v2246_v42 = vadd.f32 %v2245_v56, %v2227_v38  ;;  %v2209_v43 = vpop.f32.mrf.mxu0 }
 0x11a   : > { %v2210_v52 = vadd.f32 %v2209_v43, %v2191_v24 }
 0x11b   : > { %v4994_v44 = vadd.f32 %v2264_v41, %v2246_v42 }
 0x11c   : > { %v2229_v59 = vadd.f32 %v2228_v47, %v2210_v52 }
 0x120   : > { %v2247_v32 = vpop.f32.mrf.mxu2  ;;  %v2231_v17 = vpop.f32.mrf.mxu1 }
 0x121   : > { %v2266_v60 = vpop.f32.mrf.mxu3  ;;  %v2248_v19 = vadd.f32 %v2247_v32, %v2229_v59  ;;  %v2212_v51 = vpop.f32.mrf.mxu0 }
 0x122   : > { %v2213_v8 = vadd.f32 %v2212_v51, %v2194_v45  ;;  %2534 = vmatmul.bf16.gmra.mxu1 %v4726_v58 }
 0x123   : > { %v4996_v18 = vadd.f32 %v2266_v60, %v2248_v19  ;;  %2515 = vmatmul.bf16.gmra.mxu0 %v4724_v55 }
 0x124   : > { %v2232_v22 = vadd.f32 %v2231_v17, %v2213_v8  ;;  %2572 = vmatmul.bf16.gmra.mxu3 %v4733_v63 }
 0x125   : > { %2553 = vmatmul.bf16.gmra.mxu2 %v4731_v62 }
 0x128   : > { %v2250_v25 = vpop.f32.mrf.mxu2  ;;  %v2233_v14 = vpop.f32.mrf.mxu1 }
 0x129   : > { %v2269_v61 = vpop.f32.mrf.mxu3  ;;  %v2251_v9 = vadd.f32 %v2250_v25, %v2232_v22  ;;  %v2214_v13 = vpop.f32.mrf.mxu0 }
 0x12a   : > { %v2215_v2 = vadd.f32 %v2214_v13, %v2196_v16 }
 0x12b   : > { %v5002_v48 = vadd.f32 %v2269_v61, %v2251_v9 }
 0x12c   : > { %v2234_v49 = vadd.f32 %v2233_v14, %v2215_v2 }
 0x130   : > { %v2252_v3 = vpop.f32.mrf.mxu2  ;;  %v2302_v55 = vpop.f32.mrf.mxu1 }
 0x131   : > { %v2271_v53 = vpop.f32.mrf.mxu3  ;;  %v2253_v4 = vadd.f32 %v2252_v3, %v2234_v49  ;;  %v2283_v7 = vpop.f32.mrf.mxu0 }
 0x132   : > { %v2303_v23 = vadd.f32 %v2302_v55, %v2283_v7 }
 0x133   : > { %v5004_v58 = vadd.f32 %v2271_v53, %v2253_v4 }
 0x138   : > { %v2321_v62 = vpop.f32.mrf.mxu2  ;;  %v2304_v11 = vpop.f32.mrf.mxu1 }
 0x139   : > { %v2340_v10 = vpop.f32.mrf.mxu3  ;;  %v2322_v63 = vadd.f32 %v2321_v62, %v2303_v23  ;;  %v2285_v24 = vpop.f32.mrf.mxu0 }
 0x13a   : > { %v2305_v54 = vadd.f32 %v2304_v11, %v2285_v24 }
 0x13b   : > { %v2341_v27 = vadd.f32 %v2340_v10, %v2322_v63 }
 0x140   : > { %v2323_v28 = vpop.f32.mrf.mxu2  ;;  %v2307_v12 = vpop.f32.mrf.mxu1 }
 0x141   : > { %v2342_v57 = vpop.f32.mrf.mxu3  ;;  %v2324_v29 = vadd.f32 %v2323_v28, %v2305_v54  ;;  %v2288_v26 = vpop.f32.mrf.mxu0 }
 0x142   : > { %v2308_v15 = vadd.f32 %v2307_v12, %v2288_v26 }
 0x143   : > { %v2343_v0 = vadd.f32 %v2342_v57, %v2324_v29 }
 0x148   : > { %v2326_v21 = vpop.f32.mrf.mxu2  ;;  %v2309_v5 = vpop.f32.mrf.mxu1 }
 0x149   : > { %v2345_v1 = vpop.f32.mrf.mxu3  ;;  %v2327_v20 = vadd.f32 %v2326_v21, %v2308_v15  ;;  %v2290_v30 = vpop.f32.mrf.mxu0 }
 0x14a   : > { %v2310_v39 = vadd.f32 %v2309_v5, %v2290_v30 }
 0x14b   : > { %v2346_v50 = vadd.f32 %v2345_v1, %v2327_v20 }
 0x150   : > { %v2328_v40 = vpop.f32.mrf.mxu2  ;;  %v2378_v6 = vpop.f32.mrf.mxu1 }
 0x151   : > { %v2347_v31 = vpop.f32.mrf.mxu3  ;;  %v2329_v45 = vadd.f32 %v2328_v40, %v2310_v39  ;;  %v2359_v46 = vpop.f32.mrf.mxu0 }
 0x152   : > { %v2360_v25 = vadd.f32 %v2359_v46, %v2341_v27 }
 0x153   : > { %v2348_v33 = vadd.f32 %v2347_v31, %v2329_v45 }
 0x154   : > { %v2379_v61 = vadd.f32 %v2378_v6, %v2360_v25 }
 0x158   : > { %v2397_v34 = vpop.f32.mrf.mxu2  ;;  %v2380_v35 = vpop.f32.mrf.mxu1 }
 0x159   : > { %v2416_v36 = vpop.f32.mrf.mxu3  ;;  %v2361_v37 = vpop.f32.mrf.mxu0  ;;  %v2398_v14 = vadd.f32 %v2397_v34, %v2379_v61 }
 0x15a   : > { %v2362_v3 = vadd.f32 %v2361_v37, %v2343_v0 }
 0x15b   : > { %v2417_v53 = vadd.f32 %v2416_v36, %v2398_v14 }
 0x15c   : > { %v2381_v4 = vadd.f32 %v2380_v35, %v2362_v3 }
 0x160   : > { %v2399_v16 = vpop.f32.mrf.mxu2  ;;  %v2383_v41 = vpop.f32.mrf.mxu1 }
 0x161   : > { %v2418_v38 = vpop.f32.mrf.mxu3  ;;  %v2364_v56 = vpop.f32.mrf.mxu0  ;;  %v2400_v62 = vadd.f32 %v2399_v16, %v2381_v4 }
 0x162   : > { %v2365_v24 = vadd.f32 %v2364_v56, %v2346_v50 }
 0x163   : > { %v2419_v54 = vadd.f32 %v2418_v38, %v2400_v62 }
 0x164   : > { %v2384_v27 = vadd.f32 %v2383_v41, %v2365_v24 }
 0x168   : > { %v2402_v42 = vpop.f32.mrf.mxu2  ;;  %v2385_v52 = vpop.f32.mrf.mxu1 }
 0x169   : > { %v2421_v43 = vpop.f32.mrf.mxu3  ;;  %v2366_v47 = vpop.f32.mrf.mxu0  ;;  %v2403_v12 = vadd.f32 %v2402_v42, %v2384_v27 }
 0x16a   : > { %v2367_v1 = vadd.f32 %v2366_v47, %v2348_v33 }
 0x16b   : > { %v2422_v5 = vadd.f32 %v2421_v43, %v2403_v12 }
 0x16c   : > { %v2386_v40 = vadd.f32 %v2385_v52, %v2367_v1 }
 0x170   : > { %v2404_v59 = vpop.f32.mrf.mxu2  ;;  %v2454_v19 = vpop.f32.mrf.mxu1 }
 0x171   : > { %v2423_v32 = vpop.f32.mrf.mxu3  ;;  %v2435_v60 = vpop.f32.mrf.mxu0  ;;  %v2405_v6 = vadd.f32 %v2404_v59, %v2386_v40 }
 0x172   : > { %v2436_v7 = vadd.f32 %v2435_v60, %v2417_v53 }
 0x173   : > { %v2424_v33 = vadd.f32 %v2423_v32, %v2405_v6 }
 0x174   : > { %v2455_v11 = vadd.f32 %v2454_v19, %v2436_v7 }
 0x178   : > { %v2473_v51 = vpop.f32.mrf.mxu2  ;;  %v2456_v22 = vpop.f32.mrf.mxu1 }
 0x179   : > { %v2492_v17 = vpop.f32.mrf.mxu3  ;;  %v2437_v8 = vpop.f32.mrf.mxu0  ;;  %v2474_v28 = vadd.f32 %v2473_v51, %v2455_v11 }
 0x17a   : > { %v2438_v57 = vadd.f32 %v2437_v8, %v2419_v54 }
 0x17b   : > { %v2493_v15 = vadd.f32 %v2492_v17, %v2474_v28 }
 0x17c   : > { %v2457_v20 = vadd.f32 %v2456_v22, %v2438_v57 }
 0x180   : > { %v2475_v9 = vpop.f32.mrf.mxu2  ;;  %v2459_v49 = vpop.f32.mrf.mxu1 }
 0x181   : > { %v2494_v13 = vpop.f32.mrf.mxu3  ;;  %v2440_v2 = vpop.f32.mrf.mxu0  ;;  %v2476_v39 = vadd.f32 %v2475_v9, %v2457_v20 }
 0x182   : > { %v2441_v31 = vadd.f32 %v2440_v2, %v2422_v5 }
 0x183   : > { %v2495_v34 = vadd.f32 %v2494_v13, %v2476_v39 }
 0x184   : > { %v2460_v16 = vadd.f32 %v2459_v49, %v2441_v31 }
 0x188   : > { %v2478_v55 = vpop.f32.mrf.mxu2  ;;  %v2461_v63 = vpop.f32.mrf.mxu1 }
 0x189   : > { %v2497_v23 = vpop.f32.mrf.mxu3  ;;  %v2442_v10 = vpop.f32.mrf.mxu0  ;;  %v2479_v41 = vadd.f32 %v2478_v55, %v2460_v16 }
 0x18a   : > { %v2443_v43 = vadd.f32 %v2442_v10, %v2424_v33 }
 0x18b   : > { %v2498_v60 = vadd.f32 %v2497_v23, %v2479_v41 }
 0x18c   : > { %v2462_v17 = vadd.f32 %v2461_v63, %v2443_v43 }
 0x190   : > { %v2480_v29 = vpop.f32.mrf.mxu2  ;;  %v2530_v21 = vpop.f32.mrf.mxu1 }
 0x191   : > { %v2499_v26 = vpop.f32.mrf.mxu3  ;;  %v2511_v0 = vpop.f32.mrf.mxu0  ;;  %v2481_v61 = vadd.f32 %v2480_v29, %v2462_v17 }
 0x192   : > { %v2512_v30 = vadd.f32 %v2511_v0, %v2493_v15 }
 0x193   : > { %v2500_v14 = vadd.f32 %v2499_v26, %v2481_v61 }
 0x194   : > { %v2531_v50 = vadd.f32 %v2530_v21, %v2512_v30 }
 0x198   : > { %v2549_v45 = vpop.f32.mrf.mxu2  ;;  %v2532_v35 = vpop.f32.mrf.mxu1 }
 0x199   : > { %v2568_v46 = vpop.f32.mrf.mxu3  ;;  %v2550_v36 = vadd.f32 %v2549_v45, %v2531_v50  ;;  %v2513_v37 = vpop.f32.mrf.mxu0 }
 0x19a   : > { %v2514_v56 = vadd.f32 %v2513_v37, %v2495_v34 }
 0x19b   : > { %v2569_v38 = vadd.f32 %v2568_v46, %v2550_v36 }
 0x19c   : > { %v2533_v47 = vadd.f32 %v2532_v35, %v2514_v56 }
 0x19d   : > { %v2578_v42 = vpack.c.bf16 %v2569_v38, %v4994_v44 }
 0x19f   : > { %2582 = vst [vmem:[%s5010_s24] sm:$0xff] %v2578_v42 }
 0x1a0   : > { %v2551_v52 = vpop.f32.mrf.mxu2  ;;  %v2535_v25 = vpop.f32.mrf.mxu1 }
 0x1a1   : > { %v2570_v59 = vpop.f32.mrf.mxu3  ;;  %v2552_v19 = vadd.f32 %v2551_v52, %v2533_v47  ;;  %v2516_v51 = vpop.f32.mrf.mxu0 }
 0x1a2   : > { %v2517_v22 = vadd.f32 %v2516_v51, %v2498_v60 }
 0x1a3   : > { %v2571_v8 = vadd.f32 %v2570_v59, %v2552_v19 }
 0x1a4   : > { %v2536_v9 = vadd.f32 %v2535_v25, %v2517_v22 }
 0x1a5   : > { %v2579_v32 = vpack.c.bf16 %v2571_v8, %v4996_v18 }
 0x1a7   : > { %2583 = vst [vmem:[%s5010_s24 + $0x8] sm:$0xff] %v2579_v32 }
 0x1a8   : > { %v2554_v13 = vpop.f32.mrf.mxu2  ;;  %v2537_v7 = vpop.f32.mrf.mxu1 }
 0x1a9   : > { %v2573_v44 = vpop.f32.mrf.mxu3  ;;  %v2555_v2 = vadd.f32 %v2554_v13, %v2536_v9  ;;  %v2518_v49 = vpop.f32.mrf.mxu0 }
 0x1aa   : > { %v2519_v53 = vadd.f32 %v2518_v49, %v2500_v14 }
 0x1ab   : > { %v2574_v3 = vadd.f32 %v2573_v44, %v2555_v2 }
 0x1ac   : > { %v2538_v55 = vadd.f32 %v2537_v7, %v2519_v53 }
 0x1ad   : > { %v2580_v4 = vpack.c.bf16 %v2574_v3, %v5002_v48 }
 0x1af   : > { %2584 = vst [vmem:[%s5010_s24 + $0x10] sm:$0xff] %v2580_v4 }
 0x1b0   : > { %v2556_v23 = vpop.f32.mrf.mxu2 }
 0x1b1   : > { %v2557_v62 = vadd.f32 %v2556_v23, %v2538_v55  ;;  %v2575_v10 = vpop.f32.mrf.mxu3 }
 0x1b3   : > { %v2576_v63 = vadd.f32 %v2575_v10, %v2557_v62 }
 0x1b5   : > { %v2581_v18 = vpack.c.bf16 %v2576_v63, %v5004_v58 }
 0x1b7   : > { %2585 = vst [vmem:[%s5010_s24 + $0x18] sm:$0xff] %v2581_v18 }
 0x1b8 PF: > { %s12_s11 = sadd.s32 1, %s4218_s11   ;;  %s5032_s9 = smov %s4214_s10 }
 0x1b9   : > { %p9_p5 = scmp.ge.s32.totalorder %s12_s11, 6   ;;  %s5033_s10 = smov %s5035_s12 }
 0x1bb   :  { %11 = sbr.rel (!%p9_p5) target bundleno = 2 (0x2), region = 61 }

// kernel: generator_forward.17
= control target key start
LH: loop header
LB: loop body
LE: loop exit
PB: predicated region body
PF: predicated region fallthrough
CT: control target
= control target key end

     0   :  { %v14_v0 = vlaneseq  ;;  %v214_v2 = vmov 0.0   ;;  %vm114_vm1 = vcmask 1040384   ;;  %s310_s1 = inlined_call_operand.vmem [shape: f32[1,256], index: 1, kind: output, shape index: {0}]   ;;  %s311_s2 = inlined_call_operand.vmem [shape: f32[1,256], index: 2, kind: output, shape index: {1}]   ;;  %s312_s0 = inlined_call_operand.vmem [shape: bf16[128,256], index: 0, kind: input, shape index: {}]  }
   0x1   :  { %v20_v3 = vld [vmem:[%s312_s0] sm:$0xff]  ;;  %v21_v4 = vld [vmem:[%s312_s0 + $0x8] sm:$0xff]  ;;  %v22_v5 = vld [vmem:[%s312_s0 + $0x10] sm:$0xff] }
   0x2   :  { %vm230_vm0 = vcmp.lt.s32.totalorder %v14_v0, 256  ;;  %v36_v6 = vunpack.c.l.bf16 %v20_v3  ;;  %v37_v7 = vunpack.c.h.bf16 %v20_v3  ;;  %v38_v8 = vunpack.c.l.bf16 %v21_v4  ;;  %v23_v10 = vld [vmem:[%s312_s0 + $0x18] sm:$0xff]  ;;  %v24_v15 = vld [vmem:[%s312_s0 + $0x20] sm:$0xff]  ;;  %v25_v20 = vld [vmem:[%s312_s0 + $0x28] sm:$0xff] }
   0x3   :  { %18 = vst.msk [vmem:[%s310_s1] sm:$0x3] %vm230_vm0, %v214_v2  ;;  %v39_v9 = vunpack.c.h.bf16 %v21_v4  ;;  %v40_v11 = vunpack.c.l.bf16 %v22_v5  ;;  %v41_v12 = vunpack.c.h.bf16 %v22_v5  ;;  %v42_v16 = vunpack.c.l.bf16 %v23_v10  ;;  %v26_v25 = vld [vmem:[%s312_s0 + $0x30] sm:$0xff]  ;;  %v27_v30 = vld [vmem:[%s312_s0 + $0x38] sm:$0xff]  ;;  %v28_v39 = vld [vmem:[%s312_s0 + $0x40] sm:$0xff] }
   0x4   :  { %19 = vst.msk [vmem:[%s311_s2] sm:$0x3] %vm230_vm0, %v214_v2  ;;  %v69_v13 = vadd.f32 %v38_v8, %v36_v6  ;;  %v43_v17 = vunpack.c.h.bf16 %v23_v10  ;;  %v44_v21 = vunpack.c.l.bf16 %v24_v15  ;;  %v45_v22 = vunpack.c.h.bf16 %v24_v15  ;;  %v29_v46 = vld [vmem:[%s312_s0 + $0x48] sm:$0xff]  ;;  %v30_v55 = vld [vmem:[%s312_s0 + $0x50] sm:$0xff]  ;;  %v31_v0 = vld [vmem:[%s312_s0 + $0x58] sm:$0xff] }
   0x5   :  { %v90_v14 = vadd.f32 %v39_v9, %v37_v7  ;;  %v46_v26 = vunpack.c.l.bf16 %v25_v20  ;;  %v47_v27 = vunpack.c.h.bf16 %v25_v20  ;;  %v124_v31 = vmul.f32 %v36_v6, %v36_v6  ;;  %v32_v10 = vld [vmem:[%s312_s0 + $0x60] sm:$0xff] }
   0x6   :  { %v70_v18 = vadd.f32 %v69_v13, %v40_v11  ;;  %v125_v32 = vmul.f32 %v37_v7, %v37_v7  ;;  %v126_v33 = vmul.f32 %v38_v8, %v38_v8  ;;  %v127_v34 = vmul.f32 %v39_v9, %v39_v9 }
   0x7   :  { %v91_v19 = vadd.f32 %v90_v14, %v41_v12  ;;  %v48_v35 = vunpack.c.l.bf16 %v26_v25  ;;  %v49_v36 = vunpack.c.h.bf16 %v26_v25  ;;  %v128_v40 = vmul.f32 %v40_v11, %v40_v11 }
   0x8   :  { %v71_v23 = vadd.f32 %v70_v18, %v42_v16  ;;  %v129_v41 = vmul.f32 %v41_v12, %v41_v12  ;;  %v50_v42 = vunpack.c.l.bf16 %v27_v30  ;;  %v51_v43 = vunpack.c.h.bf16 %v27_v30 }
   0x9   :  { %v92_v24 = vadd.f32 %v91_v19, %v43_v17  ;;  %v130_v47 = vmul.f32 %v42_v16, %v42_v16  ;;  %v131_v48 = vmul.f32 %v43_v17, %v43_v17  ;;  %v156_v49 = vadd.f32 %v126_v33, %v124_v31  ;;  %v33_v19 = vld [vmem:[%s312_s0 + $0x68] sm:$0xff] }
   0xa   :  { %v72_v28 = vadd.f32 %v71_v23, %v44_v21  ;;  %v177_v50 = vadd.f32 %v127_v34, %v125_v32  ;;  %v52_v51 = vunpack.c.l.bf16 %v28_v39  ;;  %v53_v52 = vunpack.c.h.bf16 %v28_v39 }
   0xb   :  { %v93_v29 = vadd.f32 %v92_v24, %v45_v22  ;;  %v132_v56 = vmul.f32 %v44_v21, %v44_v21  ;;  %v133_v57 = vmul.f32 %v45_v22, %v45_v22  ;;  %v157_v58 = vadd.f32 %v156_v49, %v128_v40 }
   0xc   :  { %v73_v37 = vadd.f32 %v72_v28, %v46_v26  ;;  %v178_v59 = vadd.f32 %v177_v50, %v129_v41  ;;  %v54_v60 = vunpack.c.l.bf16 %v29_v46  ;;  %v55_v61 = vunpack.c.h.bf16 %v29_v46  ;;  %v34_v28 = vld [vmem:[%s312_s0 + $0x70] sm:$0xff] }
   0xd   :  { %v94_v38 = vadd.f32 %v93_v29, %v47_v27  ;;  %v134_v2 = vmul.f32 %v46_v26, %v46_v26  ;;  %v135_v3 = vmul.f32 %v47_v27, %v47_v27  ;;  %v158_v4 = vadd.f32 %v157_v58, %v130_v47 }
   0xe   :  { %v74_v44 = vadd.f32 %v73_v37, %v48_v35  ;;  %v179_v5 = vadd.f32 %v178_v59, %v131_v48  ;;  %v56_v6 = vunpack.c.l.bf16 %v30_v55  ;;  %v57_v7 = vunpack.c.h.bf16 %v30_v55  ;;  %v35_v37 = vld [vmem:[%s312_s0 + $0x78] sm:$0xff] }
   0xf   :  { %v95_v45 = vadd.f32 %v94_v38, %v49_v36  ;;  %v136_v11 = vmul.f32 %v48_v35, %v48_v35  ;;  %v137_v12 = vmul.f32 %v49_v36, %v49_v36  ;;  %v159_v13 = vadd.f32 %v158_v4, %v132_v56 }
  0x10   :  { %v75_v53 = vadd.f32 %v74_v44, %v50_v42  ;;  %v180_v14 = vadd.f32 %v179_v5, %v133_v57  ;;  %v58_v15 = vunpack.c.l.bf16 %v31_v0  ;;  %v59_v16 = vunpack.c.h.bf16 %v31_v0 }
  0x11   :  { %v96_v54 = vadd.f32 %v95_v45, %v51_v43  ;;  %v138_v20 = vmul.f32 %v50_v42, %v50_v42  ;;  %v139_v21 = vmul.f32 %v51_v43, %v51_v43  ;;  %v160_v22 = vadd.f32 %v159_v13, %v134_v2 }
  0x12   :  { %v76_v62 = vadd.f32 %v75_v53, %v52_v51  ;;  %v181_v23 = vadd.f32 %v180_v14, %v135_v3  ;;  %v60_v24 = vunpack.c.l.bf16 %v32_v10  ;;  %v61_v25 = vunpack.c.h.bf16 %v32_v10 }
  0x13   :  { %v97_v63 = vadd.f32 %v96_v54, %v53_v52  ;;  %v140_v29 = vmul.f32 %v52_v51, %v52_v51  ;;  %v141_v30 = vmul.f32 %v53_v52, %v53_v52  ;;  %v161_v31 = vadd.f32 %v160_v22, %v136_v11 }
  0x14   :  { %v77_v8 = vadd.f32 %v76_v62, %v54_v60  ;;  %v182_v32 = vadd.f32 %v181_v23, %v137_v12  ;;  %v62_v33 = vunpack.c.l.bf16 %v33_v19  ;;  %v63_v34 = vunpack.c.h.bf16 %v33_v19 }
  0x15   :  { %v98_v9 = vadd.f32 %v97_v63, %v55_v61  ;;  %v142_v38 = vmul.f32 %v54_v60, %v54_v60  ;;  %v143_v39 = vmul.f32 %v55_v61, %v55_v61  ;;  %v162_v40 = vadd.f32 %v161_v31, %v138_v20  ;;  %v68_v31 = vld [vmem:[%s310_s1] sm:$0x3] }
  0x16   :  { %v78_v17 = vadd.f32 %v77_v8, %v56_v6  ;;  %v183_v41 = vadd.f32 %v182_v32, %v139_v21  ;;  %v64_v42 = vunpack.c.l.bf16 %v34_v28  ;;  %v65_v43 = vunpack.c.h.bf16 %v34_v28 }
  0x17   :  { %v99_v18 = vadd.f32 %v98_v9, %v57_v7  ;;  %v144_v46 = vmul.f32 %v56_v6, %v56_v6  ;;  %v145_v47 = vmul.f32 %v57_v7, %v57_v7  ;;  %v163_v48 = vadd.f32 %v162_v40, %v140_v29 }
  0x18   :  { %v79_v26 = vadd.f32 %v78_v17, %v58_v15  ;;  %v184_v49 = vadd.f32 %v183_v41, %v141_v30  ;;  %v66_v50 = vunpack.c.l.bf16 %v35_v37  ;;  %v67_v51 = vunpack.c.h.bf16 %v35_v37 }
  0x19   :  { %v100_v27 = vadd.f32 %v99_v18, %v59_v16  ;;  %v146_v54 = vmul.f32 %v58_v15, %v58_v15  ;;  %v147_v55 = vmul.f32 %v59_v16, %v59_v16  ;;  %v164_v56 = vadd.f32 %v163_v48, %v142_v38 }
  0x1a   :  { %v80_v35 = vadd.f32 %v79_v26, %v60_v24  ;;  %v185_v57 = vadd.f32 %v184_v49, %v143_v39  ;;  %v148_v60 = vmul.f32 %v60_v24, %v60_v24  ;;  %v149_v61 = vmul.f32 %v61_v25, %v61_v25 }
  0x1b   :  { %v101_v36 = vadd.f32 %v100_v27, %v61_v25  ;;  %v165_v62 = vadd.f32 %v164_v56, %v144_v46  ;;  %v150_v3 = vmul.f32 %v62_v33, %v62_v33  ;;  %v151_v4 = vmul.f32 %v63_v34, %v63_v34 }
  0x1c   :  { %v81_v44 = vadd.f32 %v80_v35, %v62_v33  ;;  %v186_v63 = vadd.f32 %v185_v57, %v145_v47  ;;  %v152_v9 = vmul.f32 %v64_v42, %v64_v42  ;;  %v153_v10 = vmul.f32 %v65_v43, %v65_v43 }
  0x1d   :  { %v102_v45 = vadd.f32 %v101_v36, %v63_v34  ;;  %v166_v5 = vadd.f32 %v165_v62, %v146_v54  ;;  %v154_v15 = vmul.f32 %v66_v50, %v66_v50  ;;  %v155_v16 = vmul.f32 %v67_v51, %v67_v51 }
  0x1e   :  { %v82_v52 = vadd.f32 %v81_v44, %v64_v42  ;;  %v187_v6 = vadd.f32 %v186_v63, %v147_v55 }
  0x1f   :  { %v103_v53 = vadd.f32 %v102_v45, %v65_v43  ;;  %v167_v11 = vadd.f32 %v166_v5, %v148_v60  ;;  %v123_v45 = vld [vmem:[%s311_s2] sm:$0x3] }
  0x20   :  { %v83_v58 = vadd.f32 %v82_v52, %v66_v50  ;;  %v188_v12 = vadd.f32 %v187_v6, %v149_v61 }
  0x21   :  { %v104_v59 = vadd.f32 %v103_v53, %v67_v51  ;;  %v168_v17 = vadd.f32 %v167_v11, %v150_v3 }
  0x22   :  { %v84_v0 = vrot.slane %v83_v58, 4  ;;  %v189_v18 = vadd.f32 %v188_v12, %v151_v4 }
  0x23   :  { %v105_v2 = vrot.slane %v104_v59, 4  ;;  %v169_v21 = vadd.f32 %v168_v17, %v152_v9 }
  0x24   :  { %v85_v7 = vadd.f32 %v84_v0, %v83_v58  ;;  %v190_v22 = vadd.f32 %v189_v18, %v153_v10 }
  0x25   :  { %v106_v8 = vadd.f32 %v105_v2, %v104_v59  ;;  %v170_v25 = vadd.f32 %v169_v21, %v154_v15 }
  0x26   :  { %v86_v13 = vrot.slane %v85_v7, 2  ;;  %v191_v26 = vadd.f32 %v190_v22, %v155_v16 }
  0x27   :  { %v107_v14 = vrot.slane %v106_v8, 2  ;;  %v171_v29 = vrot.slane %v170_v25, 4 }
  0x28   :  { %v87_v19 = vadd.f32 %v86_v13, %v85_v7  ;;  %v192_v30 = vrot.slane %v191_v26, 4 }
  0x29   :  { %v108_v20 = vadd.f32 %v107_v14, %v106_v8  ;;  %v172_v33 = vadd.f32 %v171_v29, %v170_v25 }
  0x2a   :  { %v88_v23 = vrot.slane %v87_v19, 1  ;;  %v193_v34 = vadd.f32 %v192_v30, %v191_v26 }
  0x2b   :  { %v109_v24 = vrot.slane %v108_v20, 1  ;;  %v173_v37 = vrot.slane %v172_v33, 2 }
  0x2c   :  { %v89_v27 = vadd.f32 %v88_v23, %v87_v19  ;;  %v194_v38 = vrot.slane %v193_v34, 2 }
  0x2d   :  { %v110_v28 = vadd.f32 %v109_v24, %v108_v20  ;;  %v174_v39 = vadd.f32 %v173_v37, %v172_v33 }
  0x2e   :  { %v195_v40 = vadd.f32 %v194_v38, %v193_v34 }
  0x2f   :  { %v113_v32 = vrot.slane %v110_v28, 7  ;;  %v175_v41 = vrot.slane %v174_v39, 1 }
  0x30   :  { %v196_v42 = vrot.slane %v195_v40, 1 }
  0x31   :  { %v115_v35 = vsel %vm114_vm1, %v89_v27, %v113_v32  ;;  %v176_v43 = vadd.f32 %v175_v41, %v174_v39 }
  0x32   :  { %v117_v36 = vadd.f32 %v115_v35, %v68_v31  ;;  %v197_v44 = vadd.f32 %v196_v42, %v195_v40 }
  0x34   :  { %122 = vst.msk [vmem:[%s310_s1] sm:$0x3] %vm230_vm0, %v117_v36  ;;  %v200_v46 = vrot.slane %v197_v44, 7 }
  0x36   :  { %v201_v47 = vsel %vm114_vm1, %v176_v43, %v200_v46 }
  0x37   :  { %v203_v48 = vadd.f32 %v201_v47, %v123_v45 }
  0x39   :  { %204 = vst.msk [vmem:[%s311_s2] sm:$0x3] %vm230_vm0, %v203_v48 }

// kernel: generator_forward.18
= control target key start
LH: loop header
LB: loop body
LE: loop exit
PB: predicated region body
PF: predicated region fallthrough
CT: control target
= control target key end

     0   :  { %s400_s0 = inlined_call_operand.vmem [shape: bf16[128,256], index: 0, kind: input, shape index: {}]   ;;  %s401_s1 = inlined_call_operand.vmem [shape: f32[1,256], index: 1, kind: input, shape index: {}]   ;;  %s402_s2 = inlined_call_operand.vmem [shape: f32[1,256], index: 2, kind: input, shape index: {}]   ;;  %s403_s3 = inlined_call_operand.vmem [shape: bf16[128,256], index: 3, kind: output, shape index: {}]  }
   0x1   :  { %v14_v0 = vld [vmem:[%s400_s0] sm:$0xff]  ;;  %v15_v7 = vld [vmem:[%s400_s0 + $0x8] sm:$0xff]  ;;  %v16_v8 = vld [vmem:[%s400_s0 + $0x10] sm:$0xff] }
   0x2   :  { %v62_v1 = vld [vmem:[%s401_s1] sm:$0x3]  ;;  %v30_v3 = vunpack.c.l.bf16 %v14_v0  ;;  %v31_v4 = vunpack.c.h.bf16 %v14_v0  ;;  %v17_v9 = vld [vmem:[%s400_s0 + $0x18] sm:$0xff]  ;;  %v32_v12 = vunpack.c.l.bf16 %v15_v7  ;;  %v33_v13 = vunpack.c.h.bf16 %v15_v7  ;;  %v19_v39 = vld [vmem:[%s400_s0 + $0x28] sm:$0xff] }
   0x3   :  { %v100_v2 = vld [vmem:[%s402_s2] sm:$0x3]  ;;  %v235_v5 = vperm.slane %v62_v1, 0  ;;  %v237_v6 = vperm.slane %v62_v1, 1  ;;  %v34_v16 = vunpack.c.l.bf16 %v16_v8  ;;  %v35_v17 = vunpack.c.h.bf16 %v16_v8  ;;  %v20_v44 = vld [vmem:[%s400_s0 + $0x30] sm:$0xff]  ;;  %v21_v49 = vld [vmem:[%s400_s0 + $0x38] sm:$0xff] }
   0x4   :  { %v248_v10 = vperm.slane %v100_v2, 0  ;;  %v250_v11 = vperm.slane %v100_v2, 1  ;;  %v36_v20 = vunpack.c.l.bf16 %v17_v9  ;;  %v37_v21 = vunpack.c.h.bf16 %v17_v9  ;;  %v18_v30 = vld [vmem:[%s400_s0 + $0x20] sm:$0xff] }
   0x5   :  { %v68_v14 = vmul.f32 %v235_v5, %v30_v3  ;;  %v69_v15 = vmul.f32 %v237_v6, %v31_v4  ;;  %v70_v18 = vmul.f32 %v235_v5, %v32_v12  ;;  %v71_v19 = vmul.f32 %v237_v6, %v33_v13  ;;  %v22_v2 = vld [vmem:[%s400_s0 + $0x40] sm:$0xff] }
   0x6   :  { %v72_v24 = vmul.f32 %v235_v5, %v34_v16  ;;  %v73_v25 = vmul.f32 %v237_v6, %v35_v17  ;;  %v74_v28 = vmul.f32 %v235_v5, %v36_v20  ;;  %v75_v29 = vmul.f32 %v237_v6, %v37_v21 }
   0x7   :  { %v106_v22 = vadd.f32 %v248_v10, %v68_v14  ;;  %v107_v23 = vadd.f32 %v250_v11, %v69_v15  ;;  %v108_v26 = vadd.f32 %v248_v10, %v70_v18  ;;  %v109_v27 = vadd.f32 %v250_v11, %v71_v19  ;;  %v23_v19 = vld [vmem:[%s400_s0 + $0x48] sm:$0xff] }
   0x8   :  { %v110_v33 = vadd.f32 %v248_v10, %v72_v24  ;;  %v111_v34 = vadd.f32 %v250_v11, %v73_v25  ;;  %v112_v37 = vadd.f32 %v248_v10, %v74_v28  ;;  %v113_v38 = vadd.f32 %v250_v11, %v75_v29  ;;  %v24_v24 = vld [vmem:[%s400_s0 + $0x50] sm:$0xff]  ;;  %v25_v29 = vld [vmem:[%s400_s0 + $0x58] sm:$0xff] }
   0x9   :  { %v138_v31 = vmax.f32 %v106_v22, 0.0  ;;  %v139_v32 = vmax.f32 %v107_v23, 0.0  ;;  %v140_v35 = vmax.f32 %v108_v26, 0.0  ;;  %v141_v36 = vmax.f32 %v109_v27, 0.0 }
   0xa   :  { %v142_v41 = vmax.f32 %v110_v33, 0.0  ;;  %v143_v42 = vmax.f32 %v111_v34, 0.0  ;;  %v38_v43 = vunpack.c.l.bf16 %v18_v30  ;;  %v144_v46 = vmax.f32 %v112_v37, 0.0 }
   0xb   :  { %v170_v40 = vpack.c.bf16 %v139_v32, %v138_v31  ;;  %v171_v45 = vpack.c.bf16 %v141_v36, %v140_v35  ;;  %v145_v47 = vmax.f32 %v113_v38, 0.0  ;;  %v39_v48 = vunpack.c.h.bf16 %v18_v30 }
   0xc   :  { %v172_v50 = vpack.c.bf16 %v143_v42, %v142_v41  ;;  %v76_v51 = vmul.f32 %v235_v5, %v38_v43  ;;  %v40_v52 = vunpack.c.l.bf16 %v19_v39  ;;  %v41_v53 = vunpack.c.h.bf16 %v19_v39  ;;  %v26_v42 = vld [vmem:[%s400_s0 + $0x60] sm:$0xff] }
   0xd   :  { %186 = vst [vmem:[%s403_s3] sm:$0xff] %v170_v40  ;;  %v173_v54 = vpack.c.bf16 %v145_v47, %v144_v46  ;;  %v77_v55 = vmul.f32 %v237_v6, %v39_v48  ;;  %v42_v56 = vunpack.c.l.bf16 %v20_v44  ;;  %v43_v57 = vunpack.c.h.bf16 %v20_v44 }
   0xe   :  { %187 = vst [vmem:[%s403_s3 + $0x8] sm:$0xff] %v171_v45  ;;  %v114_v58 = vadd.f32 %v248_v10, %v76_v51  ;;  %v78_v59 = vmul.f32 %v235_v5, %v40_v52  ;;  %v79_v60 = vmul.f32 %v237_v6, %v41_v53  ;;  %v44_v61 = vunpack.c.l.bf16 %v21_v49 }
   0xf   :  { %188 = vst [vmem:[%s403_s3 + $0x10] sm:$0xff] %v172_v50  ;;  %v115_v62 = vadd.f32 %v250_v11, %v77_v55  ;;  %v80_v63 = vmul.f32 %v235_v5, %v42_v56  ;;  %v81_v0 = vmul.f32 %v237_v6, %v43_v57  ;;  %v45_v1 = vunpack.c.h.bf16 %v21_v49 }
  0x10   :  { %189 = vst [vmem:[%s403_s3 + $0x18] sm:$0xff] %v173_v54  ;;  %v146_v3 = vmax.f32 %v114_v58, 0.0  ;;  %v116_v4 = vadd.f32 %v248_v10, %v78_v59  ;;  %v117_v7 = vadd.f32 %v250_v11, %v79_v60  ;;  %v82_v8 = vmul.f32 %v235_v5, %v44_v61  ;;  %v27_v59 = vld [vmem:[%s400_s0 + $0x68] sm:$0xff] }
  0x11   :  { %v147_v9 = vmax.f32 %v115_v62, 0.0  ;;  %v118_v12 = vadd.f32 %v248_v10, %v80_v63  ;;  %v119_v13 = vadd.f32 %v250_v11, %v81_v0  ;;  %v83_v14 = vmul.f32 %v237_v6, %v45_v1  ;;  %v28_v0 = vld [vmem:[%s400_s0 + $0x70] sm:$0xff] }
  0x12   :  { %v148_v15 = vmax.f32 %v116_v4, 0.0  ;;  %v149_v16 = vmax.f32 %v117_v7, 0.0  ;;  %v120_v17 = vadd.f32 %v248_v10, %v82_v8  ;;  %v46_v18 = vunpack.c.l.bf16 %v22_v2  ;;  %v29_v7 = vld [vmem:[%s400_s0 + $0x78] sm:$0xff] }
  0x13   :  { %v174_v20 = vpack.c.bf16 %v147_v9, %v146_v3  ;;  %v150_v21 = vmax.f32 %v118_v12, 0.0  ;;  %v151_v22 = vmax.f32 %v119_v13, 0.0  ;;  %v121_v23 = vadd.f32 %v250_v11, %v83_v14 }
  0x14   :  { %v175_v25 = vpack.c.bf16 %v149_v16, %v148_v15  ;;  %v152_v26 = vmax.f32 %v120_v17, 0.0  ;;  %v47_v27 = vunpack.c.h.bf16 %v22_v2  ;;  %v84_v28 = vmul.f32 %v235_v5, %v46_v18 }
  0x15   :  { %190 = vst [vmem:[%s403_s3 + $0x20] sm:$0xff] %v174_v20  ;;  %v176_v30 = vpack.c.bf16 %v151_v22, %v150_v21  ;;  %v153_v31 = vmax.f32 %v121_v23, 0.0  ;;  %v48_v32 = vunpack.c.l.bf16 %v23_v19  ;;  %v49_v33 = vunpack.c.h.bf16 %v23_v19 }
  0x16   :  { %191 = vst [vmem:[%s403_s3 + $0x28] sm:$0xff] %v175_v25  ;;  %v85_v34 = vmul.f32 %v237_v6, %v47_v27  ;;  %v122_v35 = vadd.f32 %v248_v10, %v84_v28  ;;  %v50_v36 = vunpack.c.l.bf16 %v24_v24  ;;  %v51_v37 = vunpack.c.h.bf16 %v24_v24 }
  0x17   :  { %192 = vst [vmem:[%s403_s3 + $0x30] sm:$0xff] %v176_v30  ;;  %v177_v38 = vpack.c.bf16 %v153_v31, %v152_v26  ;;  %v86_v39 = vmul.f32 %v235_v5, %v48_v32  ;;  %v87_v40 = vmul.f32 %v237_v6, %v49_v33  ;;  %v52_v41 = vunpack.c.l.bf16 %v25_v29 }
  0x18   :  { %v123_v43 = vadd.f32 %v250_v11, %v85_v34  ;;  %v154_v44 = vmax.f32 %v122_v35, 0.0  ;;  %v88_v45 = vmul.f32 %v235_v5, %v50_v36  ;;  %v89_v46 = vmul.f32 %v237_v6, %v51_v37 }
  0x19   :  { %193 = vst [vmem:[%s403_s3 + $0x38] sm:$0xff] %v177_v38  ;;  %v124_v47 = vadd.f32 %v248_v10, %v86_v39  ;;  %v125_v48 = vadd.f32 %v250_v11, %v87_v40  ;;  %v53_v49 = vunpack.c.h.bf16 %v25_v29  ;;  %v90_v50 = vmul.f32 %v235_v5, %v52_v41 }
  0x1a   :  { %v155_v51 = vmax.f32 %v123_v43, 0.0  ;;  %v126_v52 = vadd.f32 %v248_v10, %v88_v45  ;;  %v127_v53 = vadd.f32 %v250_v11, %v89_v46  ;;  %v54_v54 = vunpack.c.l.bf16 %v26_v42 }
  0x1b   :  { %v156_v55 = vmax.f32 %v124_v47, 0.0  ;;  %v157_v56 = vmax.f32 %v125_v48, 0.0  ;;  %v91_v57 = vmul.f32 %v237_v6, %v53_v49  ;;  %v128_v58 = vadd.f32 %v248_v10, %v90_v50 }
  0x1c   :  { %v178_v60 = vpack.c.bf16 %v155_v51, %v154_v44  ;;  %v158_v61 = vmax.f32 %v126_v52, 0.0  ;;  %v159_v62 = vmax.f32 %v127_v53, 0.0  ;;  %v55_v63 = vunpack.c.h.bf16 %v26_v42 }
  0x1d   :  { %v179_v1 = vpack.c.bf16 %v157_v56, %v156_v55  ;;  %v129_v2 = vadd.f32 %v250_v11, %v91_v57  ;;  %v160_v3 = vmax.f32 %v128_v58, 0.0  ;;  %v92_v4 = vmul.f32 %v235_v5, %v54_v54 }
  0x1e   :  { %194 = vst [vmem:[%s403_s3 + $0x40] sm:$0xff] %v178_v60  ;;  %v180_v8 = vpack.c.bf16 %v159_v62, %v158_v61  ;;  %v93_v9 = vmul.f32 %v237_v6, %v55_v63  ;;  %v56_v12 = vunpack.c.l.bf16 %v27_v59  ;;  %v57_v13 = vunpack.c.h.bf16 %v27_v59 }
  0x1f   :  { %195 = vst [vmem:[%s403_s3 + $0x48] sm:$0xff] %v179_v1  ;;  %v161_v14 = vmax.f32 %v129_v2, 0.0  ;;  %v130_v15 = vadd.f32 %v248_v10, %v92_v4  ;;  %v58_v16 = vunpack.c.l.bf16 %v28_v0  ;;  %v59_v17 = vunpack.c.h.bf16 %v28_v0 }
  0x20   :  { %196 = vst [vmem:[%s403_s3 + $0x50] sm:$0xff] %v180_v8  ;;  %v131_v18 = vadd.f32 %v250_v11, %v93_v9  ;;  %v94_v19 = vmul.f32 %v235_v5, %v56_v12  ;;  %v95_v20 = vmul.f32 %v237_v6, %v57_v13  ;;  %v60_v21 = vunpack.c.l.bf16 %v29_v7 }
  0x21   :  { %v181_v22 = vpack.c.bf16 %v161_v14, %v160_v3  ;;  %v162_v23 = vmax.f32 %v130_v15, 0.0  ;;  %v96_v24 = vmul.f32 %v235_v5, %v58_v16  ;;  %v97_v25 = vmul.f32 %v237_v6, %v59_v17 }
  0x22   :  { %v163_v26 = vmax.f32 %v131_v18, 0.0  ;;  %v132_v27 = vadd.f32 %v248_v10, %v94_v19  ;;  %v133_v28 = vadd.f32 %v250_v11, %v95_v20  ;;  %v61_v29 = vunpack.c.h.bf16 %v29_v7 }
  0x23   :  { %197 = vst [vmem:[%s403_s3 + $0x58] sm:$0xff] %v181_v22  ;;  %v134_v30 = vadd.f32 %v248_v10, %v96_v24  ;;  %v135_v31 = vadd.f32 %v250_v11, %v97_v25  ;;  %v98_v32 = vmul.f32 %v235_v5, %v60_v21 }
  0x24   :  { %v182_v33 = vpack.c.bf16 %v163_v26, %v162_v23  ;;  %v164_v34 = vmax.f32 %v132_v27, 0.0  ;;  %v165_v35 = vmax.f32 %v133_v28, 0.0  ;;  %v99_v36 = vmul.f32 %v237_v6, %v61_v29 }
  0x25   :  { %v166_v37 = vmax.f32 %v134_v30, 0.0  ;;  %v167_v38 = vmax.f32 %v135_v31, 0.0  ;;  %v136_v39 = vadd.f32 %v248_v10, %v98_v32 }
  0x26   :  { %198 = vst [vmem:[%s403_s3 + $0x60] sm:$0xff] %v182_v33  ;;  %v183_v40 = vpack.c.bf16 %v165_v35, %v164_v34  ;;  %v137_v41 = vadd.f32 %v250_v11, %v99_v36 }
  0x27   :  { %v184_v42 = vpack.c.bf16 %v167_v38, %v166_v37  ;;  %v168_v43 = vmax.f32 %v136_v39, 0.0 }
  0x28   :  { %199 = vst [vmem:[%s403_s3 + $0x68] sm:$0xff] %v183_v40  ;;  %v169_v5 = vmax.f32 %v137_v41, 0.0 }
  0x29   :  { %200 = vst [vmem:[%s403_s3 + $0x70] sm:$0xff] %v184_v42 }
  0x2a   :  { %v185_v6 = vpack.c.bf16 %v169_v5, %v168_v43 }
  0x2c   :  { %201 = vst [vmem:[%s403_s3 + $0x78] sm:$0xff] %v185_v6 }

// kernel: generator_forward.19
= control target key start
LH: loop header
LB: loop body
LE: loop exit
PB: predicated region body
PF: predicated region fallthrough
CT: control target
= control target key end

     0   :  { %s2439_s9 = smov 0   ;;  %s2441_s10 = smov 0   ;;  %s2737_s0 = inlined_call_operand.vmem [shape: bf16[4,128,1024], index: 0, kind: input, shape index: {}]   ;;  %s2738_s1 = inlined_call_operand.vmem [shape: bf16[4,1024,128], index: 1, kind: input, shape index: {}]   ;;  %s2739_s2 = inlined_call_operand.vmem [shape: bf16[4,128,128], index: 2, kind: output, shape index: {}]  }
   0x1   :  { %s2443_s11 = smov 0  }
   0x2 LB: > { %s31_s12 = sadd.s32 1, %s2418_s10  ;;  %p1677_p0 = scmp.ge.s32.totalorder %s2422_s11, 1  ;;  %s2422_s11 = sphi %s2443_s11, %s12_s11   ;;  %s2418_s10 = sphi %s2441_s10, %s2741_s10   ;;  %s2414_s9 = sphi %s2439_s9, %s2740_s9  }
   0x3   : > { %p33_p1 = scmp.ge.s32.totalorder %s31_s12, 4  ;;  %p158_p2 = scmp.lt.s32.totalorder %s2422_s11, 5 }
   0x5   : > { %s2743_s12 = smov (%p33_p1, %s31_s12), 0  ;;  %p159_p3 = pnand %p1677_p0, %p158_p2 }
   0x6   : > { %p201_p4 = scmp.lt.s32.totalorder (!%p159_p3), %s2414_s9, 3 }
   0x7   : > { %162 = sbr.rel (%p159_p3) target bundleno = 436 (0x1b4), region = 28 }
   0xc   : > { %s2745_s9 = smov (!%p201_p4, %s2414_s9), 3 }
   0xd   : > { %s2198_s13 = sshll.u32 %s2745_s9, 9  ;;  %s2200_s20 = sshll.u32 %s2745_s9, 6 }
   0xe   : > { %s2465_s16 = scalar_lea.vmem %s2738_s1, %s2198_s13  ;;  %s2498_s19 = scalar_lea.vmem %s2737_s0, %s2198_s13 }
   0xf   : > { %v2272_v0 = vld [vmem:[%s2465_s16 + $0x38] sm:$0xff]  ;;  %v2271_v4 = vld [vmem:[%s2465_s16 + $0x30] sm:$0xff]  ;;  %v2270_v8 = vld [vmem:[%s2465_s16 + $0x28] sm:$0xff]  ;;  %s2704_s23 = scalar_lea.vmem %s2739_s2, %s2200_s20 }
  0x10   : > { %v2280_v1 = vld [vmem:[%s2465_s16 + $0x78] sm:$0xff]  ;;  %1128 = vmatpush.bf16.msra.mxu0 %v2272_v0  ;;  %v2279_v5 = vld [vmem:[%s2465_s16 + $0x70] sm:$0xff]  ;;  %v2278_v9 = vld [vmem:[%s2465_s16 + $0x68] sm:$0xff] }
  0x11   : > { %v2288_v2 = vld [vmem:[%s2465_s16 + $0xb8] sm:$0xff]  ;;  %1177 = vmatpush.bf16.msra.mxu1 %v2280_v1  ;;  %v2287_v6 = vld [vmem:[%s2465_s16 + $0xb0] sm:$0xff]  ;;  %v2286_v10 = vld [vmem:[%s2465_s16 + $0xa8] sm:$0xff] }
  0x12   : > { %v2296_v3 = vld [vmem:[%s2465_s16 + $0xf8] sm:$0xff]  ;;  %1226 = vmatpush.bf16.msra.mxu2 %v2288_v2  ;;  %v2295_v7 = vld [vmem:[%s2465_s16 + $0xf0] sm:$0xff]  ;;  %v2294_v11 = vld [vmem:[%s2465_s16 + $0xe8] sm:$0xff] }
  0x13   : > { %1275 = vmatpush.bf16.msra.mxu3 %v2296_v3  ;;  %v2269_v12 = vld [vmem:[%s2465_s16 + $0x20] sm:$0xff]  ;;  %v2268_v16 = vld [vmem:[%s2465_s16 + $0x18] sm:$0xff]  ;;  %v2267_v20 = vld [vmem:[%s2465_s16 + $0x10] sm:$0xff] }
  0x14   : > { %1129 = vmatpush.bf16.msra.mxu0 %v2271_v4  ;;  %v2277_v13 = vld [vmem:[%s2465_s16 + $0x60] sm:$0xff]  ;;  %v2276_v17 = vld [vmem:[%s2465_s16 + $0x58] sm:$0xff]  ;;  %v2275_v21 = vld [vmem:[%s2465_s16 + $0x50] sm:$0xff] }
  0x15   : > { %1178 = vmatpush.bf16.msra.mxu1 %v2279_v5  ;;  %v2285_v14 = vld [vmem:[%s2465_s16 + $0xa0] sm:$0xff]  ;;  %v2284_v18 = vld [vmem:[%s2465_s16 + $0x98] sm:$0xff]  ;;  %v2283_v22 = vld [vmem:[%s2465_s16 + $0x90] sm:$0xff] }
  0x16   : > { %1227 = vmatpush.bf16.msra.mxu2 %v2287_v6  ;;  %v2293_v15 = vld [vmem:[%s2465_s16 + $0xe0] sm:$0xff]  ;;  %v2292_v19 = vld [vmem:[%s2465_s16 + $0xd8] sm:$0xff]  ;;  %v2291_v23 = vld [vmem:[%s2465_s16 + $0xd0] sm:$0xff] }
  0x17   : > { %1276 = vmatpush.bf16.msra.mxu3 %v2295_v7  ;;  %v2266_v24 = vld [vmem:[%s2465_s16 + $0x8] sm:$0xff]  ;;  %v2265_v28 = vld [vmem:[%s2465_s16] sm:$0xff]  ;;  %v2320_v40 = vld [vmem:[%s2465_s16 + $0x1b8] sm:$0xff] }
  0x18   : > { %1130 = vmatpush.bf16.msra.mxu0 %v2270_v8  ;;  %v2274_v25 = vld [vmem:[%s2465_s16 + $0x48] sm:$0xff]  ;;  %v2273_v29 = vld [vmem:[%s2465_s16 + $0x40] sm:$0xff]  ;;  %v2304_v41 = vld [vmem:[%s2465_s16 + $0x138] sm:$0xff] }
  0x19   : > { %1179 = vmatpush.bf16.msra.mxu1 %v2278_v9  ;;  %v2282_v26 = vld [vmem:[%s2465_s16 + $0x88] sm:$0xff]  ;;  %v2281_v30 = vld [vmem:[%s2465_s16 + $0x80] sm:$0xff]  ;;  %v2328_v46 = vld [vmem:[%s2465_s16 + $0x1f8] sm:$0xff] }
  0x1a   : > { %1228 = vmatpush.bf16.msra.mxu2 %v2286_v10  ;;  %v2290_v27 = vld [vmem:[%s2465_s16 + $0xc8] sm:$0xff]  ;;  %v2289_v31 = vld [vmem:[%s2465_s16 + $0xc0] sm:$0xff]  ;;  %v2312_v47 = vld [vmem:[%s2465_s16 + $0x178] sm:$0xff] }
  0x1b   : > { %1277 = vmatpush.bf16.msra.mxu3 %v2294_v11  ;;  %v1686_v32 = vld [vmem:[%s2498_s19] sm:$0xf]  ;;  %v2201_v34 = vld [vmem:[%s2498_s19 + $0x4] sm:$0xf]  ;;  %v1694_v36 = vld [vmem:[%s2498_s19 + $0x8] sm:$0xf] }
  0x1c   : > { %1131 = vmatpush.bf16.msra.mxu0 %v2269_v12  ;;  %v2205_v33 = vld [vmem:[%s2498_s19 + $0x1c] sm:$0xf0]  ;;  %v1688_v35 = vld [vmem:[%s2498_s19 + $0x20] sm:$0xf0]  ;;  %v2206_v37 = vld [vmem:[%s2498_s19 + $0x24] sm:$0xf0] }
  0x1d   : > { %1180 = vmatpush.bf16.msra.mxu1 %v2277_v13  ;;  %v2202_v38 = vld [vmem:[%s2498_s19 + $0xc] sm:$0xf]  ;;  %v1687_v42 = vor.u32 %v2205_v33, %v1686_v32  ;;  %v1691_v43 = vor.u32 %v2201_v34, %v1688_v35  ;;  %v1695_v44 = vor.u32 %v2206_v37, %v1694_v36  ;;  %v2319_v48 = vld [vmem:[%s2465_s16 + $0x1b0] sm:$0xff]  ;;  %v1718_v56 = vld [vmem:[%s2498_s19 + $0x40] sm:$0xf] }
  0x1e   : > { %1229 = vmatpush.bf16.msra.mxu2 %v2285_v14  ;;  %v1696_v39 = vld [vmem:[%s2498_s19 + $0x28] sm:$0xf0]  ;;  %v2303_v49 = vld [vmem:[%s2465_s16 + $0x130] sm:$0xff]  ;;  %v2213_v57 = vld [vmem:[%s2498_s19 + $0x5c] sm:$0xf0] }
  0x1f   : > { %1278 = vmatpush.bf16.msra.mxu3 %v2293_v15  ;;  %v1699_v45 = vor.u32 %v2202_v38, %v1696_v39  ;;  %v2327_v50 = vld [vmem:[%s2465_s16 + $0x1f0] sm:$0xff]  ;;  %v2318_v52 = vld [vmem:[%s2465_s16 + $0x1a8] sm:$0xff]  ;;  %v2209_v58 = vld [vmem:[%s2498_s19 + $0x44] sm:$0xf]  ;;  %v1719_v0 = vor.u32 %v2213_v57, %v1718_v56 }
  0x20   : > { %1132 = vmatpush.bf16.msra.mxu0 %v2268_v16  ;;  %v2311_v51 = vld [vmem:[%s2465_s16 + $0x170] sm:$0xff]  ;;  %v2302_v53 = vld [vmem:[%s2465_s16 + $0x128] sm:$0xff]  ;;  %v1720_v59 = vld [vmem:[%s2498_s19 + $0x60] sm:$0xf0] }
  0x21   : > { %1181 = vmatpush.bf16.msra.mxu1 %v2276_v17  ;;  %v2326_v54 = vld [vmem:[%s2465_s16 + $0x1e8] sm:$0xff]  ;;  %v1723_v1 = vor.u32 %v2209_v58, %v1720_v59  ;;  %v2317_v4 = vld [vmem:[%s2465_s16 + $0x1a0] sm:$0xff]  ;;  %v2315_v36 = vld [vmem:[%s2465_s16 + $0x190] sm:$0xff] }
  0x22   : > { %1230 = vmatpush.bf16.msra.mxu2 %v2284_v18  ;;  %v2310_v55 = vld [vmem:[%s2465_s16 + $0x168] sm:$0xff]  ;;  %v2301_v5 = vld [vmem:[%s2465_s16 + $0x120] sm:$0xff]  ;;  %v2299_v37 = vld [vmem:[%s2465_s16 + $0x110] sm:$0xff] }
  0x23   : > { %1279 = vmatpush.bf16.msra.mxu3 %v2292_v19  ;;  %v1726_v60 = vld [vmem:[%s2498_s19 + $0x48] sm:$0xf]  ;;  %v2210_v62 = vld [vmem:[%s2498_s19 + $0x4c] sm:$0xf]  ;;  %v2325_v6 = vld [vmem:[%s2465_s16 + $0x1e0] sm:$0xff] }
  0x24   : > { %1133 = vmatpush.bf16.msra.mxu0 %v2267_v20  ;;  %v2214_v61 = vld [vmem:[%s2498_s19 + $0x64] sm:$0xf0]  ;;  %v1728_v63 = vld [vmem:[%s2498_s19 + $0x68] sm:$0xf0]  ;;  %v2309_v7 = vld [vmem:[%s2465_s16 + $0x160] sm:$0xff] }
  0x25   : > { %1182 = vmatpush.bf16.msra.mxu1 %v2275_v21  ;;  %v1727_v2 = vor.u32 %v2214_v61, %v1726_v60  ;;  %v1731_v3 = vor.u32 %v2210_v62, %v1728_v63  ;;  %v1750_v8 = vld [vmem:[%s2498_s19 + $0x80] sm:$0xf]  ;;  %v2217_v10 = vld [vmem:[%s2498_s19 + $0x84] sm:$0xf]  ;;  %v1758_v12 = vld [vmem:[%s2498_s19 + $0x88] sm:$0xf] }
  0x26   : > { %1231 = vmatpush.bf16.msra.mxu2 %v2283_v22  ;;  %v2221_v9 = vld [vmem:[%s2498_s19 + $0x9c] sm:$0xf0]  ;;  %v1752_v11 = vld [vmem:[%s2498_s19 + $0xa0] sm:$0xf0]  ;;  %v2222_v13 = vld [vmem:[%s2498_s19 + $0xa4] sm:$0xf0] }
  0x27   : > { %1280 = vmatpush.bf16.msra.mxu3 %v2291_v23  ;;  %v2218_v14 = vld [vmem:[%s2498_s19 + $0x8c] sm:$0xf]  ;;  %v1751_v16 = vor.u32 %v2221_v9, %v1750_v8  ;;  %v1755_v17 = vor.u32 %v2217_v10, %v1752_v11  ;;  %v1759_v18 = vor.u32 %v2222_v13, %v1758_v12  ;;  %v2316_v20 = vld [vmem:[%s2465_s16 + $0x198] sm:$0xff]  ;;  %v2323_v38 = vld [vmem:[%s2465_s16 + $0x1d0] sm:$0xff] }
  0x28   : > { %1134 = vmatpush.bf16.msra.mxu0 %v2266_v24  ;;  %v1760_v15 = vld [vmem:[%s2498_s19 + $0xa8] sm:$0xf0]  ;;  %v2300_v21 = vld [vmem:[%s2465_s16 + $0x118] sm:$0xff]  ;;  %v1782_v24 = vld [vmem:[%s2498_s19 + $0xc0] sm:$0xf] }
  0x29   : > { %1183 = vmatpush.bf16.msra.mxu1 %v2274_v25  ;;  %v1763_v19 = vor.u32 %v2218_v14, %v1760_v15  ;;  %v2324_v22 = vld [vmem:[%s2465_s16 + $0x1d8] sm:$0xff]  ;;  %v2229_v25 = vld [vmem:[%s2498_s19 + $0xdc] sm:$0xf0]  ;;  %v2307_v39 = vld [vmem:[%s2465_s16 + $0x150] sm:$0xff] }
  0x2a   : > { %1232 = vmatpush.bf16.msra.mxu2 %v2282_v26  ;;  %v2308_v23 = vld [vmem:[%s2465_s16 + $0x158] sm:$0xff]  ;;  %v2225_v26 = vld [vmem:[%s2498_s19 + $0xc4] sm:$0xf]  ;;  %v1783_v32 = vor.u32 %v2229_v25, %v1782_v24  ;;  %v1846_v56 = vld [vmem:[%s2498_s19 + $0x140] sm:$0xf] }
  0x2b   : > { %1281 = vmatpush.bf16.msra.mxu3 %v2290_v27  ;;  %v1784_v27 = vld [vmem:[%s2498_s19 + $0xe0] sm:$0xf0]  ;;  %v2245_v57 = vld [vmem:[%s2498_s19 + $0x15c] sm:$0xf0]  ;;  %v1854_v60 = vld [vmem:[%s2498_s19 + $0x148] sm:$0xf] }
  0x2c   : > { %1135 = vmatpush.bf16.msra.mxu0 %v2265_v28  ;;  %v1790_v28 = vld [vmem:[%s2498_s19 + $0xc8] sm:$0xf]  ;;  %v1787_v33 = vor.u32 %v2225_v26, %v1784_v27  ;;  %v2241_v58 = vld [vmem:[%s2498_s19 + $0x144] sm:$0xf]  ;;  %v2242_v62 = vld [vmem:[%s2498_s19 + $0x14c] sm:$0xf] }
  0x2d   : > { %1184 = vmatpush.bf16.msra.mxu1 %v2273_v29  ;;  %v2230_v29 = vld [vmem:[%s2498_s19 + $0xe4] sm:$0xf0]  ;;  %v1848_v59 = vld [vmem:[%s2498_s19 + $0x160] sm:$0xf0]  ;;  %v1856_v63 = vld [vmem:[%s2498_s19 + $0x168] sm:$0xf0] }
  0x2e   : > { %1233 = vmatpush.bf16.msra.mxu2 %v2281_v30  ;;  %v2226_v30 = vld [vmem:[%s2498_s19 + $0xcc] sm:$0xf]  ;;  %v1791_v34 = vor.u32 %v2230_v29, %v1790_v28  ;;  %v2246_v61 = vld [vmem:[%s2498_s19 + $0x164] sm:$0xf0]  ;;  %v1878_v8 = vld [vmem:[%s2498_s19 + $0x180] sm:$0xf] }
  0x2f   : > { %1282 = vmatpush.bf16.msra.mxu3 %v2289_v31  ;;  %1136 = vmatmul.bf16.vlgmr.msra.gmra.mxu0 %v1687_v42  ;;  %v1792_v31 = vld [vmem:[%s2498_s19 + $0xe8] sm:$0xf0]  ;;  %v2233_v42 = vld [vmem:[%s2498_s19 + $0x104] sm:$0xf]  ;;  %v2253_v9 = vld [vmem:[%s2498_s19 + $0x19c] sm:$0xf0] }
  0x30   : > { %1324 = vmatpush.bf16.msrb.mxu0 %v2304_v41  ;;  %1185 = vmatmul.bf16.vlgmr.msra.gmra.mxu1 %v1691_v43  ;;  %v1795_v35 = vor.u32 %v2226_v30, %v1792_v31  ;;  %v2237_v41 = vld [vmem:[%s2498_s19 + $0x11c] sm:$0xf0]  ;;  %v1816_v43 = vld [vmem:[%s2498_s19 + $0x120] sm:$0xf0]  ;;  %v1886_v12 = vld [vmem:[%s2498_s19 + $0x188] sm:$0xf] }
  0x31   : > { %1234 = vmatmul.bf16.vlgmr.msra.gmra.mxu2 %v1695_v44  ;;  %1373 = vmatpush.bf16.msrb.mxu1 %v2312_v47  ;;  %v1822_v44 = vld [vmem:[%s2498_s19 + $0x108] sm:$0xf]  ;;  %v1824_v47 = vld [vmem:[%s2498_s19 + $0x128] sm:$0xf0]  ;;  %v2249_v10 = vld [vmem:[%s2498_s19 + $0x184] sm:$0xf] }
  0x32   : > { %1422 = vmatpush.bf16.msrb.mxu2 %v2320_v40  ;;  %1283 = vmatmul.bf16.vlgmr.msra.gmra.mxu3 %v1699_v45  ;;  %v1814_v40 = vld [vmem:[%s2498_s19 + $0x100] sm:$0xf]  ;;  %v2238_v45 = vld [vmem:[%s2498_s19 + $0x124] sm:$0xf0]  ;;  %v1880_v11 = vld [vmem:[%s2498_s19 + $0x1a0] sm:$0xf0] }
  0x33   : > { %1471 = vmatpush.bf16.msrb.mxu3 %v2328_v46  ;;  %v2234_v46 = vld [vmem:[%s2498_s19 + $0x10c] sm:$0xf]  ;;  %v2254_v13 = vld [vmem:[%s2498_s19 + $0x1a4] sm:$0xf0] }
  0x34   : > { %1325 = vmatpush.bf16.msrb.mxu0 %v2303_v49  ;;  %v1819_v49 = vor.u32 %v2233_v42, %v1816_v43  ;;  %v2250_v14 = vld [vmem:[%s2498_s19 + $0x18c] sm:$0xf]  ;;  %v1918_v24 = vld [vmem:[%s2498_s19 + $0x1c8] sm:$0xf] }
  0x35   : > { %1374 = vmatpush.bf16.msrb.mxu1 %v2311_v51  ;;  %v1827_v51 = vor.u32 %v2234_v46, %v1824_v47  ;;  %v1888_v15 = vld [vmem:[%s2498_s19 + $0x1a8] sm:$0xf0]  ;;  %v2262_v25 = vld [vmem:[%s2498_s19 + $0x1e4] sm:$0xf0] }
  0x36   : > { %1423 = vmatpush.bf16.msrb.mxu2 %v2319_v48  ;;  %v1815_v48 = vor.u32 %v2237_v41, %v1814_v40  ;;  %v2258_v26 = vld [vmem:[%s2498_s19 + $0x1cc] sm:$0xf]  ;;  %v1919_v30 = vor.u32 %v2262_v25, %v1918_v24 }
  0x37   : > { %1472 = vmatpush.bf16.msrb.mxu3 %v2327_v50  ;;  %v1823_v50 = vor.u32 %v2238_v45, %v1822_v44  ;;  %v1920_v27 = vld [vmem:[%s2498_s19 + $0x1e8] sm:$0xf0] }
  0x38   : > { %1326 = vmatpush.bf16.msrb.mxu0 %v2302_v53  ;;  %v2298_v53 = vld [vmem:[%s2465_s16 + $0x108] sm:$0xff]  ;;  %v1923_v31 = vor.u32 %v2258_v26, %v1920_v27 }
  0x39   : > { %1375 = vmatpush.bf16.msrb.mxu1 %v2310_v55  ;;  %v2306_v55 = vld [vmem:[%s2465_s16 + $0x148] sm:$0xff] }
  0x3a   : > { %1424 = vmatpush.bf16.msrb.mxu2 %v2318_v52  ;;  %v2314_v52 = vld [vmem:[%s2465_s16 + $0x188] sm:$0xff] }
  0x3b   : > { %1473 = vmatpush.bf16.msrb.mxu3 %v2326_v54  ;;  %v2322_v54 = vld [vmem:[%s2465_s16 + $0x1c8] sm:$0xff] }
  0x3c   : > { %1327 = vmatpush.bf16.msrb.mxu0 %v2301_v5  ;;  %v2297_v5 = vld [vmem:[%s2465_s16 + $0x100] sm:$0xff] }
  0x3d   : > { %1376 = vmatpush.bf16.msrb.mxu1 %v2309_v7  ;;  %v2305_v7 = vld [vmem:[%s2465_s16 + $0x140] sm:$0xff] }
  0x3e   : > { %1425 = vmatpush.bf16.msrb.mxu2 %v2317_v4  ;;  %v2313_v4 = vld [vmem:[%s2465_s16 + $0x180] sm:$0xff] }
  0x3f   : > { %1141 = vmatmul.bf16.gmra.mxu0 %v1719_v0  ;;  %1474 = vmatpush.bf16.msrb.mxu3 %v2325_v6  ;;  %v1847_v0 = vor.u32 %v2245_v57, %v1846_v56  ;;  %v2321_v6 = vld [vmem:[%s2465_s16 + $0x1c0] sm:$0xff]  ;;  %v2211_v56 = vld [vmem:[%s2498_s19 + $0x54] sm:$0xf] }
  0x40   : > { %1190 = vmatmul.bf16.gmra.mxu1 %v1723_v1  ;;  %1328 = vmatpush.bf16.msrb.mxu0 %v2300_v21  ;;  %v1851_v1 = vor.u32 %v2241_v58, %v1848_v59  ;;  %v2261_v21 = vld [vmem:[%s2498_s19 + $0x1dc] sm:$0xf0]  ;;  %v1736_v57 = vld [vmem:[%s2498_s19 + $0x70] sm:$0xf0]  ;;  %v1742_v58 = vld [vmem:[%s2498_s19 + $0x58] sm:$0xf] }
  0x41   : > { %1239 = vmatmul.bf16.gmra.mxu2 %v1727_v2  ;;  %1377 = vmatpush.bf16.msrb.mxu1 %v2308_v23  ;;  %v1855_v2 = vor.u32 %v2246_v61, %v1854_v60  ;;  %v1912_v23 = vld [vmem:[%s2498_s19 + $0x1e0] sm:$0xf0]  ;;  %v2216_v59 = vld [vmem:[%s2498_s19 + $0x74] sm:$0xf0]  ;;  %v2212_v60 = vld [vmem:[%s2498_s19 + $0x5c] sm:$0xf] }
  0x42   : > { %1288 = vmatmul.bf16.gmra.mxu3 %v1731_v3  ;;  %1426 = vmatpush.bf16.msrb.mxu2 %v2316_v20  ;;  %v1859_v3 = vor.u32 %v2242_v62, %v1856_v63  ;;  %v1910_v20 = vld [vmem:[%s2498_s19 + $0x1c0] sm:$0xf]  ;;  %v1744_v61 = vld [vmem:[%s2498_s19 + $0x78] sm:$0xf0] }
  0x43   : > { %1475 = vmatpush.bf16.msrb.mxu3 %v2324_v22  ;;  %v2257_v22 = vld [vmem:[%s2498_s19 + $0x1c4] sm:$0xf]  ;;  %v1911_v28 = vor.u32 %v2261_v21, %v1910_v20  ;;  %v1774_v20 = vld [vmem:[%s2498_s19 + $0x98] sm:$0xf] }
  0x44   : > { %1329 = vmatpush.bf16.msrb.mxu0 %v2299_v37  ;;  %v1915_v29 = vor.u32 %v2257_v22, %v1912_v23  ;;  %v2208_v37 = vld [vmem:[%s2498_s19 + $0x34] sm:$0xf0]  ;;  %v2220_v22 = vld [vmem:[%s2498_s19 + $0x9c] sm:$0xf] }
  0x45   : > { %1378 = vmatpush.bf16.msrb.mxu1 %v2307_v39  ;;  %v1712_v39 = vld [vmem:[%s2498_s19 + $0x38] sm:$0xf0]  ;;  %v2224_v21 = vld [vmem:[%s2498_s19 + $0xb4] sm:$0xf0] }
  0x46   : > { %1427 = vmatpush.bf16.msrb.mxu2 %v2315_v36  ;;  %v1710_v36 = vld [vmem:[%s2498_s19 + $0x18] sm:$0xf]  ;;  %v1776_v23 = vld [vmem:[%s2498_s19 + $0xb8] sm:$0xf0] }
  0x47   : > { %1476 = vmatpush.bf16.msrb.mxu3 %v2323_v38  ;;  %v2204_v38 = vld [vmem:[%s2498_s19 + $0x1c] sm:$0xf]  ;;  %v1711_v44 = vor.u32 %v2208_v37, %v1710_v36 }
  0x48   : > { %1330 = vmatpush.bf16.msrb.mxu0 %v2298_v53  ;;  %v1715_v45 = vor.u32 %v2204_v38, %v1712_v39 }
  0x49   : > { %1379 = vmatpush.bf16.msrb.mxu1 %v2306_v55  ;;  %v2215_v55 = vld [vmem:[%s2498_s19 + $0x6c] sm:$0xf0] }
  0x4a   : > { %1428 = vmatpush.bf16.msrb.mxu2 %v2314_v52 }
  0x4b   : > { %1477 = vmatpush.bf16.msrb.mxu3 %v2322_v54  ;;  %v1734_v54 = vld [vmem:[%s2498_s19 + $0x50] sm:$0xf] }
  0x4c   : > { %1331 = vmatpush.bf16.msrb.mxu0 %v2297_v5  ;;  %v1743_v5 = vor.u32 %v2216_v59, %v1742_v58 }
  0x4d   : > { %1380 = vmatpush.bf16.msrb.mxu1 %v2305_v7 }
  0x4e   : > { %1429 = vmatpush.bf16.msrb.mxu2 %v2313_v4 }
  0x4f   : > { %1146 = vmatmul.bf16.gmra.mxu0 %v1751_v16  ;;  %1478 = vmatpush.bf16.msrb.mxu3 %v2321_v6  ;;  %v1879_v16 = vor.u32 %v2253_v9, %v1878_v8  ;;  %v1747_v6 = vor.u32 %v2212_v60, %v1744_v61 }
  0x50   : > { %1195 = vmatmul.bf16.gmra.mxu1 %v1755_v17  ;;  %v1883_v17 = vor.u32 %v2249_v10, %v1880_v11 }
  0x51   : > { %1244 = vmatmul.bf16.gmra.mxu2 %v1759_v18  ;;  %v1887_v18 = vor.u32 %v2254_v13, %v1886_v12 }
  0x52   : > { %1293 = vmatmul.bf16.gmra.mxu3 %v1763_v19  ;;  %v1891_v19 = vor.u32 %v2250_v14, %v1888_v15 }
  0x5f   : > { %1151 = vmatmul.bf16.gmra.mxu0 %v1783_v32  ;;  %v1702_v32 = vld [vmem:[%s2498_s19 + $0x10] sm:$0xf] }
  0x60   : > { %1200 = vmatmul.bf16.gmra.mxu1 %v1787_v33  ;;  %v2207_v33 = vld [vmem:[%s2498_s19 + $0x2c] sm:$0xf0] }
  0x61   : > { %1249 = vmatmul.bf16.gmra.mxu2 %v1791_v34  ;;  %v2203_v34 = vld [vmem:[%s2498_s19 + $0x14] sm:$0xf]  ;;  %v1703_v40 = vor.u32 %v2207_v33, %v1702_v32  ;;  %v1779_v32 = vor.u32 %v2220_v22, %v1776_v23 }
  0x62   : > { %1298 = vmatmul.bf16.gmra.mxu3 %v1795_v35  ;;  %v1704_v35 = vld [vmem:[%s2498_s19 + $0x30] sm:$0xf0] }
  0x63   : > { %v1707_v41 = vor.u32 %v2203_v34, %v1704_v35 }
  0x6f   : > { %1156 = vmatmul.bf16.gmra.mxu0 %v1815_v48 }
  0x70   : > { %1205 = vmatmul.bf16.gmra.mxu1 %v1819_v49 }
  0x71   : > { %1254 = vmatmul.bf16.gmra.mxu2 %v1823_v50 }
  0x72   : > { %1303 = vmatmul.bf16.gmra.mxu3 %v1827_v51 }
  0x7f   : > { %1161 = vmatmul.bf16.gmra.mxu0 %v1847_v0  ;;  %v1735_v0 = vor.u32 %v2215_v55, %v1734_v54 }
  0x80   : > { %1210 = vmatmul.bf16.gmra.mxu1 %v1851_v1  ;;  %v1739_v1 = vor.u32 %v2211_v56, %v1736_v57 }
  0x81   : > { %1259 = vmatmul.bf16.gmra.mxu2 %v1855_v2 }
  0x82   : > { %1308 = vmatmul.bf16.gmra.mxu3 %v1859_v3 }
  0x8f   : > { %1166 = vmatmul.bf16.gmra.mxu0 %v1879_v16  ;;  %v1766_v16 = vld [vmem:[%s2498_s19 + $0x90] sm:$0xf] }
  0x90   : > { %1215 = vmatmul.bf16.gmra.mxu1 %v1883_v17  ;;  %v2223_v17 = vld [vmem:[%s2498_s19 + $0xac] sm:$0xf0] }
  0x91   : > { %1264 = vmatmul.bf16.gmra.mxu2 %v1887_v18  ;;  %v2219_v18 = vld [vmem:[%s2498_s19 + $0x94] sm:$0xf]  ;;  %v1767_v26 = vor.u32 %v2223_v17, %v1766_v16 }
  0x92   : > { %1313 = vmatmul.bf16.gmra.mxu3 %v1891_v19  ;;  %v1768_v19 = vld [vmem:[%s2498_s19 + $0xb0] sm:$0xf0] }
  0x93   : > { %v1771_v27 = vor.u32 %v2219_v18, %v1768_v19 }
  0x9f   : > { %1171 = vmatmul.bf16.gmra.mxu0 %v1911_v28 }
  0xa0   : > { %1220 = vmatmul.bf16.gmra.mxu1 %v1915_v29 }
  0xa1   : > { %1269 = vmatmul.bf16.gmra.mxu2 %v1919_v30 }
  0xa2   : > { %1318 = vmatmul.bf16.gmra.mxu3 %v1923_v31  ;;  %v1775_v31 = vor.u32 %v2224_v21, %v1774_v20 }
  0xac   : > { %v1137_v42 = vpop.f32.mrf.mxu0 }
  0xad   : > { %v1186_v43 = vpop.f32.mrf.mxu1 }
  0xae   : > { %v1187_v46 = vadd.f32 %v1186_v43, %v1137_v42  ;;  %v1798_v42 = vld [vmem:[%s2498_s19 + $0xd0] sm:$0xf] }
  0xaf   : > { %1332 = vmatmul.bf16.vlgmr.msrb.gmra.mxu0 %v1703_v40  ;;  %v2231_v43 = vld [vmem:[%s2498_s19 + $0xec] sm:$0xf0] }
  0xb0   : > { %1381 = vmatmul.bf16.vlgmr.msrb.gmra.mxu1 %v1707_v41 }
  0xb1   : > { %1430 = vmatmul.bf16.vlgmr.msrb.gmra.mxu2 %v1711_v44  ;;  %v2227_v44 = vld [vmem:[%s2498_s19 + $0xd4] sm:$0xf] }
  0xb2   : > { %1479 = vmatmul.bf16.vlgmr.msrb.gmra.mxu3 %v1715_v45  ;;  %v1800_v45 = vld [vmem:[%s2498_s19 + $0xf0] sm:$0xf0] }
  0xb3   : > { %v1803_v54 = vor.u32 %v2227_v44, %v1800_v45 }
  0xb4   : > { %v1235_v47 = vpop.f32.mrf.mxu2  ;;  %v1139_v50 = vpop.f32.mrf.mxu0 }
  0xb5   : > { %v1284_v48 = vpop.f32.mrf.mxu3  ;;  %v1236_v49 = vadd.f32 %v1235_v47, %v1187_v46  ;;  %v1188_v51 = vpop.f32.mrf.mxu1  ;;  %v1806_v46 = vld [vmem:[%s2498_s19 + $0xd8] sm:$0xf] }
  0xb6   : > { %v1189_v52 = vadd.f32 %v1188_v51, %v1139_v50  ;;  %v2232_v47 = vld [vmem:[%s2498_s19 + $0xf4] sm:$0xf0] }
  0xb7   : > { %v2610_v53 = vadd.f32 %v1284_v48, %v1236_v49  ;;  %v2228_v48 = vld [vmem:[%s2498_s19 + $0xdc] sm:$0xf]  ;;  %v1807_v58 = vor.u32 %v2232_v47, %v1806_v46 }
  0xb8   : > { %v1808_v49 = vld [vmem:[%s2498_s19 + $0xf8] sm:$0xf0] }
  0xb9   : > { %v1811_v59 = vor.u32 %v2228_v48, %v1808_v49 }
  0xbc   : > { %v1237_v62 = vpop.f32.mrf.mxu2  ;;  %v1142_v3 = vpop.f32.mrf.mxu0 }
  0xbd   : > { %v1286_v63 = vpop.f32.mrf.mxu3  ;;  %v1238_v2 = vadd.f32 %v1237_v62, %v1189_v52  ;;  %v1191_v4 = vpop.f32.mrf.mxu1  ;;  %v1799_v52 = vor.u32 %v2231_v43, %v1798_v42  ;;  %v1872_v42 = vld [vmem:[%s2498_s19 + $0x178] sm:$0xf0] }
  0xbe   : > { %v1192_v7 = vadd.f32 %v1191_v4, %v1142_v3 }
  0xbf   : > { %v2620_v8 = vadd.f32 %v1286_v63, %v1238_v2  ;;  %1337 = vmatmul.bf16.gmra.mxu0 %v1735_v0 }
  0xc0   : > { %1386 = vmatmul.bf16.gmra.mxu1 %v1739_v1 }
  0xc1   : > { %1435 = vmatmul.bf16.gmra.mxu2 %v1743_v5  ;;  %v1830_v5 = vld [vmem:[%s2498_s19 + $0x110] sm:$0xf] }
  0xc2   : > { %1484 = vmatmul.bf16.gmra.mxu3 %v1747_v6  ;;  %v2239_v6 = vld [vmem:[%s2498_s19 + $0x12c] sm:$0xf0] }
  0xc3   : > { %v1831_v17 = vor.u32 %v2239_v6, %v1830_v5  ;;  %v2256_v5 = vld [vmem:[%s2498_s19 + $0x1b4] sm:$0xf0]  ;;  %v2252_v6 = vld [vmem:[%s2498_s19 + $0x19c] sm:$0xf] }
  0xc4   : > { %v1240_v9 = vpop.f32.mrf.mxu2  ;;  %v1144_v12 = vpop.f32.mrf.mxu0 }
  0xc5   : > { %v1289_v10 = vpop.f32.mrf.mxu3  ;;  %v1241_v11 = vadd.f32 %v1240_v9, %v1192_v7  ;;  %v1193_v13 = vpop.f32.mrf.mxu1  ;;  %v2235_v7 = vld [vmem:[%s2498_s19 + $0x114] sm:$0xf] }
  0xc6   : > { %v1194_v14 = vadd.f32 %v1193_v13, %v1144_v12  ;;  %v1832_v9 = vld [vmem:[%s2498_s19 + $0x130] sm:$0xf0]  ;;  %v2236_v12 = vld [vmem:[%s2498_s19 + $0x11c] sm:$0xf] }
  0xc7   : > { %v2622_v15 = vadd.f32 %v1289_v10, %v1241_v11  ;;  %v1838_v10 = vld [vmem:[%s2498_s19 + $0x118] sm:$0xf]  ;;  %v1840_v13 = vld [vmem:[%s2498_s19 + $0x138] sm:$0xf0]  ;;  %v1835_v18 = vor.u32 %v2235_v7, %v1832_v9 }
  0xc8   : > { %v2240_v11 = vld [vmem:[%s2498_s19 + $0x134] sm:$0xf0]  ;;  %v1843_v23 = vor.u32 %v2236_v12, %v1840_v13  ;;  %v1904_v7 = vld [vmem:[%s2498_s19 + $0x1b8] sm:$0xf0] }
  0xc9   : > { %v1839_v22 = vor.u32 %v2240_v11, %v1838_v10 }
  0xcc   : > { %v1242_v24 = vpop.f32.mrf.mxu2  ;;  %v1147_v29 = vpop.f32.mrf.mxu0 }
  0xcd   : > { %v1291_v25 = vpop.f32.mrf.mxu3  ;;  %v1243_v28 = vadd.f32 %v1242_v24, %v1194_v14  ;;  %v1196_v30 = vpop.f32.mrf.mxu1 }
  0xce   : > { %v1197_v33 = vadd.f32 %v1196_v30, %v1147_v29 }
  0xcf   : > { %v2632_v34 = vadd.f32 %v1291_v25, %v1243_v28  ;;  %1342 = vmatmul.bf16.gmra.mxu0 %v1767_v26 }
  0xd0   : > { %1391 = vmatmul.bf16.gmra.mxu1 %v1771_v27 }
  0xd1   : > { %1440 = vmatmul.bf16.gmra.mxu2 %v1775_v31 }
  0xd2   : > { %1489 = vmatmul.bf16.gmra.mxu3 %v1779_v32 }
  0xd4   : > { %v1245_v35 = vpop.f32.mrf.mxu2  ;;  %v1149_v38 = vpop.f32.mrf.mxu0 }
  0xd5   : > { %v1294_v36 = vpop.f32.mrf.mxu3  ;;  %v1246_v37 = vadd.f32 %v1245_v35, %v1197_v33  ;;  %v1198_v39 = vpop.f32.mrf.mxu1  ;;  %v1862_v33 = vld [vmem:[%s2498_s19 + $0x150] sm:$0xf] }
  0xd6   : > { %v1199_v40 = vadd.f32 %v1198_v39, %v1149_v38  ;;  %v2247_v35 = vld [vmem:[%s2498_s19 + $0x16c] sm:$0xf0]  ;;  %v1870_v38 = vld [vmem:[%s2498_s19 + $0x158] sm:$0xf] }
  0xd7   : > { %v2634_v41 = vadd.f32 %v1294_v36, %v1246_v37  ;;  %v2243_v36 = vld [vmem:[%s2498_s19 + $0x154] sm:$0xf]  ;;  %v2248_v39 = vld [vmem:[%s2498_s19 + $0x174] sm:$0xf0]  ;;  %v1863_v45 = vor.u32 %v2247_v35, %v1862_v33 }
  0xd8   : > { %v1864_v37 = vld [vmem:[%s2498_s19 + $0x170] sm:$0xf0]  ;;  %v1934_v35 = vld [vmem:[%s2498_s19 + $0x1d8] sm:$0xf] }
  0xd9   : > { %v1867_v46 = vor.u32 %v2243_v36, %v1864_v37  ;;  %v1928_v33 = vld [vmem:[%s2498_s19 + $0x1f0] sm:$0xf0]  ;;  %v2264_v36 = vld [vmem:[%s2498_s19 + $0x1f4] sm:$0xf0]  ;;  %v2260_v37 = vld [vmem:[%s2498_s19 + $0x1dc] sm:$0xf] }
  0xdc   : > { %v1247_v50 = vpop.f32.mrf.mxu2  ;;  %v1152_v56 = vpop.f32.mrf.mxu0 }
  0xdd   : > { %v1296_v51 = vpop.f32.mrf.mxu3  ;;  %v1248_v55 = vadd.f32 %v1247_v50, %v1199_v40  ;;  %v1201_v57 = vpop.f32.mrf.mxu1  ;;  %v2244_v40 = vld [vmem:[%s2498_s19 + $0x15c] sm:$0xf]  ;;  %v1871_v50 = vor.u32 %v2248_v39, %v1870_v38 }
  0xde   : > { %v1202_v60 = vadd.f32 %v1201_v57, %v1152_v56  ;;  %v1936_v38 = vld [vmem:[%s2498_s19 + $0x1f8] sm:$0xf0] }
  0xdf   : > { %v2644_v61 = vadd.f32 %v1296_v51, %v1248_v55  ;;  %1347 = vmatmul.bf16.gmra.mxu0 %v1799_v52  ;;  %v1875_v51 = vor.u32 %v2244_v40, %v1872_v42 }
  0xe0   : > { %1396 = vmatmul.bf16.gmra.mxu1 %v1803_v54 }
  0xe1   : > { %1445 = vmatmul.bf16.gmra.mxu2 %v1807_v58 }
  0xe2   : > { %1494 = vmatmul.bf16.gmra.mxu3 %v1811_v59 }
  0xe4   : > { %v1250_v62 = vpop.f32.mrf.mxu2  ;;  %v1154_v1 = vpop.f32.mrf.mxu0 }
  0xe5   : > { %v1299_v63 = vpop.f32.mrf.mxu3  ;;  %v1251_v0 = vadd.f32 %v1250_v62, %v1202_v60  ;;  %v1203_v2 = vpop.f32.mrf.mxu1 }
  0xe6   : > { %v1204_v3 = vadd.f32 %v1203_v2, %v1154_v1  ;;  %v2251_v1 = vld [vmem:[%s2498_s19 + $0x194] sm:$0xf] }
  0xe7   : > { %v2646_v4 = vadd.f32 %v1299_v63, %v1251_v0  ;;  %v1894_v63 = vld [vmem:[%s2498_s19 + $0x190] sm:$0xf]  ;;  %v1896_v2 = vld [vmem:[%s2498_s19 + $0x1b0] sm:$0xf0] }
  0xe8   : > { %v2255_v0 = vld [vmem:[%s2498_s19 + $0x1ac] sm:$0xf0]  ;;  %v1899_v12 = vor.u32 %v2251_v1, %v1896_v2 }
  0xe9   : > { %v1895_v11 = vor.u32 %v2255_v0, %v1894_v63 }
  0xec   : > { %v1252_v14 = vpop.f32.mrf.mxu2  ;;  %v1157_v20 = vpop.f32.mrf.mxu0 }
  0xed   : > { %v1301_v16 = vpop.f32.mrf.mxu3  ;;  %v1253_v19 = vadd.f32 %v1252_v14, %v1204_v3  ;;  %v1206_v21 = vpop.f32.mrf.mxu1  ;;  %v1902_v3 = vld [vmem:[%s2498_s19 + $0x198] sm:$0xf] }
  0xee   : > { %v1207_v24 = vadd.f32 %v1206_v21, %v1157_v20 }
  0xef   : > { %v2656_v25 = vadd.f32 %v1301_v16, %v1253_v19  ;;  %1352 = vmatmul.bf16.gmra.mxu0 %v1831_v17  ;;  %v1903_v17 = vor.u32 %v2256_v5, %v1902_v3 }
  0xf0   : > { %1401 = vmatmul.bf16.gmra.mxu1 %v1835_v18  ;;  %v1907_v18 = vor.u32 %v2252_v6, %v1904_v7 }
  0xf1   : > { %1450 = vmatmul.bf16.gmra.mxu2 %v1839_v22 }
  0xf2   : > { %1499 = vmatmul.bf16.gmra.mxu3 %v1843_v23 }
  0xf4   : > { %v1255_v26 = vpop.f32.mrf.mxu2  ;;  %v1159_v29 = vpop.f32.mrf.mxu0 }
  0xf5   : > { %v1304_v27 = vpop.f32.mrf.mxu3  ;;  %v1256_v28 = vadd.f32 %v1255_v26, %v1207_v24  ;;  %v1208_v30 = vpop.f32.mrf.mxu1 }
  0xf6   : > { %v1209_v31 = vadd.f32 %v1208_v30, %v1159_v29  ;;  %v1926_v29 = vld [vmem:[%s2498_s19 + $0x1d0] sm:$0xf] }
  0xf7   : > { %v2658_v32 = vadd.f32 %v1304_v27, %v1256_v28  ;;  %v2263_v30 = vld [vmem:[%s2498_s19 + $0x1ec] sm:$0xf0] }
  0xf8   : > { %v1927_v42 = vor.u32 %v2263_v30, %v1926_v29 }
  0xfc   : > { %v1257_v43 = vpop.f32.mrf.mxu2  ;;  %v1162_v48 = vpop.f32.mrf.mxu0 }
  0xfd   : > { %v1306_v44 = vpop.f32.mrf.mxu3  ;;  %v1258_v47 = vadd.f32 %v1257_v43, %v1209_v31  ;;  %v1211_v49 = vpop.f32.mrf.mxu1  ;;  %v2259_v31 = vld [vmem:[%s2498_s19 + $0x1d4] sm:$0xf] }
  0xfe   : > { %v1212_v52 = vadd.f32 %v1211_v49, %v1162_v48  ;;  %v1931_v43 = vor.u32 %v2259_v31, %v1928_v33  ;;  %v1939_v48 = vor.u32 %v2260_v37, %v1936_v38 }
  0xff   : > { %v2668_v54 = vadd.f32 %v1306_v44, %v1258_v47  ;;  %1357 = vmatmul.bf16.gmra.mxu0 %v1863_v45  ;;  %v1935_v47 = vor.u32 %v2264_v36, %v1934_v35 }
 0x100   : > { %1406 = vmatmul.bf16.gmra.mxu1 %v1867_v46 }
 0x101   : > { %1455 = vmatmul.bf16.gmra.mxu2 %v1871_v50 }
 0x102   : > { %1504 = vmatmul.bf16.gmra.mxu3 %v1875_v51 }
 0x104   : > { %v1260_v55 = vpop.f32.mrf.mxu2  ;;  %v1164_v58 = vpop.f32.mrf.mxu0 }
 0x105   : > { %v1309_v56 = vpop.f32.mrf.mxu3  ;;  %v1261_v57 = vadd.f32 %v1260_v55, %v1212_v52  ;;  %v1213_v59 = vpop.f32.mrf.mxu1 }
 0x106   : > { %v1214_v60 = vadd.f32 %v1213_v59, %v1164_v58 }
 0x107   : > { %v2670_v62 = vadd.f32 %v1309_v56, %v1261_v57 }
 0x10c   : > { %v1262_v9 = vpop.f32.mrf.mxu2  ;;  %v1167_v14 = vpop.f32.mrf.mxu0 }
 0x10d   : > { %v1311_v10 = vpop.f32.mrf.mxu3  ;;  %v1263_v13 = vadd.f32 %v1262_v9, %v1214_v60  ;;  %v1216_v16 = vpop.f32.mrf.mxu1 }
 0x10e   : > { %v1217_v19 = vadd.f32 %v1216_v16, %v1167_v14 }
 0x10f   : > { %v2680_v20 = vadd.f32 %v1311_v10, %v1263_v13  ;;  %1362 = vmatmul.bf16.gmra.mxu0 %v1895_v11 }
 0x110   : > { %1411 = vmatmul.bf16.gmra.mxu1 %v1899_v12 }
 0x111   : > { %1460 = vmatmul.bf16.gmra.mxu2 %v1903_v17 }
 0x112   : > { %1509 = vmatmul.bf16.gmra.mxu3 %v1907_v18 }
 0x114   : > { %v1265_v21 = vpop.f32.mrf.mxu2  ;;  %v1169_v24 = vpop.f32.mrf.mxu0 }
 0x115   : > { %v1314_v22 = vpop.f32.mrf.mxu3  ;;  %v1266_v23 = vadd.f32 %v1265_v21, %v1217_v19  ;;  %v1218_v26 = vpop.f32.mrf.mxu1 }
 0x116   : > { %v1219_v27 = vadd.f32 %v1218_v26, %v1169_v24 }
 0x117   : > { %v2682_v28 = vadd.f32 %v1314_v22, %v1266_v23 }
 0x11c   : > { %v1267_v39 = vpop.f32.mrf.mxu2  ;;  %v1172_v45 = vpop.f32.mrf.mxu0 }
 0x11d   : > { %v1316_v40 = vpop.f32.mrf.mxu3  ;;  %v1268_v44 = vadd.f32 %v1267_v39, %v1219_v27  ;;  %v1221_v46 = vpop.f32.mrf.mxu1 }
 0x11e   : > { %v1222_v49 = vadd.f32 %v1221_v46, %v1172_v45 }
 0x11f   : > { %v2692_v50 = vadd.f32 %v1316_v40, %v1268_v44  ;;  %1367 = vmatmul.bf16.gmra.mxu0 %v1927_v42 }
 0x120   : > { %1416 = vmatmul.bf16.gmra.mxu1 %v1931_v43 }
 0x121   : > { %1465 = vmatmul.bf16.gmra.mxu2 %v1935_v47 }
 0x122   : > { %1514 = vmatmul.bf16.gmra.mxu3 %v1939_v48 }
 0x124   : > { %v1270_v51 = vpop.f32.mrf.mxu2  ;;  %v1174_v56 = vpop.f32.mrf.mxu0 }
 0x125   : > { %v1319_v52 = vpop.f32.mrf.mxu3  ;;  %v1271_v55 = vadd.f32 %v1270_v51, %v1222_v49  ;;  %v1223_v57 = vpop.f32.mrf.mxu1 }
 0x126   : > { %v1224_v58 = vadd.f32 %v1223_v57, %v1174_v56 }
 0x127   : > { %v2694_v59 = vadd.f32 %v1319_v52, %v1271_v55 }
 0x12c   : > { %v1272_v60 = vpop.f32.mrf.mxu2  ;;  %v1333_v1 = vpop.f32.mrf.mxu0 }
 0x12d   : > { %v1321_v63 = vpop.f32.mrf.mxu3  ;;  %v1273_v0 = vadd.f32 %v1272_v60, %v1224_v58  ;;  %v1382_v2 = vpop.f32.mrf.mxu1  ;;  %v1334_v7 = vadd.f32 %v1333_v1, %v2610_v53 }
 0x12f   : > { %v2696_v3 = vadd.f32 %v1321_v63, %v1273_v0  ;;  %v1383_v12 = vadd.f32 %v1382_v2, %v1334_v7 }
 0x134   : > { %v1431_v5 = vpop.f32.mrf.mxu2  ;;  %v1335_v9 = vpop.f32.mrf.mxu0 }
 0x135   : > { %v1480_v6 = vpop.f32.mrf.mxu3  ;;  %v1384_v10 = vpop.f32.mrf.mxu1  ;;  %v1336_v11 = vadd.f32 %v1335_v9, %v2620_v8  ;;  %v1432_v13 = vadd.f32 %v1431_v5, %v1383_v12 }
 0x137   : > { %v1385_v14 = vadd.f32 %v1384_v10, %v1336_v11  ;;  %v1481_v22 = vadd.f32 %v1480_v6, %v1432_v13 }
 0x13c   : > { %v1433_v16 = vpop.f32.mrf.mxu2  ;;  %v1338_v19 = vpop.f32.mrf.mxu0 }
 0x13d   : > { %v1482_v17 = vpop.f32.mrf.mxu3  ;;  %v1434_v18 = vadd.f32 %v1433_v16, %v1385_v14  ;;  %v1387_v21 = vpop.f32.mrf.mxu1  ;;  %v1339_v26 = vadd.f32 %v1338_v19, %v2622_v15 }
 0x13f   : > { %v1483_v23 = vadd.f32 %v1482_v17, %v1434_v18  ;;  %v1388_v31 = vadd.f32 %v1387_v21, %v1339_v26 }
 0x141   : > { %v2332_v53 = vpack.c.bf16 %v1483_v23, %v1481_v22 }
 0x143   : > { %2333 = vst [vmem:[%s2704_s23] sm:$0xff] %v2332_v53  }
 0x144   : > { %v1436_v8 = vpop.f32.mrf.mxu2  ;;  %v1340_v27 = vpop.f32.mrf.mxu0 }
 0x145   : > { %v1485_v24 = vpop.f32.mrf.mxu3  ;;  %v1389_v29 = vpop.f32.mrf.mxu1  ;;  %v1341_v30 = vadd.f32 %v1340_v27, %v2632_v34  ;;  %v1437_v33 = vadd.f32 %v1436_v8, %v1388_v31 }
 0x147   : > { %v1390_v35 = vadd.f32 %v1389_v29, %v1341_v30  ;;  %v1486_v42 = vadd.f32 %v1485_v24, %v1437_v33 }
 0x14c   : > { %v1438_v36 = vpop.f32.mrf.mxu2  ;;  %v1343_v39 = vpop.f32.mrf.mxu0 }
 0x14d   : > { %v1487_v37 = vpop.f32.mrf.mxu3  ;;  %v1439_v38 = vadd.f32 %v1438_v36, %v1390_v35  ;;  %v1392_v40 = vpop.f32.mrf.mxu1  ;;  %v1344_v15 = vadd.f32 %v1343_v39, %v2634_v41 }
 0x14f   : > { %v1488_v43 = vadd.f32 %v1487_v37, %v1439_v38  ;;  %v1393_v49 = vadd.f32 %v1392_v40, %v1344_v15 }
 0x151   : > { %v2337_v44 = vpack.c.bf16 %v1488_v43, %v1486_v42 }
 0x153   : > { %2369 = vst [vmem:[%s2704_s23 + $0x8] sm:$0xff] %v2337_v44  }
 0x154   : > { %v1441_v45 = vpop.f32.mrf.mxu2  ;;  %v1345_v47 = vpop.f32.mrf.mxu0 }
 0x155   : > { %v1490_v46 = vpop.f32.mrf.mxu3  ;;  %v1394_v48 = vpop.f32.mrf.mxu1  ;;  %v1346_v34 = vadd.f32 %v1345_v47, %v2644_v61  ;;  %v1442_v51 = vadd.f32 %v1441_v45, %v1393_v49 }
 0x157   : > { %v1395_v52 = vadd.f32 %v1394_v48, %v1346_v34  ;;  %v1491_v63 = vadd.f32 %v1490_v46, %v1442_v51 }
 0x15c   : > { %v1443_v55 = vpop.f32.mrf.mxu2  ;;  %v1348_v58 = vpop.f32.mrf.mxu0 }
 0x15d   : > { %v1492_v56 = vpop.f32.mrf.mxu3  ;;  %v1444_v57 = vadd.f32 %v1443_v55, %v1395_v52  ;;  %v1397_v60 = vpop.f32.mrf.mxu1  ;;  %v1349_v41 = vadd.f32 %v1348_v58, %v2646_v4 }
 0x15f   : > { %v1493_v0 = vadd.f32 %v1492_v56, %v1444_v57  ;;  %v1398_v9 = vadd.f32 %v1397_v60, %v1349_v41 }
 0x161   : > { %v2342_v1 = vpack.c.bf16 %v1493_v0, %v1491_v63 }
 0x163   : > { %2370 = vst [vmem:[%s2704_s23 + $0x10] sm:$0xff] %v2342_v1  }
 0x164   : > { %v1446_v2 = vpop.f32.mrf.mxu2  ;;  %v1350_v6 = vpop.f32.mrf.mxu0 }
 0x165   : > { %v1495_v5 = vpop.f32.mrf.mxu3  ;;  %v1399_v7 = vpop.f32.mrf.mxu1  ;;  %v1351_v61 = vadd.f32 %v1350_v6, %v2656_v25  ;;  %v1447_v10 = vadd.f32 %v1446_v2, %v1398_v9 }
 0x167   : > { %v1400_v11 = vadd.f32 %v1399_v7, %v1351_v61  ;;  %v1496_v18 = vadd.f32 %v1495_v5, %v1447_v10 }
 0x16c   : > { %v1448_v12 = vpop.f32.mrf.mxu2  ;;  %v1353_v16 = vpop.f32.mrf.mxu0 }
 0x16d   : > { %v1497_v13 = vpop.f32.mrf.mxu3  ;;  %v1449_v14 = vadd.f32 %v1448_v12, %v1400_v11  ;;  %v1402_v17 = vpop.f32.mrf.mxu1  ;;  %v1354_v4 = vadd.f32 %v1353_v16, %v2658_v32 }
 0x16f   : > { %v1498_v19 = vadd.f32 %v1497_v13, %v1449_v14  ;;  %v1403_v24 = vadd.f32 %v1402_v17, %v1354_v4 }
 0x171   : > { %v2347_v21 = vpack.c.bf16 %v1498_v19, %v1496_v18 }
 0x173   : > { %2371 = vst [vmem:[%s2704_s23 + $0x18] sm:$0xff] %v2347_v21  }
 0x174   : > { %v1451_v22 = vpop.f32.mrf.mxu2  ;;  %v1355_v53 = vpop.f32.mrf.mxu0 }
 0x175   : > { %v1500_v23 = vpop.f32.mrf.mxu3  ;;  %v1404_v8 = vpop.f32.mrf.mxu1  ;;  %v1356_v25 = vadd.f32 %v1355_v53, %v2668_v54  ;;  %v1452_v26 = vadd.f32 %v1451_v22, %v1403_v24 }
 0x177   : > { %v1405_v27 = vadd.f32 %v1404_v8, %v1356_v25  ;;  %v1501_v36 = vadd.f32 %v1500_v23, %v1452_v26 }
 0x17c   : > { %v1453_v29 = vpop.f32.mrf.mxu2  ;;  %v1358_v33 = vpop.f32.mrf.mxu0 }
 0x17d   : > { %v1502_v30 = vpop.f32.mrf.mxu3  ;;  %v1454_v31 = vadd.f32 %v1453_v29, %v1405_v27  ;;  %v1407_v35 = vpop.f32.mrf.mxu1  ;;  %v1359_v32 = vadd.f32 %v1358_v33, %v2670_v62 }
 0x17f   : > { %v1503_v37 = vadd.f32 %v1502_v30, %v1454_v31  ;;  %v1408_v44 = vadd.f32 %v1407_v35, %v1359_v32 }
 0x181   : > { %v2352_v38 = vpack.c.bf16 %v1503_v37, %v1501_v36 }
 0x183   : > { %2372 = vst [vmem:[%s2704_s23 + $0x20] sm:$0xff] %v2352_v38  }
 0x184   : > { %v1456_v39 = vpop.f32.mrf.mxu2  ;;  %v1360_v42 = vpop.f32.mrf.mxu0 }
 0x185   : > { %v1505_v40 = vpop.f32.mrf.mxu3  ;;  %v1409_v43 = vpop.f32.mrf.mxu1  ;;  %v1361_v54 = vadd.f32 %v1360_v42, %v2680_v20  ;;  %v1457_v45 = vadd.f32 %v1456_v39, %v1408_v44 }
 0x187   : > { %v1410_v46 = vadd.f32 %v1409_v43, %v1361_v54  ;;  %v1506_v51 = vadd.f32 %v1505_v40, %v1457_v45 }
 0x18c   : > { %v1458_v15 = vpop.f32.mrf.mxu2  ;;  %v1363_v34 = vpop.f32.mrf.mxu0 }
 0x18d   : > { %v1507_v47 = vpop.f32.mrf.mxu3  ;;  %v1459_v48 = vadd.f32 %v1458_v15, %v1410_v46  ;;  %v1412_v49 = vpop.f32.mrf.mxu1  ;;  %v1364_v62 = vadd.f32 %v1363_v34, %v2682_v28 }
 0x18f   : > { %v1508_v52 = vadd.f32 %v1507_v47, %v1459_v48  ;;  %v1413_v63 = vadd.f32 %v1412_v49, %v1364_v62 }
 0x191   : > { %v2357_v55 = vpack.c.bf16 %v1508_v52, %v1506_v51 }
 0x193   : > { %2373 = vst [vmem:[%s2704_s23 + $0x28] sm:$0xff] %v2357_v55  }
 0x194   : > { %v1461_v56 = vpop.f32.mrf.mxu2  ;;  %v1365_v58 = vpop.f32.mrf.mxu0 }
 0x195   : > { %v1510_v57 = vpop.f32.mrf.mxu3  ;;  %v1414_v60 = vpop.f32.mrf.mxu1  ;;  %v1366_v20 = vadd.f32 %v1365_v58, %v2692_v50  ;;  %v1462_v0 = vadd.f32 %v1461_v56, %v1413_v63 }
 0x197   : > { %v1415_v1 = vadd.f32 %v1414_v60, %v1366_v20  ;;  %v1511_v7 = vadd.f32 %v1510_v57, %v1462_v0 }
 0x19c   : > { %v1463_v2 = vpop.f32.mrf.mxu2  ;;  %v1368_v6 = vpop.f32.mrf.mxu0 }
 0x19d   : > { %v1512_v5 = vpop.f32.mrf.mxu3  ;;  %v1464_v41 = vadd.f32 %v1463_v2, %v1415_v1  ;;  %v1417_v9 = vpop.f32.mrf.mxu1  ;;  %v1369_v28 = vadd.f32 %v1368_v6, %v2694_v59 }
 0x19f   : > { %v1513_v61 = vadd.f32 %v1512_v5, %v1464_v41  ;;  %v1418_v14 = vadd.f32 %v1417_v9, %v1369_v28 }
 0x1a1   : > { %v2362_v10 = vpack.c.bf16 %v1513_v61, %v1511_v7 }
 0x1a3   : > { %2374 = vst [vmem:[%s2704_s23 + $0x30] sm:$0xff] %v2362_v10  }
 0x1a4   : > { %v1466_v11 = vpop.f32.mrf.mxu2  ;;  %v1370_v13 = vpop.f32.mrf.mxu0 }
 0x1a5   : > { %v1515_v12 = vpop.f32.mrf.mxu3  ;;  %v1371_v50 = vadd.f32 %v1370_v13, %v2696_v3  ;;  %v1419_v16 = vpop.f32.mrf.mxu1  ;;  %v1467_v17 = vadd.f32 %v1466_v11, %v1418_v14 }
 0x1a7   : > { %v1420_v18 = vadd.f32 %v1419_v16, %v1371_v50  ;;  %v1516_v23 = vadd.f32 %v1515_v12, %v1467_v17 }
 0x1ac   : > { %v1468_v19 = vpop.f32.mrf.mxu2 }
 0x1ad   : > { %v1469_v21 = vadd.f32 %v1468_v19, %v1420_v18  ;;  %v1517_v22 = vpop.f32.mrf.mxu3 }
 0x1af   : > { %v1518_v4 = vadd.f32 %v1517_v22, %v1469_v21 }
 0x1b1   : > { %v2367_v53 = vpack.c.bf16 %v1518_v4, %v1516_v23 }
 0x1b3   : > { %2375 = vst [vmem:[%s2704_s23 + $0x38] sm:$0xff] %v2367_v53  }
 0x1b4 PF: > { %s12_s11 = sadd.s32 1, %s2422_s11   ;;  %s2740_s9 = smov %s2418_s10 }
 0x1b5   : > { %p9_p5 = scmp.ge.s32.totalorder %s12_s11, 6   ;;  %s2741_s10 = smov %s2743_s12 }
 0x1b7   :  { %11 = sbr.rel (!%p9_p5) target bundleno = 2 (0x2), region = 61 }

// kernel: generator_forward.20
= control target key start
LH: loop header
LB: loop body
LE: loop exit
PB: predicated region body
PF: predicated region fallthrough
CT: control target
= control target key end

     0   :  { %v520_v0 = vmov 0.0   ;;  %s650_s1 = inlined_call_operand.vmem [shape: f32[1,128], index: 1, kind: output, shape index: {0}]   ;;  %s651_s2 = inlined_call_operand.vmem [shape: f32[1,128], index: 2, kind: output, shape index: {1}]   ;;  %s652_s0 = inlined_call_operand.vmem [shape: bf16[512,128], index: 0, kind: input, shape index: {}]  }
   0x1   :  { %14 = vst [vmem:[%s650_s1] sm:$0x1] %v520_v0  ;;  %v361_v1 = vld [vmem:[%s652_s0] sm:$0xff]   ;;  %v488_v2 = vld [vmem:[%s652_s0 + $0x8] sm:$0xff]   ;;  %v489_v6 = vld [vmem:[%s652_s0 + $0x10] sm:$0xff]  }
   0x2   :  { %15 = vst [vmem:[%s651_s2] sm:$0x1] %v520_v0  ;;  %v362_v3 = vunpack.c.l.bf16 %v361_v1  ;;  %v363_v4 = vunpack.c.h.bf16 %v361_v1  ;;  %v366_v5 = vunpack.c.l.bf16 %v488_v2  ;;  %v367_v8 = vunpack.c.h.bf16 %v488_v2  ;;  %v490_v14 = vld [vmem:[%s652_s0 + $0x18] sm:$0xff]   ;;  %v491_v23 = vld [vmem:[%s652_s0 + $0x20] sm:$0xff]   ;;  %v492_v32 = vld [vmem:[%s652_s0 + $0x28] sm:$0xff]  }
   0x3   :  { %v370_v12 = vunpack.c.l.bf16 %v489_v6  ;;  %v371_v16 = vunpack.c.h.bf16 %v489_v6  ;;  %v374_v20 = vunpack.c.l.bf16 %v490_v14  ;;  %v375_v25 = vunpack.c.h.bf16 %v490_v14  ;;  %v493_v41 = vld [vmem:[%s652_s0 + $0x30] sm:$0xff]   ;;  %v494_v50 = vld [vmem:[%s652_s0 + $0x38] sm:$0xff]   ;;  %v495_v59 = vld [vmem:[%s652_s0 + $0x40] sm:$0xff]  }
   0x4   :  { %v145_v7 = vadd.f32 %v363_v4, %v362_v3  ;;  %v217_v9 = vmul.f32 %v362_v3, %v362_v3  ;;  %v218_v10 = vmul.f32 %v363_v4, %v363_v4  ;;  %v219_v13 = vmul.f32 %v366_v5, %v366_v5  ;;  %v496_v4 = vld [vmem:[%s652_s0 + $0x48] sm:$0xff]  }
   0x5   :  { %v220_v17 = vmul.f32 %v367_v8, %v367_v8  ;;  %v221_v21 = vmul.f32 %v370_v12, %v370_v12  ;;  %v222_v26 = vmul.f32 %v371_v16, %v371_v16  ;;  %v378_v29 = vunpack.c.l.bf16 %v491_v23 }
   0x6   :  { %v146_v11 = vadd.f32 %v366_v5, %v145_v7  ;;  %v281_v18 = vadd.f32 %v218_v10, %v217_v9  ;;  %v223_v30 = vmul.f32 %v374_v20, %v374_v20  ;;  %v379_v34 = vunpack.c.h.bf16 %v491_v23 }
   0x7   :  { %v224_v35 = vmul.f32 %v375_v25, %v375_v25  ;;  %v382_v38 = vunpack.c.l.bf16 %v492_v32  ;;  %v225_v39 = vmul.f32 %v378_v29, %v378_v29  ;;  %v383_v43 = vunpack.c.h.bf16 %v492_v32 }
   0x8   :  { %v147_v15 = vadd.f32 %v367_v8, %v146_v11  ;;  %v282_v22 = vadd.f32 %v281_v18, %v219_v13  ;;  %v226_v44 = vmul.f32 %v379_v34, %v379_v34  ;;  %v386_v47 = vunpack.c.l.bf16 %v493_v41  ;;  %v497_v13 = vld [vmem:[%s652_s0 + $0x50] sm:$0xff]  }
   0x9   :  { %v227_v48 = vmul.f32 %v382_v38, %v382_v38  ;;  %v387_v52 = vunpack.c.h.bf16 %v493_v41  ;;  %v228_v53 = vmul.f32 %v383_v43, %v383_v43  ;;  %v390_v56 = vunpack.c.l.bf16 %v494_v50 }
   0xa   :  { %v148_v19 = vadd.f32 %v370_v12, %v147_v15  ;;  %v283_v27 = vadd.f32 %v282_v22, %v220_v17  ;;  %v229_v57 = vmul.f32 %v386_v47, %v386_v47  ;;  %v391_v61 = vunpack.c.h.bf16 %v494_v50  ;;  %v498_v22 = vld [vmem:[%s652_s0 + $0x58] sm:$0xff]  }
   0xb   :  { %v230_v62 = vmul.f32 %v387_v52, %v387_v52  ;;  %v394_v1 = vunpack.c.l.bf16 %v495_v59  ;;  %v231_v2 = vmul.f32 %v390_v56, %v390_v56  ;;  %v395_v6 = vunpack.c.h.bf16 %v495_v59 }
   0xc   :  { %v149_v24 = vadd.f32 %v371_v16, %v148_v19  ;;  %v284_v31 = vadd.f32 %v283_v27, %v221_v21  ;;  %v232_v7 = vmul.f32 %v391_v61, %v391_v61  ;;  %v398_v10 = vunpack.c.l.bf16 %v496_v4 }
   0xd   :  { %v233_v11 = vmul.f32 %v394_v1, %v394_v1  ;;  %v399_v15 = vunpack.c.h.bf16 %v496_v4  ;;  %v234_v16 = vmul.f32 %v395_v6, %v395_v6  ;;  %v402_v19 = vunpack.c.l.bf16 %v497_v13 }
   0xe   :  { %v150_v28 = vadd.f32 %v374_v20, %v149_v24  ;;  %v285_v36 = vadd.f32 %v284_v31, %v222_v26  ;;  %v235_v20 = vmul.f32 %v398_v10, %v398_v10  ;;  %v403_v24 = vunpack.c.h.bf16 %v497_v13  ;;  %v499_v31 = vld [vmem:[%s652_s0 + $0x60] sm:$0xff]  }
  0x10   :  { %v151_v33 = vadd.f32 %v375_v25, %v150_v28  ;;  %v286_v40 = vadd.f32 %v285_v36, %v223_v30  ;;  %v236_v25 = vmul.f32 %v399_v15, %v399_v15  ;;  %v406_v28 = vunpack.c.l.bf16 %v498_v22 }
  0x12   :  { %v152_v37 = vadd.f32 %v378_v29, %v151_v33  ;;  %v287_v45 = vadd.f32 %v286_v40, %v224_v35  ;;  %v237_v29 = vmul.f32 %v402_v19, %v402_v19  ;;  %v407_v33 = vunpack.c.h.bf16 %v498_v22  ;;  %v500_v40 = vld [vmem:[%s652_s0 + $0x68] sm:$0xff]  }
  0x14   :  { %v153_v42 = vadd.f32 %v379_v34, %v152_v37  ;;  %v288_v49 = vadd.f32 %v287_v45, %v225_v39  ;;  %v238_v34 = vmul.f32 %v403_v24, %v403_v24  ;;  %v410_v37 = vunpack.c.l.bf16 %v499_v31 }
  0x16   :  { %v154_v46 = vadd.f32 %v382_v38, %v153_v42  ;;  %v289_v54 = vadd.f32 %v288_v49, %v226_v44  ;;  %v239_v38 = vmul.f32 %v406_v28, %v406_v28  ;;  %v411_v42 = vunpack.c.h.bf16 %v499_v31  ;;  %v501_v49 = vld [vmem:[%s652_s0 + $0x70] sm:$0xff]  }
  0x18   :  { %v155_v51 = vadd.f32 %v383_v43, %v154_v46  ;;  %v290_v58 = vadd.f32 %v289_v54, %v227_v48  ;;  %v240_v43 = vmul.f32 %v407_v33, %v407_v33  ;;  %v414_v46 = vunpack.c.l.bf16 %v500_v40 }
  0x1a   :  { %v156_v55 = vadd.f32 %v386_v47, %v155_v51  ;;  %v291_v63 = vadd.f32 %v290_v58, %v228_v53  ;;  %v241_v47 = vmul.f32 %v410_v37, %v410_v37  ;;  %v415_v51 = vunpack.c.h.bf16 %v500_v40  ;;  %v502_v58 = vld [vmem:[%s652_s0 + $0x78] sm:$0xff]  }
  0x1c   :  { %v157_v60 = vadd.f32 %v387_v52, %v156_v55  ;;  %v292_v3 = vadd.f32 %v291_v63, %v229_v57  ;;  %v242_v52 = vmul.f32 %v411_v42, %v411_v42  ;;  %v418_v55 = vunpack.c.l.bf16 %v501_v49 }
  0x1e   :  { %v158_v0 = vadd.f32 %v390_v56, %v157_v60  ;;  %v293_v8 = vadd.f32 %v292_v3, %v230_v62  ;;  %v243_v56 = vmul.f32 %v414_v46, %v414_v46  ;;  %v419_v60 = vunpack.c.h.bf16 %v501_v49  ;;  %v503_v3 = vld [vmem:[%s652_s0 + $0x80] sm:$0xff]  }
  0x20   :  { %v159_v5 = vadd.f32 %v391_v61, %v158_v0  ;;  %v294_v12 = vadd.f32 %v293_v8, %v231_v2  ;;  %v244_v61 = vmul.f32 %v415_v51, %v415_v51  ;;  %v422_v0 = vunpack.c.l.bf16 %v502_v58 }
  0x22   :  { %v160_v9 = vadd.f32 %v394_v1, %v159_v5  ;;  %v295_v17 = vadd.f32 %v294_v12, %v232_v7  ;;  %v245_v1 = vmul.f32 %v418_v55, %v418_v55  ;;  %v423_v5 = vunpack.c.h.bf16 %v502_v58  ;;  %v504_v12 = vld [vmem:[%s652_s0 + $0x88] sm:$0xff]  }
  0x24   :  { %v161_v14 = vadd.f32 %v395_v6, %v160_v9  ;;  %v296_v21 = vadd.f32 %v295_v17, %v233_v11  ;;  %v246_v6 = vmul.f32 %v419_v60, %v419_v60  ;;  %v426_v9 = vunpack.c.l.bf16 %v503_v3 }
  0x26   :  { %v162_v18 = vadd.f32 %v398_v10, %v161_v14  ;;  %v297_v26 = vadd.f32 %v296_v21, %v234_v16  ;;  %v247_v10 = vmul.f32 %v422_v0, %v422_v0  ;;  %v427_v14 = vunpack.c.h.bf16 %v503_v3  ;;  %v505_v21 = vld [vmem:[%s652_s0 + $0x90] sm:$0xff]  }
  0x28   :  { %v163_v23 = vadd.f32 %v399_v15, %v162_v18  ;;  %v298_v30 = vadd.f32 %v297_v26, %v235_v20  ;;  %v248_v15 = vmul.f32 %v423_v5, %v423_v5  ;;  %v430_v18 = vunpack.c.l.bf16 %v504_v12 }
  0x2a   :  { %v164_v27 = vadd.f32 %v402_v19, %v163_v23  ;;  %v299_v35 = vadd.f32 %v298_v30, %v236_v25  ;;  %v249_v19 = vmul.f32 %v426_v9, %v426_v9  ;;  %v431_v23 = vunpack.c.h.bf16 %v504_v12  ;;  %v506_v30 = vld [vmem:[%s652_s0 + $0x98] sm:$0xff]  }
  0x2c   :  { %v165_v32 = vadd.f32 %v403_v24, %v164_v27  ;;  %v300_v39 = vadd.f32 %v299_v35, %v237_v29  ;;  %v250_v24 = vmul.f32 %v427_v14, %v427_v14  ;;  %v434_v27 = vunpack.c.l.bf16 %v505_v21 }
  0x2e   :  { %v166_v36 = vadd.f32 %v406_v28, %v165_v32  ;;  %v301_v44 = vadd.f32 %v300_v39, %v238_v34  ;;  %v251_v28 = vmul.f32 %v430_v18, %v430_v18  ;;  %v435_v32 = vunpack.c.h.bf16 %v505_v21  ;;  %v507_v39 = vld [vmem:[%s652_s0 + $0xa0] sm:$0xff]  }
  0x30   :  { %v167_v41 = vadd.f32 %v407_v33, %v166_v36  ;;  %v302_v48 = vadd.f32 %v301_v44, %v239_v38  ;;  %v252_v33 = vmul.f32 %v431_v23, %v431_v23  ;;  %v438_v36 = vunpack.c.l.bf16 %v506_v30 }
  0x32   :  { %v168_v45 = vadd.f32 %v410_v37, %v167_v41  ;;  %v303_v53 = vadd.f32 %v302_v48, %v240_v43  ;;  %v253_v37 = vmul.f32 %v434_v27, %v434_v27  ;;  %v439_v41 = vunpack.c.h.bf16 %v506_v30  ;;  %v508_v48 = vld [vmem:[%s652_s0 + $0xa8] sm:$0xff]  }
  0x34   :  { %v169_v50 = vadd.f32 %v411_v42, %v168_v45  ;;  %v304_v57 = vadd.f32 %v303_v53, %v241_v47  ;;  %v254_v42 = vmul.f32 %v435_v32, %v435_v32  ;;  %v442_v45 = vunpack.c.l.bf16 %v507_v39 }
  0x36   :  { %v170_v54 = vadd.f32 %v414_v46, %v169_v50  ;;  %v305_v62 = vadd.f32 %v304_v57, %v242_v52  ;;  %v255_v46 = vmul.f32 %v438_v36, %v438_v36  ;;  %v443_v50 = vunpack.c.h.bf16 %v507_v39  ;;  %v509_v57 = vld [vmem:[%s652_s0 + $0xb0] sm:$0xff]  }
  0x38   :  { %v171_v59 = vadd.f32 %v415_v51, %v170_v54  ;;  %v306_v2 = vadd.f32 %v305_v62, %v243_v56  ;;  %v256_v51 = vmul.f32 %v439_v41, %v439_v41  ;;  %v446_v54 = vunpack.c.l.bf16 %v508_v48 }
  0x3a   :  { %v172_v63 = vadd.f32 %v418_v55, %v171_v59  ;;  %v307_v7 = vadd.f32 %v306_v2, %v244_v61  ;;  %v257_v55 = vmul.f32 %v442_v45, %v442_v45  ;;  %v447_v59 = vunpack.c.h.bf16 %v508_v48  ;;  %v510_v2 = vld [vmem:[%s652_s0 + $0xb8] sm:$0xff]  }
  0x3c   :  { %v173_v4 = vadd.f32 %v419_v60, %v172_v63  ;;  %v308_v11 = vadd.f32 %v307_v7, %v245_v1  ;;  %v258_v60 = vmul.f32 %v443_v50, %v443_v50  ;;  %v450_v63 = vunpack.c.l.bf16 %v509_v57 }
  0x3e   :  { %v174_v8 = vadd.f32 %v422_v0, %v173_v4  ;;  %v309_v16 = vadd.f32 %v308_v11, %v246_v6  ;;  %v259_v0 = vmul.f32 %v446_v54, %v446_v54  ;;  %v451_v4 = vunpack.c.h.bf16 %v509_v57  ;;  %v511_v11 = vld [vmem:[%s652_s0 + $0xc0] sm:$0xff]  }
  0x40   :  { %v175_v13 = vadd.f32 %v423_v5, %v174_v8  ;;  %v310_v20 = vadd.f32 %v309_v16, %v247_v10  ;;  %v260_v5 = vmul.f32 %v447_v59, %v447_v59  ;;  %v454_v8 = vunpack.c.l.bf16 %v510_v2 }
  0x42   :  { %v176_v17 = vadd.f32 %v426_v9, %v175_v13  ;;  %v311_v25 = vadd.f32 %v310_v20, %v248_v15  ;;  %v261_v9 = vmul.f32 %v450_v63, %v450_v63  ;;  %v455_v13 = vunpack.c.h.bf16 %v510_v2  ;;  %v512_v20 = vld [vmem:[%s652_s0 + $0xc8] sm:$0xff]  }
  0x44   :  { %v177_v22 = vadd.f32 %v427_v14, %v176_v17  ;;  %v312_v29 = vadd.f32 %v311_v25, %v249_v19  ;;  %v262_v14 = vmul.f32 %v451_v4, %v451_v4  ;;  %v458_v17 = vunpack.c.l.bf16 %v511_v11 }
  0x46   :  { %v178_v26 = vadd.f32 %v430_v18, %v177_v22  ;;  %v313_v34 = vadd.f32 %v312_v29, %v250_v24  ;;  %v263_v18 = vmul.f32 %v454_v8, %v454_v8  ;;  %v459_v22 = vunpack.c.h.bf16 %v511_v11  ;;  %v513_v29 = vld [vmem:[%s652_s0 + $0xd0] sm:$0xff]  }
  0x48   :  { %v179_v31 = vadd.f32 %v431_v23, %v178_v26  ;;  %v314_v38 = vadd.f32 %v313_v34, %v251_v28  ;;  %v264_v23 = vmul.f32 %v455_v13, %v455_v13  ;;  %v462_v26 = vunpack.c.l.bf16 %v512_v20 }
  0x4a   :  { %v180_v35 = vadd.f32 %v434_v27, %v179_v31  ;;  %v315_v43 = vadd.f32 %v314_v38, %v252_v33  ;;  %v265_v27 = vmul.f32 %v458_v17, %v458_v17  ;;  %v463_v31 = vunpack.c.h.bf16 %v512_v20  ;;  %v514_v38 = vld [vmem:[%s652_s0 + $0xd8] sm:$0xff]  }
  0x4c   :  { %v181_v40 = vadd.f32 %v435_v32, %v180_v35  ;;  %v316_v47 = vadd.f32 %v315_v43, %v253_v37  ;;  %v266_v32 = vmul.f32 %v459_v22, %v459_v22  ;;  %v466_v35 = vunpack.c.l.bf16 %v513_v29 }
  0x4e   :  { %v182_v44 = vadd.f32 %v438_v36, %v181_v40  ;;  %v317_v52 = vadd.f32 %v316_v47, %v254_v42  ;;  %v267_v36 = vmul.f32 %v462_v26, %v462_v26  ;;  %v467_v40 = vunpack.c.h.bf16 %v513_v29  ;;  %v515_v47 = vld [vmem:[%s652_s0 + $0xe0] sm:$0xff]  }
  0x50   :  { %v183_v49 = vadd.f32 %v439_v41, %v182_v44  ;;  %v318_v56 = vadd.f32 %v317_v52, %v255_v46  ;;  %v268_v41 = vmul.f32 %v463_v31, %v463_v31  ;;  %v470_v44 = vunpack.c.l.bf16 %v514_v38 }
  0x52   :  { %v184_v53 = vadd.f32 %v442_v45, %v183_v49  ;;  %v319_v61 = vadd.f32 %v318_v56, %v256_v51  ;;  %v269_v45 = vmul.f32 %v466_v35, %v466_v35  ;;  %v471_v49 = vunpack.c.h.bf16 %v514_v38  ;;  %v516_v56 = vld [vmem:[%s652_s0 + $0xe8] sm:$0xff]   ;;  %v144_v38 = vld [vmem:[%s650_s1] sm:$0x1] }
  0x54   :  { %v185_v58 = vadd.f32 %v443_v50, %v184_v53  ;;  %v320_v1 = vadd.f32 %v319_v61, %v257_v55  ;;  %v270_v50 = vmul.f32 %v467_v40, %v467_v40  ;;  %v474_v53 = vunpack.c.l.bf16 %v515_v47 }
  0x56   :  { %v186_v62 = vadd.f32 %v446_v54, %v185_v58  ;;  %v321_v6 = vadd.f32 %v320_v1, %v258_v60  ;;  %v271_v54 = vmul.f32 %v470_v44, %v470_v44  ;;  %v475_v58 = vunpack.c.h.bf16 %v515_v47  ;;  %v517_v1 = vld [vmem:[%s652_s0 + $0xf0] sm:$0xff]  }
  0x58   :  { %v187_v3 = vadd.f32 %v447_v59, %v186_v62  ;;  %v322_v10 = vadd.f32 %v321_v6, %v259_v0  ;;  %v272_v59 = vmul.f32 %v471_v49, %v471_v49  ;;  %v478_v62 = vunpack.c.l.bf16 %v516_v56 }
  0x5a   :  { %v188_v7 = vadd.f32 %v450_v63, %v187_v3  ;;  %v323_v15 = vadd.f32 %v322_v10, %v260_v5  ;;  %v273_v63 = vmul.f32 %v474_v53, %v474_v53  ;;  %v479_v3 = vunpack.c.h.bf16 %v516_v56  ;;  %v518_v10 = vld [vmem:[%s652_s0 + $0xf8] sm:$0xff]  }
  0x5b   :  { %v487_v20 = vunpack.c.h.bf16 %v518_v10 }
  0x5c   :  { %v189_v12 = vadd.f32 %v451_v4, %v188_v7  ;;  %v324_v19 = vadd.f32 %v323_v15, %v261_v9  ;;  %v274_v4 = vmul.f32 %v475_v58, %v475_v58  ;;  %v482_v7 = vunpack.c.l.bf16 %v517_v1 }
  0x5e   :  { %v190_v16 = vadd.f32 %v454_v8, %v189_v12  ;;  %v325_v24 = vadd.f32 %v324_v19, %v262_v14  ;;  %v275_v8 = vmul.f32 %v478_v62, %v478_v62  ;;  %v483_v12 = vunpack.c.h.bf16 %v517_v1 }
  0x60   :  { %v191_v21 = vadd.f32 %v455_v13, %v190_v16  ;;  %v326_v28 = vadd.f32 %v325_v24, %v263_v18  ;;  %v276_v13 = vmul.f32 %v479_v3, %v479_v3  ;;  %v486_v16 = vunpack.c.l.bf16 %v518_v10 }
  0x62   :  { %v192_v25 = vadd.f32 %v458_v17, %v191_v21  ;;  %v327_v33 = vadd.f32 %v326_v28, %v264_v23  ;;  %v277_v17 = vmul.f32 %v482_v7, %v482_v7  ;;  %v278_v21 = vmul.f32 %v483_v12, %v483_v12 }
  0x63   :  { %v279_v24 = vmul.f32 %v486_v16, %v486_v16 }
  0x64   :  { %v193_v30 = vadd.f32 %v459_v22, %v192_v25  ;;  %v328_v37 = vadd.f32 %v327_v33, %v265_v27  ;;  %v280_v27 = vmul.f32 %v487_v20, %v487_v20 }
  0x66   :  { %v194_v34 = vadd.f32 %v462_v26, %v193_v30  ;;  %v329_v42 = vadd.f32 %v328_v37, %v266_v32 }
  0x68   :  { %v195_v39 = vadd.f32 %v463_v31, %v194_v34  ;;  %v330_v46 = vadd.f32 %v329_v42, %v267_v36 }
  0x6a   :  { %v196_v43 = vadd.f32 %v466_v35, %v195_v39  ;;  %v331_v51 = vadd.f32 %v330_v46, %v268_v41 }
  0x6c   :  { %v197_v48 = vadd.f32 %v467_v40, %v196_v43  ;;  %v332_v55 = vadd.f32 %v331_v51, %v269_v45 }
  0x6e   :  { %v198_v52 = vadd.f32 %v470_v44, %v197_v48  ;;  %v333_v60 = vadd.f32 %v332_v55, %v270_v50  ;;  %v216_v44 = vld [vmem:[%s651_s2] sm:$0x1] }
  0x70   :  { %v199_v57 = vadd.f32 %v471_v49, %v198_v52  ;;  %v334_v0 = vadd.f32 %v333_v60, %v271_v54 }
  0x72   :  { %v200_v61 = vadd.f32 %v474_v53, %v199_v57  ;;  %v335_v5 = vadd.f32 %v334_v0, %v272_v59 }
  0x74   :  { %v201_v2 = vadd.f32 %v475_v58, %v200_v61  ;;  %v336_v9 = vadd.f32 %v335_v5, %v273_v63 }
  0x76   :  { %v202_v6 = vadd.f32 %v478_v62, %v201_v2  ;;  %v337_v14 = vadd.f32 %v336_v9, %v274_v4 }
  0x78   :  { %v203_v11 = vadd.f32 %v479_v3, %v202_v6  ;;  %v338_v18 = vadd.f32 %v337_v14, %v275_v8 }
  0x7a   :  { %v204_v15 = vadd.f32 %v482_v7, %v203_v11  ;;  %v339_v22 = vadd.f32 %v338_v18, %v276_v13 }
  0x7c   :  { %v205_v19 = vadd.f32 %v483_v12, %v204_v15  ;;  %v340_v25 = vadd.f32 %v339_v22, %v277_v17 }
  0x7e   :  { %v206_v23 = vadd.f32 %v486_v16, %v205_v19  ;;  %v341_v28 = vadd.f32 %v340_v25, %v278_v21 }
  0x80   :  { %v207_v26 = vadd.f32 %v487_v20, %v206_v23  ;;  %v342_v30 = vadd.f32 %v341_v28, %v279_v24 }
  0x82   :  { %v208_v29 = vrot.slane %v207_v26, 4  ;;  %v343_v32 = vadd.f32 %v342_v30, %v280_v27 }
  0x84   :  { %v209_v31 = vadd.f32 %v208_v29, %v207_v26  ;;  %v344_v34 = vrot.slane %v343_v32, 4 }
  0x86   :  { %v210_v33 = vrot.slane %v209_v31, 2  ;;  %v345_v36 = vadd.f32 %v344_v34, %v343_v32 }
  0x88   :  { %v211_v35 = vadd.f32 %v210_v33, %v209_v31  ;;  %v346_v39 = vrot.slane %v345_v36, 2 }
  0x8a   :  { %v212_v37 = vrot.slane %v211_v35, 1  ;;  %v347_v41 = vadd.f32 %v346_v39, %v345_v36 }
  0x8c   :  { %v213_v40 = vadd.f32 %v212_v37, %v211_v35  ;;  %v348_v43 = vrot.slane %v347_v41, 1 }
  0x8e   :  { %v214_v42 = vadd.f32 %v213_v40, %v144_v38  ;;  %v349_v45 = vadd.f32 %v348_v43, %v347_v41 }
  0x90   :  { %215 = vst [vmem:[%s650_s1] sm:$0x1] %v214_v42  ;;  %v350_v46 = vadd.f32 %v349_v45, %v216_v44 }
  0x92   :  { %351 = vst [vmem:[%s651_s2] sm:$0x1] %v350_v46 }

// kernel: generator_forward.21
= control target key start
LH: loop header
LB: loop body
LE: loop exit
PB: predicated region body
PF: predicated region fallthrough
CT: control target
= control target key end

     0   :  { %s1176_s0 = inlined_call_operand.vmem [shape: bf16[512,128], index: 0, kind: input, shape index: {}]   ;;  %s1177_s1 = inlined_call_operand.vmem [shape: f32[1,128], index: 1, kind: input, shape index: {}]   ;;  %s1178_s2 = inlined_call_operand.vmem [shape: f32[1,128], index: 2, kind: input, shape index: {}]   ;;  %s1179_s3 = inlined_call_operand.vmem [shape: bf16[512,128], index: 3, kind: output, shape index: {}]  }
   0x1   :  { %v475_v0 = vld [vmem:[%s1176_s0] sm:$0xff]   ;;  %v762_v5 = vld [vmem:[%s1176_s0 + $0x8] sm:$0xff]   ;;  %v763_v8 = vld [vmem:[%s1176_s0 + $0x10] sm:$0xff]  }
   0x2   :  { %v852_v1 = vld [vmem:[%s1177_s1] ss:$0 sm:$0xff]  ;;  %v476_v2 = vunpack.c.l.bf16 %v475_v0  ;;  %v477_v3 = vunpack.c.h.bf16 %v475_v0  ;;  %v480_v6 = vunpack.c.l.bf16 %v762_v5  ;;  %v481_v7 = vunpack.c.h.bf16 %v762_v5  ;;  %v764_v9 = vld [vmem:[%s1176_s0 + $0x18] sm:$0xff]   ;;  %v766_v35 = vld [vmem:[%s1176_s0 + $0x28] sm:$0xff]  }
   0x3   :  { %v857_v4 = vld [vmem:[%s1178_s2] ss:$0 sm:$0xff]  ;;  %v484_v12 = vunpack.c.l.bf16 %v763_v8  ;;  %v485_v13 = vunpack.c.h.bf16 %v763_v8  ;;  %v488_v16 = vunpack.c.l.bf16 %v764_v9  ;;  %v489_v17 = vunpack.c.h.bf16 %v764_v9  ;;  %v767_v40 = vld [vmem:[%s1176_s0 + $0x30] sm:$0xff]   ;;  %v768_v45 = vld [vmem:[%s1176_s0 + $0x38] sm:$0xff]  }
   0x4   :  { %v146_v10 = vmul.f32 %v852_v1, %v476_v2  ;;  %v147_v11 = vmul.f32 %v852_v1, %v477_v3  ;;  %v148_v14 = vmul.f32 %v852_v1, %v480_v6  ;;  %v149_v15 = vmul.f32 %v852_v1, %v481_v7  ;;  %v765_v26 = vld [vmem:[%s1176_s0 + $0x20] sm:$0xff]  }
   0x5   :  { %v150_v20 = vmul.f32 %v852_v1, %v484_v12  ;;  %v151_v21 = vmul.f32 %v852_v1, %v485_v13  ;;  %v152_v24 = vmul.f32 %v852_v1, %v488_v16  ;;  %v153_v25 = vmul.f32 %v852_v1, %v489_v17  ;;  %v769_v62 = vld [vmem:[%s1176_s0 + $0x40] sm:$0xff]   ;;  %v770_v13 = vld [vmem:[%s1176_s0 + $0x48] sm:$0xff]  }
   0x6   :  { %v214_v18 = vadd.f32 %v857_v4, %v146_v10  ;;  %v215_v19 = vadd.f32 %v857_v4, %v147_v11  ;;  %v216_v22 = vadd.f32 %v857_v4, %v148_v14  ;;  %v217_v23 = vadd.f32 %v857_v4, %v149_v15 }
   0x7   :  { %v218_v29 = vadd.f32 %v857_v4, %v150_v20  ;;  %v219_v30 = vadd.f32 %v857_v4, %v151_v21  ;;  %v220_v33 = vadd.f32 %v857_v4, %v152_v24  ;;  %v221_v34 = vadd.f32 %v857_v4, %v153_v25 }
   0x8   :  { %v278_v27 = vmax.f32 %v214_v18, 0.0  ;;  %v279_v28 = vmax.f32 %v215_v19, 0.0  ;;  %v280_v31 = vmax.f32 %v216_v22, 0.0  ;;  %v281_v32 = vmax.f32 %v217_v23, 0.0  ;;  %v771_v18 = vld [vmem:[%s1176_s0 + $0x50] sm:$0xff]   ;;  %v772_v23 = vld [vmem:[%s1176_s0 + $0x58] sm:$0xff]  }
   0x9   :  { %v282_v37 = vmax.f32 %v218_v29, 0.0  ;;  %v283_v38 = vmax.f32 %v219_v30, 0.0  ;;  %v492_v39 = vunpack.c.l.bf16 %v765_v26  ;;  %v284_v42 = vmax.f32 %v220_v33, 0.0 }
   0xa   :  { %v605_v36 = vpack.c.bf16 %v279_v28, %v278_v27  ;;  %v610_v41 = vpack.c.bf16 %v281_v32, %v280_v31  ;;  %v285_v43 = vmax.f32 %v221_v34, 0.0  ;;  %v493_v44 = vunpack.c.h.bf16 %v765_v26 }
   0xb   :  { %v615_v46 = vpack.c.bf16 %v283_v38, %v282_v37  ;;  %v154_v47 = vmul.f32 %v852_v1, %v492_v39  ;;  %v496_v48 = vunpack.c.l.bf16 %v766_v35  ;;  %v497_v49 = vunpack.c.h.bf16 %v766_v35 }
   0xc   :  { %606 = vst [vmem:[%s1179_s3] sm:$0xff] %v605_v36   ;;  %v620_v50 = vpack.c.bf16 %v285_v43, %v284_v42  ;;  %v155_v51 = vmul.f32 %v852_v1, %v493_v44  ;;  %v500_v52 = vunpack.c.l.bf16 %v767_v40  ;;  %v501_v53 = vunpack.c.h.bf16 %v767_v40  ;;  %v773_v36 = vld [vmem:[%s1176_s0 + $0x60] sm:$0xff]  }
   0xd   :  { %793 = vst [vmem:[%s1179_s3 + $0x8] sm:$0xff] %v610_v41   ;;  %v222_v54 = vadd.f32 %v857_v4, %v154_v47  ;;  %v156_v55 = vmul.f32 %v852_v1, %v496_v48  ;;  %v157_v56 = vmul.f32 %v852_v1, %v497_v49  ;;  %v504_v57 = vunpack.c.l.bf16 %v768_v45 }
   0xe   :  { %794 = vst [vmem:[%s1179_s3 + $0x10] sm:$0xff] %v615_v46   ;;  %v223_v58 = vadd.f32 %v857_v4, %v155_v51  ;;  %v158_v59 = vmul.f32 %v852_v1, %v500_v52  ;;  %v159_v60 = vmul.f32 %v852_v1, %v501_v53  ;;  %v505_v61 = vunpack.c.h.bf16 %v768_v45  ;;  %v774_v53 = vld [vmem:[%s1176_s0 + $0x68] sm:$0xff]  }
   0xf   :  { %795 = vst [vmem:[%s1179_s3 + $0x18] sm:$0xff] %v620_v50   ;;  %v286_v63 = vmax.f32 %v222_v54, 0.0  ;;  %v224_v0 = vadd.f32 %v857_v4, %v156_v55  ;;  %v225_v2 = vadd.f32 %v857_v4, %v157_v56  ;;  %v160_v3 = vmul.f32 %v852_v1, %v504_v57 }
  0x10   :  { %v287_v5 = vmax.f32 %v223_v58, 0.0  ;;  %v226_v6 = vadd.f32 %v857_v4, %v158_v59  ;;  %v227_v7 = vadd.f32 %v857_v4, %v159_v60  ;;  %v161_v8 = vmul.f32 %v852_v1, %v505_v61  ;;  %v775_v58 = vld [vmem:[%s1176_s0 + $0x70] sm:$0xff]  }
  0x11   :  { %v288_v9 = vmax.f32 %v224_v0, 0.0  ;;  %v289_v10 = vmax.f32 %v225_v2, 0.0  ;;  %v228_v11 = vadd.f32 %v857_v4, %v160_v3  ;;  %v508_v12 = vunpack.c.l.bf16 %v769_v62 }
  0x12   :  { %v625_v14 = vpack.c.bf16 %v287_v5, %v286_v63  ;;  %v290_v15 = vmax.f32 %v226_v6, 0.0  ;;  %v291_v16 = vmax.f32 %v227_v7, 0.0  ;;  %v229_v17 = vadd.f32 %v857_v4, %v161_v8  ;;  %v776_v63 = vld [vmem:[%s1176_s0 + $0x78] sm:$0xff]  }
  0x13   :  { %v630_v19 = vpack.c.bf16 %v289_v10, %v288_v9  ;;  %v292_v20 = vmax.f32 %v228_v11, 0.0  ;;  %v509_v21 = vunpack.c.h.bf16 %v769_v62  ;;  %v162_v22 = vmul.f32 %v852_v1, %v508_v12 }
  0x14   :  { %796 = vst [vmem:[%s1179_s3 + $0x20] sm:$0xff] %v625_v14   ;;  %v635_v24 = vpack.c.bf16 %v291_v16, %v290_v15  ;;  %v293_v25 = vmax.f32 %v229_v17, 0.0  ;;  %v512_v26 = vunpack.c.l.bf16 %v770_v13  ;;  %v513_v27 = vunpack.c.h.bf16 %v770_v13  ;;  %v777_v14 = vld [vmem:[%s1176_s0 + $0x80] sm:$0xff]  }
  0x15   :  { %797 = vst [vmem:[%s1179_s3 + $0x28] sm:$0xff] %v630_v19   ;;  %v163_v28 = vmul.f32 %v852_v1, %v509_v21  ;;  %v230_v29 = vadd.f32 %v857_v4, %v162_v22  ;;  %v516_v30 = vunpack.c.l.bf16 %v771_v18  ;;  %v517_v31 = vunpack.c.h.bf16 %v771_v18 }
  0x16   :  { %798 = vst [vmem:[%s1179_s3 + $0x30] sm:$0xff] %v635_v24   ;;  %v640_v32 = vpack.c.bf16 %v293_v25, %v292_v20  ;;  %v164_v33 = vmul.f32 %v852_v1, %v512_v26  ;;  %v165_v34 = vmul.f32 %v852_v1, %v513_v27  ;;  %v520_v35 = vunpack.c.l.bf16 %v772_v23  ;;  %v778_v27 = vld [vmem:[%s1176_s0 + $0x88] sm:$0xff]  }
  0x17   :  { %v231_v37 = vadd.f32 %v857_v4, %v163_v28  ;;  %v294_v38 = vmax.f32 %v230_v29, 0.0  ;;  %v166_v39 = vmul.f32 %v852_v1, %v516_v30  ;;  %v167_v40 = vmul.f32 %v852_v1, %v517_v31 }
  0x18   :  { %799 = vst [vmem:[%s1179_s3 + $0x38] sm:$0xff] %v640_v32   ;;  %v232_v41 = vadd.f32 %v857_v4, %v164_v33  ;;  %v233_v42 = vadd.f32 %v857_v4, %v165_v34  ;;  %v521_v43 = vunpack.c.h.bf16 %v772_v23  ;;  %v168_v44 = vmul.f32 %v852_v1, %v520_v35 }
  0x19   :  { %v295_v45 = vmax.f32 %v231_v37, 0.0  ;;  %v234_v46 = vadd.f32 %v857_v4, %v166_v39  ;;  %v235_v47 = vadd.f32 %v857_v4, %v167_v40  ;;  %v524_v48 = vunpack.c.l.bf16 %v773_v36 }
  0x1a   :  { %v296_v49 = vmax.f32 %v232_v41, 0.0  ;;  %v297_v50 = vmax.f32 %v233_v42, 0.0  ;;  %v169_v51 = vmul.f32 %v852_v1, %v521_v43  ;;  %v236_v52 = vadd.f32 %v857_v4, %v168_v44  ;;  %v780_v41 = vld [vmem:[%s1176_s0 + $0x98] sm:$0xff]  }
  0x1b   :  { %v645_v54 = vpack.c.bf16 %v295_v45, %v294_v38  ;;  %v298_v55 = vmax.f32 %v234_v46, 0.0  ;;  %v299_v56 = vmax.f32 %v235_v47, 0.0  ;;  %v525_v57 = vunpack.c.h.bf16 %v773_v36  ;;  %v779_v36 = vld [vmem:[%s1176_s0 + $0x90] sm:$0xff]  }
  0x1c   :  { %v650_v59 = vpack.c.bf16 %v297_v50, %v296_v49  ;;  %v237_v60 = vadd.f32 %v857_v4, %v169_v51  ;;  %v300_v61 = vmax.f32 %v236_v52, 0.0  ;;  %v170_v62 = vmul.f32 %v852_v1, %v524_v48 }
  0x1d   :  { %800 = vst [vmem:[%s1179_s3 + $0x40] sm:$0xff] %v645_v54   ;;  %v655_v0 = vpack.c.bf16 %v299_v56, %v298_v55  ;;  %v171_v2 = vmul.f32 %v852_v1, %v525_v57  ;;  %v528_v3 = vunpack.c.l.bf16 %v774_v53  ;;  %v529_v5 = vunpack.c.h.bf16 %v774_v53  ;;  %v781_v54 = vld [vmem:[%s1176_s0 + $0xa0] sm:$0xff]  }
  0x1e   :  { %801 = vst [vmem:[%s1179_s3 + $0x48] sm:$0xff] %v650_v59   ;;  %v301_v6 = vmax.f32 %v237_v60, 0.0  ;;  %v238_v7 = vadd.f32 %v857_v4, %v170_v62  ;;  %v532_v8 = vunpack.c.l.bf16 %v775_v58  ;;  %v533_v9 = vunpack.c.h.bf16 %v775_v58 }
  0x1f   :  { %802 = vst [vmem:[%s1179_s3 + $0x50] sm:$0xff] %v655_v0   ;;  %v239_v10 = vadd.f32 %v857_v4, %v171_v2  ;;  %v172_v11 = vmul.f32 %v852_v1, %v528_v3  ;;  %v173_v12 = vmul.f32 %v852_v1, %v529_v5  ;;  %v536_v13 = vunpack.c.l.bf16 %v776_v63  ;;  %v782_v5 = vld [vmem:[%s1176_s0 + $0xa8] sm:$0xff]  }
  0x20   :  { %v660_v15 = vpack.c.bf16 %v301_v6, %v300_v61  ;;  %v302_v16 = vmax.f32 %v238_v7, 0.0  ;;  %v174_v17 = vmul.f32 %v852_v1, %v532_v8  ;;  %v175_v18 = vmul.f32 %v852_v1, %v533_v9 }
  0x21   :  { %v303_v19 = vmax.f32 %v239_v10, 0.0  ;;  %v240_v20 = vadd.f32 %v857_v4, %v172_v11  ;;  %v241_v21 = vadd.f32 %v857_v4, %v173_v12  ;;  %v537_v22 = vunpack.c.h.bf16 %v776_v63 }
  0x22   :  { %803 = vst [vmem:[%s1179_s3 + $0x58] sm:$0xff] %v660_v15   ;;  %v242_v23 = vadd.f32 %v857_v4, %v174_v17  ;;  %v243_v24 = vadd.f32 %v857_v4, %v175_v18  ;;  %v176_v25 = vmul.f32 %v852_v1, %v536_v13  ;;  %v540_v26 = vunpack.c.l.bf16 %v777_v14 }
  0x23   :  { %v665_v28 = vpack.c.bf16 %v303_v19, %v302_v16  ;;  %v304_v29 = vmax.f32 %v240_v20, 0.0  ;;  %v305_v30 = vmax.f32 %v241_v21, 0.0  ;;  %v177_v31 = vmul.f32 %v852_v1, %v537_v22 }
  0x24   :  { %v306_v32 = vmax.f32 %v242_v23, 0.0  ;;  %v307_v33 = vmax.f32 %v243_v24, 0.0  ;;  %v244_v34 = vadd.f32 %v857_v4, %v176_v25  ;;  %v541_v35 = vunpack.c.h.bf16 %v777_v14  ;;  %v783_v14 = vld [vmem:[%s1176_s0 + $0xb0] sm:$0xff]   ;;  %v784_v23 = vld [vmem:[%s1176_s0 + $0xb8] sm:$0xff]  }
  0x25   :  { %804 = vst [vmem:[%s1179_s3 + $0x60] sm:$0xff] %v665_v28   ;;  %v670_v37 = vpack.c.bf16 %v305_v30, %v304_v29  ;;  %v245_v38 = vadd.f32 %v857_v4, %v177_v31  ;;  %v178_v39 = vmul.f32 %v852_v1, %v540_v26  ;;  %v544_v40 = vunpack.c.l.bf16 %v778_v27 }
  0x26   :  { %v675_v42 = vpack.c.bf16 %v307_v33, %v306_v32  ;;  %v308_v43 = vmax.f32 %v244_v34, 0.0  ;;  %v179_v44 = vmul.f32 %v852_v1, %v541_v35  ;;  %v545_v45 = vunpack.c.h.bf16 %v778_v27  ;;  %v785_v32 = vld [vmem:[%s1176_s0 + $0xc0] sm:$0xff]  }
  0x27   :  { %805 = vst [vmem:[%s1179_s3 + $0x68] sm:$0xff] %v670_v37   ;;  %v309_v46 = vmax.f32 %v245_v38, 0.0  ;;  %v246_v47 = vadd.f32 %v857_v4, %v178_v39  ;;  %v180_v48 = vmul.f32 %v852_v1, %v544_v40  ;;  %v548_v49 = vunpack.c.l.bf16 %v779_v36 }
  0x28   :  { %806 = vst [vmem:[%s1179_s3 + $0x70] sm:$0xff] %v675_v42   ;;  %v247_v50 = vadd.f32 %v857_v4, %v179_v44  ;;  %v181_v51 = vmul.f32 %v852_v1, %v545_v45  ;;  %v549_v52 = vunpack.c.h.bf16 %v779_v36  ;;  %v552_v53 = vunpack.c.l.bf16 %v780_v41  ;;  %v786_v45 = vld [vmem:[%s1176_s0 + $0xc8] sm:$0xff]  }
  0x29   :  { %v680_v55 = vpack.c.bf16 %v309_v46, %v308_v43  ;;  %v310_v56 = vmax.f32 %v246_v47, 0.0  ;;  %v248_v57 = vadd.f32 %v857_v4, %v180_v48  ;;  %v182_v58 = vmul.f32 %v852_v1, %v548_v49 }
  0x2a   :  { %v311_v59 = vmax.f32 %v247_v50, 0.0  ;;  %v249_v60 = vadd.f32 %v857_v4, %v181_v51  ;;  %v183_v61 = vmul.f32 %v852_v1, %v549_v52  ;;  %v553_v62 = vunpack.c.h.bf16 %v780_v41 }
  0x2b   :  { %807 = vst [vmem:[%s1179_s3 + $0x78] sm:$0xff] %v680_v55   ;;  %v312_v63 = vmax.f32 %v248_v57, 0.0  ;;  %v250_v0 = vadd.f32 %v857_v4, %v182_v58  ;;  %v184_v2 = vmul.f32 %v852_v1, %v552_v53  ;;  %v556_v3 = vunpack.c.l.bf16 %v781_v54 }
  0x2c   :  { %v685_v6 = vpack.c.bf16 %v311_v59, %v310_v56  ;;  %v313_v7 = vmax.f32 %v249_v60, 0.0  ;;  %v251_v8 = vadd.f32 %v857_v4, %v183_v61  ;;  %v185_v9 = vmul.f32 %v852_v1, %v553_v62 }
  0x2d   :  { %v314_v10 = vmax.f32 %v250_v0, 0.0  ;;  %v252_v11 = vadd.f32 %v857_v4, %v184_v2  ;;  %v557_v12 = vunpack.c.h.bf16 %v781_v54  ;;  %v186_v13 = vmul.f32 %v852_v1, %v556_v3  ;;  %v787_v54 = vld [vmem:[%s1176_s0 + $0xd0] sm:$0xff]  }
  0x2e   :  { %808 = vst [vmem:[%s1179_s3 + $0x80] sm:$0xff] %v685_v6   ;;  %v690_v15 = vpack.c.bf16 %v313_v7, %v312_v63  ;;  %v315_v16 = vmax.f32 %v251_v8, 0.0  ;;  %v253_v17 = vadd.f32 %v857_v4, %v185_v9  ;;  %v560_v18 = vunpack.c.l.bf16 %v782_v5  ;;  %v788_v63 = vld [vmem:[%s1176_s0 + $0xd8] sm:$0xff]  }
  0x2f   :  { %v316_v19 = vmax.f32 %v252_v11, 0.0  ;;  %v187_v20 = vmul.f32 %v852_v1, %v557_v12  ;;  %v254_v21 = vadd.f32 %v857_v4, %v186_v13  ;;  %v561_v22 = vunpack.c.h.bf16 %v782_v5 }
  0x30   :  { %809 = vst [vmem:[%s1179_s3 + $0x88] sm:$0xff] %v690_v15   ;;  %v695_v24 = vpack.c.bf16 %v315_v16, %v314_v10  ;;  %v317_v25 = vmax.f32 %v253_v17, 0.0  ;;  %v188_v26 = vmul.f32 %v852_v1, %v560_v18  ;;  %v564_v27 = vunpack.c.l.bf16 %v783_v14  ;;  %v789_v10 = vld [vmem:[%s1176_s0 + $0xe0] sm:$0xff]  }
  0x31   :  { %v255_v28 = vadd.f32 %v857_v4, %v187_v20  ;;  %v318_v29 = vmax.f32 %v254_v21, 0.0  ;;  %v189_v30 = vmul.f32 %v852_v1, %v561_v22  ;;  %v565_v31 = vunpack.c.h.bf16 %v783_v14 }
  0x32   :  { %810 = vst [vmem:[%s1179_s3 + $0x90] sm:$0xff] %v695_v24   ;;  %v700_v33 = vpack.c.bf16 %v317_v25, %v316_v19  ;;  %v256_v34 = vadd.f32 %v857_v4, %v188_v26  ;;  %v190_v35 = vmul.f32 %v852_v1, %v564_v27  ;;  %v568_v36 = vunpack.c.l.bf16 %v784_v23 }
  0x33   :  { %v319_v37 = vmax.f32 %v255_v28, 0.0  ;;  %v257_v38 = vadd.f32 %v857_v4, %v189_v30  ;;  %v191_v39 = vmul.f32 %v852_v1, %v565_v31  ;;  %v569_v40 = vunpack.c.h.bf16 %v784_v23  ;;  %v790_v23 = vld [vmem:[%s1176_s0 + $0xe8] sm:$0xff]  }
  0x34   :  { %811 = vst [vmem:[%s1179_s3 + $0x98] sm:$0xff] %v700_v33   ;;  %v320_v41 = vmax.f32 %v256_v34, 0.0  ;;  %v258_v42 = vadd.f32 %v857_v4, %v190_v35  ;;  %v192_v43 = vmul.f32 %v852_v1, %v568_v36  ;;  %v572_v44 = vunpack.c.l.bf16 %v785_v32 }
  0x35   :  { %v705_v46 = vpack.c.bf16 %v319_v37, %v318_v29  ;;  %v321_v47 = vmax.f32 %v257_v38, 0.0  ;;  %v259_v48 = vadd.f32 %v857_v4, %v191_v39  ;;  %v193_v49 = vmul.f32 %v852_v1, %v569_v40 }
  0x36   :  { %v322_v50 = vmax.f32 %v258_v42, 0.0  ;;  %v260_v51 = vadd.f32 %v857_v4, %v192_v43  ;;  %v573_v52 = vunpack.c.h.bf16 %v785_v32  ;;  %v194_v53 = vmul.f32 %v852_v1, %v572_v44  ;;  %v791_v32 = vld [vmem:[%s1176_s0 + $0xf0] sm:$0xff]  }
  0x37   :  { %812 = vst [vmem:[%s1179_s3 + $0xa0] sm:$0xff] %v705_v46   ;;  %v710_v55 = vpack.c.bf16 %v321_v47, %v320_v41  ;;  %v323_v56 = vmax.f32 %v259_v48, 0.0  ;;  %v261_v57 = vadd.f32 %v857_v4, %v193_v49  ;;  %v576_v58 = vunpack.c.l.bf16 %v786_v45  ;;  %v792_v41 = vld [vmem:[%s1176_s0 + $0xf8] sm:$0xff]  }
  0x38   :  { %v324_v59 = vmax.f32 %v260_v51, 0.0  ;;  %v195_v60 = vmul.f32 %v852_v1, %v573_v52  ;;  %v262_v61 = vadd.f32 %v857_v4, %v194_v53  ;;  %v577_v62 = vunpack.c.h.bf16 %v786_v45 }
  0x39   :  { %813 = vst [vmem:[%s1179_s3 + $0xa8] sm:$0xff] %v710_v55   ;;  %v715_v0 = vpack.c.bf16 %v323_v56, %v322_v50  ;;  %v325_v2 = vmax.f32 %v261_v57, 0.0  ;;  %v196_v3 = vmul.f32 %v852_v1, %v576_v58  ;;  %v580_v5 = vunpack.c.l.bf16 %v787_v54 }
  0x3a   :  { %v263_v6 = vadd.f32 %v857_v4, %v195_v60  ;;  %v326_v7 = vmax.f32 %v262_v61, 0.0  ;;  %v197_v8 = vmul.f32 %v852_v1, %v577_v62  ;;  %v581_v9 = vunpack.c.h.bf16 %v787_v54 }
  0x3b   :  { %814 = vst [vmem:[%s1179_s3 + $0xb0] sm:$0xff] %v715_v0   ;;  %v720_v11 = vpack.c.bf16 %v325_v2, %v324_v59  ;;  %v264_v12 = vadd.f32 %v857_v4, %v196_v3  ;;  %v198_v13 = vmul.f32 %v852_v1, %v580_v5  ;;  %v584_v14 = vunpack.c.l.bf16 %v788_v63 }
  0x3c   :  { %v327_v15 = vmax.f32 %v263_v6, 0.0  ;;  %v265_v16 = vadd.f32 %v857_v4, %v197_v8  ;;  %v199_v17 = vmul.f32 %v852_v1, %v581_v9  ;;  %v585_v18 = vunpack.c.h.bf16 %v788_v63 }
  0x3d   :  { %815 = vst [vmem:[%s1179_s3 + $0xb8] sm:$0xff] %v720_v11   ;;  %v328_v19 = vmax.f32 %v264_v12, 0.0  ;;  %v266_v20 = vadd.f32 %v857_v4, %v198_v13  ;;  %v200_v21 = vmul.f32 %v852_v1, %v584_v14  ;;  %v588_v22 = vunpack.c.l.bf16 %v789_v10 }
  0x3e   :  { %v725_v24 = vpack.c.bf16 %v327_v15, %v326_v7  ;;  %v329_v25 = vmax.f32 %v265_v16, 0.0  ;;  %v267_v26 = vadd.f32 %v857_v4, %v199_v17  ;;  %v201_v27 = vmul.f32 %v852_v1, %v585_v18 }
  0x3f   :  { %v330_v28 = vmax.f32 %v266_v20, 0.0  ;;  %v268_v29 = vadd.f32 %v857_v4, %v200_v21  ;;  %v589_v30 = vunpack.c.h.bf16 %v789_v10  ;;  %v202_v31 = vmul.f32 %v852_v1, %v588_v22 }
  0x40   :  { %816 = vst [vmem:[%s1179_s3 + $0xc0] sm:$0xff] %v725_v24   ;;  %v730_v33 = vpack.c.bf16 %v329_v25, %v328_v19  ;;  %v331_v34 = vmax.f32 %v267_v26, 0.0  ;;  %v269_v35 = vadd.f32 %v857_v4, %v201_v27  ;;  %v592_v36 = vunpack.c.l.bf16 %v790_v23 }
  0x41   :  { %v332_v37 = vmax.f32 %v268_v29, 0.0  ;;  %v203_v38 = vmul.f32 %v852_v1, %v589_v30  ;;  %v270_v39 = vadd.f32 %v857_v4, %v202_v31  ;;  %v593_v40 = vunpack.c.h.bf16 %v790_v23 }
  0x42   :  { %817 = vst [vmem:[%s1179_s3 + $0xc8] sm:$0xff] %v730_v33   ;;  %v735_v42 = vpack.c.bf16 %v331_v34, %v330_v28  ;;  %v333_v43 = vmax.f32 %v269_v35, 0.0  ;;  %v204_v44 = vmul.f32 %v852_v1, %v592_v36  ;;  %v596_v45 = vunpack.c.l.bf16 %v791_v32 }
  0x43   :  { %v271_v46 = vadd.f32 %v857_v4, %v203_v38  ;;  %v334_v47 = vmax.f32 %v270_v39, 0.0  ;;  %v205_v48 = vmul.f32 %v852_v1, %v593_v40  ;;  %v597_v49 = vunpack.c.h.bf16 %v791_v32 }
  0x44   :  { %818 = vst [vmem:[%s1179_s3 + $0xd0] sm:$0xff] %v735_v42   ;;  %v740_v50 = vpack.c.bf16 %v333_v43, %v332_v37  ;;  %v272_v51 = vadd.f32 %v857_v4, %v204_v44  ;;  %v206_v52 = vmul.f32 %v852_v1, %v596_v45  ;;  %v600_v53 = vunpack.c.l.bf16 %v792_v41 }
  0x45   :  { %v335_v54 = vmax.f32 %v271_v46, 0.0  ;;  %v273_v55 = vadd.f32 %v857_v4, %v205_v48  ;;  %v207_v56 = vmul.f32 %v852_v1, %v597_v49  ;;  %v601_v57 = vunpack.c.h.bf16 %v792_v41 }
  0x46   :  { %819 = vst [vmem:[%s1179_s3 + $0xd8] sm:$0xff] %v740_v50   ;;  %v336_v58 = vmax.f32 %v272_v51, 0.0  ;;  %v274_v59 = vadd.f32 %v857_v4, %v206_v52  ;;  %v208_v60 = vmul.f32 %v852_v1, %v600_v53 }
  0x47   :  { %v745_v61 = vpack.c.bf16 %v335_v54, %v334_v47  ;;  %v337_v62 = vmax.f32 %v273_v55, 0.0  ;;  %v275_v63 = vadd.f32 %v857_v4, %v207_v56  ;;  %v209_v0 = vmul.f32 %v852_v1, %v601_v57 }
  0x48   :  { %v338_v2 = vmax.f32 %v274_v59, 0.0  ;;  %v276_v3 = vadd.f32 %v857_v4, %v208_v60 }
  0x49   :  { %820 = vst [vmem:[%s1179_s3 + $0xe0] sm:$0xff] %v745_v61   ;;  %v750_v5 = vpack.c.bf16 %v337_v62, %v336_v58  ;;  %v339_v6 = vmax.f32 %v275_v63, 0.0  ;;  %v277_v7 = vadd.f32 %v857_v4, %v209_v0 }
  0x4a   :  { %v340_v8 = vmax.f32 %v276_v3, 0.0 }
  0x4b   :  { %821 = vst [vmem:[%s1179_s3 + $0xe8] sm:$0xff] %v750_v5   ;;  %v755_v9 = vpack.c.bf16 %v339_v6, %v338_v2  ;;  %v341_v10 = vmax.f32 %v277_v7, 0.0 }
  0x4d   :  { %822 = vst [vmem:[%s1179_s3 + $0xf0] sm:$0xff] %v755_v9   ;;  %v760_v1 = vpack.c.bf16 %v341_v10, %v340_v8 }
  0x4f   :  { %823 = vst [vmem:[%s1179_s3 + $0xf8] sm:$0xff] %v760_v1  }

// kernel: generator_forward.22
= control target key start
LH: loop header
LB: loop body
LE: loop exit
PB: predicated region body
PF: predicated region fallthrough
CT: control target
= control target key end

     0   :  { %s2009_s9 = smov 0   ;;  %s2011_s10 = smov 0   ;;  %s2311_s0 = inlined_call_operand.vmem [shape: bf16[4,512,512], index: 0, kind: input, shape index: {}]   ;;  %s2312_s1 = inlined_call_operand.vmem [shape: bf16[4,512,64], index: 1, kind: input, shape index: {}]   ;;  %s2313_s2 = inlined_call_operand.vmem [shape: bf16[4,512,64], index: 2, kind: output, shape index: {}]  }
   0x1   :  { %s2013_s11 = smov 0   ;;  %s2015_s12 = smov 0  }
   0x2   :  { %s2017_s13 = smov 0  }
   0x3 LB: > { %s27_s14 = sadd.s32 1, %s1984_s11  ;;  %s31_s15 = sadd.s32 1, %s1988_s12  ;;  %s1992_s13 = sphi %s2017_s13, %s12_s13   ;;  %s1988_s12 = sphi %s2015_s12, %s2317_s12   ;;  %s1984_s11 = sphi %s2013_s11, %s2316_s11   ;;  %s1980_s10 = sphi %s2011_s10, %s2315_s10   ;;  %s1976_s9 = sphi %s2009_s9, %s2314_s9  }
   0x4   : > { %p29_p0 = scmp.ge.s32.totalorder %s27_s14, 2  ;;  %p1421_p1 = scmp.ge.s32.totalorder %s1992_s13, 1 }
   0x5   : > { %p158_p2 = scmp.lt.s32.totalorder %s1992_s13, 9 }
   0x6   : > { %s2319_s14 = smov (%p29_p0, %s27_s14), 0  ;;  %s2321_s15 = smov (!%p29_p0, %s31_s15), %s1988_s12 }
   0x7   : > { %p159_p3 = pnand %p1421_p1, %p158_p2  ;;  %p33_p4 = scmp.ge.s32.totalorder %s2321_s15, 4 }
   0x8   : > { %p201_p5 = scmp.lt.s32.totalorder (!%p159_p3), %s1980_s10, 3  ;;  %s1422_s20 = sshll.u32 (!%p159_p3), %s1976_s9, 5 }
   0x9   : > { %s2323_s15 = smov (%p33_p4, %s2321_s15), 0  ;;  %162 = sbr.rel (%p159_p3) target bundleno = 438 (0x1b6), region = 28 }
   0xa   : > { %p203_p6 = scmp.lt.s32.totalorder (!%p159_p3), %s1422_s20, 63 }
   0xe   : > { %s2325_s10 = smov (!%p201_p5, %s1980_s10), 3  ;;  %s2327_s20 = smov (!%p203_p6, %s1422_s20), 63  ;;  %vm1260_vm0 = vcmask 519168  }
   0xf   : > { %s1424_s16 = sshll.u32 %s2325_s10, 8  ;;  %s1423_s21 = sshll.u32 %s2327_s20, 2 }
  0x10   : > { %s2049_s19 = scalar_lea.vmem %s2312_s1, %s1424_s16  ;;  %s207_s22 = sadd.s32 %s1424_s16, %s1423_s21 }
  0x11   : > { %v1889_v0 = vld [vmem:[%s2049_s19 + $0x38] sm:$0xff]  ;;  %v1888_v4 = vld [vmem:[%s2049_s19 + $0x30] sm:$0xff]  ;;  %v1887_v8 = vld [vmem:[%s2049_s19 + $0x28] sm:$0xff]  ;;  %s1425_s23 = sshll.u32 %s207_s22, 2  ;;  %s1429_s27 = sshll.u32 %s2325_s10, 6 }
  0x12   : > { %v1897_v1 = vld [vmem:[%s2049_s19 + $0x78] sm:$0xff]  ;;  %872 = vmatpush.bf16.msra.mxu0 %v1889_v0  ;;  %v1896_v5 = vld [vmem:[%s2049_s19 + $0x70] sm:$0xff]  ;;  %v1895_v9 = vld [vmem:[%s2049_s19 + $0x68] sm:$0xff]  ;;  %s2084_s26 = scalar_lea.vmem %s2311_s0, %s1425_s23  ;;  %s2104_s28 = sadd.s32 %s1429_s27, %s2327_s20 }
  0x13   : > { %v1905_v2 = vld [vmem:[%s2049_s19 + $0xb8] sm:$0xff]  ;;  %961 = vmatpush.bf16.msra.mxu1 %v1897_v1  ;;  %v1904_v6 = vld [vmem:[%s2049_s19 + $0xb0] sm:$0xff]  ;;  %v1903_v10 = vld [vmem:[%s2049_s19 + $0xa8] sm:$0xff]  ;;  %s1430_s29 = sshll.u32 %s2104_s28, 2 }
  0x14   : > { %v1913_v3 = vld [vmem:[%s2049_s19 + $0xf8] sm:$0xff]  ;;  %1050 = vmatpush.bf16.msra.mxu2 %v1905_v2  ;;  %v1912_v7 = vld [vmem:[%s2049_s19 + $0xf0] sm:$0xff]  ;;  %v1911_v11 = vld [vmem:[%s2049_s19 + $0xe8] sm:$0xff]  ;;  %s2174_s4 = scalar_lea.vmem %s2313_s2, %s1430_s29 }
  0x15   : > { %1139 = vmatpush.bf16.msra.mxu3 %v1913_v3  ;;  %v1886_v12 = vld [vmem:[%s2049_s19 + $0x20] sm:$0xff]  ;;  %v1885_v16 = vld [vmem:[%s2049_s19 + $0x18] sm:$0xff]  ;;  %v1884_v20 = vld [vmem:[%s2049_s19 + $0x10] sm:$0xff] }
  0x16   : > { %873 = vmatpush.bf16.msra.mxu0 %v1888_v4  ;;  %v1894_v13 = vld [vmem:[%s2049_s19 + $0x60] sm:$0xff]  ;;  %v1893_v17 = vld [vmem:[%s2049_s19 + $0x58] sm:$0xff]  ;;  %v1892_v21 = vld [vmem:[%s2049_s19 + $0x50] sm:$0xff] }
  0x17   : > { %962 = vmatpush.bf16.msra.mxu1 %v1896_v5  ;;  %v1902_v14 = vld [vmem:[%s2049_s19 + $0xa0] sm:$0xff]  ;;  %v1901_v18 = vld [vmem:[%s2049_s19 + $0x98] sm:$0xff]  ;;  %v1900_v22 = vld [vmem:[%s2049_s19 + $0x90] sm:$0xff] }
  0x18   : > { %1051 = vmatpush.bf16.msra.mxu2 %v1904_v6  ;;  %v1910_v15 = vld [vmem:[%s2049_s19 + $0xe0] sm:$0xff]  ;;  %v1909_v19 = vld [vmem:[%s2049_s19 + $0xd8] sm:$0xff]  ;;  %v1908_v23 = vld [vmem:[%s2049_s19 + $0xd0] sm:$0xff] }
  0x19   : > { %1140 = vmatpush.bf16.msra.mxu3 %v1912_v7  ;;  %v1883_v24 = vld [vmem:[%s2049_s19 + $0x8] sm:$0xff]  ;;  %v1882_v28 = vld [vmem:[%s2049_s19] sm:$0xff]  ;;  %v1820_v33 = vld [vmem:[%s2084_s26 + $0xc] sm:$0xf0] }
  0x1a   : > { %874 = vmatpush.bf16.msra.mxu0 %v1887_v8  ;;  %v1891_v25 = vld [vmem:[%s2049_s19 + $0x48] sm:$0xff]  ;;  %v1890_v29 = vld [vmem:[%s2049_s19 + $0x40] sm:$0xff]  ;;  %v1435_v35 = vld [vmem:[%s2084_s26 + $0x10] sm:$0xf0] }
  0x1b   : > { %963 = vmatpush.bf16.msra.mxu1 %v1895_v9  ;;  %v1899_v26 = vld [vmem:[%s2049_s19 + $0x88] sm:$0xff]  ;;  %v1898_v30 = vld [vmem:[%s2049_s19 + $0x80] sm:$0xff]  ;;  %v1821_v37 = vld [vmem:[%s2084_s26 + $0x14] sm:$0xf0] }
  0x1c   : > { %1052 = vmatpush.bf16.msra.mxu2 %v1903_v10  ;;  %v1907_v27 = vld [vmem:[%s2049_s19 + $0xc8] sm:$0xff]  ;;  %v1906_v31 = vld [vmem:[%s2049_s19 + $0xc0] sm:$0xff]  ;;  %v1443_v39 = vld [vmem:[%s2084_s26 + $0x18] sm:$0xf0] }
  0x1d   : > { %1141 = vmatpush.bf16.msra.mxu3 %v1911_v11  ;;  %v1433_v32 = vld [vmem:[%s2084_s26] sm:$0xf]  ;;  %v1818_v34 = vld [vmem:[%s2084_s26 + $0x4] sm:$0xf]  ;;  %v1441_v36 = vld [vmem:[%s2084_s26 + $0x8] sm:$0xf] }
  0x1e   : > { %875 = vmatpush.bf16.msra.mxu0 %v1886_v12  ;;  %v1819_v38 = vld [vmem:[%s2084_s26 + $0xc] sm:$0xf]  ;;  %v1434_v40 = vor.u32 %v1820_v33, %v1433_v32  ;;  %v1438_v41 = vor.u32 %v1818_v34, %v1435_v35  ;;  %v1442_v42 = vor.u32 %v1821_v37, %v1441_v36  ;;  %v1449_v44 = vld [vmem:[%s2084_s26 + $0x20] sm:$0xf]  ;;  %v1824_v45 = vld [vmem:[%s2084_s26 + $0x2c] sm:$0xf0] }
  0x1f   : > { %964 = vmatpush.bf16.msra.mxu1 %v1894_v13  ;;  %v1446_v43 = vor.u32 %v1819_v38, %v1443_v39  ;;  %v1822_v46 = vld [vmem:[%s2084_s26 + $0x24] sm:$0xf]  ;;  %v1451_v47 = vld [vmem:[%s2084_s26 + $0x30] sm:$0xf0]  ;;  %v1457_v48 = vld [vmem:[%s2084_s26 + $0x28] sm:$0xf]  ;;  %v1450_v52 = vor.u32 %v1824_v45, %v1449_v44 }
  0x20   : > { %1053 = vmatpush.bf16.msra.mxu2 %v1902_v14  ;;  %v1825_v49 = vld [vmem:[%s2084_s26 + $0x34] sm:$0xf0]  ;;  %v1823_v50 = vld [vmem:[%s2084_s26 + $0x2c] sm:$0xf]  ;;  %v1459_v51 = vld [vmem:[%s2084_s26 + $0x38] sm:$0xf0]  ;;  %v1454_v53 = vor.u32 %v1822_v46, %v1451_v47 }
  0x21   : > { %1142 = vmatpush.bf16.msra.mxu3 %v1910_v15  ;;  %v1458_v54 = vor.u32 %v1825_v49, %v1457_v48  ;;  %v1462_v55 = vor.u32 %v1823_v50, %v1459_v51  ;;  %v1465_v56 = vld [vmem:[%s2084_s26 + $0x40] sm:$0xf]  ;;  %v1828_v57 = vld [vmem:[%s2084_s26 + $0x4c] sm:$0xf0]  ;;  %v1826_v58 = vld [vmem:[%s2084_s26 + $0x44] sm:$0xf] }
  0x22   : > { %876 = vmatpush.bf16.msra.mxu0 %v1885_v16  ;;  %v1467_v59 = vld [vmem:[%s2084_s26 + $0x50] sm:$0xf0]  ;;  %v1473_v60 = vld [vmem:[%s2084_s26 + $0x48] sm:$0xf]  ;;  %v1829_v61 = vld [vmem:[%s2084_s26 + $0x54] sm:$0xf0]  ;;  %v1466_v0 = vor.u32 %v1828_v57, %v1465_v56 }
  0x23   : > { %965 = vmatpush.bf16.msra.mxu1 %v1893_v17  ;;  %v1827_v62 = vld [vmem:[%s2084_s26 + $0x4c] sm:$0xf]  ;;  %v1475_v63 = vld [vmem:[%s2084_s26 + $0x58] sm:$0xf0]  ;;  %v1470_v1 = vor.u32 %v1826_v58, %v1467_v59  ;;  %v1474_v2 = vor.u32 %v1829_v61, %v1473_v60  ;;  %v1481_v4 = vld [vmem:[%s2084_s26 + $0x60] sm:$0xf] }
  0x24   : > { %1054 = vmatpush.bf16.msra.mxu2 %v1901_v18  ;;  %v1478_v3 = vor.u32 %v1827_v62, %v1475_v63  ;;  %v1832_v5 = vld [vmem:[%s2084_s26 + $0x6c] sm:$0xf0]  ;;  %v1830_v6 = vld [vmem:[%s2084_s26 + $0x64] sm:$0xf]  ;;  %v1483_v7 = vld [vmem:[%s2084_s26 + $0x70] sm:$0xf0] }
  0x25   : > { %1143 = vmatpush.bf16.msra.mxu3 %v1909_v19  ;;  %v1489_v8 = vld [vmem:[%s2084_s26 + $0x68] sm:$0xf]  ;;  %v1833_v9 = vld [vmem:[%s2084_s26 + $0x74] sm:$0xf0]  ;;  %v1831_v10 = vld [vmem:[%s2084_s26 + $0x6c] sm:$0xf]  ;;  %v1482_v12 = vor.u32 %v1832_v5, %v1481_v4  ;;  %v1486_v13 = vor.u32 %v1830_v6, %v1483_v7 }
  0x26   : > { %877 = vmatpush.bf16.msra.mxu0 %v1884_v20  ;;  %v1491_v11 = vld [vmem:[%s2084_s26 + $0x78] sm:$0xf0]  ;;  %v1490_v14 = vor.u32 %v1833_v9, %v1489_v8  ;;  %v1497_v16 = vld [vmem:[%s2084_s26 + $0x80] sm:$0xf]  ;;  %v1836_v17 = vld [vmem:[%s2084_s26 + $0x8c] sm:$0xf0] }
  0x27   : > { %966 = vmatpush.bf16.msra.mxu1 %v1892_v21  ;;  %v1494_v15 = vor.u32 %v1831_v10, %v1491_v11  ;;  %v1834_v18 = vld [vmem:[%s2084_s26 + $0x84] sm:$0xf]  ;;  %v1499_v19 = vld [vmem:[%s2084_s26 + $0x90] sm:$0xf0]  ;;  %v1505_v20 = vld [vmem:[%s2084_s26 + $0x88] sm:$0xf] }
  0x28   : > { %1055 = vmatpush.bf16.msra.mxu2 %v1900_v22  ;;  %v1837_v21 = vld [vmem:[%s2084_s26 + $0x94] sm:$0xf0]  ;;  %v1835_v22 = vld [vmem:[%s2084_s26 + $0x8c] sm:$0xf]  ;;  %v1521_v32 = vld [vmem:[%s2084_s26 + $0xa8] sm:$0xf] }
  0x29   : > { %1144 = vmatpush.bf16.msra.mxu3 %v1908_v23  ;;  %v1507_v23 = vld [vmem:[%s2084_s26 + $0x98] sm:$0xf0]  ;;  %v1841_v33 = vld [vmem:[%s2084_s26 + $0xb4] sm:$0xf0]  ;;  %v1839_v34 = vld [vmem:[%s2084_s26 + $0xac] sm:$0xf] }
  0x2a   : > { %878 = vmatpush.bf16.msra.mxu0 %v1883_v24  ;;  %v1498_v24 = vor.u32 %v1836_v17, %v1497_v16  ;;  %v1523_v35 = vld [vmem:[%s2084_s26 + $0xb8] sm:$0xf0]  ;;  %v1522_v38 = vor.u32 %v1841_v33, %v1521_v32  ;;  %v1537_v44 = vld [vmem:[%s2084_s26 + $0xc8] sm:$0xf]  ;;  %v1845_v45 = vld [vmem:[%s2084_s26 + $0xd4] sm:$0xf0] }
  0x2b   : > { %967 = vmatpush.bf16.msra.mxu1 %v1891_v25  ;;  %v1502_v25 = vor.u32 %v1834_v18, %v1499_v19  ;;  %v1526_v39 = vor.u32 %v1839_v34, %v1523_v35  ;;  %v1843_v46 = vld [vmem:[%s2084_s26 + $0xcc] sm:$0xf]  ;;  %v1539_v47 = vld [vmem:[%s2084_s26 + $0xd8] sm:$0xf0]  ;;  %v1538_v50 = vor.u32 %v1845_v45, %v1537_v44  ;;  %v1553_v56 = vld [vmem:[%s2084_s26 + $0xe8] sm:$0xf] }
  0x2c   : > { %1056 = vmatpush.bf16.msra.mxu2 %v1899_v26  ;;  %v1506_v26 = vor.u32 %v1837_v21, %v1505_v20  ;;  %v1542_v51 = vor.u32 %v1843_v46, %v1539_v47  ;;  %v1849_v57 = vld [vmem:[%s2084_s26 + $0xf4] sm:$0xf0]  ;;  %v1847_v58 = vld [vmem:[%s2084_s26 + $0xec] sm:$0xf]  ;;  %v1555_v59 = vld [vmem:[%s2084_s26 + $0xf8] sm:$0xf0] }
  0x2d   : > { %1145 = vmatpush.bf16.msra.mxu3 %v1907_v27  ;;  %v1510_v27 = vor.u32 %v1835_v22, %v1507_v23  ;;  %v1554_v62 = vor.u32 %v1849_v57, %v1553_v56  ;;  %v1558_v63 = vor.u32 %v1847_v58, %v1555_v59  ;;  %v1569_v4 = vld [vmem:[%s2084_s26 + $0x108] sm:$0xf]  ;;  %v1853_v5 = vld [vmem:[%s2084_s26 + $0x114] sm:$0xf0]  ;;  %v1851_v6 = vld [vmem:[%s2084_s26 + $0x10c] sm:$0xf] }
  0x2e   : > { %879 = vmatpush.bf16.msra.mxu0 %v1882_v28  ;;  %v1513_v28 = vld [vmem:[%s2084_s26 + $0xa0] sm:$0xf]  ;;  %v1571_v7 = vld [vmem:[%s2084_s26 + $0x118] sm:$0xf0]  ;;  %v1856_v22 = vld [vmem:[%s2084_s26 + $0x12c] sm:$0xf0] }
  0x2f   : > { %968 = vmatpush.bf16.msra.mxu1 %v1890_v29  ;;  %v1840_v29 = vld [vmem:[%s2084_s26 + $0xac] sm:$0xf0]  ;;  %v1577_v21 = vld [vmem:[%s2084_s26 + $0x120] sm:$0xf]  ;;  %v1859_v56 = vld [vmem:[%s2084_s26 + $0x14c] sm:$0xf] }
  0x30   : > { %1057 = vmatpush.bf16.msra.mxu2 %v1898_v30  ;;  %v1838_v30 = vld [vmem:[%s2084_s26 + $0xa4] sm:$0xf]  ;;  %v1514_v36 = vor.u32 %v1840_v29, %v1513_v28  ;;  %v1855_v28 = vld [vmem:[%s2084_s26 + $0x12c] sm:$0xf]  ;;  %v1587_v29 = vld [vmem:[%s2084_s26 + $0x138] sm:$0xf0]  ;;  %v1578_v33 = vor.u32 %v1856_v22, %v1577_v21 }
  0x31   : > { %1146 = vmatpush.bf16.msra.mxu3 %v1906_v31  ;;  %880 = vmatmul.bf16.vlgmr.msra.gmra.mxu0 %v1434_v40  ;;  %v1515_v31 = vld [vmem:[%s2084_s26 + $0xb0] sm:$0xf0]  ;;  %v1529_v40 = vld [vmem:[%s2084_s26 + $0xc0] sm:$0xf]  ;;  %v1603_v57 = vld [vmem:[%s2084_s26 + $0x158] sm:$0xf0] }
  0x32   : > { %969 = vmatmul.bf16.vlgmr.msra.gmra.mxu1 %v1438_v41  ;;  %v1518_v37 = vor.u32 %v1838_v30, %v1515_v31  ;;  %v1844_v41 = vld [vmem:[%s2084_s26 + $0xcc] sm:$0xf0]  ;;  %v1619_v21 = vld [vmem:[%s2084_s26 + $0x178] sm:$0xf0] }
  0x33   : > { %1058 = vmatmul.bf16.vlgmr.msra.gmra.mxu2 %v1442_v42  ;;  %v1842_v42 = vld [vmem:[%s2084_s26 + $0xc4] sm:$0xf]  ;;  %v1530_v48 = vor.u32 %v1844_v41, %v1529_v40 }
  0x34   : > { %1147 = vmatmul.bf16.vlgmr.msra.gmra.mxu3 %v1446_v43  ;;  %v1531_v43 = vld [vmem:[%s2084_s26 + $0xd0] sm:$0xf0] }
  0x35   : > { %v1534_v49 = vor.u32 %v1842_v42, %v1531_v43 }
  0x41   : > { %885 = vmatmul.bf16.gmra.mxu0 %v1450_v52  ;;  %v1545_v52 = vld [vmem:[%s2084_s26 + $0xe0] sm:$0xf] }
  0x42   : > { %974 = vmatmul.bf16.gmra.mxu1 %v1454_v53  ;;  %v1848_v53 = vld [vmem:[%s2084_s26 + $0xec] sm:$0xf0] }
  0x43   : > { %1063 = vmatmul.bf16.gmra.mxu2 %v1458_v54  ;;  %v1846_v54 = vld [vmem:[%s2084_s26 + $0xe4] sm:$0xf]  ;;  %v1546_v60 = vor.u32 %v1848_v53, %v1545_v52  ;;  %v1595_v53 = vld [vmem:[%s2084_s26 + $0x150] sm:$0xf0] }
  0x44   : > { %1152 = vmatmul.bf16.gmra.mxu3 %v1462_v55  ;;  %v1547_v55 = vld [vmem:[%s2084_s26 + $0xf0] sm:$0xf0]  ;;  %v1858_v52 = vld [vmem:[%s2084_s26 + $0x144] sm:$0xf] }
  0x45   : > { %v1550_v61 = vor.u32 %v1846_v54, %v1547_v55  ;;  %v1601_v54 = vld [vmem:[%s2084_s26 + $0x148] sm:$0xf]  ;;  %v1861_v55 = vld [vmem:[%s2084_s26 + $0x154] sm:$0xf0] }
  0x51   : > { %890 = vmatmul.bf16.gmra.mxu0 %v1466_v0  ;;  %v1561_v0 = vld [vmem:[%s2084_s26 + $0x100] sm:$0xf] }
  0x52   : > { %979 = vmatmul.bf16.gmra.mxu1 %v1470_v1  ;;  %v1852_v1 = vld [vmem:[%s2084_s26 + $0x10c] sm:$0xf0] }
  0x53   : > { %1068 = vmatmul.bf16.gmra.mxu2 %v1474_v2  ;;  %v1850_v2 = vld [vmem:[%s2084_s26 + $0x104] sm:$0xf]  ;;  %v1562_v8 = vor.u32 %v1852_v1, %v1561_v0 }
  0x54   : > { %1157 = vmatmul.bf16.gmra.mxu3 %v1478_v3  ;;  %v1563_v3 = vld [vmem:[%s2084_s26 + $0x110] sm:$0xf0] }
  0x55   : > { %v1566_v9 = vor.u32 %v1850_v2, %v1563_v3  ;;  %v1602_v2 = vor.u32 %v1861_v55, %v1601_v54  ;;  %v1606_v3 = vor.u32 %v1859_v56, %v1603_v57 }
  0x61   : > { %895 = vmatmul.bf16.gmra.mxu0 %v1482_v12  ;;  %v1570_v12 = vor.u32 %v1853_v5, %v1569_v4 }
  0x62   : > { %984 = vmatmul.bf16.gmra.mxu1 %v1486_v13  ;;  %v1574_v13 = vor.u32 %v1851_v6, %v1571_v7 }
  0x63   : > { %1073 = vmatmul.bf16.gmra.mxu2 %v1490_v14 }
  0x64   : > { %1162 = vmatmul.bf16.gmra.mxu3 %v1494_v15 }
  0x71   : > { %900 = vmatmul.bf16.gmra.mxu0 %v1498_v24  ;;  %v1854_v24 = vld [vmem:[%s2084_s26 + $0x124] sm:$0xf] }
  0x72   : > { %989 = vmatmul.bf16.gmra.mxu1 %v1502_v25  ;;  %v1579_v25 = vld [vmem:[%s2084_s26 + $0x130] sm:$0xf0] }
  0x73   : > { %1078 = vmatmul.bf16.gmra.mxu2 %v1506_v26  ;;  %v1585_v26 = vld [vmem:[%s2084_s26 + $0x128] sm:$0xf]  ;;  %v1582_v34 = vor.u32 %v1854_v24, %v1579_v25 }
  0x74   : > { %1167 = vmatmul.bf16.gmra.mxu3 %v1510_v27  ;;  %v1857_v27 = vld [vmem:[%s2084_s26 + $0x134] sm:$0xf0] }
  0x81   : > { %905 = vmatmul.bf16.gmra.mxu0 %v1514_v36 }
  0x82   : > { %994 = vmatmul.bf16.gmra.mxu1 %v1518_v37 }
  0x83   : > { %1083 = vmatmul.bf16.gmra.mxu2 %v1522_v38  ;;  %v1586_v38 = vor.u32 %v1857_v27, %v1585_v26 }
  0x84   : > { %1172 = vmatmul.bf16.gmra.mxu3 %v1526_v39  ;;  %v1590_v39 = vor.u32 %v1855_v28, %v1587_v29 }
  0x91   : > { %910 = vmatmul.bf16.gmra.mxu0 %v1530_v48 }
  0x92   : > { %999 = vmatmul.bf16.gmra.mxu1 %v1534_v49  ;;  %v1593_v49 = vld [vmem:[%s2084_s26 + $0x140] sm:$0xf] }
  0x93   : > { %1088 = vmatmul.bf16.gmra.mxu2 %v1538_v50  ;;  %v1860_v50 = vld [vmem:[%s2084_s26 + $0x14c] sm:$0xf0] }
  0x94   : > { %1177 = vmatmul.bf16.gmra.mxu3 %v1542_v51 }
  0xa1   : > { %915 = vmatmul.bf16.gmra.mxu0 %v1546_v60 }
  0xa2   : > { %1004 = vmatmul.bf16.gmra.mxu1 %v1550_v61  ;;  %v1594_v61 = vor.u32 %v1860_v50, %v1593_v49  ;;  %v1635_v49 = vld [vmem:[%s2084_s26 + $0x198] sm:$0xf0] }
  0xa3   : > { %1093 = vmatmul.bf16.gmra.mxu2 %v1554_v62  ;;  %v1598_v62 = vor.u32 %v1858_v52, %v1595_v53 }
  0xa4   : > { %1182 = vmatmul.bf16.gmra.mxu3 %v1558_v63 }
  0xae   : > { %v881_v10 = vpop.f32.mrf.mxu0 }
  0xaf   : > { %v970_v11 = vpop.f32.mrf.mxu1 }
  0xb0   : > { %v971_v14 = vadd.f32 %v970_v11, %v881_v10 }
  0xb1   : > { %920 = vmatmul.bf16.gmra.mxu0 %v1562_v8 }
  0xb2   : > { %1009 = vmatmul.bf16.gmra.mxu1 %v1566_v9 }
  0xb3   : > { %1098 = vmatmul.bf16.gmra.mxu2 %v1570_v12 }
  0xb4   : > { %1187 = vmatmul.bf16.gmra.mxu3 %v1574_v13  ;;  %v1609_v13 = vld [vmem:[%s2084_s26 + $0x160] sm:$0xf] }
  0xb6   : > { %v1059_v15 = vpop.f32.mrf.mxu2  ;;  %v883_v18 = vpop.f32.mrf.mxu0 }
  0xb7   : > { %v1148_v16 = vpop.f32.mrf.mxu3  ;;  %v1060_v17 = vadd.f32 %v1059_v15, %v971_v14  ;;  %v972_v19 = vpop.f32.mrf.mxu1  ;;  %v1864_v14 = vld [vmem:[%s2084_s26 + $0x16c] sm:$0xf0] }
  0xb8   : > { %v973_v30 = vadd.f32 %v972_v19, %v883_v18  ;;  %v1617_v18 = vld [vmem:[%s2084_s26 + $0x168] sm:$0xf]  ;;  %v1865_v19 = vld [vmem:[%s2084_s26 + $0x174] sm:$0xf0]  ;;  %v1610_v25 = vor.u32 %v1864_v14, %v1609_v13  ;;  %v1651_v13 = vld [vmem:[%s2084_s26 + $0x1b8] sm:$0xf0] }
  0xb9   : > { %v1149_v20 = vadd.f32 %v1148_v16, %v1060_v17  ;;  %v1862_v16 = vld [vmem:[%s2084_s26 + $0x164] sm:$0xf]  ;;  %v1611_v17 = vld [vmem:[%s2084_s26 + $0x170] sm:$0xf0] }
  0xba   : > { %v1614_v26 = vor.u32 %v1862_v16, %v1611_v17 }
  0xbb   : > { %v1228_v23 = vpack.c.bf16 %v1149_v20, %v1149_v20  ;;  %v1863_v20 = vld [vmem:[%s2084_s26 + $0x16c] sm:$0xf] }
  0xbd   : > { %1261 = vst.msk [vmem:[%s2174_s4] sm:$0xf] %vm1260_vm0, %v1228_v23 }
  0xbe   : > { %v1061_v31 = vpop.f32.mrf.mxu2  ;;  %v886_v36 = vpop.f32.mrf.mxu0 }
  0xbf   : > { %v1150_v32 = vpop.f32.mrf.mxu3  ;;  %v1062_v35 = vadd.f32 %v1061_v31, %v973_v30  ;;  %v975_v37 = vpop.f32.mrf.mxu1  ;;  %v1618_v30 = vor.u32 %v1865_v19, %v1617_v18  ;;  %v1622_v31 = vor.u32 %v1863_v20, %v1619_v21 }
  0xc0   : > { %v976_v42 = vadd.f32 %v975_v37, %v886_v36 }
  0xc1   : > { %v1151_v40 = vadd.f32 %v1150_v32, %v1062_v35  ;;  %925 = vmatmul.bf16.gmra.mxu0 %v1578_v33 }
  0xc2   : > { %1014 = vmatmul.bf16.gmra.mxu1 %v1582_v34 }
  0xc3   : > { %v1229_v41 = vpack.c.bf16 %v1151_v40, %v1151_v40  ;;  %1103 = vmatmul.bf16.gmra.mxu2 %v1586_v38 }
  0xc4   : > { %1192 = vmatmul.bf16.gmra.mxu3 %v1590_v39 }
  0xc5   : > { %1262 = vst.msk [vmem:[%s2174_s4 + $0x4] sm:$0xf] %vm1260_vm0, %v1229_v41  ;;  %v1625_v41 = vld [vmem:[%s2084_s26 + $0x180] sm:$0xf] }
  0xc6   : > { %v1064_v43 = vpop.f32.mrf.mxu2  ;;  %v888_v46 = vpop.f32.mrf.mxu0 }
  0xc7   : > { %v1153_v44 = vpop.f32.mrf.mxu3  ;;  %v1065_v45 = vadd.f32 %v1064_v43, %v976_v42  ;;  %v977_v47 = vpop.f32.mrf.mxu1  ;;  %v1868_v42 = vld [vmem:[%s2084_s26 + $0x18c] sm:$0xf0] }
  0xc8   : > { %v978_v58 = vadd.f32 %v977_v47, %v888_v46  ;;  %v1633_v46 = vld [vmem:[%s2084_s26 + $0x188] sm:$0xf]  ;;  %v1869_v47 = vld [vmem:[%s2084_s26 + $0x194] sm:$0xf0]  ;;  %v1626_v53 = vor.u32 %v1868_v42, %v1625_v41  ;;  %v1667_v41 = vld [vmem:[%s2084_s26 + $0x1d8] sm:$0xf0] }
  0xc9   : > { %v1154_v48 = vadd.f32 %v1153_v44, %v1065_v45  ;;  %v1866_v44 = vld [vmem:[%s2084_s26 + $0x184] sm:$0xf]  ;;  %v1627_v45 = vld [vmem:[%s2084_s26 + $0x190] sm:$0xf0] }
  0xca   : > { %v1630_v54 = vor.u32 %v1866_v44, %v1627_v45 }
  0xcb   : > { %v1230_v51 = vpack.c.bf16 %v1154_v48, %v1154_v48  ;;  %v1867_v48 = vld [vmem:[%s2084_s26 + $0x18c] sm:$0xf] }
  0xcd   : > { %1263 = vst.msk [vmem:[%s2174_s4 + $0x8] sm:$0xf] %vm1260_vm0, %v1230_v51 }
  0xce   : > { %v1066_v59 = vpop.f32.mrf.mxu2  ;;  %v891_v0 = vpop.f32.mrf.mxu0 }
  0xcf   : > { %v1155_v60 = vpop.f32.mrf.mxu3  ;;  %v1067_v63 = vadd.f32 %v1066_v59, %v978_v58  ;;  %v980_v1 = vpop.f32.mrf.mxu1  ;;  %v1634_v58 = vor.u32 %v1869_v47, %v1633_v46  ;;  %v1638_v59 = vor.u32 %v1867_v48, %v1635_v49 }
  0xd0   : > { %v981_v6 = vadd.f32 %v980_v1, %v891_v0 }
  0xd1   : > { %v1156_v4 = vadd.f32 %v1155_v60, %v1067_v63  ;;  %930 = vmatmul.bf16.gmra.mxu0 %v1594_v61 }
  0xd2   : > { %1019 = vmatmul.bf16.gmra.mxu1 %v1598_v62 }
  0xd3   : > { %v1231_v5 = vpack.c.bf16 %v1156_v4, %v1156_v4  ;;  %1108 = vmatmul.bf16.gmra.mxu2 %v1602_v2 }
  0xd4   : > { %1197 = vmatmul.bf16.gmra.mxu3 %v1606_v3 }
  0xd5   : > { %1264 = vst.msk [vmem:[%s2174_s4 + $0xc] sm:$0xf] %vm1260_vm0, %v1231_v5  ;;  %v1641_v5 = vld [vmem:[%s2084_s26 + $0x1a0] sm:$0xf] }
  0xd6   : > { %v1069_v7 = vpop.f32.mrf.mxu2  ;;  %v893_v10 = vpop.f32.mrf.mxu0 }
  0xd7   : > { %v1158_v8 = vpop.f32.mrf.mxu3  ;;  %v1070_v9 = vadd.f32 %v1069_v7, %v981_v6  ;;  %v982_v11 = vpop.f32.mrf.mxu1  ;;  %v1872_v6 = vld [vmem:[%s2084_s26 + $0x1ac] sm:$0xf0] }
  0xd8   : > { %v983_v22 = vadd.f32 %v982_v11, %v893_v10  ;;  %v1649_v10 = vld [vmem:[%s2084_s26 + $0x1a8] sm:$0xf]  ;;  %v1873_v11 = vld [vmem:[%s2084_s26 + $0x1b4] sm:$0xf0]  ;;  %v1642_v17 = vor.u32 %v1872_v6, %v1641_v5  ;;  %v1683_v5 = vld [vmem:[%s2084_s26 + $0x1f8] sm:$0xf0] }
  0xd9   : > { %v1159_v12 = vadd.f32 %v1158_v8, %v1070_v9  ;;  %v1870_v8 = vld [vmem:[%s2084_s26 + $0x1a4] sm:$0xf]  ;;  %v1643_v9 = vld [vmem:[%s2084_s26 + $0x1b0] sm:$0xf0] }
  0xda   : > { %v1646_v18 = vor.u32 %v1870_v8, %v1643_v9 }
  0xdb   : > { %v1232_v15 = vpack.c.bf16 %v1159_v12, %v1159_v12  ;;  %v1871_v12 = vld [vmem:[%s2084_s26 + $0x1ac] sm:$0xf] }
  0xdd   : > { %1265 = vst.msk [vmem:[%s2174_s4 + $0x10] sm:$0xf] %vm1260_vm0, %v1232_v15 }
  0xde   : > { %v1071_v23 = vpop.f32.mrf.mxu2  ;;  %v896_v28 = vpop.f32.mrf.mxu0 }
  0xdf   : > { %v1160_v24 = vpop.f32.mrf.mxu3  ;;  %v1072_v27 = vadd.f32 %v1071_v23, %v983_v22  ;;  %v985_v29 = vpop.f32.mrf.mxu1  ;;  %v1650_v22 = vor.u32 %v1873_v11, %v1649_v10  ;;  %v1654_v23 = vor.u32 %v1871_v12, %v1651_v13 }
  0xe0   : > { %v986_v34 = vadd.f32 %v985_v29, %v896_v28 }
  0xe1   : > { %v1161_v32 = vadd.f32 %v1160_v24, %v1072_v27  ;;  %935 = vmatmul.bf16.gmra.mxu0 %v1610_v25 }
  0xe2   : > { %1024 = vmatmul.bf16.gmra.mxu1 %v1614_v26 }
  0xe3   : > { %v1233_v33 = vpack.c.bf16 %v1161_v32, %v1161_v32  ;;  %1113 = vmatmul.bf16.gmra.mxu2 %v1618_v30 }
  0xe4   : > { %1202 = vmatmul.bf16.gmra.mxu3 %v1622_v31 }
  0xe5   : > { %1266 = vst.msk [vmem:[%s2174_s4 + $0x14] sm:$0xf] %vm1260_vm0, %v1233_v33  ;;  %v1657_v33 = vld [vmem:[%s2084_s26 + $0x1c0] sm:$0xf] }
  0xe6   : > { %v1074_v35 = vpop.f32.mrf.mxu2  ;;  %v898_v38 = vpop.f32.mrf.mxu0 }
  0xe7   : > { %v1163_v36 = vpop.f32.mrf.mxu3  ;;  %v1075_v37 = vadd.f32 %v1074_v35, %v986_v34  ;;  %v987_v39 = vpop.f32.mrf.mxu1  ;;  %v1876_v34 = vld [vmem:[%s2084_s26 + $0x1cc] sm:$0xf0] }
  0xe8   : > { %v988_v50 = vadd.f32 %v987_v39, %v898_v38  ;;  %v1665_v38 = vld [vmem:[%s2084_s26 + $0x1c8] sm:$0xf]  ;;  %v1877_v39 = vld [vmem:[%s2084_s26 + $0x1d4] sm:$0xf0]  ;;  %v1658_v45 = vor.u32 %v1876_v34, %v1657_v33 }
  0xe9   : > { %v1164_v40 = vadd.f32 %v1163_v36, %v1075_v37  ;;  %v1874_v36 = vld [vmem:[%s2084_s26 + $0x1c4] sm:$0xf]  ;;  %v1659_v37 = vld [vmem:[%s2084_s26 + $0x1d0] sm:$0xf0] }
  0xea   : > { %v1662_v46 = vor.u32 %v1874_v36, %v1659_v37 }
  0xeb   : > { %v1234_v43 = vpack.c.bf16 %v1164_v40, %v1164_v40  ;;  %v1875_v40 = vld [vmem:[%s2084_s26 + $0x1cc] sm:$0xf] }
  0xed   : > { %1267 = vst.msk [vmem:[%s2174_s4 + $0x18] sm:$0xf] %vm1260_vm0, %v1234_v43 }
  0xee   : > { %v1076_v51 = vpop.f32.mrf.mxu2  ;;  %v901_v56 = vpop.f32.mrf.mxu0 }
  0xef   : > { %v1165_v52 = vpop.f32.mrf.mxu3  ;;  %v1077_v55 = vadd.f32 %v1076_v51, %v988_v50  ;;  %v990_v57 = vpop.f32.mrf.mxu1  ;;  %v1666_v50 = vor.u32 %v1877_v39, %v1665_v38  ;;  %v1670_v51 = vor.u32 %v1875_v40, %v1667_v41 }
  0xf0   : > { %v991_v62 = vadd.f32 %v990_v57, %v901_v56 }
  0xf1   : > { %v1166_v60 = vadd.f32 %v1165_v52, %v1077_v55  ;;  %940 = vmatmul.bf16.gmra.mxu0 %v1626_v53 }
  0xf2   : > { %1029 = vmatmul.bf16.gmra.mxu1 %v1630_v54 }
  0xf3   : > { %v1235_v61 = vpack.c.bf16 %v1166_v60, %v1166_v60  ;;  %1118 = vmatmul.bf16.gmra.mxu2 %v1634_v58 }
  0xf4   : > { %1207 = vmatmul.bf16.gmra.mxu3 %v1638_v59 }
  0xf5   : > { %1268 = vst.msk [vmem:[%s2174_s4 + $0x1c] sm:$0xf] %vm1260_vm0, %v1235_v61  ;;  %v1673_v61 = vld [vmem:[%s2084_s26 + $0x1e0] sm:$0xf] }
  0xf6   : > { %v1079_v63 = vpop.f32.mrf.mxu2  ;;  %v903_v2 = vpop.f32.mrf.mxu0 }
  0xf7   : > { %v1168_v0 = vpop.f32.mrf.mxu3  ;;  %v1080_v1 = vadd.f32 %v1079_v63, %v991_v62  ;;  %v992_v3 = vpop.f32.mrf.mxu1  ;;  %v1880_v62 = vld [vmem:[%s2084_s26 + $0x1ec] sm:$0xf0] }
  0xf8   : > { %v993_v14 = vadd.f32 %v992_v3, %v903_v2  ;;  %v1681_v2 = vld [vmem:[%s2084_s26 + $0x1e8] sm:$0xf]  ;;  %v1881_v3 = vld [vmem:[%s2084_s26 + $0x1f4] sm:$0xf0]  ;;  %v1674_v9 = vor.u32 %v1880_v62, %v1673_v61 }
  0xf9   : > { %v1169_v4 = vadd.f32 %v1168_v0, %v1080_v1  ;;  %v1878_v0 = vld [vmem:[%s2084_s26 + $0x1e4] sm:$0xf]  ;;  %v1675_v1 = vld [vmem:[%s2084_s26 + $0x1f0] sm:$0xf0] }
  0xfa   : > { %v1678_v10 = vor.u32 %v1878_v0, %v1675_v1 }
  0xfb   : > { %v1236_v7 = vpack.c.bf16 %v1169_v4, %v1169_v4  ;;  %v1879_v4 = vld [vmem:[%s2084_s26 + $0x1ec] sm:$0xf] }
  0xfd   : > { %1269 = vst.msk [vmem:[%s2174_s4 + $0x20] sm:$0xf] %vm1260_vm0, %v1236_v7 }
  0xfe   : > { %v1081_v15 = vpop.f32.mrf.mxu2  ;;  %v906_v20 = vpop.f32.mrf.mxu0 }
  0xff   : > { %v1170_v16 = vpop.f32.mrf.mxu3  ;;  %v1082_v19 = vadd.f32 %v1081_v15, %v993_v14  ;;  %v995_v21 = vpop.f32.mrf.mxu1  ;;  %v1682_v14 = vor.u32 %v1881_v3, %v1681_v2  ;;  %v1686_v15 = vor.u32 %v1879_v4, %v1683_v5 }
 0x100   : > { %v996_v26 = vadd.f32 %v995_v21, %v906_v20 }
 0x101   : > { %v1171_v24 = vadd.f32 %v1170_v16, %v1082_v19  ;;  %945 = vmatmul.bf16.gmra.mxu0 %v1642_v17 }
 0x102   : > { %1034 = vmatmul.bf16.gmra.mxu1 %v1646_v18 }
 0x103   : > { %v1237_v25 = vpack.c.bf16 %v1171_v24, %v1171_v24  ;;  %1123 = vmatmul.bf16.gmra.mxu2 %v1650_v22 }
 0x104   : > { %1212 = vmatmul.bf16.gmra.mxu3 %v1654_v23 }
 0x105   : > { %1270 = vst.msk [vmem:[%s2174_s4 + $0x24] sm:$0xf] %vm1260_vm0, %v1237_v25 }
 0x106   : > { %v1084_v27 = vpop.f32.mrf.mxu2  ;;  %v908_v30 = vpop.f32.mrf.mxu0 }
 0x107   : > { %v1173_v28 = vpop.f32.mrf.mxu3  ;;  %v1085_v29 = vadd.f32 %v1084_v27, %v996_v26  ;;  %v997_v31 = vpop.f32.mrf.mxu1 }
 0x108   : > { %v998_v42 = vadd.f32 %v997_v31, %v908_v30 }
 0x109   : > { %v1174_v32 = vadd.f32 %v1173_v28, %v1085_v29 }
 0x10b   : > { %v1238_v35 = vpack.c.bf16 %v1174_v32, %v1174_v32 }
 0x10d   : > { %1271 = vst.msk [vmem:[%s2174_s4 + $0x28] sm:$0xf] %vm1260_vm0, %v1238_v35 }
 0x10e   : > { %v1086_v43 = vpop.f32.mrf.mxu2  ;;  %v911_v48 = vpop.f32.mrf.mxu0 }
 0x10f   : > { %v1175_v44 = vpop.f32.mrf.mxu3  ;;  %v1087_v47 = vadd.f32 %v1086_v43, %v998_v42  ;;  %v1000_v49 = vpop.f32.mrf.mxu1 }
 0x110   : > { %v1001_v54 = vadd.f32 %v1000_v49, %v911_v48 }
 0x111   : > { %v1176_v52 = vadd.f32 %v1175_v44, %v1087_v47  ;;  %950 = vmatmul.bf16.gmra.mxu0 %v1658_v45 }
 0x112   : > { %1039 = vmatmul.bf16.gmra.mxu1 %v1662_v46 }
 0x113   : > { %v1239_v53 = vpack.c.bf16 %v1176_v52, %v1176_v52  ;;  %1128 = vmatmul.bf16.gmra.mxu2 %v1666_v50 }
 0x114   : > { %1217 = vmatmul.bf16.gmra.mxu3 %v1670_v51 }
 0x115   : > { %1272 = vst.msk [vmem:[%s2174_s4 + $0x2c] sm:$0xf] %vm1260_vm0, %v1239_v53 }
 0x116   : > { %v1089_v55 = vpop.f32.mrf.mxu2  ;;  %v913_v58 = vpop.f32.mrf.mxu0 }
 0x117   : > { %v1178_v56 = vpop.f32.mrf.mxu3  ;;  %v1090_v57 = vadd.f32 %v1089_v55, %v1001_v54  ;;  %v1002_v59 = vpop.f32.mrf.mxu1 }
 0x118   : > { %v1003_v6 = vadd.f32 %v1002_v59, %v913_v58 }
 0x119   : > { %v1179_v60 = vadd.f32 %v1178_v56, %v1090_v57 }
 0x11b   : > { %v1240_v63 = vpack.c.bf16 %v1179_v60, %v1179_v60 }
 0x11d   : > { %1273 = vst.msk [vmem:[%s2174_s4 + $0x30] sm:$0xf] %vm1260_vm0, %v1240_v63 }
 0x11e   : > { %v1091_v7 = vpop.f32.mrf.mxu2  ;;  %v916_v12 = vpop.f32.mrf.mxu0 }
 0x11f   : > { %v1180_v8 = vpop.f32.mrf.mxu3  ;;  %v1092_v11 = vadd.f32 %v1091_v7, %v1003_v6  ;;  %v1005_v13 = vpop.f32.mrf.mxu1 }
 0x120   : > { %v1006_v18 = vadd.f32 %v1005_v13, %v916_v12 }
 0x121   : > { %v1181_v16 = vadd.f32 %v1180_v8, %v1092_v11  ;;  %955 = vmatmul.bf16.gmra.mxu0 %v1674_v9 }
 0x122   : > { %1044 = vmatmul.bf16.gmra.mxu1 %v1678_v10 }
 0x123   : > { %v1241_v17 = vpack.c.bf16 %v1181_v16, %v1181_v16  ;;  %1133 = vmatmul.bf16.gmra.mxu2 %v1682_v14 }
 0x124   : > { %1222 = vmatmul.bf16.gmra.mxu3 %v1686_v15 }
 0x125   : > { %1274 = vst.msk [vmem:[%s2174_s4 + $0x34] sm:$0xf] %vm1260_vm0, %v1241_v17 }
 0x126   : > { %v1094_v19 = vpop.f32.mrf.mxu2  ;;  %v918_v22 = vpop.f32.mrf.mxu0 }
 0x127   : > { %v1183_v20 = vpop.f32.mrf.mxu3  ;;  %v1095_v21 = vadd.f32 %v1094_v19, %v1006_v18  ;;  %v1007_v23 = vpop.f32.mrf.mxu1 }
 0x128   : > { %v1008_v26 = vadd.f32 %v1007_v23, %v918_v22 }
 0x129   : > { %v1184_v24 = vadd.f32 %v1183_v20, %v1095_v21 }
 0x12b   : > { %v1242_v25 = vpack.c.bf16 %v1184_v24, %v1184_v24 }
 0x12d   : > { %1275 = vst.msk [vmem:[%s2174_s4 + $0x38] sm:$0xf] %vm1260_vm0, %v1242_v25 }
 0x12e   : > { %v1096_v27 = vpop.f32.mrf.mxu2  ;;  %v921_v30 = vpop.f32.mrf.mxu0 }
 0x12f   : > { %v1185_v28 = vpop.f32.mrf.mxu3  ;;  %v1097_v29 = vadd.f32 %v1096_v27, %v1008_v26  ;;  %v1010_v31 = vpop.f32.mrf.mxu1 }
 0x130   : > { %v1011_v34 = vadd.f32 %v1010_v31, %v921_v30 }
 0x131   : > { %v1186_v32 = vadd.f32 %v1185_v28, %v1097_v29 }
 0x133   : > { %v1243_v33 = vpack.c.bf16 %v1186_v32, %v1186_v32 }
 0x135   : > { %1276 = vst.msk [vmem:[%s2174_s4 + $0x3c] sm:$0xf] %vm1260_vm0, %v1243_v33 }
 0x136   : > { %v1099_v35 = vpop.f32.mrf.mxu2  ;;  %v923_v38 = vpop.f32.mrf.mxu0 }
 0x137   : > { %v1188_v36 = vpop.f32.mrf.mxu3  ;;  %v1100_v37 = vadd.f32 %v1099_v35, %v1011_v34  ;;  %v1012_v39 = vpop.f32.mrf.mxu1 }
 0x138   : > { %v1013_v42 = vadd.f32 %v1012_v39, %v923_v38 }
 0x139   : > { %v1189_v40 = vadd.f32 %v1188_v36, %v1100_v37 }
 0x13b   : > { %v1244_v41 = vpack.c.bf16 %v1189_v40, %v1189_v40 }
 0x13d   : > { %1277 = vst.msk [vmem:[%s2174_s4 + $0x40] sm:$0xf] %vm1260_vm0, %v1244_v41 }
 0x13e   : > { %v1101_v43 = vpop.f32.mrf.mxu2  ;;  %v926_v46 = vpop.f32.mrf.mxu0 }
 0x13f   : > { %v1190_v44 = vpop.f32.mrf.mxu3  ;;  %v1102_v45 = vadd.f32 %v1101_v43, %v1013_v42  ;;  %v1015_v47 = vpop.f32.mrf.mxu1 }
 0x140   : > { %v1016_v50 = vadd.f32 %v1015_v47, %v926_v46 }
 0x141   : > { %v1191_v48 = vadd.f32 %v1190_v44, %v1102_v45 }
 0x143   : > { %v1245_v49 = vpack.c.bf16 %v1191_v48, %v1191_v48 }
 0x145   : > { %1278 = vst.msk [vmem:[%s2174_s4 + $0x44] sm:$0xf] %vm1260_vm0, %v1245_v49 }
 0x146   : > { %v1104_v51 = vpop.f32.mrf.mxu2  ;;  %v928_v54 = vpop.f32.mrf.mxu0 }
 0x147   : > { %v1193_v52 = vpop.f32.mrf.mxu3  ;;  %v1105_v53 = vadd.f32 %v1104_v51, %v1016_v50  ;;  %v1017_v55 = vpop.f32.mrf.mxu1 }
 0x148   : > { %v1018_v58 = vadd.f32 %v1017_v55, %v928_v54 }
 0x149   : > { %v1194_v56 = vadd.f32 %v1193_v52, %v1105_v53 }
 0x14b   : > { %v1246_v57 = vpack.c.bf16 %v1194_v56, %v1194_v56 }
 0x14d   : > { %1279 = vst.msk [vmem:[%s2174_s4 + $0x48] sm:$0xf] %vm1260_vm0, %v1246_v57 }
 0x14e   : > { %v1106_v59 = vpop.f32.mrf.mxu2  ;;  %v931_v62 = vpop.f32.mrf.mxu0 }
 0x14f   : > { %v1195_v60 = vpop.f32.mrf.mxu3  ;;  %v1107_v61 = vadd.f32 %v1106_v59, %v1018_v58  ;;  %v1020_v63 = vpop.f32.mrf.mxu1 }
 0x150   : > { %v1021_v2 = vadd.f32 %v1020_v63, %v931_v62 }
 0x151   : > { %v1196_v0 = vadd.f32 %v1195_v60, %v1107_v61 }
 0x153   : > { %v1247_v1 = vpack.c.bf16 %v1196_v0, %v1196_v0 }
 0x155   : > { %1280 = vst.msk [vmem:[%s2174_s4 + $0x4c] sm:$0xf] %vm1260_vm0, %v1247_v1 }
 0x156   : > { %v1109_v3 = vpop.f32.mrf.mxu2  ;;  %v933_v6 = vpop.f32.mrf.mxu0 }
 0x157   : > { %v1198_v4 = vpop.f32.mrf.mxu3  ;;  %v1110_v5 = vadd.f32 %v1109_v3, %v1021_v2  ;;  %v1022_v7 = vpop.f32.mrf.mxu1 }
 0x158   : > { %v1023_v10 = vadd.f32 %v1022_v7, %v933_v6 }
 0x159   : > { %v1199_v8 = vadd.f32 %v1198_v4, %v1110_v5 }
 0x15b   : > { %v1248_v9 = vpack.c.bf16 %v1199_v8, %v1199_v8 }
 0x15d   : > { %1281 = vst.msk [vmem:[%s2174_s4 + $0x50] sm:$0xf] %vm1260_vm0, %v1248_v9 }
 0x15e   : > { %v1111_v11 = vpop.f32.mrf.mxu2  ;;  %v936_v14 = vpop.f32.mrf.mxu0 }
 0x15f   : > { %v1200_v12 = vpop.f32.mrf.mxu3  ;;  %v1112_v13 = vadd.f32 %v1111_v11, %v1023_v10  ;;  %v1025_v15 = vpop.f32.mrf.mxu1 }
 0x160   : > { %v1026_v18 = vadd.f32 %v1025_v15, %v936_v14 }
 0x161   : > { %v1201_v16 = vadd.f32 %v1200_v12, %v1112_v13 }
 0x163   : > { %v1249_v17 = vpack.c.bf16 %v1201_v16, %v1201_v16 }
 0x165   : > { %1282 = vst.msk [vmem:[%s2174_s4 + $0x54] sm:$0xf] %vm1260_vm0, %v1249_v17 }
 0x166   : > { %v1114_v19 = vpop.f32.mrf.mxu2  ;;  %v938_v22 = vpop.f32.mrf.mxu0 }
 0x167   : > { %v1203_v20 = vpop.f32.mrf.mxu3  ;;  %v1115_v21 = vadd.f32 %v1114_v19, %v1026_v18  ;;  %v1027_v23 = vpop.f32.mrf.mxu1 }
 0x168   : > { %v1028_v26 = vadd.f32 %v1027_v23, %v938_v22 }
 0x169   : > { %v1204_v24 = vadd.f32 %v1203_v20, %v1115_v21 }
 0x16b   : > { %v1250_v25 = vpack.c.bf16 %v1204_v24, %v1204_v24 }
 0x16d   : > { %1283 = vst.msk [vmem:[%s2174_s4 + $0x58] sm:$0xf] %vm1260_vm0, %v1250_v25 }
 0x16e   : > { %v1116_v27 = vpop.f32.mrf.mxu2  ;;  %v941_v30 = vpop.f32.mrf.mxu0 }
 0x16f   : > { %v1205_v28 = vpop.f32.mrf.mxu3  ;;  %v1117_v29 = vadd.f32 %v1116_v27, %v1028_v26  ;;  %v1030_v31 = vpop.f32.mrf.mxu1 }
 0x170   : > { %v1031_v34 = vadd.f32 %v1030_v31, %v941_v30 }
 0x171   : > { %v1206_v32 = vadd.f32 %v1205_v28, %v1117_v29 }
 0x173   : > { %v1251_v33 = vpack.c.bf16 %v1206_v32, %v1206_v32 }
 0x175   : > { %1284 = vst.msk [vmem:[%s2174_s4 + $0x5c] sm:$0xf] %vm1260_vm0, %v1251_v33 }
 0x176   : > { %v1119_v35 = vpop.f32.mrf.mxu2  ;;  %v943_v38 = vpop.f32.mrf.mxu0 }
 0x177   : > { %v1208_v36 = vpop.f32.mrf.mxu3  ;;  %v1120_v37 = vadd.f32 %v1119_v35, %v1031_v34  ;;  %v1032_v39 = vpop.f32.mrf.mxu1 }
 0x178   : > { %v1033_v42 = vadd.f32 %v1032_v39, %v943_v38 }
 0x179   : > { %v1209_v40 = vadd.f32 %v1208_v36, %v1120_v37 }
 0x17b   : > { %v1252_v41 = vpack.c.bf16 %v1209_v40, %v1209_v40 }
 0x17d   : > { %1285 = vst.msk [vmem:[%s2174_s4 + $0x60] sm:$0xf] %vm1260_vm0, %v1252_v41 }
 0x17e   : > { %v1121_v43 = vpop.f32.mrf.mxu2  ;;  %v946_v46 = vpop.f32.mrf.mxu0 }
 0x17f   : > { %v1210_v44 = vpop.f32.mrf.mxu3  ;;  %v1122_v45 = vadd.f32 %v1121_v43, %v1033_v42  ;;  %v1035_v47 = vpop.f32.mrf.mxu1 }
 0x180   : > { %v1036_v50 = vadd.f32 %v1035_v47, %v946_v46 }
 0x181   : > { %v1211_v48 = vadd.f32 %v1210_v44, %v1122_v45 }
 0x183   : > { %v1253_v49 = vpack.c.bf16 %v1211_v48, %v1211_v48 }
 0x185   : > { %1286 = vst.msk [vmem:[%s2174_s4 + $0x64] sm:$0xf] %vm1260_vm0, %v1253_v49 }
 0x186   : > { %v1124_v51 = vpop.f32.mrf.mxu2  ;;  %v948_v54 = vpop.f32.mrf.mxu0 }
 0x187   : > { %v1213_v52 = vpop.f32.mrf.mxu3  ;;  %v1125_v53 = vadd.f32 %v1124_v51, %v1036_v50  ;;  %v1037_v55 = vpop.f32.mrf.mxu1 }
 0x188   : > { %v1038_v58 = vadd.f32 %v1037_v55, %v948_v54 }
 0x189   : > { %v1214_v56 = vadd.f32 %v1213_v52, %v1125_v53 }
 0x18b   : > { %v1254_v57 = vpack.c.bf16 %v1214_v56, %v1214_v56 }
 0x18d   : > { %1287 = vst.msk [vmem:[%s2174_s4 + $0x68] sm:$0xf] %vm1260_vm0, %v1254_v57 }
 0x18e   : > { %v1126_v59 = vpop.f32.mrf.mxu2  ;;  %v951_v62 = vpop.f32.mrf.mxu0 }
 0x18f   : > { %v1215_v60 = vpop.f32.mrf.mxu3  ;;  %v1127_v61 = vadd.f32 %v1126_v59, %v1038_v58  ;;  %v1040_v63 = vpop.f32.mrf.mxu1 }
 0x190   : > { %v1041_v2 = vadd.f32 %v1040_v63, %v951_v62 }
 0x191   : > { %v1216_v0 = vadd.f32 %v1215_v60, %v1127_v61 }
 0x193   : > { %v1255_v1 = vpack.c.bf16 %v1216_v0, %v1216_v0 }
 0x195   : > { %1288 = vst.msk [vmem:[%s2174_s4 + $0x6c] sm:$0xf] %vm1260_vm0, %v1255_v1 }
 0x196   : > { %v1129_v3 = vpop.f32.mrf.mxu2  ;;  %v953_v6 = vpop.f32.mrf.mxu0 }
 0x197   : > { %v1218_v4 = vpop.f32.mrf.mxu3  ;;  %v1130_v5 = vadd.f32 %v1129_v3, %v1041_v2  ;;  %v1042_v7 = vpop.f32.mrf.mxu1 }
 0x198   : > { %v1043_v10 = vadd.f32 %v1042_v7, %v953_v6 }
 0x199   : > { %v1219_v8 = vadd.f32 %v1218_v4, %v1130_v5 }
 0x19b   : > { %v1256_v9 = vpack.c.bf16 %v1219_v8, %v1219_v8 }
 0x19d   : > { %1289 = vst.msk [vmem:[%s2174_s4 + $0x70] sm:$0xf] %vm1260_vm0, %v1256_v9 }
 0x19e   : > { %v1131_v11 = vpop.f32.mrf.mxu2  ;;  %v956_v14 = vpop.f32.mrf.mxu0 }
 0x19f   : > { %v1220_v12 = vpop.f32.mrf.mxu3  ;;  %v1132_v13 = vadd.f32 %v1131_v11, %v1043_v10  ;;  %v1045_v15 = vpop.f32.mrf.mxu1 }
 0x1a0   : > { %v1046_v18 = vadd.f32 %v1045_v15, %v956_v14 }
 0x1a1   : > { %v1221_v16 = vadd.f32 %v1220_v12, %v1132_v13 }
 0x1a3   : > { %v1257_v17 = vpack.c.bf16 %v1221_v16, %v1221_v16 }
 0x1a5   : > { %1290 = vst.msk [vmem:[%s2174_s4 + $0x74] sm:$0xf] %vm1260_vm0, %v1257_v17 }
 0x1a6   : > { %v1134_v19 = vpop.f32.mrf.mxu2  ;;  %v958_v23 = vpop.f32.mrf.mxu0 }
 0x1a7   : > { %v1223_v20 = vpop.f32.mrf.mxu3  ;;  %v1135_v21 = vadd.f32 %v1134_v19, %v1046_v18  ;;  %v1047_v24 = vpop.f32.mrf.mxu1 }
 0x1a8   : > { %v1048_v26 = vadd.f32 %v1047_v24, %v958_v23 }
 0x1a9   : > { %v1224_v22 = vadd.f32 %v1223_v20, %v1135_v21 }
 0x1ab   : > { %v1258_v25 = vpack.c.bf16 %v1224_v22, %v1224_v22 }
 0x1ad   : > { %1291 = vst.msk [vmem:[%s2174_s4 + $0x78] sm:$0xf] %vm1260_vm0, %v1258_v25 }
 0x1ae   : > { %v1136_v27 = vpop.f32.mrf.mxu2 }
 0x1af   : > { %v1137_v28 = vadd.f32 %v1136_v27, %v1048_v26  ;;  %v1225_v29 = vpop.f32.mrf.mxu3 }
 0x1b1   : > { %v1226_v30 = vadd.f32 %v1225_v29, %v1137_v28 }
 0x1b3   : > { %v1259_v31 = vpack.c.bf16 %v1226_v30, %v1226_v30 }
 0x1b5   : > { %1292 = vst.msk [vmem:[%s2174_s4 + $0x7c] sm:$0xf] %vm1260_vm0, %v1259_v31 }
 0x1b6 PF: > { %s12_s13 = sadd.s32 1, %s1992_s13   ;;  %s2314_s9 = smov %s1984_s11 }
 0x1b7   : > { %p9_p7 = scmp.ge.s32.totalorder %s12_s13, 10   ;;  %s2315_s10 = smov %s1988_s12 }
 0x1b8   : > { %s2316_s11 = smov %s2319_s14  ;;  %s2317_s12 = smov %s2323_s15 }
 0x1b9   :  { %11 = sbr.rel (!%p9_p7) target bundleno = 3 (0x3), region = 61 }

// kernel: generator_forward.23
= control target key start
LH: loop header
LB: loop body
LE: loop exit
PB: predicated region body
PF: predicated region fallthrough
CT: control target
= control target key end

     0   :  { %s706_s9 = smov 0   ;;  %s772_s0 = inlined_call_operand.vmem [shape: bf16[1024,128], index: 0, kind: input, shape index: {}]   ;;  %s773_s1 = inlined_call_operand.vmem [shape: f32[1,128], index: 1, kind: output, shape index: {0}]   ;;  %s774_s2 = inlined_call_operand.vmem [shape: f32[1,128], index: 2, kind: output, shape index: {1}]  }
   0x1 LB: > { %s505_s10 = sadd.s32 4294967295, %s688_s9   ;;  %p508_p0 = scmp.ge.s32.totalorder %s688_s9, 1  ;;  %s688_s9 = sphi %s706_s9, %s13_s9  }
   0x2   : > { %p106_p1 = scmp.lt.s32.totalorder %s688_s9, 3 }
   0x4   : > { %p107_p2 = pnand %p508_p0, %p106_p1 }
   0x5   : > { %s509_s11 = sshll.u32 (!%p107_p2), %s505_s10, 6  ;;  %p511_p4 = scmp.ne.s32.totalorder (!%p107_p2), %s505_s10, 0 }
   0x6   : > { %110 = sbr.rel (%p107_p2) target bundleno = 165 (0xa5), region = 24  ;;  %p124_p3 = scmp.lt.s32.totalorder (!%p107_p2), %s509_s11, 127 }
   0xb   : > { %s776_s11 = smov (!%p124_p3, %s509_s11), 127  ;;  %132 = sbr.rel (%p511_p4) target bundleno = 19 (0x13), region = 28 }
   0xc   : > { %s510_s12 = sshll.u32 %s776_s11, 2 }
   0xd   : > { %s717_s15 = scalar_lea.vmem %s772_s0, %s510_s12 }
  0x10   : > { %v690_v0 = vmov 0.0  }
  0x11   : > { %133 = vst [vmem:[%s773_s1] sm:$0x1] %v690_v0 }
  0x12   : > { %134 = vst [vmem:[%s774_s2] sm:$0x1] %v690_v0 }
  0x13 PF: > { %v515_v1 = vld [vmem:[%s717_s15] sm:$0xff]   ;;  %v642_v2 = vld [vmem:[%s717_s15 + $0x8] sm:$0xff]   ;;  %v643_v6 = vld [vmem:[%s717_s15 + $0x10] sm:$0xff]  }
  0x14   : > { %v516_v3 = vunpack.c.l.bf16 %v515_v1  ;;  %v517_v4 = vunpack.c.h.bf16 %v515_v1  ;;  %v520_v5 = vunpack.c.l.bf16 %v642_v2  ;;  %v521_v8 = vunpack.c.h.bf16 %v642_v2  ;;  %v644_v14 = vld [vmem:[%s717_s15 + $0x18] sm:$0xff]   ;;  %v645_v23 = vld [vmem:[%s717_s15 + $0x20] sm:$0xff]   ;;  %v646_v32 = vld [vmem:[%s717_s15 + $0x28] sm:$0xff]  }
  0x15   : > { %v524_v12 = vunpack.c.l.bf16 %v643_v6  ;;  %v525_v16 = vunpack.c.h.bf16 %v643_v6  ;;  %v528_v20 = vunpack.c.l.bf16 %v644_v14  ;;  %v529_v25 = vunpack.c.h.bf16 %v644_v14  ;;  %v647_v41 = vld [vmem:[%s717_s15 + $0x30] sm:$0xff]   ;;  %v648_v50 = vld [vmem:[%s717_s15 + $0x38] sm:$0xff]   ;;  %v649_v59 = vld [vmem:[%s717_s15 + $0x40] sm:$0xff]  }
  0x16   : > { %v264_v7 = vadd.f32 %v517_v4, %v516_v3  ;;  %v336_v9 = vmul.f32 %v516_v3, %v516_v3  ;;  %v337_v10 = vmul.f32 %v517_v4, %v517_v4  ;;  %v338_v13 = vmul.f32 %v520_v5, %v520_v5  ;;  %v650_v4 = vld [vmem:[%s717_s15 + $0x48] sm:$0xff]  }
  0x17   : > { %v339_v17 = vmul.f32 %v521_v8, %v521_v8  ;;  %v340_v21 = vmul.f32 %v524_v12, %v524_v12  ;;  %v341_v26 = vmul.f32 %v525_v16, %v525_v16  ;;  %v532_v29 = vunpack.c.l.bf16 %v645_v23 }
  0x18   : > { %v265_v11 = vadd.f32 %v520_v5, %v264_v7  ;;  %v400_v18 = vadd.f32 %v337_v10, %v336_v9  ;;  %v342_v30 = vmul.f32 %v528_v20, %v528_v20  ;;  %v533_v34 = vunpack.c.h.bf16 %v645_v23 }
  0x19   : > { %v343_v35 = vmul.f32 %v529_v25, %v529_v25  ;;  %v536_v38 = vunpack.c.l.bf16 %v646_v32  ;;  %v344_v39 = vmul.f32 %v532_v29, %v532_v29  ;;  %v537_v43 = vunpack.c.h.bf16 %v646_v32 }
  0x1a   : > { %v266_v15 = vadd.f32 %v521_v8, %v265_v11  ;;  %v401_v22 = vadd.f32 %v400_v18, %v338_v13  ;;  %v345_v44 = vmul.f32 %v533_v34, %v533_v34  ;;  %v540_v47 = vunpack.c.l.bf16 %v647_v41  ;;  %v651_v13 = vld [vmem:[%s717_s15 + $0x50] sm:$0xff]  }
  0x1b   : > { %v346_v48 = vmul.f32 %v536_v38, %v536_v38  ;;  %v541_v52 = vunpack.c.h.bf16 %v647_v41  ;;  %v347_v53 = vmul.f32 %v537_v43, %v537_v43  ;;  %v544_v56 = vunpack.c.l.bf16 %v648_v50 }
  0x1c   : > { %v267_v19 = vadd.f32 %v524_v12, %v266_v15  ;;  %v402_v27 = vadd.f32 %v401_v22, %v339_v17  ;;  %v348_v57 = vmul.f32 %v540_v47, %v540_v47  ;;  %v545_v61 = vunpack.c.h.bf16 %v648_v50  ;;  %v652_v22 = vld [vmem:[%s717_s15 + $0x58] sm:$0xff]  }
  0x1d   : > { %v349_v62 = vmul.f32 %v541_v52, %v541_v52  ;;  %v548_v1 = vunpack.c.l.bf16 %v649_v59  ;;  %v350_v2 = vmul.f32 %v544_v56, %v544_v56  ;;  %v549_v6 = vunpack.c.h.bf16 %v649_v59 }
  0x1e   : > { %v268_v24 = vadd.f32 %v525_v16, %v267_v19  ;;  %v403_v31 = vadd.f32 %v402_v27, %v340_v21  ;;  %v351_v7 = vmul.f32 %v545_v61, %v545_v61  ;;  %v552_v10 = vunpack.c.l.bf16 %v650_v4 }
  0x1f   : > { %v352_v11 = vmul.f32 %v548_v1, %v548_v1  ;;  %v553_v15 = vunpack.c.h.bf16 %v650_v4  ;;  %v353_v16 = vmul.f32 %v549_v6, %v549_v6  ;;  %v556_v19 = vunpack.c.l.bf16 %v651_v13 }
  0x20   : > { %v269_v28 = vadd.f32 %v528_v20, %v268_v24  ;;  %v404_v36 = vadd.f32 %v403_v31, %v341_v26  ;;  %v354_v20 = vmul.f32 %v552_v10, %v552_v10  ;;  %v557_v24 = vunpack.c.h.bf16 %v651_v13  ;;  %v653_v31 = vld [vmem:[%s717_s15 + $0x60] sm:$0xff]  }
  0x22   : > { %v270_v33 = vadd.f32 %v529_v25, %v269_v28  ;;  %v405_v40 = vadd.f32 %v404_v36, %v342_v30  ;;  %v355_v25 = vmul.f32 %v553_v15, %v553_v15  ;;  %v560_v28 = vunpack.c.l.bf16 %v652_v22 }
  0x24   : > { %v271_v37 = vadd.f32 %v532_v29, %v270_v33  ;;  %v406_v45 = vadd.f32 %v405_v40, %v343_v35  ;;  %v356_v29 = vmul.f32 %v556_v19, %v556_v19  ;;  %v561_v33 = vunpack.c.h.bf16 %v652_v22  ;;  %v654_v40 = vld [vmem:[%s717_s15 + $0x68] sm:$0xff]  }
  0x26   : > { %v272_v42 = vadd.f32 %v533_v34, %v271_v37  ;;  %v407_v49 = vadd.f32 %v406_v45, %v344_v39  ;;  %v357_v34 = vmul.f32 %v557_v24, %v557_v24  ;;  %v564_v37 = vunpack.c.l.bf16 %v653_v31 }
  0x28   : > { %v273_v46 = vadd.f32 %v536_v38, %v272_v42  ;;  %v408_v54 = vadd.f32 %v407_v49, %v345_v44  ;;  %v358_v38 = vmul.f32 %v560_v28, %v560_v28  ;;  %v565_v42 = vunpack.c.h.bf16 %v653_v31  ;;  %v655_v49 = vld [vmem:[%s717_s15 + $0x70] sm:$0xff]  }
  0x2a   : > { %v274_v51 = vadd.f32 %v537_v43, %v273_v46  ;;  %v409_v58 = vadd.f32 %v408_v54, %v346_v48  ;;  %v359_v43 = vmul.f32 %v561_v33, %v561_v33  ;;  %v568_v46 = vunpack.c.l.bf16 %v654_v40 }
  0x2c   : > { %v275_v55 = vadd.f32 %v540_v47, %v274_v51  ;;  %v410_v63 = vadd.f32 %v409_v58, %v347_v53  ;;  %v360_v47 = vmul.f32 %v564_v37, %v564_v37  ;;  %v569_v51 = vunpack.c.h.bf16 %v654_v40  ;;  %v656_v58 = vld [vmem:[%s717_s15 + $0x78] sm:$0xff]  }
  0x2e   : > { %v276_v60 = vadd.f32 %v541_v52, %v275_v55  ;;  %v411_v3 = vadd.f32 %v410_v63, %v348_v57  ;;  %v361_v52 = vmul.f32 %v565_v42, %v565_v42  ;;  %v572_v55 = vunpack.c.l.bf16 %v655_v49 }
  0x30   : > { %v277_v0 = vadd.f32 %v544_v56, %v276_v60  ;;  %v412_v8 = vadd.f32 %v411_v3, %v349_v62  ;;  %v362_v56 = vmul.f32 %v568_v46, %v568_v46  ;;  %v573_v60 = vunpack.c.h.bf16 %v655_v49  ;;  %v657_v3 = vld [vmem:[%s717_s15 + $0x80] sm:$0xff]  }
  0x32   : > { %v278_v5 = vadd.f32 %v545_v61, %v277_v0  ;;  %v413_v12 = vadd.f32 %v412_v8, %v350_v2  ;;  %v363_v61 = vmul.f32 %v569_v51, %v569_v51  ;;  %v576_v0 = vunpack.c.l.bf16 %v656_v58 }
  0x34   : > { %v279_v9 = vadd.f32 %v548_v1, %v278_v5  ;;  %v414_v17 = vadd.f32 %v413_v12, %v351_v7  ;;  %v364_v1 = vmul.f32 %v572_v55, %v572_v55  ;;  %v577_v5 = vunpack.c.h.bf16 %v656_v58  ;;  %v658_v12 = vld [vmem:[%s717_s15 + $0x88] sm:$0xff]  }
  0x36   : > { %v280_v14 = vadd.f32 %v549_v6, %v279_v9  ;;  %v415_v21 = vadd.f32 %v414_v17, %v352_v11  ;;  %v365_v6 = vmul.f32 %v573_v60, %v573_v60  ;;  %v580_v9 = vunpack.c.l.bf16 %v657_v3 }
  0x38   : > { %v281_v18 = vadd.f32 %v552_v10, %v280_v14  ;;  %v416_v26 = vadd.f32 %v415_v21, %v353_v16  ;;  %v366_v10 = vmul.f32 %v576_v0, %v576_v0  ;;  %v581_v14 = vunpack.c.h.bf16 %v657_v3  ;;  %v659_v21 = vld [vmem:[%s717_s15 + $0x90] sm:$0xff]  }
  0x3a   : > { %v282_v23 = vadd.f32 %v553_v15, %v281_v18  ;;  %v417_v30 = vadd.f32 %v416_v26, %v354_v20  ;;  %v367_v15 = vmul.f32 %v577_v5, %v577_v5  ;;  %v584_v18 = vunpack.c.l.bf16 %v658_v12 }
  0x3c   : > { %v283_v27 = vadd.f32 %v556_v19, %v282_v23  ;;  %v418_v35 = vadd.f32 %v417_v30, %v355_v25  ;;  %v368_v19 = vmul.f32 %v580_v9, %v580_v9  ;;  %v585_v23 = vunpack.c.h.bf16 %v658_v12  ;;  %v660_v30 = vld [vmem:[%s717_s15 + $0x98] sm:$0xff]  }
  0x3e   : > { %v284_v32 = vadd.f32 %v557_v24, %v283_v27  ;;  %v419_v39 = vadd.f32 %v418_v35, %v356_v29  ;;  %v369_v24 = vmul.f32 %v581_v14, %v581_v14  ;;  %v588_v27 = vunpack.c.l.bf16 %v659_v21 }
  0x40   : > { %v285_v36 = vadd.f32 %v560_v28, %v284_v32  ;;  %v420_v44 = vadd.f32 %v419_v39, %v357_v34  ;;  %v370_v28 = vmul.f32 %v584_v18, %v584_v18  ;;  %v589_v32 = vunpack.c.h.bf16 %v659_v21  ;;  %v661_v39 = vld [vmem:[%s717_s15 + $0xa0] sm:$0xff]  }
  0x42   : > { %v286_v41 = vadd.f32 %v561_v33, %v285_v36  ;;  %v421_v48 = vadd.f32 %v420_v44, %v358_v38  ;;  %v371_v33 = vmul.f32 %v585_v23, %v585_v23  ;;  %v592_v36 = vunpack.c.l.bf16 %v660_v30 }
  0x44   : > { %v287_v45 = vadd.f32 %v564_v37, %v286_v41  ;;  %v422_v53 = vadd.f32 %v421_v48, %v359_v43  ;;  %v372_v37 = vmul.f32 %v588_v27, %v588_v27  ;;  %v593_v41 = vunpack.c.h.bf16 %v660_v30  ;;  %v662_v48 = vld [vmem:[%s717_s15 + $0xa8] sm:$0xff]  }
  0x46   : > { %v288_v50 = vadd.f32 %v565_v42, %v287_v45  ;;  %v423_v57 = vadd.f32 %v422_v53, %v360_v47  ;;  %v373_v42 = vmul.f32 %v589_v32, %v589_v32  ;;  %v596_v45 = vunpack.c.l.bf16 %v661_v39 }
  0x48   : > { %v289_v54 = vadd.f32 %v568_v46, %v288_v50  ;;  %v424_v62 = vadd.f32 %v423_v57, %v361_v52  ;;  %v374_v46 = vmul.f32 %v592_v36, %v592_v36  ;;  %v597_v50 = vunpack.c.h.bf16 %v661_v39  ;;  %v663_v57 = vld [vmem:[%s717_s15 + $0xb0] sm:$0xff]  }
  0x4a   : > { %v290_v59 = vadd.f32 %v569_v51, %v289_v54  ;;  %v425_v2 = vadd.f32 %v424_v62, %v362_v56  ;;  %v375_v51 = vmul.f32 %v593_v41, %v593_v41  ;;  %v600_v54 = vunpack.c.l.bf16 %v662_v48 }
  0x4c   : > { %v291_v63 = vadd.f32 %v572_v55, %v290_v59  ;;  %v426_v7 = vadd.f32 %v425_v2, %v363_v61  ;;  %v376_v55 = vmul.f32 %v596_v45, %v596_v45  ;;  %v601_v59 = vunpack.c.h.bf16 %v662_v48  ;;  %v664_v2 = vld [vmem:[%s717_s15 + $0xb8] sm:$0xff]  }
  0x4e   : > { %v292_v4 = vadd.f32 %v573_v60, %v291_v63  ;;  %v427_v11 = vadd.f32 %v426_v7, %v364_v1  ;;  %v377_v60 = vmul.f32 %v597_v50, %v597_v50  ;;  %v604_v63 = vunpack.c.l.bf16 %v663_v57 }
  0x50   : > { %v293_v8 = vadd.f32 %v576_v0, %v292_v4  ;;  %v428_v16 = vadd.f32 %v427_v11, %v365_v6  ;;  %v378_v0 = vmul.f32 %v600_v54, %v600_v54  ;;  %v605_v4 = vunpack.c.h.bf16 %v663_v57  ;;  %v665_v11 = vld [vmem:[%s717_s15 + $0xc0] sm:$0xff]  }
  0x52   : > { %v294_v13 = vadd.f32 %v577_v5, %v293_v8  ;;  %v429_v20 = vadd.f32 %v428_v16, %v366_v10  ;;  %v379_v5 = vmul.f32 %v601_v59, %v601_v59  ;;  %v608_v8 = vunpack.c.l.bf16 %v664_v2 }
  0x54   : > { %v295_v17 = vadd.f32 %v580_v9, %v294_v13  ;;  %v430_v25 = vadd.f32 %v429_v20, %v367_v15  ;;  %v380_v9 = vmul.f32 %v604_v63, %v604_v63  ;;  %v609_v13 = vunpack.c.h.bf16 %v664_v2  ;;  %v666_v20 = vld [vmem:[%s717_s15 + $0xc8] sm:$0xff]  }
  0x56   : > { %v296_v22 = vadd.f32 %v581_v14, %v295_v17  ;;  %v431_v29 = vadd.f32 %v430_v25, %v368_v19  ;;  %v381_v14 = vmul.f32 %v605_v4, %v605_v4  ;;  %v612_v17 = vunpack.c.l.bf16 %v665_v11 }
  0x58   : > { %v297_v26 = vadd.f32 %v584_v18, %v296_v22  ;;  %v432_v34 = vadd.f32 %v431_v29, %v369_v24  ;;  %v382_v18 = vmul.f32 %v608_v8, %v608_v8  ;;  %v613_v22 = vunpack.c.h.bf16 %v665_v11  ;;  %v667_v29 = vld [vmem:[%s717_s15 + $0xd0] sm:$0xff]  }
  0x5a   : > { %v298_v31 = vadd.f32 %v585_v23, %v297_v26  ;;  %v433_v38 = vadd.f32 %v432_v34, %v370_v28  ;;  %v383_v23 = vmul.f32 %v609_v13, %v609_v13  ;;  %v616_v26 = vunpack.c.l.bf16 %v666_v20 }
  0x5c   : > { %v299_v35 = vadd.f32 %v588_v27, %v298_v31  ;;  %v434_v43 = vadd.f32 %v433_v38, %v371_v33  ;;  %v384_v27 = vmul.f32 %v612_v17, %v612_v17  ;;  %v617_v31 = vunpack.c.h.bf16 %v666_v20  ;;  %v668_v38 = vld [vmem:[%s717_s15 + $0xd8] sm:$0xff]  }
  0x5e   : > { %v300_v40 = vadd.f32 %v589_v32, %v299_v35  ;;  %v435_v47 = vadd.f32 %v434_v43, %v372_v37  ;;  %v385_v32 = vmul.f32 %v613_v22, %v613_v22  ;;  %v620_v35 = vunpack.c.l.bf16 %v667_v29 }
  0x60   : > { %v301_v44 = vadd.f32 %v592_v36, %v300_v40  ;;  %v436_v52 = vadd.f32 %v435_v47, %v373_v42  ;;  %v386_v36 = vmul.f32 %v616_v26, %v616_v26  ;;  %v621_v40 = vunpack.c.h.bf16 %v667_v29  ;;  %v669_v47 = vld [vmem:[%s717_s15 + $0xe0] sm:$0xff]  }
  0x62   : > { %v302_v49 = vadd.f32 %v593_v41, %v301_v44  ;;  %v437_v56 = vadd.f32 %v436_v52, %v374_v46  ;;  %v387_v41 = vmul.f32 %v617_v31, %v617_v31  ;;  %v624_v44 = vunpack.c.l.bf16 %v668_v38 }
  0x64   : > { %v303_v53 = vadd.f32 %v596_v45, %v302_v49  ;;  %v438_v61 = vadd.f32 %v437_v56, %v375_v51  ;;  %v388_v45 = vmul.f32 %v620_v35, %v620_v35  ;;  %v625_v49 = vunpack.c.h.bf16 %v668_v38  ;;  %v670_v56 = vld [vmem:[%s717_s15 + $0xe8] sm:$0xff]   ;;  %v263_v38 = vld [vmem:[%s773_s1] sm:$0x1] }
  0x66   : > { %v304_v58 = vadd.f32 %v597_v50, %v303_v53  ;;  %v439_v1 = vadd.f32 %v438_v61, %v376_v55  ;;  %v389_v50 = vmul.f32 %v621_v40, %v621_v40  ;;  %v628_v53 = vunpack.c.l.bf16 %v669_v47 }
  0x68   : > { %v305_v62 = vadd.f32 %v600_v54, %v304_v58  ;;  %v440_v6 = vadd.f32 %v439_v1, %v377_v60  ;;  %v390_v54 = vmul.f32 %v624_v44, %v624_v44  ;;  %v629_v58 = vunpack.c.h.bf16 %v669_v47  ;;  %v671_v1 = vld [vmem:[%s717_s15 + $0xf0] sm:$0xff]  }
  0x6a   : > { %v306_v3 = vadd.f32 %v601_v59, %v305_v62  ;;  %v441_v10 = vadd.f32 %v440_v6, %v378_v0  ;;  %v391_v59 = vmul.f32 %v625_v49, %v625_v49  ;;  %v632_v62 = vunpack.c.l.bf16 %v670_v56 }
  0x6c   : > { %v307_v7 = vadd.f32 %v604_v63, %v306_v3  ;;  %v442_v15 = vadd.f32 %v441_v10, %v379_v5  ;;  %v392_v63 = vmul.f32 %v628_v53, %v628_v53  ;;  %v633_v3 = vunpack.c.h.bf16 %v670_v56  ;;  %v672_v10 = vld [vmem:[%s717_s15 + $0xf8] sm:$0xff]  }
  0x6d   : > { %v641_v20 = vunpack.c.h.bf16 %v672_v10 }
  0x6e   : > { %v308_v12 = vadd.f32 %v605_v4, %v307_v7  ;;  %v443_v19 = vadd.f32 %v442_v15, %v380_v9  ;;  %v393_v4 = vmul.f32 %v629_v58, %v629_v58  ;;  %v636_v7 = vunpack.c.l.bf16 %v671_v1 }
  0x70   : > { %v309_v16 = vadd.f32 %v608_v8, %v308_v12  ;;  %v444_v24 = vadd.f32 %v443_v19, %v381_v14  ;;  %v394_v8 = vmul.f32 %v632_v62, %v632_v62  ;;  %v637_v12 = vunpack.c.h.bf16 %v671_v1 }
  0x72   : > { %v310_v21 = vadd.f32 %v609_v13, %v309_v16  ;;  %v445_v28 = vadd.f32 %v444_v24, %v382_v18  ;;  %v395_v13 = vmul.f32 %v633_v3, %v633_v3  ;;  %v640_v16 = vunpack.c.l.bf16 %v672_v10 }
  0x74   : > { %v311_v25 = vadd.f32 %v612_v17, %v310_v21  ;;  %v446_v33 = vadd.f32 %v445_v28, %v383_v23  ;;  %v396_v17 = vmul.f32 %v636_v7, %v636_v7  ;;  %v397_v21 = vmul.f32 %v637_v12, %v637_v12 }
  0x75   : > { %v398_v24 = vmul.f32 %v640_v16, %v640_v16 }
  0x76   : > { %v312_v30 = vadd.f32 %v613_v22, %v311_v25  ;;  %v447_v37 = vadd.f32 %v446_v33, %v384_v27  ;;  %v399_v27 = vmul.f32 %v641_v20, %v641_v20 }
  0x78   : > { %v313_v34 = vadd.f32 %v616_v26, %v312_v30  ;;  %v448_v42 = vadd.f32 %v447_v37, %v385_v32 }
  0x7a   : > { %v314_v39 = vadd.f32 %v617_v31, %v313_v34  ;;  %v449_v46 = vadd.f32 %v448_v42, %v386_v36 }
  0x7c   : > { %v315_v43 = vadd.f32 %v620_v35, %v314_v39  ;;  %v450_v51 = vadd.f32 %v449_v46, %v387_v41 }
  0x7e   : > { %v316_v48 = vadd.f32 %v621_v40, %v315_v43  ;;  %v451_v55 = vadd.f32 %v450_v51, %v388_v45 }
  0x80   : > { %v317_v52 = vadd.f32 %v624_v44, %v316_v48  ;;  %v452_v60 = vadd.f32 %v451_v55, %v389_v50  ;;  %v335_v44 = vld [vmem:[%s774_s2] sm:$0x1] }
  0x82   : > { %v318_v57 = vadd.f32 %v625_v49, %v317_v52  ;;  %v453_v0 = vadd.f32 %v452_v60, %v390_v54 }
  0x84   : > { %v319_v61 = vadd.f32 %v628_v53, %v318_v57  ;;  %v454_v5 = vadd.f32 %v453_v0, %v391_v59 }
  0x86   : > { %v320_v2 = vadd.f32 %v629_v58, %v319_v61  ;;  %v455_v9 = vadd.f32 %v454_v5, %v392_v63 }
  0x88   : > { %v321_v6 = vadd.f32 %v632_v62, %v320_v2  ;;  %v456_v14 = vadd.f32 %v455_v9, %v393_v4 }
  0x8a   : > { %v322_v11 = vadd.f32 %v633_v3, %v321_v6  ;;  %v457_v18 = vadd.f32 %v456_v14, %v394_v8 }
  0x8c   : > { %v323_v15 = vadd.f32 %v636_v7, %v322_v11  ;;  %v458_v22 = vadd.f32 %v457_v18, %v395_v13 }
  0x8e   : > { %v324_v19 = vadd.f32 %v637_v12, %v323_v15  ;;  %v459_v25 = vadd.f32 %v458_v22, %v396_v17 }
  0x90   : > { %v325_v23 = vadd.f32 %v640_v16, %v324_v19  ;;  %v460_v28 = vadd.f32 %v459_v25, %v397_v21 }
  0x92   : > { %v326_v26 = vadd.f32 %v641_v20, %v325_v23  ;;  %v461_v30 = vadd.f32 %v460_v28, %v398_v24 }
  0x94   : > { %v327_v29 = vrot.slane %v326_v26, 4  ;;  %v462_v32 = vadd.f32 %v461_v30, %v399_v27 }
  0x96   : > { %v328_v31 = vadd.f32 %v327_v29, %v326_v26  ;;  %v463_v34 = vrot.slane %v462_v32, 4 }
  0x98   : > { %v329_v33 = vrot.slane %v328_v31, 2  ;;  %v464_v36 = vadd.f32 %v463_v34, %v462_v32 }
  0x9a   : > { %v330_v35 = vadd.f32 %v329_v33, %v328_v31  ;;  %v465_v39 = vrot.slane %v464_v36, 2 }
  0x9c   : > { %v331_v37 = vrot.slane %v330_v35, 1  ;;  %v466_v41 = vadd.f32 %v465_v39, %v464_v36 }
  0x9e   : > { %v332_v40 = vadd.f32 %v331_v37, %v330_v35  ;;  %v467_v43 = vrot.slane %v466_v41, 1 }
  0xa0   : > { %v333_v42 = vadd.f32 %v332_v40, %v263_v38  ;;  %v468_v45 = vadd.f32 %v467_v43, %v466_v41 }
  0xa2   : > { %334 = vst [vmem:[%s773_s1] sm:$0x1] %v333_v42  ;;  %v469_v46 = vadd.f32 %v468_v45, %v335_v44 }
  0xa4   : > { %470 = vst [vmem:[%s774_s2] sm:$0x1] %v469_v46 }
  0xa5 PF: > { %s13_s9 = sadd.s32 1, %s688_s9  }
  0xa6   : > { %p10_p5 = scmp.ge.s32.totalorder %s13_s9, 4  }
  0xa8   :  { %12 = sbr.rel (!%p10_p5) target bundleno = 1 (0x1), region = 62 }

// kernel: tile.25
= control target key start
LH: loop header
LB: loop body
LE: loop exit
PB: predicated region body
PF: predicated region fallthrough
CT: control target
= control target key end

     0   :  { %s22_s0 = inlined_call_operand.vmem [shape: f32[64], index: 0, kind: input, shape index: {}]   ;;  %s23_s1 = inlined_call_operand.vmem [shape: f32[2,64], index: 1, kind: output, shape index: {}]  }
   0x1   :  { %v4_v0 = vld [vmem:[%s22_s0] ss:$0 sm:$0xff] }
   0x2   :  { %5 = vst [vmem:[%s23_s1] sm:$0x3] %v4_v0 }

// kernel: tile.26
= control target key start
LH: loop header
LB: loop body
LE: loop exit
PB: predicated region body
PF: predicated region fallthrough
CT: control target
= control target key end

     0   :  { %vm7_vm0 = vcmask 523264   ;;  %vm13_vm1 = vcmask 1048064   ;;  %s39_s0 = inlined_call_operand.vmem [shape: f32[2,64], index: 0, kind: input, shape index: {}]   ;;  %s40_s1 = inlined_call_operand.vmem [shape: f32[1,128], index: 1, kind: output, shape index: {}]  }
   0x1   :  { %v4_v0 = vld [vmem:[%s39_s0] sm:$0x3]  ;;  %s22_s0 = smov 64  }
   0x2   :  { %5 = vst [vmem:[#allocation1] sm:$0x3] %v4_v0 }
   0x9   :  { %v10_v1 = vld [vmem:[#allocation1 + $0x1] sm:$0x1]   ;;  %v6_v2 = vld [vmem:[#allocation1] sm:$0x1]  }
   0xa   :  { %11 = vrot.lane.b32.xlu0 %v10_v1, %s22_s0  ;;  %8 = vst.msk [vmem:[#allocation0] sm:$0x1] %vm7_vm0, %v6_v2  }
  0x7c   :  { %v12_v3 = vpop.permute.xlu0 %11  }
  0x7d   :  { %14 = vst.msk [vmem:[#allocation0] sm:$0x1] %vm13_vm1, %v12_v3  }
  0x84   :  { %v17_v4 = vld [vmem:[#allocation0] sm:$0x1] }
  0x85   :  { %20 = vst [vmem:[%s40_s1] sm:$0x1] %v17_v4 }

// kernel: generator_forward.24
= control target key start
LH: loop header
LB: loop body
LE: loop exit
PB: predicated region body
PF: predicated region fallthrough
CT: control target
= control target key end

     0   :  { %s1085_s12 = smov 0   ;;  %s1315_s0 = inlined_call_operand.vmem [shape: bf16[1024,128], index: 0, kind: input, shape index: {}]   ;;  %s1316_s1 = inlined_call_operand.vmem [shape: f32[1,128], index: 1, kind: input, shape index: {}]   ;;  %s1317_s2 = inlined_call_operand.vmem [shape: f32[1,128], index: 2, kind: input, shape index: {}]   ;;  %s1318_s3 = inlined_call_operand.vmem [shape: bf16[1024,128], index: 3, kind: output, shape index: {}]  }
   0x1 LB: > { %s686_s13 = sadd.s32 4294967295, %s1063_s12   ;;  %p690_p0 = scmp.ge.s32.totalorder %s1063_s12, 1  ;;  %s1063_s12 = sphi %s1085_s12, %s13_s12  }
   0x2   : > { %p138_p1 = scmp.lt.s32.totalorder %s1063_s12, 3 }
   0x4   : > { %p139_p2 = pnand %p690_p0, %p138_p1 }
   0x5   : > { %s691_s14 = sshll.u32 (!%p139_p2), %s686_s13, 6 }
   0x6   : > { %142 = sbr.rel (%p139_p2) target bundleno = 93 (0x5d), region = 32  ;;  %p163_p3 = scmp.lt.s32.totalorder (!%p139_p2), %s691_s14, 127 }
   0xb   : > { %s1320_s14 = smov (!%p163_p3, %s691_s14), 127  ;;  %v1106_v0 = vld [vmem:[%s1316_s1] ss:$0 sm:$0xff] }
   0xc   : > { %s692_s15 = sshll.u32 %s1320_s14, 2  ;;  %v1114_v6 = vld [vmem:[%s1317_s2] ss:$0 sm:$0xff] }
   0xd   : > { %s1101_s18 = scalar_lea.vmem %s1315_s0, %s692_s15  ;;  %s1140_s25 = scalar_lea.vmem %s1318_s3, %s692_s15 }
   0xe   : > { %v698_v1 = vld [vmem:[%s1101_s18] sm:$0xff]   ;;  %v985_v2 = vld [vmem:[%s1101_s18 + $0x8] sm:$0xff]   ;;  %v986_v3 = vld [vmem:[%s1101_s18 + $0x10] sm:$0xff]  }
   0xf   : > { %v699_v4 = vunpack.c.l.bf16 %v698_v1  ;;  %v700_v5 = vunpack.c.h.bf16 %v698_v1  ;;  %v703_v7 = vunpack.c.l.bf16 %v985_v2  ;;  %v704_v8 = vunpack.c.h.bf16 %v985_v2  ;;  %v987_v9 = vld [vmem:[%s1101_s18 + $0x18] sm:$0xff]   ;;  %v988_v30 = vld [vmem:[%s1101_s18 + $0x20] sm:$0xff]   ;;  %v989_v35 = vld [vmem:[%s1101_s18 + $0x28] sm:$0xff]  }
  0x10   : > { %v707_v10 = vunpack.c.l.bf16 %v986_v3  ;;  %v708_v11 = vunpack.c.h.bf16 %v986_v3  ;;  %v711_v12 = vunpack.c.l.bf16 %v987_v9  ;;  %v712_v13 = vunpack.c.h.bf16 %v987_v9  ;;  %v990_v40 = vld [vmem:[%s1101_s18 + $0x30] sm:$0xff]   ;;  %v991_v45 = vld [vmem:[%s1101_s18 + $0x38] sm:$0xff]   ;;  %v992_v3 = vld [vmem:[%s1101_s18 + $0x40] sm:$0xff]  }
  0x11   : > { %v306_v14 = vmul.f32 %v1106_v0, %v699_v4  ;;  %v307_v15 = vmul.f32 %v1106_v0, %v700_v5  ;;  %v308_v16 = vmul.f32 %v1106_v0, %v703_v7  ;;  %v309_v17 = vmul.f32 %v1106_v0, %v704_v8 }
  0x12   : > { %v310_v18 = vmul.f32 %v1106_v0, %v707_v10  ;;  %v311_v19 = vmul.f32 %v1106_v0, %v708_v11  ;;  %v312_v20 = vmul.f32 %v1106_v0, %v711_v12  ;;  %v313_v21 = vmul.f32 %v1106_v0, %v712_v13  ;;  %v993_v13 = vld [vmem:[%s1101_s18 + $0x48] sm:$0xff]  }
  0x13   : > { %v374_v22 = vadd.f32 %v1114_v6, %v306_v14  ;;  %v375_v23 = vadd.f32 %v1114_v6, %v307_v15  ;;  %v376_v24 = vadd.f32 %v1114_v6, %v308_v16  ;;  %v377_v25 = vadd.f32 %v1114_v6, %v309_v17 }
  0x14   : > { %v378_v26 = vadd.f32 %v1114_v6, %v310_v18  ;;  %v379_v27 = vadd.f32 %v1114_v6, %v311_v19  ;;  %v380_v28 = vadd.f32 %v1114_v6, %v312_v20  ;;  %v381_v29 = vadd.f32 %v1114_v6, %v313_v21  ;;  %v994_v18 = vld [vmem:[%s1101_s18 + $0x50] sm:$0xff]  }
  0x15   : > { %v438_v31 = vmax.f32 %v374_v22, 0.0  ;;  %v439_v32 = vmax.f32 %v375_v23, 0.0  ;;  %v440_v33 = vmax.f32 %v376_v24, 0.0  ;;  %v441_v34 = vmax.f32 %v377_v25, 0.0  ;;  %v995_v23 = vld [vmem:[%s1101_s18 + $0x58] sm:$0xff]  }
  0x16   : > { %v442_v36 = vmax.f32 %v378_v26, 0.0  ;;  %v443_v37 = vmax.f32 %v379_v27, 0.0  ;;  %v444_v38 = vmax.f32 %v380_v28, 0.0  ;;  %v445_v39 = vmax.f32 %v381_v29, 0.0 }
  0x17   : > { %v828_v41 = vpack.c.bf16 %v439_v32, %v438_v31  ;;  %v833_v42 = vpack.c.bf16 %v441_v34, %v440_v33  ;;  %v715_v43 = vunpack.c.l.bf16 %v988_v30  ;;  %v716_v44 = vunpack.c.h.bf16 %v988_v30 }
  0x18   : > { %v838_v46 = vpack.c.bf16 %v443_v37, %v442_v36  ;;  %v843_v47 = vpack.c.bf16 %v445_v39, %v444_v38  ;;  %v719_v48 = vunpack.c.l.bf16 %v989_v35  ;;  %v720_v49 = vunpack.c.h.bf16 %v989_v35 }
  0x19   : > { %829 = vst [vmem:[%s1140_s25] sm:$0xff] %v828_v41   ;;  %v314_v50 = vmul.f32 %v1106_v0, %v715_v43  ;;  %v315_v51 = vmul.f32 %v1106_v0, %v716_v44  ;;  %v723_v52 = vunpack.c.l.bf16 %v990_v40  ;;  %v724_v53 = vunpack.c.h.bf16 %v990_v40  ;;  %v996_v40 = vld [vmem:[%s1101_s18 + $0x60] sm:$0xff]  }
  0x1a   : > { %1016 = vst [vmem:[%s1140_s25 + $0x8] sm:$0xff] %v833_v42   ;;  %v316_v54 = vmul.f32 %v1106_v0, %v719_v48  ;;  %v317_v55 = vmul.f32 %v1106_v0, %v720_v49  ;;  %v727_v56 = vunpack.c.l.bf16 %v991_v45  ;;  %v728_v57 = vunpack.c.h.bf16 %v991_v45 }
  0x1b   : > { %1017 = vst [vmem:[%s1140_s25 + $0x10] sm:$0xff] %v838_v46   ;;  %v382_v58 = vadd.f32 %v1114_v6, %v314_v50  ;;  %v383_v59 = vadd.f32 %v1114_v6, %v315_v51  ;;  %v318_v60 = vmul.f32 %v1106_v0, %v723_v52  ;;  %v319_v61 = vmul.f32 %v1106_v0, %v724_v53  ;;  %v997_v53 = vld [vmem:[%s1101_s18 + $0x68] sm:$0xff]  }
  0x1c   : > { %1018 = vst [vmem:[%s1140_s25 + $0x18] sm:$0xff] %v843_v47   ;;  %v384_v62 = vadd.f32 %v1114_v6, %v316_v54  ;;  %v385_v63 = vadd.f32 %v1114_v6, %v317_v55  ;;  %v320_v1 = vmul.f32 %v1106_v0, %v727_v56  ;;  %v321_v2 = vmul.f32 %v1106_v0, %v728_v57 }
  0x1d   : > { %v446_v4 = vmax.f32 %v382_v58, 0.0  ;;  %v447_v5 = vmax.f32 %v383_v59, 0.0  ;;  %v386_v7 = vadd.f32 %v1114_v6, %v318_v60  ;;  %v387_v8 = vadd.f32 %v1114_v6, %v319_v61  ;;  %v998_v58 = vld [vmem:[%s1101_s18 + $0x70] sm:$0xff]  }
  0x1e   : > { %v448_v9 = vmax.f32 %v384_v62, 0.0  ;;  %v449_v10 = vmax.f32 %v385_v63, 0.0  ;;  %v388_v11 = vadd.f32 %v1114_v6, %v320_v1  ;;  %v389_v12 = vadd.f32 %v1114_v6, %v321_v2  ;;  %v999_v63 = vld [vmem:[%s1101_s18 + $0x78] sm:$0xff]  }
  0x1f   : > { %v848_v14 = vpack.c.bf16 %v447_v5, %v446_v4  ;;  %v450_v15 = vmax.f32 %v386_v7, 0.0  ;;  %v451_v16 = vmax.f32 %v387_v8, 0.0  ;;  %v731_v17 = vunpack.c.l.bf16 %v992_v3 }
  0x20   : > { %v853_v19 = vpack.c.bf16 %v449_v10, %v448_v9  ;;  %v452_v20 = vmax.f32 %v388_v11, 0.0  ;;  %v453_v21 = vmax.f32 %v389_v12, 0.0  ;;  %v732_v22 = vunpack.c.h.bf16 %v992_v3 }
  0x21   : > { %1019 = vst [vmem:[%s1140_s25 + $0x20] sm:$0xff] %v848_v14   ;;  %v858_v24 = vpack.c.bf16 %v451_v16, %v450_v15  ;;  %v322_v25 = vmul.f32 %v1106_v0, %v731_v17  ;;  %v735_v26 = vunpack.c.l.bf16 %v993_v13  ;;  %v736_v27 = vunpack.c.h.bf16 %v993_v13  ;;  %v1000_v14 = vld [vmem:[%s1101_s18 + $0x80] sm:$0xff]  }
  0x22   : > { %1020 = vst [vmem:[%s1140_s25 + $0x28] sm:$0xff] %v853_v19   ;;  %v863_v28 = vpack.c.bf16 %v453_v21, %v452_v20  ;;  %v323_v29 = vmul.f32 %v1106_v0, %v732_v22  ;;  %v739_v30 = vunpack.c.l.bf16 %v994_v18  ;;  %v740_v31 = vunpack.c.h.bf16 %v994_v18 }
  0x23   : > { %1021 = vst [vmem:[%s1140_s25 + $0x30] sm:$0xff] %v858_v24   ;;  %v390_v32 = vadd.f32 %v1114_v6, %v322_v25  ;;  %v324_v33 = vmul.f32 %v1106_v0, %v735_v26  ;;  %v325_v34 = vmul.f32 %v1106_v0, %v736_v27  ;;  %v743_v35 = vunpack.c.l.bf16 %v995_v23 }
  0x24   : > { %1022 = vst [vmem:[%s1140_s25 + $0x38] sm:$0xff] %v863_v28   ;;  %v391_v36 = vadd.f32 %v1114_v6, %v323_v29  ;;  %v326_v37 = vmul.f32 %v1106_v0, %v739_v30  ;;  %v327_v38 = vmul.f32 %v1106_v0, %v740_v31  ;;  %v744_v39 = vunpack.c.h.bf16 %v995_v23  ;;  %v1001_v31 = vld [vmem:[%s1101_s18 + $0x88] sm:$0xff]  }
  0x25   : > { %v454_v41 = vmax.f32 %v390_v32, 0.0  ;;  %v392_v42 = vadd.f32 %v1114_v6, %v324_v33  ;;  %v393_v43 = vadd.f32 %v1114_v6, %v325_v34  ;;  %v328_v44 = vmul.f32 %v1106_v0, %v743_v35 }
  0x26   : > { %v455_v45 = vmax.f32 %v391_v36, 0.0  ;;  %v394_v46 = vadd.f32 %v1114_v6, %v326_v37  ;;  %v395_v47 = vadd.f32 %v1114_v6, %v327_v38  ;;  %v329_v48 = vmul.f32 %v1106_v0, %v744_v39  ;;  %v1002_v36 = vld [vmem:[%s1101_s18 + $0x90] sm:$0xff]  }
  0x27   : > { %v456_v49 = vmax.f32 %v392_v42, 0.0  ;;  %v457_v50 = vmax.f32 %v393_v43, 0.0  ;;  %v396_v51 = vadd.f32 %v1114_v6, %v328_v44  ;;  %v747_v52 = vunpack.c.l.bf16 %v996_v40 }
  0x28   : > { %v868_v54 = vpack.c.bf16 %v455_v45, %v454_v41  ;;  %v458_v55 = vmax.f32 %v394_v46, 0.0  ;;  %v459_v56 = vmax.f32 %v395_v47, 0.0  ;;  %v397_v57 = vadd.f32 %v1114_v6, %v329_v48  ;;  %v1003_v41 = vld [vmem:[%s1101_s18 + $0x98] sm:$0xff]  }
  0x29   : > { %v873_v59 = vpack.c.bf16 %v457_v50, %v456_v49  ;;  %v460_v60 = vmax.f32 %v396_v51, 0.0  ;;  %v748_v61 = vunpack.c.h.bf16 %v996_v40  ;;  %v330_v62 = vmul.f32 %v1106_v0, %v747_v52 }
  0x2a   : > { %1023 = vst [vmem:[%s1140_s25 + $0x40] sm:$0xff] %v868_v54   ;;  %v878_v1 = vpack.c.bf16 %v459_v56, %v458_v55  ;;  %v461_v2 = vmax.f32 %v397_v57, 0.0  ;;  %v751_v3 = vunpack.c.l.bf16 %v997_v53  ;;  %v752_v4 = vunpack.c.h.bf16 %v997_v53  ;;  %v1004_v54 = vld [vmem:[%s1101_s18 + $0xa0] sm:$0xff]  }
  0x2b   : > { %1024 = vst [vmem:[%s1140_s25 + $0x48] sm:$0xff] %v873_v59   ;;  %v331_v5 = vmul.f32 %v1106_v0, %v748_v61  ;;  %v398_v7 = vadd.f32 %v1114_v6, %v330_v62  ;;  %v755_v8 = vunpack.c.l.bf16 %v998_v58  ;;  %v756_v9 = vunpack.c.h.bf16 %v998_v58 }
  0x2c   : > { %1025 = vst [vmem:[%s1140_s25 + $0x50] sm:$0xff] %v878_v1   ;;  %v883_v10 = vpack.c.bf16 %v461_v2, %v460_v60  ;;  %v332_v11 = vmul.f32 %v1106_v0, %v751_v3  ;;  %v333_v12 = vmul.f32 %v1106_v0, %v752_v4  ;;  %v759_v13 = vunpack.c.l.bf16 %v999_v63  ;;  %v1005_v4 = vld [vmem:[%s1101_s18 + $0xa8] sm:$0xff]  }
  0x2d   : > { %v399_v15 = vadd.f32 %v1114_v6, %v331_v5  ;;  %v462_v16 = vmax.f32 %v398_v7, 0.0  ;;  %v334_v17 = vmul.f32 %v1106_v0, %v755_v8  ;;  %v335_v18 = vmul.f32 %v1106_v0, %v756_v9 }
  0x2e   : > { %1026 = vst [vmem:[%s1140_s25 + $0x58] sm:$0xff] %v883_v10   ;;  %v400_v19 = vadd.f32 %v1114_v6, %v332_v11  ;;  %v401_v20 = vadd.f32 %v1114_v6, %v333_v12  ;;  %v760_v21 = vunpack.c.h.bf16 %v999_v63  ;;  %v336_v22 = vmul.f32 %v1106_v0, %v759_v13 }
  0x2f   : > { %v463_v23 = vmax.f32 %v399_v15, 0.0  ;;  %v402_v24 = vadd.f32 %v1114_v6, %v334_v17  ;;  %v403_v25 = vadd.f32 %v1114_v6, %v335_v18  ;;  %v763_v26 = vunpack.c.l.bf16 %v1000_v14 }
  0x30   : > { %v464_v27 = vmax.f32 %v400_v19, 0.0  ;;  %v465_v28 = vmax.f32 %v401_v20, 0.0  ;;  %v337_v29 = vmul.f32 %v1106_v0, %v760_v21  ;;  %v404_v30 = vadd.f32 %v1114_v6, %v336_v22  ;;  %v1007_v19 = vld [vmem:[%s1101_s18 + $0xb8] sm:$0xff]  }
  0x31   : > { %v888_v32 = vpack.c.bf16 %v463_v23, %v462_v16  ;;  %v466_v33 = vmax.f32 %v402_v24, 0.0  ;;  %v467_v34 = vmax.f32 %v403_v25, 0.0  ;;  %v764_v35 = vunpack.c.h.bf16 %v1000_v14  ;;  %v1006_v14 = vld [vmem:[%s1101_s18 + $0xb0] sm:$0xff]  }
  0x32   : > { %v893_v37 = vpack.c.bf16 %v465_v28, %v464_v27  ;;  %v405_v38 = vadd.f32 %v1114_v6, %v337_v29  ;;  %v468_v39 = vmax.f32 %v404_v30, 0.0  ;;  %v338_v40 = vmul.f32 %v1106_v0, %v763_v26 }
  0x33   : > { %1027 = vst [vmem:[%s1140_s25 + $0x60] sm:$0xff] %v888_v32   ;;  %v898_v42 = vpack.c.bf16 %v467_v34, %v466_v33  ;;  %v339_v43 = vmul.f32 %v1106_v0, %v764_v35  ;;  %v767_v44 = vunpack.c.l.bf16 %v1001_v31  ;;  %v768_v45 = vunpack.c.h.bf16 %v1001_v31  ;;  %v1008_v32 = vld [vmem:[%s1101_s18 + $0xc0] sm:$0xff]  }
  0x34   : > { %1028 = vst [vmem:[%s1140_s25 + $0x68] sm:$0xff] %v893_v37   ;;  %v469_v46 = vmax.f32 %v405_v38, 0.0  ;;  %v406_v47 = vadd.f32 %v1114_v6, %v338_v40  ;;  %v771_v48 = vunpack.c.l.bf16 %v1002_v36  ;;  %v772_v49 = vunpack.c.h.bf16 %v1002_v36 }
  0x35   : > { %1029 = vst [vmem:[%s1140_s25 + $0x70] sm:$0xff] %v898_v42   ;;  %v407_v50 = vadd.f32 %v1114_v6, %v339_v43  ;;  %v340_v51 = vmul.f32 %v1106_v0, %v767_v44  ;;  %v341_v52 = vmul.f32 %v1106_v0, %v768_v45  ;;  %v775_v53 = vunpack.c.l.bf16 %v1003_v41  ;;  %v1009_v45 = vld [vmem:[%s1101_s18 + $0xc8] sm:$0xff]  }
  0x36   : > { %v903_v55 = vpack.c.bf16 %v469_v46, %v468_v39  ;;  %v470_v56 = vmax.f32 %v406_v47, 0.0  ;;  %v342_v57 = vmul.f32 %v1106_v0, %v771_v48  ;;  %v343_v58 = vmul.f32 %v1106_v0, %v772_v49 }
  0x37   : > { %v471_v59 = vmax.f32 %v407_v50, 0.0  ;;  %v408_v60 = vadd.f32 %v1114_v6, %v340_v51  ;;  %v409_v61 = vadd.f32 %v1114_v6, %v341_v52  ;;  %v776_v62 = vunpack.c.h.bf16 %v1003_v41 }
  0x38   : > { %1030 = vst [vmem:[%s1140_s25 + $0x78] sm:$0xff] %v903_v55   ;;  %v410_v63 = vadd.f32 %v1114_v6, %v342_v57  ;;  %v411_v1 = vadd.f32 %v1114_v6, %v343_v58  ;;  %v344_v2 = vmul.f32 %v1106_v0, %v775_v53  ;;  %v779_v3 = vunpack.c.l.bf16 %v1004_v54 }
  0x39   : > { %v908_v5 = vpack.c.bf16 %v471_v59, %v470_v56  ;;  %v472_v7 = vmax.f32 %v408_v60, 0.0  ;;  %v473_v8 = vmax.f32 %v409_v61, 0.0  ;;  %v345_v9 = vmul.f32 %v1106_v0, %v776_v62 }
  0x3a   : > { %v474_v10 = vmax.f32 %v410_v63, 0.0  ;;  %v475_v11 = vmax.f32 %v411_v1, 0.0  ;;  %v412_v12 = vadd.f32 %v1114_v6, %v344_v2  ;;  %v780_v13 = vunpack.c.h.bf16 %v1004_v54  ;;  %v1010_v54 = vld [vmem:[%s1101_s18 + $0xd0] sm:$0xff]   ;;  %v1011_v63 = vld [vmem:[%s1101_s18 + $0xd8] sm:$0xff]  }
  0x3b   : > { %1031 = vst [vmem:[%s1140_s25 + $0x80] sm:$0xff] %v908_v5   ;;  %v913_v15 = vpack.c.bf16 %v473_v8, %v472_v7  ;;  %v413_v16 = vadd.f32 %v1114_v6, %v345_v9  ;;  %v346_v17 = vmul.f32 %v1106_v0, %v779_v3  ;;  %v783_v18 = vunpack.c.l.bf16 %v1005_v4 }
  0x3c   : > { %v918_v20 = vpack.c.bf16 %v475_v11, %v474_v10  ;;  %v476_v21 = vmax.f32 %v412_v12, 0.0  ;;  %v347_v22 = vmul.f32 %v1106_v0, %v780_v13  ;;  %v784_v23 = vunpack.c.h.bf16 %v1005_v4  ;;  %v1012_v10 = vld [vmem:[%s1101_s18 + $0xe0] sm:$0xff]  }
  0x3d   : > { %1032 = vst [vmem:[%s1140_s25 + $0x88] sm:$0xff] %v913_v15   ;;  %v477_v24 = vmax.f32 %v413_v16, 0.0  ;;  %v414_v25 = vadd.f32 %v1114_v6, %v346_v17  ;;  %v348_v26 = vmul.f32 %v1106_v0, %v783_v18  ;;  %v787_v27 = vunpack.c.l.bf16 %v1006_v14 }
  0x3e   : > { %1033 = vst [vmem:[%s1140_s25 + $0x90] sm:$0xff] %v918_v20   ;;  %v415_v28 = vadd.f32 %v1114_v6, %v347_v22  ;;  %v349_v29 = vmul.f32 %v1106_v0, %v784_v23  ;;  %v788_v30 = vunpack.c.h.bf16 %v1006_v14  ;;  %v791_v31 = vunpack.c.l.bf16 %v1007_v19  ;;  %v1013_v23 = vld [vmem:[%s1101_s18 + $0xe8] sm:$0xff]  }
  0x3f   : > { %v923_v33 = vpack.c.bf16 %v477_v24, %v476_v21  ;;  %v478_v34 = vmax.f32 %v414_v25, 0.0  ;;  %v416_v35 = vadd.f32 %v1114_v6, %v348_v26  ;;  %v350_v36 = vmul.f32 %v1106_v0, %v787_v27 }
  0x40   : > { %v479_v37 = vmax.f32 %v415_v28, 0.0  ;;  %v417_v38 = vadd.f32 %v1114_v6, %v349_v29  ;;  %v351_v39 = vmul.f32 %v1106_v0, %v788_v30  ;;  %v792_v40 = vunpack.c.h.bf16 %v1007_v19 }
  0x41   : > { %1034 = vst [vmem:[%s1140_s25 + $0x98] sm:$0xff] %v923_v33   ;;  %v480_v41 = vmax.f32 %v416_v35, 0.0  ;;  %v418_v42 = vadd.f32 %v1114_v6, %v350_v36  ;;  %v352_v43 = vmul.f32 %v1106_v0, %v791_v31  ;;  %v795_v44 = vunpack.c.l.bf16 %v1008_v32 }
  0x42   : > { %v928_v46 = vpack.c.bf16 %v479_v37, %v478_v34  ;;  %v481_v47 = vmax.f32 %v417_v38, 0.0  ;;  %v419_v48 = vadd.f32 %v1114_v6, %v351_v39  ;;  %v353_v49 = vmul.f32 %v1106_v0, %v792_v40 }
  0x43   : > { %v482_v50 = vmax.f32 %v418_v42, 0.0  ;;  %v420_v51 = vadd.f32 %v1114_v6, %v352_v43  ;;  %v796_v52 = vunpack.c.h.bf16 %v1008_v32  ;;  %v354_v53 = vmul.f32 %v1106_v0, %v795_v44  ;;  %v1014_v32 = vld [vmem:[%s1101_s18 + $0xf0] sm:$0xff]  }
  0x44   : > { %1035 = vst [vmem:[%s1140_s25 + $0xa0] sm:$0xff] %v928_v46   ;;  %v933_v55 = vpack.c.bf16 %v481_v47, %v480_v41  ;;  %v483_v56 = vmax.f32 %v419_v48, 0.0  ;;  %v421_v57 = vadd.f32 %v1114_v6, %v353_v49  ;;  %v799_v58 = vunpack.c.l.bf16 %v1009_v45  ;;  %v1015_v41 = vld [vmem:[%s1101_s18 + $0xf8] sm:$0xff]  }
  0x45   : > { %v484_v59 = vmax.f32 %v420_v51, 0.0  ;;  %v355_v60 = vmul.f32 %v1106_v0, %v796_v52  ;;  %v422_v61 = vadd.f32 %v1114_v6, %v354_v53  ;;  %v800_v62 = vunpack.c.h.bf16 %v1009_v45 }
  0x46   : > { %1036 = vst [vmem:[%s1140_s25 + $0xa8] sm:$0xff] %v933_v55   ;;  %v938_v1 = vpack.c.bf16 %v483_v56, %v482_v50  ;;  %v485_v2 = vmax.f32 %v421_v57, 0.0  ;;  %v356_v3 = vmul.f32 %v1106_v0, %v799_v58  ;;  %v803_v4 = vunpack.c.l.bf16 %v1010_v54 }
  0x47   : > { %v423_v5 = vadd.f32 %v1114_v6, %v355_v60  ;;  %v486_v7 = vmax.f32 %v422_v61, 0.0  ;;  %v357_v8 = vmul.f32 %v1106_v0, %v800_v62  ;;  %v804_v9 = vunpack.c.h.bf16 %v1010_v54 }
  0x48   : > { %1037 = vst [vmem:[%s1140_s25 + $0xb0] sm:$0xff] %v938_v1   ;;  %v943_v11 = vpack.c.bf16 %v485_v2, %v484_v59  ;;  %v424_v12 = vadd.f32 %v1114_v6, %v356_v3  ;;  %v358_v13 = vmul.f32 %v1106_v0, %v803_v4  ;;  %v807_v14 = vunpack.c.l.bf16 %v1011_v63 }
  0x49   : > { %v487_v15 = vmax.f32 %v423_v5, 0.0  ;;  %v425_v16 = vadd.f32 %v1114_v6, %v357_v8  ;;  %v359_v17 = vmul.f32 %v1106_v0, %v804_v9  ;;  %v808_v18 = vunpack.c.h.bf16 %v1011_v63 }
  0x4a   : > { %1038 = vst [vmem:[%s1140_s25 + $0xb8] sm:$0xff] %v943_v11   ;;  %v488_v19 = vmax.f32 %v424_v12, 0.0  ;;  %v426_v20 = vadd.f32 %v1114_v6, %v358_v13  ;;  %v360_v21 = vmul.f32 %v1106_v0, %v807_v14  ;;  %v811_v22 = vunpack.c.l.bf16 %v1012_v10 }
  0x4b   : > { %v948_v24 = vpack.c.bf16 %v487_v15, %v486_v7  ;;  %v489_v25 = vmax.f32 %v425_v16, 0.0  ;;  %v427_v26 = vadd.f32 %v1114_v6, %v359_v17  ;;  %v361_v27 = vmul.f32 %v1106_v0, %v808_v18 }
  0x4c   : > { %v490_v28 = vmax.f32 %v426_v20, 0.0  ;;  %v428_v29 = vadd.f32 %v1114_v6, %v360_v21  ;;  %v812_v30 = vunpack.c.h.bf16 %v1012_v10  ;;  %v362_v31 = vmul.f32 %v1106_v0, %v811_v22 }
  0x4d   : > { %1039 = vst [vmem:[%s1140_s25 + $0xc0] sm:$0xff] %v948_v24   ;;  %v953_v33 = vpack.c.bf16 %v489_v25, %v488_v19  ;;  %v491_v34 = vmax.f32 %v427_v26, 0.0  ;;  %v429_v35 = vadd.f32 %v1114_v6, %v361_v27  ;;  %v815_v36 = vunpack.c.l.bf16 %v1013_v23 }
  0x4e   : > { %v492_v37 = vmax.f32 %v428_v29, 0.0  ;;  %v363_v38 = vmul.f32 %v1106_v0, %v812_v30  ;;  %v430_v39 = vadd.f32 %v1114_v6, %v362_v31  ;;  %v816_v40 = vunpack.c.h.bf16 %v1013_v23 }
  0x4f   : > { %1040 = vst [vmem:[%s1140_s25 + $0xc8] sm:$0xff] %v953_v33   ;;  %v958_v42 = vpack.c.bf16 %v491_v34, %v490_v28  ;;  %v493_v43 = vmax.f32 %v429_v35, 0.0  ;;  %v364_v44 = vmul.f32 %v1106_v0, %v815_v36  ;;  %v819_v45 = vunpack.c.l.bf16 %v1014_v32 }
  0x50   : > { %v431_v46 = vadd.f32 %v1114_v6, %v363_v38  ;;  %v494_v47 = vmax.f32 %v430_v39, 0.0  ;;  %v365_v48 = vmul.f32 %v1106_v0, %v816_v40  ;;  %v820_v49 = vunpack.c.h.bf16 %v1014_v32 }
  0x51   : > { %1041 = vst [vmem:[%s1140_s25 + $0xd0] sm:$0xff] %v958_v42   ;;  %v963_v50 = vpack.c.bf16 %v493_v43, %v492_v37  ;;  %v432_v51 = vadd.f32 %v1114_v6, %v364_v44  ;;  %v366_v52 = vmul.f32 %v1106_v0, %v819_v45  ;;  %v823_v53 = vunpack.c.l.bf16 %v1015_v41 }
  0x52   : > { %v495_v54 = vmax.f32 %v431_v46, 0.0  ;;  %v433_v55 = vadd.f32 %v1114_v6, %v365_v48  ;;  %v367_v56 = vmul.f32 %v1106_v0, %v820_v49  ;;  %v824_v57 = vunpack.c.h.bf16 %v1015_v41 }
  0x53   : > { %1042 = vst [vmem:[%s1140_s25 + $0xd8] sm:$0xff] %v963_v50   ;;  %v496_v58 = vmax.f32 %v432_v51, 0.0  ;;  %v434_v59 = vadd.f32 %v1114_v6, %v366_v52  ;;  %v368_v60 = vmul.f32 %v1106_v0, %v823_v53 }
  0x54   : > { %v968_v61 = vpack.c.bf16 %v495_v54, %v494_v47  ;;  %v497_v62 = vmax.f32 %v433_v55, 0.0  ;;  %v435_v63 = vadd.f32 %v1114_v6, %v367_v56  ;;  %v369_v1 = vmul.f32 %v1106_v0, %v824_v57 }
  0x55   : > { %v498_v2 = vmax.f32 %v434_v59, 0.0  ;;  %v436_v3 = vadd.f32 %v1114_v6, %v368_v60 }
  0x56   : > { %1043 = vst [vmem:[%s1140_s25 + $0xe0] sm:$0xff] %v968_v61   ;;  %v973_v4 = vpack.c.bf16 %v497_v62, %v496_v58  ;;  %v499_v5 = vmax.f32 %v435_v63, 0.0  ;;  %v437_v7 = vadd.f32 %v1114_v6, %v369_v1 }
  0x57   : > { %v500_v8 = vmax.f32 %v436_v3, 0.0 }
  0x58   : > { %1044 = vst [vmem:[%s1140_s25 + $0xe8] sm:$0xff] %v973_v4   ;;  %v978_v9 = vpack.c.bf16 %v499_v5, %v498_v2  ;;  %v501_v10 = vmax.f32 %v437_v7, 0.0 }
  0x5a   : > { %1045 = vst [vmem:[%s1140_s25 + $0xf0] sm:$0xff] %v978_v9   ;;  %v983_v11 = vpack.c.bf16 %v501_v10, %v500_v8 }
  0x5c   : > { %1046 = vst [vmem:[%s1140_s25 + $0xf8] sm:$0xff] %v983_v11  }
  0x5d PF: > { %s13_s12 = sadd.s32 1, %s1063_s12  }
  0x5e   : > { %p10_p4 = scmp.ge.s32.totalorder %s13_s12, 4  }
  0x60   :  { %12 = sbr.rel (!%p10_p4) target bundleno = 1 (0x1), region = 62 }

// kernel: generator_forward.25
= control target key start
LH: loop header
LB: loop body
LE: loop exit
PB: predicated region body
PF: predicated region fallthrough
CT: control target
= control target key end

     0   :  { %s1351_s9 = smov 0   ;;  %s1353_s10 = smov 0   ;;  %s1567_s0 = inlined_call_operand.vmem [shape: bf16[4,2048,256], index: 0, kind: input, shape index: {}]   ;;  %s1568_s1 = inlined_call_operand.vmem [shape: bf16[4,256,3], index: 1, kind: input, shape index: {}]   ;;  %s1569_s2 = inlined_call_operand.vmem [shape: f32[4,2048,3], index: 2, kind: output, shape index: {}]  }
   0x1   :  { %s1355_s11 = smov 0   ;;  %s1357_s12 = smov 0  }
   0x2   :  { %s1359_s13 = smov 0  }
   0x3 LB: > { %s27_s14 = sadd.s32 1, %s1326_s11  ;;  %s31_s15 = sadd.s32 1, %s1330_s12  ;;  %s1334_s13 = sphi %s1359_s13, %s12_s13   ;;  %s1330_s12 = sphi %s1357_s12, %s1573_s12   ;;  %s1326_s11 = sphi %s1355_s11, %s1572_s11   ;;  %s1322_s10 = sphi %s1353_s10, %s1571_s10   ;;  %s1318_s9 = sphi %s1351_s9, %s1570_s9  }
   0x4   : > { %p29_p0 = scmp.ge.s32.totalorder %s27_s14, 8  ;;  %p923_p1 = scmp.ge.s32.totalorder %s1334_s13, 1 }
   0x5   : > { %p158_p2 = scmp.lt.s32.totalorder %s1334_s13, 33 }
   0x6   : > { %s1575_s14 = smov (%p29_p0, %s27_s14), 0  ;;  %s1577_s15 = smov (!%p29_p0, %s31_s15), %s1330_s12 }
   0x7   : > { %p159_p3 = pnand %p923_p1, %p158_p2  ;;  %p33_p4 = scmp.ge.s32.totalorder %s1577_s15, 4 }
   0x8   : > { %s924_s16 = sshll.u32 (!%p159_p3), %s1318_s9, 5  ;;  %p201_p5 = scmp.lt.s32.totalorder (!%p159_p3), %s1322_s10, 3 }
   0x9   : > { %s1579_s15 = smov (%p33_p4, %s1577_s15), 0  ;;  %162 = sbr.rel (%p159_p3) target bundleno = 312 (0x138), region = 28 }
   0xa   : > { %p203_p6 = scmp.lt.s32.totalorder (!%p159_p3), %s924_s16, 255 }
   0xe   : > { %s1581_s10 = smov (!%p201_p5, %s1322_s10), 3  ;;  %s1583_s16 = smov (!%p203_p6, %s924_s16), 255  ;;  %vm762_vm0 = vcmask 23552  }
   0xf   : > { %s1127_s17 = sshll.u32 %s1581_s10, 7  ;;  %s931_s21 = sshll.u32 %s1581_s10, 8 }
  0x10   : > { %s1389_s20 = scalar_lea.vmem %s1568_s1, %s1127_s17  ;;  %s1395_s22 = sadd.s32 %s931_s21, %s1583_s16 }
  0x11   : > { %v1167_v0 = vld [vmem:[%s1389_s20 + $0x38] sm:$0xff]  ;;  %v1166_v2 = vld [vmem:[%s1389_s20 + $0x30] sm:$0xff]  ;;  %v1165_v4 = vld [vmem:[%s1389_s20 + $0x28] sm:$0xff]  ;;  %s925_s23 = sshll.u32 %s1583_s16, 1  ;;  %s926_s24 = sshll.u32 %s1581_s10, 9 }
  0x12   : > { %v1175_v1 = vld [vmem:[%s1389_s20 + $0x78] sm:$0xff]  ;;  %552 = vmatpush.bf16.msra.mxu0 %v1167_v0  ;;  %1176 = vmatpush.bf16.msra.mxu2 %v1167_v0  ;;  %v1174_v3 = vld [vmem:[%s1389_s20 + $0x70] sm:$0xff]  ;;  %v1173_v5 = vld [vmem:[%s1389_s20 + $0x68] sm:$0xff]  ;;  %s207_s25 = sadd.s32 %s926_s24, %s925_s23  ;;  %s932_s30 = sshll.u32 %s1395_s22, 3 }
  0x13   : > { %641 = vmatpush.bf16.msra.mxu1 %v1175_v1  ;;  %1184 = vmatpush.bf16.msra.mxu3 %v1175_v1  ;;  %v1164_v6 = vld [vmem:[%s1389_s20 + $0x20] sm:$0xff]  ;;  %v1163_v8 = vld [vmem:[%s1389_s20 + $0x18] sm:$0xff]  ;;  %v1162_v10 = vld [vmem:[%s1389_s20 + $0x10] sm:$0xff]  ;;  %s927_s26 = sshll.u32 %s207_s25, 2  ;;  %s1486_s5 = scalar_lea.vmem %s1569_s2, %s932_s30 }
  0x14   : > { %v1172_v7 = vld [vmem:[%s1389_s20 + $0x60] sm:$0xff]  ;;  %v1171_v9 = vld [vmem:[%s1389_s20 + $0x58] sm:$0xff]  ;;  %v1170_v11 = vld [vmem:[%s1389_s20 + $0x50] sm:$0xff]  ;;  %s1412_s29 = scalar_lea.vmem %s1567_s0, %s927_s26 }
  0x15   : > { %v1161_v12 = vld [vmem:[%s1389_s20 + $0x8] sm:$0xff]  ;;  %v1160_v14 = vld [vmem:[%s1389_s20] sm:$0xff]  ;;  %v943_v28 = vld [vmem:[%s1412_s29 + $0x10] sm:$0xf] }
  0x16   : > { %553 = vmatpush.bf16.msra.mxu0 %v1166_v2  ;;  %1177 = vmatpush.bf16.msra.mxu2 %v1166_v2  ;;  %v1169_v13 = vld [vmem:[%s1389_s20 + $0x48] sm:$0xff]  ;;  %v1168_v15 = vld [vmem:[%s1389_s20 + $0x40] sm:$0xff]  ;;  %v1131_v29 = vld [vmem:[%s1412_s29 + $0x14] sm:$0xf0] }
  0x17   : > { %642 = vmatpush.bf16.msra.mxu1 %v1174_v3  ;;  %1185 = vmatpush.bf16.msra.mxu3 %v1174_v3  ;;  %v935_v16 = vld [vmem:[%s1412_s29] sm:$0xf]  ;;  %v1129_v17 = vld [vmem:[%s1412_s29 + $0x4] sm:$0xf0]  ;;  %v1128_v20 = vld [vmem:[%s1412_s29 + $0x4] sm:$0xf]  ;;  %v944_v36 = vor.u32 %v1131_v29, %v943_v28 }
  0x18   : > { %v999_v18 = vld [vmem:[%s1412_s29 + $0x80] sm:$0xf]  ;;  %v1145_v19 = vld [vmem:[%s1412_s29 + $0x84] sm:$0xf0]  ;;  %v937_v21 = vld [vmem:[%s1412_s29 + $0x8] sm:$0xf0]  ;;  %v936_v24 = vor.u32 %v1129_v17, %v935_v16 }
  0x19   : > { %v1144_v22 = vld [vmem:[%s1412_s29 + $0x84] sm:$0xf]  ;;  %v1001_v23 = vld [vmem:[%s1412_s29 + $0x88] sm:$0xf0]  ;;  %v1000_v25 = vor.u32 %v1145_v19, %v999_v18  ;;  %v940_v26 = vor.u32 %v1128_v20, %v937_v21  ;;  %v1007_v30 = vld [vmem:[%s1412_s29 + $0x90] sm:$0xf] }
  0x1a   : > { %554 = vmatpush.bf16.msra.mxu0 %v1165_v4  ;;  %1178 = vmatpush.bf16.msra.mxu2 %v1165_v4  ;;  %v1004_v27 = vor.u32 %v1144_v22, %v1001_v23  ;;  %v1147_v31 = vld [vmem:[%s1412_s29 + $0x94] sm:$0xf0]  ;;  %v1130_v32 = vld [vmem:[%s1412_s29 + $0x14] sm:$0xf]  ;;  %v945_v33 = vld [vmem:[%s1412_s29 + $0x18] sm:$0xf0] }
  0x1b   : > { %643 = vmatpush.bf16.msra.mxu1 %v1173_v5  ;;  %1186 = vmatpush.bf16.msra.mxu3 %v1173_v5  ;;  %v1146_v34 = vld [vmem:[%s1412_s29 + $0x94] sm:$0xf]  ;;  %v1009_v35 = vld [vmem:[%s1412_s29 + $0x98] sm:$0xf0]  ;;  %v1008_v37 = vor.u32 %v1147_v31, %v1007_v30  ;;  %v948_v38 = vor.u32 %v1130_v32, %v945_v33  ;;  %v951_v40 = vld [vmem:[%s1412_s29 + $0x20] sm:$0xf] }
  0x1c   : > { %v1012_v39 = vor.u32 %v1146_v34, %v1009_v35  ;;  %v1133_v41 = vld [vmem:[%s1412_s29 + $0x24] sm:$0xf0]  ;;  %v1015_v42 = vld [vmem:[%s1412_s29 + $0xa0] sm:$0xf]  ;;  %v1132_v44 = vld [vmem:[%s1412_s29 + $0x24] sm:$0xf] }
  0x1d   : > { %v1149_v43 = vld [vmem:[%s1412_s29 + $0xa4] sm:$0xf0]  ;;  %v953_v45 = vld [vmem:[%s1412_s29 + $0x28] sm:$0xf0]  ;;  %v1148_v46 = vld [vmem:[%s1412_s29 + $0xa4] sm:$0xf]  ;;  %v952_v48 = vor.u32 %v1133_v41, %v951_v40 }
  0x1e   : > { %555 = vmatpush.bf16.msra.mxu0 %v1164_v6  ;;  %1179 = vmatpush.bf16.msra.mxu2 %v1164_v6  ;;  %v1017_v47 = vld [vmem:[%s1412_s29 + $0xa8] sm:$0xf0]  ;;  %v1016_v49 = vor.u32 %v1149_v43, %v1015_v42  ;;  %v956_v50 = vor.u32 %v1132_v44, %v953_v45  ;;  %v959_v52 = vld [vmem:[%s1412_s29 + $0x30] sm:$0xf]  ;;  %v1135_v53 = vld [vmem:[%s1412_s29 + $0x34] sm:$0xf0] }
  0x1f   : > { %644 = vmatpush.bf16.msra.mxu1 %v1172_v7  ;;  %1187 = vmatpush.bf16.msra.mxu3 %v1172_v7  ;;  %v1020_v51 = vor.u32 %v1148_v46, %v1017_v47  ;;  %v1023_v54 = vld [vmem:[%s1412_s29 + $0xb0] sm:$0xf]  ;;  %v1151_v55 = vld [vmem:[%s1412_s29 + $0xb4] sm:$0xf0]  ;;  %v1134_v56 = vld [vmem:[%s1412_s29 + $0x34] sm:$0xf]  ;;  %v960_v60 = vor.u32 %v1135_v53, %v959_v52 }
  0x20   : > { %v961_v57 = vld [vmem:[%s1412_s29 + $0x38] sm:$0xf0]  ;;  %v1150_v58 = vld [vmem:[%s1412_s29 + $0xb4] sm:$0xf]  ;;  %v1024_v61 = vor.u32 %v1151_v55, %v1023_v54  ;;  %v967_v0 = vld [vmem:[%s1412_s29 + $0x40] sm:$0xf] }
  0x21   : > { %v1025_v59 = vld [vmem:[%s1412_s29 + $0xb8] sm:$0xf0]  ;;  %v964_v62 = vor.u32 %v1134_v56, %v961_v57  ;;  %v1137_v1 = vld [vmem:[%s1412_s29 + $0x44] sm:$0xf0]  ;;  %v1031_v2 = vld [vmem:[%s1412_s29 + $0xc0] sm:$0xf] }
  0x22   : > { %556 = vmatpush.bf16.msra.mxu0 %v1163_v8  ;;  %1180 = vmatpush.bf16.msra.mxu2 %v1163_v8  ;;  %v1028_v63 = vor.u32 %v1150_v58, %v1025_v59  ;;  %v1153_v3 = vld [vmem:[%s1412_s29 + $0xc4] sm:$0xf0]  ;;  %v1136_v4 = vld [vmem:[%s1412_s29 + $0x44] sm:$0xf]  ;;  %v969_v5 = vld [vmem:[%s1412_s29 + $0x48] sm:$0xf0]  ;;  %v968_v8 = vor.u32 %v1137_v1, %v967_v0 }
  0x23   : > { %645 = vmatpush.bf16.msra.mxu1 %v1171_v9  ;;  %1188 = vmatpush.bf16.msra.mxu3 %v1171_v9  ;;  %v1152_v6 = vld [vmem:[%s1412_s29 + $0xc4] sm:$0xf]  ;;  %v1033_v7 = vld [vmem:[%s1412_s29 + $0xc8] sm:$0xf0]  ;;  %v1032_v9 = vor.u32 %v1153_v3, %v1031_v2  ;;  %v1138_v16 = vld [vmem:[%s1412_s29 + $0x54] sm:$0xf] }
  0x24   : > { %v977_v17 = vld [vmem:[%s1412_s29 + $0x58] sm:$0xf0]  ;;  %v1154_v18 = vld [vmem:[%s1412_s29 + $0xd4] sm:$0xf]  ;;  %v1140_v28 = vld [vmem:[%s1412_s29 + $0x64] sm:$0xf] }
  0x25   : > { %v1041_v19 = vld [vmem:[%s1412_s29 + $0xd8] sm:$0xf0]  ;;  %v980_v22 = vor.u32 %v1138_v16, %v977_v17  ;;  %v985_v29 = vld [vmem:[%s1412_s29 + $0x68] sm:$0xf0]  ;;  %v1156_v30 = vld [vmem:[%s1412_s29 + $0xe4] sm:$0xf] }
  0x26   : > { %557 = vmatpush.bf16.msra.mxu0 %v1162_v10  ;;  %1181 = vmatpush.bf16.msra.mxu2 %v1162_v10  ;;  %v972_v10 = vor.u32 %v1136_v4, %v969_v5  ;;  %v1044_v23 = vor.u32 %v1154_v18, %v1041_v19  ;;  %v1049_v31 = vld [vmem:[%s1412_s29 + $0xe8] sm:$0xf0]  ;;  %v988_v34 = vor.u32 %v1140_v28, %v985_v29  ;;  %v1142_v40 = vld [vmem:[%s1412_s29 + $0x74] sm:$0xf]  ;;  %v993_v41 = vld [vmem:[%s1412_s29 + $0x78] sm:$0xf0] }
  0x27   : > { %646 = vmatpush.bf16.msra.mxu1 %v1170_v11  ;;  %1189 = vmatpush.bf16.msra.mxu3 %v1170_v11  ;;  %v1036_v11 = vor.u32 %v1152_v6, %v1033_v7  ;;  %v1052_v35 = vor.u32 %v1156_v30, %v1049_v31  ;;  %v1158_v42 = vld [vmem:[%s1412_s29 + $0xf4] sm:$0xf]  ;;  %v1057_v43 = vld [vmem:[%s1412_s29 + $0xf8] sm:$0xf0]  ;;  %v996_v46 = vor.u32 %v1142_v40, %v993_v41 }
  0x28   : > { %v1060_v47 = vor.u32 %v1158_v42, %v1057_v43 }
  0x2a   : > { %558 = vmatpush.bf16.msra.mxu0 %v1161_v12  ;;  %1182 = vmatpush.bf16.msra.mxu2 %v1161_v12  ;;  %v975_v12 = vld [vmem:[%s1412_s29 + $0x50] sm:$0xf] }
  0x2b   : > { %647 = vmatpush.bf16.msra.mxu1 %v1169_v13  ;;  %1190 = vmatpush.bf16.msra.mxu3 %v1169_v13  ;;  %v1139_v13 = vld [vmem:[%s1412_s29 + $0x54] sm:$0xf0] }
  0x2c   : > { %v976_v20 = vor.u32 %v1139_v13, %v975_v12 }
  0x2e   : > { %559 = vmatpush.bf16.msra.mxu0 %v1160_v14  ;;  %1183 = vmatpush.bf16.msra.mxu2 %v1160_v14  ;;  %v1039_v14 = vld [vmem:[%s1412_s29 + $0xd0] sm:$0xf] }
  0x2f   : > { %648 = vmatpush.bf16.msra.mxu1 %v1168_v15  ;;  %1191 = vmatpush.bf16.msra.mxu3 %v1168_v15  ;;  %v1155_v15 = vld [vmem:[%s1412_s29 + $0xd4] sm:$0xf0] }
  0x30   : > { %v1040_v21 = vor.u32 %v1155_v15, %v1039_v14 }
  0x31   : > { %560 = vmatmul.bf16.vlgmr.msra.gmra.mxu0 %v936_v24  ;;  %600 = vmatmul.bf16.vlgmr.msra.gmra.mxu2 %v1000_v25  ;;  %v983_v24 = vld [vmem:[%s1412_s29 + $0x60] sm:$0xf]  ;;  %v1141_v25 = vld [vmem:[%s1412_s29 + $0x64] sm:$0xf0] }
  0x32   : > { %649 = vmatmul.bf16.vlgmr.msra.gmra.mxu1 %v940_v26  ;;  %689 = vmatmul.bf16.vlgmr.msra.gmra.mxu3 %v1004_v27  ;;  %v1047_v26 = vld [vmem:[%s1412_s29 + $0xe0] sm:$0xf]  ;;  %v1157_v27 = vld [vmem:[%s1412_s29 + $0xe4] sm:$0xf0]  ;;  %v984_v32 = vor.u32 %v1141_v25, %v983_v24 }
  0x33   : > { %v1048_v33 = vor.u32 %v1157_v27, %v1047_v26 }
  0x41   : > { %565 = vmatmul.bf16.gmra.mxu0 %v944_v36  ;;  %605 = vmatmul.bf16.gmra.mxu2 %v1008_v37  ;;  %v991_v36 = vld [vmem:[%s1412_s29 + $0x70] sm:$0xf]  ;;  %v1143_v37 = vld [vmem:[%s1412_s29 + $0x74] sm:$0xf0] }
  0x42   : > { %654 = vmatmul.bf16.gmra.mxu1 %v948_v38  ;;  %694 = vmatmul.bf16.gmra.mxu3 %v1012_v39  ;;  %v1055_v38 = vld [vmem:[%s1412_s29 + $0xf0] sm:$0xf]  ;;  %v1159_v39 = vld [vmem:[%s1412_s29 + $0xf4] sm:$0xf0]  ;;  %v992_v44 = vor.u32 %v1143_v37, %v991_v36 }
  0x43   : > { %v1056_v45 = vor.u32 %v1159_v39, %v1055_v38 }
  0x51   : > { %570 = vmatmul.bf16.gmra.mxu0 %v952_v48  ;;  %610 = vmatmul.bf16.gmra.mxu2 %v1016_v49 }
  0x52   : > { %659 = vmatmul.bf16.gmra.mxu1 %v956_v50  ;;  %699 = vmatmul.bf16.gmra.mxu3 %v1020_v51 }
  0x61   : > { %575 = vmatmul.bf16.gmra.mxu0 %v960_v60  ;;  %615 = vmatmul.bf16.gmra.mxu2 %v1024_v61 }
  0x62   : > { %664 = vmatmul.bf16.gmra.mxu1 %v964_v62  ;;  %704 = vmatmul.bf16.gmra.mxu3 %v1028_v63 }
  0x71   : > { %580 = vmatmul.bf16.gmra.mxu0 %v968_v8  ;;  %620 = vmatmul.bf16.gmra.mxu2 %v1032_v9 }
  0x72   : > { %669 = vmatmul.bf16.gmra.mxu1 %v972_v10  ;;  %709 = vmatmul.bf16.gmra.mxu3 %v1036_v11 }
  0x81   : > { %585 = vmatmul.bf16.gmra.mxu0 %v976_v20  ;;  %625 = vmatmul.bf16.gmra.mxu2 %v1040_v21 }
  0x82   : > { %674 = vmatmul.bf16.gmra.mxu1 %v980_v22  ;;  %714 = vmatmul.bf16.gmra.mxu3 %v1044_v23 }
  0x91   : > { %590 = vmatmul.bf16.gmra.mxu0 %v984_v32  ;;  %630 = vmatmul.bf16.gmra.mxu2 %v1048_v33 }
  0x92   : > { %679 = vmatmul.bf16.gmra.mxu1 %v988_v34  ;;  %719 = vmatmul.bf16.gmra.mxu3 %v1052_v35 }
  0xa1   : > { %595 = vmatmul.bf16.gmra.mxu0 %v992_v44  ;;  %635 = vmatmul.bf16.gmra.mxu2 %v1056_v45 }
  0xa2   : > { %684 = vmatmul.bf16.gmra.mxu1 %v996_v46  ;;  %724 = vmatmul.bf16.gmra.mxu3 %v1060_v47 }
  0xae   : > { %v561_v48 = vpop.f32.mrf.mxu0 }
  0xaf   : > { %v650_v49 = vpop.f32.mrf.mxu1 }
  0xb0   : > { %v651_v50 = vadd.f32 %v650_v49, %v561_v48 }
  0xb2   : > { %1232 = vtanh.f32 %v651_v50 }
  0xb4   : > { %v601_v51 = vpop.f32.mrf.mxu2 }
  0xb5   : > { %v690_v52 = vpop.f32.mrf.mxu3 }
  0xb6   : > { %v691_v53 = vadd.f32 %v690_v52, %v601_v51  ;;  %v563_v54 = vpop.f32.mrf.mxu0 }
  0xb7   : > { %v652_v55 = vpop.f32.mrf.mxu1 }
  0xb8   : > { %v1233_v56 = vpop.eup %1232  ;;  %1234 = vtanh.f32 %v691_v53  ;;  %v653_v57 = vadd.f32 %v652_v55, %v563_v54 }
  0xb9   : > { %763 = vst.msk [vmem:[%s1486_s5] sm:$0xff] %vm762_vm0, %v1233_v56 }
  0xba   : > { %1236 = vtanh.f32 %v653_v57 }
  0xbc   : > { %v603_v58 = vpop.f32.mrf.mxu2 }
  0xbd   : > { %v692_v59 = vpop.f32.mrf.mxu3 }
  0xbe   : > { %v1235_v60 = vpop.eup %1234  ;;  %v693_v61 = vadd.f32 %v692_v59, %v603_v58  ;;  %v566_v62 = vpop.f32.mrf.mxu0 }
  0xbf   : > { %779 = vst.msk [vmem:[%s1486_s5 + $0x80] sm:$0xff] %vm762_vm0, %v1235_v60  ;;  %v655_v63 = vpop.f32.mrf.mxu1 }
  0xc0   : > { %v1237_v0 = vpop.eup %1236  ;;  %1238 = vtanh.f32 %v693_v61  ;;  %v656_v1 = vadd.f32 %v655_v63, %v566_v62 }
  0xc1   : > { %764 = vst.msk [vmem:[%s1486_s5 + $0x8] sm:$0xff] %vm762_vm0, %v1237_v0 }
  0xc2   : > { %1240 = vtanh.f32 %v656_v1 }
  0xc4   : > { %v606_v2 = vpop.f32.mrf.mxu2 }
  0xc5   : > { %v695_v3 = vpop.f32.mrf.mxu3 }
  0xc6   : > { %v1239_v4 = vpop.eup %1238  ;;  %v696_v5 = vadd.f32 %v695_v3, %v606_v2  ;;  %v568_v6 = vpop.f32.mrf.mxu0 }
  0xc7   : > { %780 = vst.msk [vmem:[%s1486_s5 + $0x88] sm:$0xff] %vm762_vm0, %v1239_v4  ;;  %v657_v7 = vpop.f32.mrf.mxu1 }
  0xc8   : > { %v1241_v8 = vpop.eup %1240  ;;  %1242 = vtanh.f32 %v696_v5  ;;  %v658_v9 = vadd.f32 %v657_v7, %v568_v6 }
  0xc9   : > { %765 = vst.msk [vmem:[%s1486_s5 + $0x10] sm:$0xff] %vm762_vm0, %v1241_v8 }
  0xca   : > { %1244 = vtanh.f32 %v658_v9 }
  0xcc   : > { %v608_v10 = vpop.f32.mrf.mxu2 }
  0xcd   : > { %v697_v11 = vpop.f32.mrf.mxu3 }
  0xce   : > { %v1243_v12 = vpop.eup %1242  ;;  %v698_v13 = vadd.f32 %v697_v11, %v608_v10  ;;  %v571_v14 = vpop.f32.mrf.mxu0 }
  0xcf   : > { %781 = vst.msk [vmem:[%s1486_s5 + $0x90] sm:$0xff] %vm762_vm0, %v1243_v12  ;;  %v660_v15 = vpop.f32.mrf.mxu1 }
  0xd0   : > { %v1245_v16 = vpop.eup %1244  ;;  %1246 = vtanh.f32 %v698_v13  ;;  %v661_v17 = vadd.f32 %v660_v15, %v571_v14 }
  0xd1   : > { %766 = vst.msk [vmem:[%s1486_s5 + $0x18] sm:$0xff] %vm762_vm0, %v1245_v16 }
  0xd2   : > { %1248 = vtanh.f32 %v661_v17 }
  0xd4   : > { %v611_v18 = vpop.f32.mrf.mxu2 }
  0xd5   : > { %v700_v19 = vpop.f32.mrf.mxu3 }
  0xd6   : > { %v1247_v20 = vpop.eup %1246  ;;  %v701_v21 = vadd.f32 %v700_v19, %v611_v18  ;;  %v573_v22 = vpop.f32.mrf.mxu0 }
  0xd7   : > { %782 = vst.msk [vmem:[%s1486_s5 + $0x98] sm:$0xff] %vm762_vm0, %v1247_v20  ;;  %v662_v23 = vpop.f32.mrf.mxu1 }
  0xd8   : > { %v1249_v24 = vpop.eup %1248  ;;  %1250 = vtanh.f32 %v701_v21  ;;  %v663_v25 = vadd.f32 %v662_v23, %v573_v22 }
  0xd9   : > { %767 = vst.msk [vmem:[%s1486_s5 + $0x20] sm:$0xff] %vm762_vm0, %v1249_v24 }
  0xda   : > { %1252 = vtanh.f32 %v663_v25 }
  0xdc   : > { %v613_v26 = vpop.f32.mrf.mxu2 }
  0xdd   : > { %v702_v27 = vpop.f32.mrf.mxu3 }
  0xde   : > { %v1251_v28 = vpop.eup %1250  ;;  %v703_v29 = vadd.f32 %v702_v27, %v613_v26  ;;  %v576_v30 = vpop.f32.mrf.mxu0 }
  0xdf   : > { %783 = vst.msk [vmem:[%s1486_s5 + $0xa0] sm:$0xff] %vm762_vm0, %v1251_v28  ;;  %v665_v31 = vpop.f32.mrf.mxu1 }
  0xe0   : > { %v1253_v32 = vpop.eup %1252  ;;  %1254 = vtanh.f32 %v703_v29  ;;  %v666_v33 = vadd.f32 %v665_v31, %v576_v30 }
  0xe1   : > { %768 = vst.msk [vmem:[%s1486_s5 + $0x28] sm:$0xff] %vm762_vm0, %v1253_v32 }
  0xe2   : > { %1256 = vtanh.f32 %v666_v33 }
  0xe4   : > { %v616_v34 = vpop.f32.mrf.mxu2 }
  0xe5   : > { %v705_v35 = vpop.f32.mrf.mxu3 }
  0xe6   : > { %v1255_v36 = vpop.eup %1254  ;;  %v706_v37 = vadd.f32 %v705_v35, %v616_v34  ;;  %v578_v38 = vpop.f32.mrf.mxu0 }
  0xe7   : > { %784 = vst.msk [vmem:[%s1486_s5 + $0xa8] sm:$0xff] %vm762_vm0, %v1255_v36  ;;  %v667_v39 = vpop.f32.mrf.mxu1 }
  0xe8   : > { %v1257_v40 = vpop.eup %1256  ;;  %1258 = vtanh.f32 %v706_v37  ;;  %v668_v41 = vadd.f32 %v667_v39, %v578_v38 }
  0xe9   : > { %769 = vst.msk [vmem:[%s1486_s5 + $0x30] sm:$0xff] %vm762_vm0, %v1257_v40 }
  0xea   : > { %1260 = vtanh.f32 %v668_v41 }
  0xec   : > { %v618_v42 = vpop.f32.mrf.mxu2 }
  0xed   : > { %v707_v43 = vpop.f32.mrf.mxu3 }
  0xee   : > { %v1259_v44 = vpop.eup %1258  ;;  %v708_v45 = vadd.f32 %v707_v43, %v618_v42  ;;  %v581_v46 = vpop.f32.mrf.mxu0 }
  0xef   : > { %785 = vst.msk [vmem:[%s1486_s5 + $0xb0] sm:$0xff] %vm762_vm0, %v1259_v44  ;;  %v670_v47 = vpop.f32.mrf.mxu1 }
  0xf0   : > { %v1261_v48 = vpop.eup %1260  ;;  %1262 = vtanh.f32 %v708_v45  ;;  %v671_v49 = vadd.f32 %v670_v47, %v581_v46 }
  0xf1   : > { %770 = vst.msk [vmem:[%s1486_s5 + $0x38] sm:$0xff] %vm762_vm0, %v1261_v48 }
  0xf2   : > { %1264 = vtanh.f32 %v671_v49 }
  0xf4   : > { %v621_v50 = vpop.f32.mrf.mxu2 }
  0xf5   : > { %v710_v51 = vpop.f32.mrf.mxu3 }
  0xf6   : > { %v1263_v52 = vpop.eup %1262  ;;  %v711_v53 = vadd.f32 %v710_v51, %v621_v50  ;;  %v583_v54 = vpop.f32.mrf.mxu0 }
  0xf7   : > { %786 = vst.msk [vmem:[%s1486_s5 + $0xb8] sm:$0xff] %vm762_vm0, %v1263_v52  ;;  %v672_v55 = vpop.f32.mrf.mxu1 }
  0xf8   : > { %v1265_v56 = vpop.eup %1264  ;;  %1266 = vtanh.f32 %v711_v53  ;;  %v673_v57 = vadd.f32 %v672_v55, %v583_v54 }
  0xf9   : > { %771 = vst.msk [vmem:[%s1486_s5 + $0x40] sm:$0xff] %vm762_vm0, %v1265_v56 }
  0xfa   : > { %1268 = vtanh.f32 %v673_v57 }
  0xfc   : > { %v623_v58 = vpop.f32.mrf.mxu2 }
  0xfd   : > { %v712_v59 = vpop.f32.mrf.mxu3 }
  0xfe   : > { %v1267_v60 = vpop.eup %1266  ;;  %v713_v61 = vadd.f32 %v712_v59, %v623_v58  ;;  %v586_v62 = vpop.f32.mrf.mxu0 }
  0xff   : > { %787 = vst.msk [vmem:[%s1486_s5 + $0xc0] sm:$0xff] %vm762_vm0, %v1267_v60  ;;  %v675_v63 = vpop.f32.mrf.mxu1 }
 0x100   : > { %v1269_v0 = vpop.eup %1268  ;;  %1270 = vtanh.f32 %v713_v61  ;;  %v676_v1 = vadd.f32 %v675_v63, %v586_v62 }
 0x101   : > { %772 = vst.msk [vmem:[%s1486_s5 + $0x48] sm:$0xff] %vm762_vm0, %v1269_v0 }
 0x102   : > { %1272 = vtanh.f32 %v676_v1 }
 0x104   : > { %v626_v2 = vpop.f32.mrf.mxu2 }
 0x105   : > { %v715_v3 = vpop.f32.mrf.mxu3 }
 0x106   : > { %v1271_v4 = vpop.eup %1270  ;;  %v716_v5 = vadd.f32 %v715_v3, %v626_v2  ;;  %v588_v6 = vpop.f32.mrf.mxu0 }
 0x107   : > { %788 = vst.msk [vmem:[%s1486_s5 + $0xc8] sm:$0xff] %vm762_vm0, %v1271_v4  ;;  %v677_v7 = vpop.f32.mrf.mxu1 }
 0x108   : > { %v1273_v8 = vpop.eup %1272  ;;  %1274 = vtanh.f32 %v716_v5  ;;  %v678_v9 = vadd.f32 %v677_v7, %v588_v6 }
 0x109   : > { %773 = vst.msk [vmem:[%s1486_s5 + $0x50] sm:$0xff] %vm762_vm0, %v1273_v8 }
 0x10a   : > { %1276 = vtanh.f32 %v678_v9 }
 0x10c   : > { %v628_v10 = vpop.f32.mrf.mxu2 }
 0x10d   : > { %v717_v11 = vpop.f32.mrf.mxu3 }
 0x10e   : > { %v1275_v12 = vpop.eup %1274  ;;  %v718_v13 = vadd.f32 %v717_v11, %v628_v10  ;;  %v591_v14 = vpop.f32.mrf.mxu0 }
 0x10f   : > { %789 = vst.msk [vmem:[%s1486_s5 + $0xd0] sm:$0xff] %vm762_vm0, %v1275_v12  ;;  %v680_v15 = vpop.f32.mrf.mxu1 }
 0x110   : > { %v1277_v16 = vpop.eup %1276  ;;  %1278 = vtanh.f32 %v718_v13  ;;  %v681_v17 = vadd.f32 %v680_v15, %v591_v14 }
 0x111   : > { %774 = vst.msk [vmem:[%s1486_s5 + $0x58] sm:$0xff] %vm762_vm0, %v1277_v16 }
 0x112   : > { %1280 = vtanh.f32 %v681_v17 }
 0x114   : > { %v631_v18 = vpop.f32.mrf.mxu2 }
 0x115   : > { %v720_v19 = vpop.f32.mrf.mxu3 }
 0x116   : > { %v1279_v20 = vpop.eup %1278  ;;  %v721_v21 = vadd.f32 %v720_v19, %v631_v18  ;;  %v593_v22 = vpop.f32.mrf.mxu0 }
 0x117   : > { %790 = vst.msk [vmem:[%s1486_s5 + $0xd8] sm:$0xff] %vm762_vm0, %v1279_v20  ;;  %v682_v23 = vpop.f32.mrf.mxu1 }
 0x118   : > { %v1281_v24 = vpop.eup %1280  ;;  %1282 = vtanh.f32 %v721_v21  ;;  %v683_v25 = vadd.f32 %v682_v23, %v593_v22 }
 0x119   : > { %775 = vst.msk [vmem:[%s1486_s5 + $0x60] sm:$0xff] %vm762_vm0, %v1281_v24 }
 0x11a   : > { %1284 = vtanh.f32 %v683_v25 }
 0x11c   : > { %v633_v26 = vpop.f32.mrf.mxu2 }
 0x11d   : > { %v722_v27 = vpop.f32.mrf.mxu3 }
 0x11e   : > { %v1283_v28 = vpop.eup %1282  ;;  %v723_v29 = vadd.f32 %v722_v27, %v633_v26  ;;  %v596_v30 = vpop.f32.mrf.mxu0 }
 0x11f   : > { %791 = vst.msk [vmem:[%s1486_s5 + $0xe0] sm:$0xff] %vm762_vm0, %v1283_v28  ;;  %v685_v31 = vpop.f32.mrf.mxu1 }
 0x120   : > { %v1285_v32 = vpop.eup %1284  ;;  %1286 = vtanh.f32 %v723_v29  ;;  %v686_v33 = vadd.f32 %v685_v31, %v596_v30 }
 0x121   : > { %776 = vst.msk [vmem:[%s1486_s5 + $0x68] sm:$0xff] %vm762_vm0, %v1285_v32 }
 0x122   : > { %1288 = vtanh.f32 %v686_v33 }
 0x124   : > { %v636_v34 = vpop.f32.mrf.mxu2 }
 0x125   : > { %v725_v35 = vpop.f32.mrf.mxu3 }
 0x126   : > { %v1287_v36 = vpop.eup %1286  ;;  %v726_v37 = vadd.f32 %v725_v35, %v636_v34  ;;  %v598_v38 = vpop.f32.mrf.mxu0 }
 0x127   : > { %792 = vst.msk [vmem:[%s1486_s5 + $0xe8] sm:$0xff] %vm762_vm0, %v1287_v36  ;;  %v687_v39 = vpop.f32.mrf.mxu1 }
 0x128   : > { %v1289_v40 = vpop.eup %1288  ;;  %1290 = vtanh.f32 %v726_v37  ;;  %v688_v41 = vadd.f32 %v687_v39, %v598_v38 }
 0x129   : > { %777 = vst.msk [vmem:[%s1486_s5 + $0x70] sm:$0xff] %vm762_vm0, %v1289_v40 }
 0x12a   : > { %1292 = vtanh.f32 %v688_v41 }
 0x12c   : > { %v638_v42 = vpop.f32.mrf.mxu2 }
 0x12d   : > { %v727_v43 = vpop.f32.mrf.mxu3 }
 0x12e   : > { %v1291_v44 = vpop.eup %1290  ;;  %v728_v45 = vadd.f32 %v727_v43, %v638_v42 }
 0x12f   : > { %793 = vst.msk [vmem:[%s1486_s5 + $0xf0] sm:$0xff] %vm762_vm0, %v1291_v44 }
 0x130   : > { %v1293_v46 = vpop.eup %1292  ;;  %1294 = vtanh.f32 %v728_v45 }
 0x131   : > { %778 = vst.msk [vmem:[%s1486_s5 + $0x78] sm:$0xff] %vm762_vm0, %v1293_v46 }
 0x136   : > { %v1295_v47 = vpop.eup %1294 }
 0x137   : > { %794 = vst.msk [vmem:[%s1486_s5 + $0xf8] sm:$0xff] %vm762_vm0, %v1295_v47 }
 0x138 PF: > { %s12_s13 = sadd.s32 1, %s1334_s13   ;;  %s1570_s9 = smov %s1326_s11 }
 0x139   : > { %p9_p7 = scmp.ge.s32.totalorder %s12_s13, 34   ;;  %s1571_s10 = smov %s1330_s12 }
 0x13a   : > { %s1572_s11 = smov %s1575_s14  ;;  %s1573_s12 = smov %s1579_s15 }
 0x13b   :  { %11 = sbr.rel (!%p9_p7) target bundleno = 3 (0x3), region = 61 }

</bundles_post_ra>
